<compile_context>
chip_gen: v7x
topology: tpu7x:2x2x1
jax: 0.10.0
libtpu: 0.0.40
codegen_flags: <defaults>
</compile_context>

<pallas_src>
import functools
import math

import jax
import jax.numpy as jnp
from jax.experimental import pallas as pl
from jax.experimental.pallas import tpu as pltpu


def _full_spec(shape):
    # Whole-array block (no grid): index_map takes no args, returns block (0,...).
    return pl.BlockSpec(shape, lambda: (0,) * len(shape))


# ----------------------- Pallas kernels -----------------------

def _bmm_bias_kernel(a_ref, w_ref, b_ref, o_ref, *, relu):
    """One (branch, m-tile, n-tile) step: (tm,K) @ (K,tn) + bias [+ ReLU]."""
    y = jnp.dot(a_ref[0, :, :], w_ref[0, :, :],
                preferred_element_type=jnp.float32)     # bf16 x bf16 -> f32 (MXU)
    y = y + b_ref[0, :, :]                               # f32 epilogue on VPU
    if relu:
        y = jnp.maximum(y, 0.0)
    o_ref[0, :, :] = y.astype(o_ref.dtype)


def batched_matmul_bias(a, w, b, *, relu, out_dtype, tile_m=None, tile_n=None):
    """a: (G,M,K) bf16, w: (G,K,N) bf16, b: (G,1,N) f32 -> (G,M,N) out_dtype.

    Grid = (branch, m-tile, n-tile), all "parallel" (shards across the two v7x
    TensorCores). Tiling M/N gives Pallas double-buffered activation / weight
    streams so DMA overlaps MXU work (fc1 is bandwidth-bound on weight bytes).
    K is kept whole: 3136 is not a multiple of 128 and the per-step weight
    block at tn=256 is already only 1.6 MB, which pipelines fine.
    """
    G, M, K = a.shape
    Gw, Kw, N = w.shape
    assert G == Gw and K == Kw and b.shape == (G, 1, N)
    tm = tile_m if tile_m is not None else M
    tn = tile_n if tile_n is not None else N
    assert M % tm == 0 and N % tn == 0

    return pl.pallas_call(
        functools.partial(_bmm_bias_kernel, relu=relu),
        out_shape=jax.ShapeDtypeStruct((G, M, N), out_dtype),
        grid_spec=pltpu.PrefetchScalarGridSpec(
            num_scalar_prefetch=0,
            grid=(G, M // tm, N // tn),
            in_specs=[
                pl.BlockSpec((1, tm, K), lambda g, i, j: (g, i, 0)),
                pl.BlockSpec((1, K, tn), lambda g, i, j: (g, 0, j)),
                pl.BlockSpec((1, 1, tn), lambda g, i, j: (g, 0, j)),
            ],
            out_specs=pl.BlockSpec((1, tm, tn), lambda g, i, j: (g, i, j)),
        ),
        compiler_params=pltpu.CompilerParams(
            dimension_semantics=("parallel", "parallel", "parallel")),
    )(a, w, b)


def _fc2_avg_kernel(a_ref, w_ref, b_ref, o_ref):
    """Accumulate each branch's fc2 output into the resident (B,10) output; /3 at end."""
    g = pl.program_id(0)

    @pl.when(g == 0)
    def _():
        o_ref[...] = jnp.zeros_like(o_ref)

    y = jnp.dot(a_ref[0, :, :], w_ref[0, :, :],
                preferred_element_type=jnp.float32) + b_ref[0, :, :]
    o_ref[...] += y

    @pl.when(g == pl.num_programs(0) - 1)
    def _():
        o_ref[...] = o_ref[...] * (1.0 / 3.0)


def fc2_and_average(h, w, b):
    """h: (3,B,K) bf16, w: (3,K,10) bf16, b: (3,1,10) f32 -> (B,10) f32."""
    G, B, K = h.shape
    Gw, Kw, N = w.shape
    assert G == Gw and K == Kw
    return pl.pallas_call(
        _fc2_avg_kernel,
        out_shape=jax.ShapeDtypeStruct((B, N), jnp.float32),
        grid_spec=pltpu.PrefetchScalarGridSpec(
            num_scalar_prefetch=0,
            grid=(G,),
            in_specs=[
                pl.BlockSpec((1, B, K), lambda g: (g, 0, 0)),
                pl.BlockSpec((1, K, N), lambda g: (g, 0, 0)),
                pl.BlockSpec((1, 1, N), lambda g: (g, 0, 0)),
            ],
            out_specs=pl.BlockSpec((B, N), lambda g: (0, 0)),  # resident accumulator
        ),
        compiler_params=pltpu.CompilerParams(
            dimension_semantics=("arbitrary",)),
    )(h, w, b)


def _maxpool_kernel(a_ref, b_ref, o_ref):
    # a/b: (R, 2, W/2, C) = even-W / odd-W columns, with H grouped in pairs on
    # axis 1. W-pool = elementwise max of the two inputs; H-pool = max over the
    # leading pair axis (plain vreg-wise max, no cross-lane/sublane work).
    m = jnp.maximum(a_ref[...].astype(jnp.float32),
                    b_ref[...].astype(jnp.float32))
    o_ref[...] = jnp.max(m, axis=1).astype(o_ref.dtype)


def maxpool2x2(y):
    """y: (..., H, W, C) -> (..., H//2, W//2, C), 2x2 / stride-2 max pool."""
    *lead, H, W, C = y.shape
    ya = y[..., 0::2, :]                      # even W columns
    yb = y[..., 1::2, :]                      # odd  W columns
    R = math.prod(lead) * (H // 2)
    ya = ya.reshape(R, 2, W // 2, C)          # free reshape (row-major)
    yb = yb.reshape(R, 2, W // 2, C)
    out = pl.pallas_call(
        _maxpool_kernel,
        out_shape=jax.ShapeDtypeStruct((R, W // 2, C), y.dtype),
        in_specs=[_full_spec((R, 2, W // 2, C))] * 2,
        out_specs=_full_spec((R, W // 2, C)),
    )(ya, yb)
    return out.reshape(*lead, H // 2, W // 2, C)


# ----------------------- JAX glue -----------------------

def im2col(x, k, pad):
    """x: (B,H,W,C) -> (B*H*W, k*k*C). Patch feature order = (kh, kw, cin)."""
    B, H, W, C = x.shape
    xp = jnp.pad(x, ((0, 0), (pad, pad), (pad, pad), (0, 0)))
    patches = []
    for dh in range(k):
        for dw in range(k):
            patches.append(xp[:, dh:dh + H, dw:dw + W, :])
    p = jnp.stack(patches, axis=3)                       # (B, H, W, k*k, C)
    return p.reshape(B * H * W, k * k * C)


def prepare_params(branch_params):
    """Convert 3 PyTorch-layout param dicts into stacked, matmul-ready bf16
    weights. Called ONCE outside jit (no per-forward transposes)."""
    def conv_w(w):  # (Cout, Cin, 5, 5) -> (25*Cin, Cout) with (kh,kw,cin) rows
        cout, cin, kh, kw = w.shape
        return jnp.transpose(w, (2, 3, 1, 0)).reshape(kh * kw * cin, cout)

    # conv1: fuse branches along Cout (3*32=96), zero-pad to 128 lanes.
    w1 = jnp.concatenate([conv_w(p["w1"]) for p in branch_params], axis=1)  # (25, 96)
    w1 = jnp.pad(w1, ((0, 0), (0, 32))).astype(jnp.bfloat16)[None]          # (1, 25, 128)
    b1 = jnp.concatenate([p["b1"] for p in branch_params])                  # (96,)
    b1 = jnp.pad(b1, (0, 32)).astype(jnp.float32).reshape(1, 1, 128)

    w2 = jnp.stack([conv_w(p["w2"]) for p in branch_params]).astype(jnp.bfloat16)   # (3, 800, 64)
    b2 = jnp.stack([p["b2"] for p in branch_params]).astype(jnp.float32).reshape(3, 1, 64)

    # fc1: (out,in) -> (in,out) once; pad out 1000 -> 1024 for 256-wide N tiles.
    fc1_w = jnp.stack([jnp.pad(p["fc1_w"].T, ((0, 0), (0, 24)))
                       for p in branch_params]).astype(jnp.bfloat16)        # (3, 3136, 1024)
    fc1_b = jnp.stack([jnp.pad(p["fc1_b"], (0, 24))
                       for p in branch_params]).astype(jnp.float32).reshape(3, 1, 1024)

    # fc2: (out,in) -> (in,out); pad in 1000 -> 1024 (matches fc1's padded outputs,
    # padded rows are zero so the result is unchanged).
    fc2_w = jnp.stack([jnp.pad(p["fc2_w"].T, ((0, 24), (0, 0)))
                       for p in branch_params]).astype(jnp.bfloat16)        # (3, 1024, 10)
    fc2_b = jnp.stack([p["fc2_b"] for p in branch_params]).astype(jnp.float32).reshape(3, 1, 10)

    return {"w1": w1, "b1": b1, "w2": w2, "b2": b2,
            "fc1_w": fc1_w, "fc1_b": fc1_b, "fc2_w": fc2_w, "fc2_b": fc2_b}


def triplenet_forward(x_nchw, prep):
    """x_nchw: (B,1,28,28) f32 -> (B,10) f32 == (m1(x)+m2(x)+m3(x)) / 3."""
    B = x_nchw.shape[0]
    x = jnp.transpose(x_nchw, (0, 2, 3, 1))                      # NCHW -> NHWC

    # --- layer1: all 3 branches fused (shared im2col, Cout 96 padded to 128) ---
    cols1 = im2col(x, 5, 2).astype(jnp.bfloat16)                 # (B*784, 25)
    M1 = cols1.shape[0]
    tm1 = M1 // 4 if M1 % 32 == 0 else None                      # 4 parallel M tiles
    y1 = batched_matmul_bias(cols1[None], prep["w1"], prep["b1"],
                             relu=True, out_dtype=jnp.bfloat16,
                             tile_m=tm1)                         # (1, B*784, 128)
    p1 = maxpool2x2(y1.reshape(B, 28, 28, 128))                  # (B,14,14,128); lanes 96..127 are 0

    # --- layer2: one pallas_call, parallel branch grid axis ---
    # TODO(synk): conv2 still materializes a 25x im2col in HBM; a shifted-matmul
    # kernel (grid over the 25 taps) would avoid that at larger batch sizes.
    cols2 = jnp.stack([im2col(p1[..., 32 * g:32 * (g + 1)], 5, 2)
                       for g in range(3)])                       # (3, B*196, 800) bf16
    y2 = batched_matmul_bias(cols2, prep["w2"], prep["b2"],
                             relu=True, out_dtype=jnp.bfloat16)  # (3, B*196, 64)
    p2 = maxpool2x2(y2.reshape(3, B, 14, 14, 64))                # (3, B, 7, 7, 64)

    # PyTorch flattens (C,H,W): transpose to channel-major before reshape.
    flat = jnp.transpose(p2, (0, 1, 4, 2, 3)).reshape(3, B, 7 * 7 * 64)   # (3, B, 3136)

    # TODO(synk): nn.Dropout() is identity at inference; training-mode dropout
    # is not implemented.
    # NOTE: reference ConvNet has NO activation between fc1 and fc2.
    h1 = batched_matmul_bias(flat, prep["fc1_w"], prep["fc1_b"],
                             relu=False, out_dtype=jnp.bfloat16,
                             tile_n=256)                         # (3, B, 1024)
    return fc2_and_average(h1, prep["fc2_w"], prep["fc2_b"])     # (B, 10) f32


def init_convnet_params(key):
    ks = jax.random.split(key, 8)

    def u(k, shape, fan_in):
        bound = 1.0 / jnp.sqrt(jnp.float32(fan_in))
        return jax.random.uniform(k, shape, jnp.float32, -bound, bound)

    return {
        "w1": u(ks[0], (32, 1, 5, 5), 1 * 25),
        "b1": u(ks[1], (32,), 1 * 25),
        "w2": u(ks[2], (64, 32, 5, 5), 32 * 25),
        "b2": u(ks[3], (64,), 32 * 25),
        "fc1_w": u(ks[4], (1000, 3136), 3136),   # PyTorch Linear: (out, in)
        "fc1_b": u(ks[5], (1000,), 3136),
        "fc2_w": u(ks[6], (10, 1000), 1000),
        "fc2_b": u(ks[7], (10,), 1000),
    }


if __name__ == "__main__":
    key = jax.random.PRNGKey(0)
    kx, k1, k2, k3 = jax.random.split(key, 4)
    # fc1 expects 7*7*64 features, so spatial must be 28x28 with 1 channel (MNIST).
    x = jax.random.normal(kx, (2, 1, 28, 28), jnp.float32)
    branch_params = [init_convnet_params(k) for k in (k1, k2, k3)]

    prep = prepare_params(branch_params)         # once, outside jit
    fwd = jax.jit(triplenet_forward)
    out = jax.block_until_ready(fwd(x, prep))
    assert out.shape == (2, 10) and out.dtype == jnp.float32
    print("KERNEL_OK")
</pallas_src>

<mosaic_0001>
module attributes {stable_mosaic.version = 11 : i64} {
  func.func @_bmm_bias_kernel(%arg0: i32, %arg1: i32, %arg2: i32, %arg3: memref<1x392x25xbf16, #tpu.memory_space<vmem>>, %arg4: memref<1x25x128xbf16, #tpu.memory_space<vmem>>, %arg5: memref<1x1x128xf32, #tpu.memory_space<vmem>>, %arg6: memref<1x392x128xbf16, #tpu.memory_space<vmem>>) attributes {dimension_semantics = [#tpu.dimension_semantics<parallel>, #tpu.dimension_semantics<parallel>, #tpu.dimension_semantics<parallel>], iteration_bounds = array<i64: 1, 4, 1>, scalar_prefetch = 0 : i64, scratch_operands = 0 : i64, tpu.core_type = #tpu.core_type<tc>, window_params = [{transform_indices = @transform_0, window_bounds = array<i64: 1, 392, 25>}, {transform_indices = @transform_1, window_bounds = array<i64: 1, 25, 128>}, {transform_indices = @transform_2, window_bounds = array<i64: 1, 1, 128>}, {transform_indices = @transform_3, window_bounds = array<i64: 1, 392, 128>}]} {
    %c0 = arith.constant 0 : index
    %c0_0 = arith.constant 0 : index
    %c0_1 = arith.constant 0 : index
    %0 = vector.load %arg3[%c0, %c0_0, %c0_1] : memref<1x392x25xbf16, #tpu.memory_space<vmem>>, vector<1x392x25xbf16>
    %1 = vector.shape_cast %0 : vector<1x392x25xbf16> to vector<392x25xbf16>
    %c0_2 = arith.constant 0 : index
    %c0_3 = arith.constant 0 : index
    %c0_4 = arith.constant 0 : index
    %2 = vector.load %arg4[%c0_2, %c0_3, %c0_4] : memref<1x25x128xbf16, #tpu.memory_space<vmem>>, vector<1x25x128xbf16>
    %3 = vector.shape_cast %2 : vector<1x25x128xbf16> to vector<25x128xbf16>
    %cst = arith.constant dense<0.000000e+00> : vector<392x128xf32>
    %4 = tpu.matmul %1, %3, %cst {dimension_numbers = #tpu.dot_dimension_numbers<[1], [0], [0], [1], [0, 0, 1, 1], [], []>} : vector<392x25xbf16>, vector<25x128xbf16>, vector<392x128xf32> -> vector<392x128xf32>
    %c0_5 = arith.constant 0 : index
    %c0_6 = arith.constant 0 : index
    %c0_7 = arith.constant 0 : index
    %5 = vector.load %arg5[%c0_5, %c0_6, %c0_7] : memref<1x1x128xf32, #tpu.memory_space<vmem>>, vector<1x1x128xf32>
    %6 = vector.shape_cast %5 : vector<1x1x128xf32> to vector<1x128xf32>
    %7 = vector.broadcast %6 : vector<1x128xf32> to vector<392x128xf32>
    %8 = arith.addf %4, %7 : vector<392x128xf32>
    %cst_8 = arith.constant 0.000000e+00 : f32
    %9 = vector.broadcast %cst_8 : f32 to vector<392x128xf32>
    %10 = arith.maximumf %8, %9 : vector<392x128xf32>
    %11 = arith.truncf %10 : vector<392x128xf32> to vector<392x128xbf16>
    %c0_9 = arith.constant 0 : index
    %c0_10 = arith.constant 0 : index
    %c0_11 = arith.constant 0 : index
    %12 = vector.load %arg6[%c0_9, %c0_10, %c0_11] : memref<1x392x128xbf16, #tpu.memory_space<vmem>>, vector<1x392x128xbf16>
    %13 = vector.shape_cast %12 : vector<1x392x128xbf16> to vector<392x128xbf16>
    %14 = vector.shape_cast %11 : vector<392x128xbf16> to vector<1x392x128xbf16>
    tpu.vector_store %arg6[%c0_9, %c0_10, %c0_11], %14 {strides = array<i32>} : memref<1x392x128xbf16, #tpu.memory_space<vmem>>, vector<1x392x128xbf16>,
    return
  }
  func.func @transform_0(%arg0: i32, %arg1: i32, %arg2: i32) -> (i32, i32, i32) {
    %c0_i32 = arith.constant 0 : i32
    %c0_i32_0 = arith.constant 0 : i32
    return %arg0, %arg1, %c0_i32 : i32, i32, i32
  }
  func.func @transform_1(%arg0: i32, %arg1: i32, %arg2: i32) -> (i32, i32, i32) {
    %c0_i32 = arith.constant 0 : i32
    %c0_i32_0 = arith.constant 0 : i32
    return %arg0, %c0_i32, %arg2 : i32, i32, i32
  }
  func.func @transform_2(%arg0: i32, %arg1: i32, %arg2: i32) -> (i32, i32, i32) {
    %c0_i32 = arith.constant 0 : i32
    %c0_i32_0 = arith.constant 0 : i32
    return %arg0, %c0_i32, %arg2 : i32, i32, i32
  }
  func.func @transform_3(%arg0: i32, %arg1: i32, %arg2: i32) -> (i32, i32, i32) {
    %c0_i32 = arith.constant 0 : i32
    return %arg0, %arg1, %arg2 : i32, i32, i32
  }
}

module attributes {stable_mosaic.version = 11 : i64} {
  func.func @_maxpool_kernel(%arg0: memref<28x2x14x128xbf16, #tpu.memory_space<vmem>>, %arg1: memref<28x2x14x128xbf16, #tpu.memory_space<vmem>>, %arg2: memref<28x14x128xbf16, #tpu.memory_space<vmem>>) attributes {dimension_semantics = [], scalar_prefetch = 0 : i64, scratch_operands = 0 : i64, tpu.core_type = #tpu.core_type<tc>} {
    %c0 = arith.constant 0 : index
    %c0_0 = arith.constant 0 : index
    %c0_1 = arith.constant 0 : index
    %c0_2 = arith.constant 0 : index
    %0 = vector.load %arg0[%c0, %c0_0, %c0_1, %c0_2] : memref<28x2x14x128xbf16, #tpu.memory_space<vmem>>, vector<28x2x14x128xbf16>
    %1 = arith.extf %0 : vector<28x2x14x128xbf16> to vector<28x2x14x128xf32>
    %c0_3 = arith.constant 0 : index
    %c0_4 = arith.constant 0 : index
    %c0_5 = arith.constant 0 : index
    %c0_6 = arith.constant 0 : index
    %2 = vector.load %arg1[%c0_3, %c0_4, %c0_5, %c0_6] : memref<28x2x14x128xbf16, #tpu.memory_space<vmem>>, vector<28x2x14x128xbf16>
    %3 = arith.extf %2 : vector<28x2x14x128xbf16> to vector<28x2x14x128xf32>
    %4 = arith.maximumf %1, %3 : vector<28x2x14x128xf32>
    %cst = arith.constant dense<0xFF800000> : vector<28x14x128xf32>
    %5 = vector.multi_reduction <maximumf>, %4, %cst [1] : vector<28x2x14x128xf32> to vector<28x14x128xf32>
    %6 = arith.truncf %5 : vector<28x14x128xf32> to vector<28x14x128xbf16>
    %c0_7 = arith.constant 0 : index
    %c0_8 = arith.constant 0 : index
    %c0_9 = arith.constant 0 : index
    %7 = vector.load %arg2[%c0_7, %c0_8, %c0_9] : memref<28x14x128xbf16, #tpu.memory_space<vmem>>, vector<28x14x128xbf16>
    tpu.vector_store %arg2[%c0_7, %c0_8, %c0_9], %6 {strides = array<i32>} : memref<28x14x128xbf16, #tpu.memory_space<vmem>>, vector<28x14x128xbf16>,
    return
  }
}

module attributes {stable_mosaic.version = 11 : i64} {
  func.func @_bmm_bias_kernel(%arg0: i32, %arg1: i32, %arg2: i32, %arg3: memref<1x392x800xbf16, #tpu.memory_space<vmem>>, %arg4: memref<1x800x64xbf16, #tpu.memory_space<vmem>>, %arg5: memref<1x1x64xf32, #tpu.memory_space<vmem>>, %arg6: memref<1x392x64xbf16, #tpu.memory_space<vmem>>) attributes {dimension_semantics = [#tpu.dimension_semantics<parallel>, #tpu.dimension_semantics<parallel>, #tpu.dimension_semantics<parallel>], iteration_bounds = array<i64: 3, 1, 1>, scalar_prefetch = 0 : i64, scratch_operands = 0 : i64, tpu.core_type = #tpu.core_type<tc>, window_params = [{transform_indices = @transform_0, window_bounds = array<i64: 1, 392, 800>}, {transform_indices = @transform_1, window_bounds = array<i64: 1, 800, 64>}, {transform_indices = @transform_2, window_bounds = array<i64: 1, 1, 64>}, {transform_indices = @transform_3, window_bounds = array<i64: 1, 392, 64>}]} {
    %c0 = arith.constant 0 : index
    %c0_0 = arith.constant 0 : index
    %c0_1 = arith.constant 0 : index
    %0 = vector.load %arg3[%c0, %c0_0, %c0_1] : memref<1x392x800xbf16, #tpu.memory_space<vmem>>, vector<1x392x800xbf16>
    %1 = vector.shape_cast %0 : vector<1x392x800xbf16> to vector<392x800xbf16>
    %c0_2 = arith.constant 0 : index
    %c0_3 = arith.constant 0 : index
    %c0_4 = arith.constant 0 : index
    %2 = vector.load %arg4[%c0_2, %c0_3, %c0_4] : memref<1x800x64xbf16, #tpu.memory_space<vmem>>, vector<1x800x64xbf16>
    %3 = vector.shape_cast %2 : vector<1x800x64xbf16> to vector<800x64xbf16>
    %cst = arith.constant dense<0.000000e+00> : vector<392x64xf32>
    %4 = tpu.matmul %1, %3, %cst {dimension_numbers = #tpu.dot_dimension_numbers<[1], [0], [0], [1], [0, 0, 1, 1], [], []>} : vector<392x800xbf16>, vector<800x64xbf16>, vector<392x64xf32> -> vector<392x64xf32>
    %c0_5 = arith.constant 0 : index
    %c0_6 = arith.constant 0 : index
    %c0_7 = arith.constant 0 : index
    %5 = vector.load %arg5[%c0_5, %c0_6, %c0_7] : memref<1x1x64xf32, #tpu.memory_space<vmem>>, vector<1x1x64xf32>
    %6 = vector.shape_cast %5 : vector<1x1x64xf32> to vector<1x64xf32>
    %7 = vector.broadcast %6 : vector<1x64xf32> to vector<392x64xf32>
    %8 = arith.addf %4, %7 : vector<392x64xf32>
    %cst_8 = arith.constant 0.000000e+00 : f32
    %9 = vector.broadcast %cst_8 : f32 to vector<392x64xf32>
    %10 = arith.maximumf %8, %9 : vector<392x64xf32>
    %11 = arith.truncf %10 : vector<392x64xf32> to vector<392x64xbf16>
    %c0_9 = arith.constant 0 : index
    %c0_10 = arith.constant 0 : index
    %c0_11 = arith.constant 0 : index
    %12 = vector.load %arg6[%c0_9, %c0_10, %c0_11] : memref<1x392x64xbf16, #tpu.memory_space<vmem>>, vector<1x392x64xbf16>
    %13 = vector.shape_cast %12 : vector<1x392x64xbf16> to vector<392x64xbf16>
    %14 = vector.shape_cast %11 : vector<392x64xbf16> to vector<1x392x64xbf16>
    tpu.vector_store %arg6[%c0_9, %c0_10, %c0_11], %14 {strides = array<i32>} : memref<1x392x64xbf16, #tpu.memory_space<vmem>>, vector<1x392x64xbf16>,
    return
  }
  func.func @transform_0(%arg0: i32, %arg1: i32, %arg2: i32) -> (i32, i32, i32) {
    %c0_i32 = arith.constant 0 : i32
    %c0_i32_0 = arith.constant 0 : i32
    return %arg0, %arg1, %c0_i32 : i32, i32, i32
  }
  func.func @transform_1(%arg0: i32, %arg1: i32, %arg2: i32) -> (i32, i32, i32) {
    %c0_i32 = arith.constant 0 : i32
    %c0_i32_0 = arith.constant 0 : i32
    return %arg0, %c0_i32, %arg2 : i32, i32, i32
  }
  func.func @transform_2(%arg0: i32, %arg1: i32, %arg2: i32) -> (i32, i32, i32) {
    %c0_i32 = arith.constant 0 : i32
    %c0_i32_0 = arith.constant 0 : i32
    return %arg0, %c0_i32, %arg2 : i32, i32, i32
  }
  func.func @transform_3(%arg0: i32, %arg1: i32, %arg2: i32) -> (i32, i32, i32) {
    %c0_i32 = arith.constant 0 : i32
    return %arg0, %arg1, %arg2 : i32, i32, i32
  }
}

module attributes {stable_mosaic.version = 11 : i64} {
  func.func @_maxpool_kernel(%arg0: memref<42x2x7x64xbf16, #tpu.memory_space<vmem>>, %arg1: memref<42x2x7x64xbf16, #tpu.memory_space<vmem>>, %arg2: memref<42x7x64xbf16, #tpu.memory_space<vmem>>) attributes {dimension_semantics = [], scalar_prefetch = 0 : i64, scratch_operands = 0 : i64, tpu.core_type = #tpu.core_type<tc>} {
    %c0 = arith.constant 0 : index
    %c0_0 = arith.constant 0 : index
    %c0_1 = arith.constant 0 : index
    %c0_2 = arith.constant 0 : index
    %0 = vector.load %arg0[%c0, %c0_0, %c0_1, %c0_2] : memref<42x2x7x64xbf16, #tpu.memory_space<vmem>>, vector<42x2x7x64xbf16>
    %1 = arith.extf %0 : vector<42x2x7x64xbf16> to vector<42x2x7x64xf32>
    %c0_3 = arith.constant 0 : index
    %c0_4 = arith.constant 0 : index
    %c0_5 = arith.constant 0 : index
    %c0_6 = arith.constant 0 : index
    %2 = vector.load %arg1[%c0_3, %c0_4, %c0_5, %c0_6] : memref<42x2x7x64xbf16, #tpu.memory_space<vmem>>, vector<42x2x7x64xbf16>
    %3 = arith.extf %2 : vector<42x2x7x64xbf16> to vector<42x2x7x64xf32>
    %4 = arith.maximumf %1, %3 : vector<42x2x7x64xf32>
    %cst = arith.constant dense<0xFF800000> : vector<42x7x64xf32>
    %5 = vector.multi_reduction <maximumf>, %4, %cst [1] : vector<42x2x7x64xf32> to vector<42x7x64xf32>
    %6 = arith.truncf %5 : vector<42x7x64xf32> to vector<42x7x64xbf16>
    %c0_7 = arith.constant 0 : index
    %c0_8 = arith.constant 0 : index
    %c0_9 = arith.constant 0 : index
    %7 = vector.load %arg2[%c0_7, %c0_8, %c0_9] : memref<42x7x64xbf16, #tpu.memory_space<vmem>>, vector<42x7x64xbf16>
    tpu.vector_store %arg2[%c0_7, %c0_8, %c0_9], %6 {strides = array<i32>} : memref<42x7x64xbf16, #tpu.memory_space<vmem>>, vector<42x7x64xbf16>,
    return
  }
}

module attributes {stable_mosaic.version = 11 : i64} {
  func.func @_bmm_bias_kernel(%arg0: i32, %arg1: i32, %arg2: i32, %arg3: memref<1x2x3136xbf16, #tpu.memory_space<vmem>>, %arg4: memref<1x3136x256xbf16, #tpu.memory_space<vmem>>, %arg5: memref<1x1x256xf32, #tpu.memory_space<vmem>>, %arg6: memref<1x2x256xbf16, #tpu.memory_space<vmem>>) attributes {dimension_semantics = [#tpu.dimension_semantics<parallel>, #tpu.dimension_semantics<parallel>, #tpu.dimension_semantics<parallel>], iteration_bounds = array<i64: 3, 1, 4>, scalar_prefetch = 0 : i64, scratch_operands = 0 : i64, tpu.core_type = #tpu.core_type<tc>, window_params = [{transform_indices = @transform_0, window_bounds = array<i64: 1, 2, 3136>}, {transform_indices = @transform_1, window_bounds = array<i64: 1, 3136, 256>}, {transform_indices = @transform_2, window_bounds = array<i64: 1, 1, 256>}, {transform_indices = @transform_3, window_bounds = array<i64: 1, 2, 256>}]} {
    %c0 = arith.constant 0 : index
    %c0_0 = arith.constant 0 : index
    %c0_1 = arith.constant 0 : index
    %0 = vector.load %arg3[%c0, %c0_0, %c0_1] : memref<1x2x3136xbf16, #tpu.memory_space<vmem>>, vector<1x2x3136xbf16>
    %1 = vector.shape_cast %0 : vector<1x2x3136xbf16> to vector<2x3136xbf16>
    %c0_2 = arith.constant 0 : index
    %c0_3 = arith.constant 0 : index
    %c0_4 = arith.constant 0 : index
    %2 = vector.load %arg4[%c0_2, %c0_3, %c0_4] : memref<1x3136x256xbf16, #tpu.memory_space<vmem>>, vector<1x3136x256xbf16>
    %3 = vector.shape_cast %2 : vector<1x3136x256xbf16> to vector<3136x256xbf16>
    %cst = arith.constant dense<0.000000e+00> : vector<2x256xf32>
    %4 = tpu.matmul %1, %3, %cst {dimension_numbers = #tpu.dot_dimension_numbers<[1], [0], [0], [1], [0, 0, 1, 1], [], []>} : vector<2x3136xbf16>, vector<3136x256xbf16>, vector<2x256xf32> -> vector<2x256xf32>
    %c0_5 = arith.constant 0 : index
    %c0_6 = arith.constant 0 : index
    %c0_7 = arith.constant 0 : index
    %5 = vector.load %arg5[%c0_5, %c0_6, %c0_7] : memref<1x1x256xf32, #tpu.memory_space<vmem>>, vector<1x1x256xf32>
    %6 = vector.shape_cast %5 : vector<1x1x256xf32> to vector<1x256xf32>
    %7 = vector.broadcast %6 : vector<1x256xf32> to vector<2x256xf32>
    %8 = arith.addf %4, %7 : vector<2x256xf32>
    %9 = arith.truncf %8 : vector<2x256xf32> to vector<2x256xbf16>
    %c0_8 = arith.constant 0 : index
    %c0_9 = arith.constant 0 : index
    %c0_10 = arith.constant 0 : index
    %10 = vector.load %arg6[%c0_8, %c0_9, %c0_10] : memref<1x2x256xbf16, #tpu.memory_space<vmem>>, vector<1x2x256xbf16>
    %11 = vector.shape_cast %10 : vector<1x2x256xbf16> to vector<2x256xbf16>
    %12 = vector.shape_cast %9 : vector<2x256xbf16> to vector<1x2x256xbf16>
    tpu.vector_store %arg6[%c0_8, %c0_9, %c0_10], %12 {strides = array<i32>} : memref<1x2x256xbf16, #tpu.memory_space<vmem>>, vector<1x2x256xbf16>,
    return
  }
  func.func @transform_0(%arg0: i32, %arg1: i32, %arg2: i32) -> (i32, i32, i32) {
    %c0_i32 = arith.constant 0 : i32
    %c0_i32_0 = arith.constant 0 : i32
    return %arg0, %arg1, %c0_i32 : i32, i32, i32
  }
  func.func @transform_1(%arg0: i32, %arg1: i32, %arg2: i32) -> (i32, i32, i32) {
    %c0_i32 = arith.constant 0 : i32
    %c0_i32_0 = arith.constant 0 : i32
    return %arg0, %c0_i32, %arg2 : i32, i32, i32
  }
  func.func @transform_2(%arg0: i32, %arg1: i32, %arg2: i32) -> (i32, i32, i32) {
    %c0_i32 = arith.constant 0 : i32
    %c0_i32_0 = arith.constant 0 : i32
    return %arg0, %c0_i32, %arg2 : i32, i32, i32
  }
  func.func @transform_3(%arg0: i32, %arg1: i32, %arg2: i32) -> (i32, i32, i32) {
    %c0_i32 = arith.constant 0 : i32
    return %arg0, %arg1, %arg2 : i32, i32, i32
  }
}

module attributes {stable_mosaic.version = 11 : i64} {
  func.func @_fc2_avg_kernel(%arg0: i32, %arg1: memref<1x2x1024xbf16, #tpu.memory_space<vmem>>, %arg2: memref<1x1024x10xbf16, #tpu.memory_space<vmem>>, %arg3: memref<1x1x10xf32, #tpu.memory_space<vmem>>, %arg4: memref<2x10xf32, #tpu.memory_space<vmem>>) attributes {dimension_semantics = [#tpu.dimension_semantics<arbitrary>], iteration_bounds = array<i64: 3>, scalar_prefetch = 0 : i64, scratch_operands = 0 : i64, tpu.core_type = #tpu.core_type<tc>, window_params = [{transform_indices = @transform_0, window_bounds = array<i64: 1, 2, 1024>}, {transform_indices = @transform_1, window_bounds = array<i64: 1, 1024, 10>}, {transform_indices = @transform_2, window_bounds = array<i64: 1, 1, 10>}, {pipeline_mode = #tpu.pipeline_mode<synchronous>, transform_indices = @transform_3, window_bounds = array<i64: 2, 10>}]} {
    %c0_i32 = arith.constant 0 : i32
    %0 = arith.cmpi eq, %arg0, %c0_i32 : i32
    %1 = arith.extui %0 : i1 to i32
    %c0_i32_0 = arith.constant 0 : i32
    %2 = arith.cmpi ne, %1, %c0_i32_0 : i32
    scf.if %2 {
      %cst_14 = arith.constant 0.000000e+00 : f32
      %18 = vector.broadcast %cst_14 : f32 to vector<2x10xf32>
      %c0_15 = arith.constant 0 : index
      %c0_16 = arith.constant 0 : index
      %19 = vector.load %arg4[%c0_15, %c0_16] : memref<2x10xf32, #tpu.memory_space<vmem>>, vector<2x10xf32>
      tpu.vector_store %arg4[%c0_15, %c0_16], %18 {strides = array<i32>} : memref<2x10xf32, #tpu.memory_space<vmem>>, vector<2x10xf32>,
    } else {
    }
    %c0 = arith.constant 0 : index
    %c0_1 = arith.constant 0 : index
    %c0_2 = arith.constant 0 : index
    %3 = vector.load %arg1[%c0, %c0_1, %c0_2] : memref<1x2x1024xbf16, #tpu.memory_space<vmem>>, vector<1x2x1024xbf16>
    %4 = vector.shape_cast %3 : vector<1x2x1024xbf16> to vector<2x1024xbf16>
    %c0_3 = arith.constant 0 : index
    %c0_4 = arith.constant 0 : index
    %c0_5 = arith.constant 0 : index
    %5 = vector.load %arg2[%c0_3, %c0_4, %c0_5] : memref<1x1024x10xbf16, #tpu.memory_space<vmem>>, vector<1x1024x10xbf16>
    %6 = vector.shape_cast %5 : vector<1x1024x10xbf16> to vector<1024x10xbf16>
    %cst = arith.constant dense<0.000000e+00> : vector<2x10xf32>
    %7 = tpu.matmul %4, %6, %cst {dimension_numbers = #tpu.dot_dimension_numbers<[1], [0], [0], [1], [0, 0, 1, 1], [], []>} : vector<2x1024xbf16>, vector<1024x10xbf16>, vector<2x10xf32> -> vector<2x10xf32>
    %c0_6 = arith.constant 0 : index
    %c0_7 = arith.constant 0 : index
    %c0_8 = arith.constant 0 : index
    %8 = vector.load %arg3[%c0_6, %c0_7, %c0_8] : memref<1x1x10xf32, #tpu.memory_space<vmem>>, vector<1x1x10xf32>
    %9 = vector.shape_cast %8 : vector<1x1x10xf32> to vector<1x10xf32>
    %10 = vector.broadcast %9 : vector<1x10xf32> to vector<2x10xf32>
    %11 = arith.addf %7, %10 : vector<2x10xf32>
    %c0_9 = arith.constant 0 : index
    %c0_10 = arith.constant 0 : index
    %12 = vector.load %arg4[%c0_9, %c0_10] : memref<2x10xf32, #tpu.memory_space<vmem>>, vector<2x10xf32>
    %13 = arith.addf %12, %11 : vector<2x10xf32>
    %c0_11 = arith.constant 0 : index
    %c0_12 = arith.constant 0 : index
    %14 = vector.load %arg4[%c0_11, %c0_12] : memref<2x10xf32, #tpu.memory_space<vmem>>, vector<2x10xf32>
    tpu.vector_store %arg4[%c0_11, %c0_12], %13 {strides = array<i32>} : memref<2x10xf32, #tpu.memory_space<vmem>>, vector<2x10xf32>,
    %c2_i32 = arith.constant 2 : i32
    %15 = arith.cmpi eq, %arg0, %c2_i32 : i32
    %16 = arith.extui %15 : i1 to i32
    %c0_i32_13 = arith.constant 0 : i32
    %17 = arith.cmpi ne, %16, %c0_i32_13 : i32
    scf.if %17 {
      %c0_14 = arith.constant 0 : index
      %c0_15 = arith.constant 0 : index
      %18 = vector.load %arg4[%c0_14, %c0_15] : memref<2x10xf32, #tpu.memory_space<vmem>>, vector<2x10xf32>
      %cst_16 = arith.constant 0.333333343 : f32
      %19 = vector.broadcast %cst_16 : f32 to vector<2x10xf32>
      %20 = arith.mulf %18, %19 : vector<2x10xf32>
      %c0_17 = arith.constant 0 : index
      %c0_18 = arith.constant 0 : index
      %21 = vector.load %arg4[%c0_17, %c0_18] : memref<2x10xf32, #tpu.memory_space<vmem>>, vector<2x10xf32>
      tpu.vector_store %arg4[%c0_17, %c0_18], %20 {strides = array<i32>} : memref<2x10xf32, #tpu.memory_space<vmem>>, vector<2x10xf32>,
    } else {
    }
    return
  }
  func.func @transform_0(%arg0: i32) -> (i32, i32, i32) {
    %c0_i32 = arith.constant 0 : i32
    %c0_i32_0 = arith.constant 0 : i32
    %c0_i32_1 = arith.constant 0 : i32
    return %arg0, %c0_i32, %c0_i32_0 : i32, i32, i32
  }
  func.func @transform_1(%arg0: i32) -> (i32, i32, i32) {
    %c0_i32 = arith.constant 0 : i32
    %c0_i32_0 = arith.constant 0 : i32
    %c0_i32_1 = arith.constant 0 : i32
    return %arg0, %c0_i32, %c0_i32_0 : i32, i32, i32
  }
  func.func @transform_2(%arg0: i32) -> (i32, i32, i32) {
    %c0_i32 = arith.constant 0 : i32
    %c0_i32_0 = arith.constant 0 : i32
    %c0_i32_1 = arith.constant 0 : i32
    return %arg0, %c0_i32, %c0_i32_0 : i32, i32, i32
  }
  func.func @transform_3(%arg0: i32) -> (i32, i32) {
    %c0_i32 = arith.constant 0 : i32
    %c0_i32_0 = arith.constant 0 : i32
    %c0_i32_1 = arith.constant 0 : i32
    return %c0_i32, %c0_i32_0 : i32, i32
  }
}

</mosaic_0001>

<bundles_post_ra>
// kernel: triplenet_forward.6
= control target key start
LH: loop header
LB: loop body
LE: loop exit
PB: predicated region body
PF: predicated region fallthrough
CT: control target
= control target key end

     0   :  { %s1763_s12 = smov 0   ;;  %s1765_s13 = smov 0   ;;  %s1999_s0 = inlined_call_operand.vmem [shape: bf16[1,1568,25], index: 0, kind: input, shape index: {}]   ;;  %s2000_s1 = inlined_call_operand.vmem [shape: bf16[1,25,128], index: 1, kind: input, shape index: {}]   ;;  %s2001_s2 = inlined_call_operand.vmem [shape: f32[1,1,128], index: 2, kind: input, shape index: {}]   ;;  %s2002_s3 = inlined_call_operand.vmem [shape: bf16[1,1568,128], index: 3, kind: output, shape index: {}]  }
   0x1   :  { %s1767_s14 = smov 0  }
   0x2 LB: > { %s28_s15 = sadd.s32 1, %s1734_s13  ;;  %p1228_p0 = scmp.ge.s32.totalorder %s1738_s14, 1  ;;  %s1738_s14 = sphi %s1767_s14, %s13_s14   ;;  %s1734_s13 = sphi %s1765_s13, %s2004_s13   ;;  %s1730_s12 = sphi %s1763_s12, %s2003_s12  }
   0x3   : > { %p30_p1 = scmp.ge.s32.totalorder %s28_s15, 4  ;;  %p195_p2 = scmp.lt.s32.totalorder %s1738_s14, 5 }
   0x5   : > { %s2006_s15 = smov (%p30_p1, %s28_s15), 0  ;;  %p196_p3 = pnand %p1228_p0, %p195_p2 }
   0x6   : > { %v1689_v0 = vld [vmem:[%s2000_s1] sm:$0xff] (!%p196_p3)   ;;  %v1740_v1 = vmov (!%p196_p3), 0.0   ;;  %v1690_v2 = vld [vmem:[%s2000_s1 + $0x8] sm:$0x1f] (!%p196_p3)   ;;  %vm552_vm0 = vcmask (!%p196_p3), 1043456   ;;  %vm553_vm1 = vcmask (!%p196_p3), 1044480  }
   0x7   : > { %199 = sbr.rel (%p196_p3) target bundleno = 335 (0x14f), region = 32  ;;  %1554 = vmatprep.subr.bf16.mxu0 (!%p196_p3), %v1740_v1  ;;  %1658 = vmatprep.subr.bf16.mxu1 (!%p196_p3), %v1740_v1  ;;  %v1741_v3 = vmov (!%p196_p3), 65535   ;;  %vm1742_vm2 = vmmov (!%p196_p3), 0   ;;  %vm476_vm3 = vcmask (!%p196_p3), 203776   ;;  %v1907_v32 = vld [vmem:[%s2001_s2] ss:$0 sm:$0xff] (!%p196_p3) }
   0x8   : > { %1555 = vmatpush3.bf16.msra.mxu0 (!%p196_p3), %v1689_v0  ;;  %1660 = vmatpush3.bf16.msra.mxu1 (!%p196_p3), %v1689_v0  ;;  %s244_s20 = smul.u32 (!%p196_p3), 49, %s1730_s12  ;;  %v554_v4 = vsel (!%p196_p3), %vm552_vm0, 4294967295, %v1741_v3 }
   0x9   : > { %1556 = vmatprep.subr.bf16.mxu0 (!%p196_p3), %v1740_v1  ;;  %1558 = vmatprep.mubr.msk.bf16.mxu0 (!%p196_p3), %vm1742_vm2, %v1740_v1  ;;  %v555_v5 = vsel (!%p196_p3), %vm553_vm1, %v554_v4, 0 }
   0xa   : > { %p247_p4 = scmp.lt.s32.totalorder (!%p196_p3), %s244_s20, 195  ;;  %1659 = vmatprep.subr.bf16.mxu1 (!%p196_p3), %v1740_v1  ;;  %1610 = vmatprep.mubr.msk.bf16.mxu1 (!%p196_p3), %vm1742_vm2, %v1740_v1  ;;  %v557_v6 = vand.u32 (!%p196_p3), %v1690_v2, %v555_v5 }
   0xc   : > { %1557 = vmatpush3.bf16.msra.mxu0 (!%p196_p3), %v557_v6  ;;  %1661 = vmatpush3.bf16.msra.mxu1 (!%p196_p3), %v557_v6 }
   0xe   : > { %s2008_s20 = smov (!%p247_p4, %s244_s20), 195 }
   0xf   : > { %s1229_s21 = sshll.u32 %s2008_s20, 2 }
  0x10   : > { %s1806_s24 = scalar_lea.vmem %s1999_s0, %s1229_s21  ;;  %s1918_s29 = scalar_lea.vmem %s2002_s3, %s1229_s21 }
  0x11   : > { %v1691_v7 = vld [vmem:[%s1806_s24] sm:$0xff]   ;;  %v1692_v8 = vld [vmem:[%s1806_s24 + $0x68] sm:$0xff]   ;;  %v1694_v10 = vld [vmem:[%s1806_s24 + $0x70] sm:$0xff]  }
  0x12   : > { %1559 = vmatmul.mubr.msk.bf16.vlgmr.msra.gmra.mrb[0].mxu0 %vm476_vm3, %v1691_v7  ;;  %1611 = vmatmul.mubr.msk.bf16.vlgmr.msra.gmra.mrb[0].mxu1 %vm476_vm3, %v1692_v8  ;;  %v1693_v9 = vld [vmem:[%s1806_s24 + $0x8] sm:$0xff]   ;;  %v1695_v11 = vld [vmem:[%s1806_s24 + $0x10] sm:$0xff]   ;;  %v1696_v12 = vld [vmem:[%s1806_s24 + $0x78] sm:$0xff]  }
  0x13   : > { %1562 = vmatprep.mubr.msk.bf16.mxu0 %vm1742_vm2, %v1740_v1  ;;  %1614 = vmatprep.mubr.msk.bf16.mxu1 %vm1742_vm2, %v1740_v1  ;;  %v1697_v13 = vld [vmem:[%s1806_s24 + $0x18] sm:$0xff]   ;;  %v1698_v14 = vld [vmem:[%s1806_s24 + $0x80] sm:$0xff]   ;;  %v1700_v16 = vld [vmem:[%s1806_s24 + $0x88] sm:$0xff]  }
  0x14   : > { %v1699_v15 = vld [vmem:[%s1806_s24 + $0x20] sm:$0xff]   ;;  %v1701_v17 = vld [vmem:[%s1806_s24 + $0x28] sm:$0xff]   ;;  %v1702_v18 = vld [vmem:[%s1806_s24 + $0x90] sm:$0xff]  }
  0x15   : > { %v1703_v19 = vld [vmem:[%s1806_s24 + $0x30] sm:$0xff]   ;;  %v1704_v20 = vld [vmem:[%s1806_s24 + $0x98] sm:$0xff]   ;;  %v1706_v22 = vld [vmem:[%s1806_s24 + $0xa0] sm:$0xff]  }
  0x16   : > { %v1705_v21 = vld [vmem:[%s1806_s24 + $0x38] sm:$0xff]   ;;  %v1707_v23 = vld [vmem:[%s1806_s24 + $0x40] sm:$0xff]   ;;  %v1708_v24 = vld [vmem:[%s1806_s24 + $0xa8] sm:$0xff]  }
  0x17   : > { %v1709_v25 = vld [vmem:[%s1806_s24 + $0x48] sm:$0xff]   ;;  %v1710_v26 = vld [vmem:[%s1806_s24 + $0xb0] sm:$0xff]   ;;  %v1712_v28 = vld [vmem:[%s1806_s24 + $0xb8] sm:$0xff]  }
  0x18   : > { %v1711_v27 = vld [vmem:[%s1806_s24 + $0x50] sm:$0xff]   ;;  %v1713_v29 = vld [vmem:[%s1806_s24 + $0x58] sm:$0xff]   ;;  %v1714_v30 = vld [vmem:[%s1806_s24 + $0xc0] ss:$0 sps:$4 sm:$0xff]  }
  0x19   : > { %v1715_v31 = vld [vmem:[%s1806_s24 + $0x60] sm:$0xff]  }
  0x1a   : > { %1563 = vmatmul.mubr.msk.bf16.gmra.mrb[4].mxu0 %vm476_vm3, %v1693_v9  ;;  %1615 = vmatmul.mubr.msk.bf16.gmra.mrb[4].mxu1 %vm476_vm3, %v1694_v10 }
  0x1b   : > { %1566 = vmatprep.mubr.msk.bf16.mxu0 %vm1742_vm2, %v1740_v1  ;;  %1618 = vmatprep.mubr.msk.bf16.mxu1 %vm1742_vm2, %v1740_v1 }
  0x22   : > { %1567 = vmatmul.mubr.msk.bf16.gmra.mrb[8].mxu0 %vm476_vm3, %v1695_v11  ;;  %1619 = vmatmul.mubr.msk.bf16.gmra.mrb[8].mxu1 %vm476_vm3, %v1696_v12 }
  0x23   : > { %1570 = vmatprep.mubr.msk.bf16.mxu0 %vm1742_vm2, %v1740_v1  ;;  %1622 = vmatprep.mubr.msk.bf16.mxu1 %vm1742_vm2, %v1740_v1 }
  0x2a   : > { %1571 = vmatmul.mubr.msk.bf16.gmra.mrb[12].mxu0 %vm476_vm3, %v1697_v13  ;;  %1623 = vmatmul.mubr.msk.bf16.gmra.mrb[12].mxu1 %vm476_vm3, %v1698_v14 }
  0x2b   : > { %1574 = vmatprep.mubr.msk.bf16.mxu0 %vm1742_vm2, %v1740_v1  ;;  %1626 = vmatprep.mubr.msk.bf16.mxu1 %vm1742_vm2, %v1740_v1 }
  0x32   : > { %1575 = vmatmul.mubr.msk.bf16.gmra.mrb[16].mxu0 %vm476_vm3, %v1699_v15  ;;  %1627 = vmatmul.mubr.msk.bf16.gmra.mrb[16].mxu1 %vm476_vm3, %v1700_v16 }
  0x33   : > { %1578 = vmatprep.mubr.msk.bf16.mxu0 %vm1742_vm2, %v1740_v1  ;;  %1630 = vmatprep.mubr.msk.bf16.mxu1 %vm1742_vm2, %v1740_v1 }
  0x3a   : > { %1579 = vmatmul.mubr.msk.bf16.gmra.mrb[20].mxu0 %vm476_vm3, %v1701_v17  ;;  %1631 = vmatmul.mubr.msk.bf16.gmra.mrb[20].mxu1 %vm476_vm3, %v1702_v18 }
  0x3b   : > { %1582 = vmatprep.mubr.msk.bf16.mxu0 %vm1742_vm2, %v1740_v1  ;;  %1634 = vmatprep.mubr.msk.bf16.mxu1 %vm1742_vm2, %v1740_v1 }
  0x42   : > { %1583 = vmatmul.mubr.msk.bf16.gmra.mrb[24].mxu0 %vm476_vm3, %v1703_v19  ;;  %1635 = vmatmul.mubr.msk.bf16.gmra.mrb[24].mxu1 %vm476_vm3, %v1704_v20 }
  0x43   : > { %1586 = vmatprep.mubr.msk.bf16.mxu0 %vm1742_vm2, %v1740_v1  ;;  %1638 = vmatprep.mubr.msk.bf16.mxu1 %vm1742_vm2, %v1740_v1 }
  0x4a   : > { %1587 = vmatmul.mubr.msk.bf16.gmra.mrb[28].mxu0 %vm476_vm3, %v1705_v21  ;;  %1639 = vmatmul.mubr.msk.bf16.gmra.mrb[28].mxu1 %vm476_vm3, %v1706_v22 }
  0x4b   : > { %1590 = vmatprep.mubr.msk.bf16.mxu0 %vm1742_vm2, %v1740_v1  ;;  %1642 = vmatprep.mubr.msk.bf16.mxu1 %vm1742_vm2, %v1740_v1 }
  0x52   : > { %1591 = vmatmul.mubr.msk.bf16.gmra.mrb[32].mxu0 %vm476_vm3, %v1707_v23  ;;  %1643 = vmatmul.mubr.msk.bf16.gmra.mrb[32].mxu1 %vm476_vm3, %v1708_v24 }
  0x53   : > { %1594 = vmatprep.mubr.msk.bf16.mxu0 %vm1742_vm2, %v1740_v1  ;;  %1646 = vmatprep.mubr.msk.bf16.mxu1 %vm1742_vm2, %v1740_v1 }
  0x5a   : > { %1595 = vmatmul.mubr.msk.bf16.gmra.mrb[36].mxu0 %vm476_vm3, %v1709_v25  ;;  %1647 = vmatmul.mubr.msk.bf16.gmra.mrb[36].mxu1 %vm476_vm3, %v1710_v26 }
  0x5b   : > { %1598 = vmatprep.mubr.msk.bf16.mxu0 %vm1742_vm2, %v1740_v1  ;;  %1650 = vmatprep.mubr.msk.bf16.mxu1 %vm1742_vm2, %v1740_v1 }
  0x62   : > { %1599 = vmatmul.mubr.msk.bf16.gmra.mrb[40].mxu0 %vm476_vm3, %v1711_v27  ;;  %1651 = vmatmul.mubr.msk.bf16.gmra.mrb[40].mxu1 %vm476_vm3, %v1712_v28 }
  0x63   : > { %1602 = vmatprep.mubr.msk.bf16.mxu0 %vm1742_vm2, %v1740_v1  ;;  %1654 = vmatprep.mubr.msk.bf16.mxu1 %vm1742_vm2, %v1740_v1 }
  0x6a   : > { %1603 = vmatmul.mubr.msk.bf16.gmra.mrb[44].mxu0 %vm476_vm3, %v1713_v29  ;;  %1655 = vmatmul.mubr.msk.bf16.gmra.mrb[44].mxu1 %vm476_vm3, %v1714_v30 }
  0x6b   : > { %1606 = vmatprep.mubr.msk.bf16.mxu0 %vm1742_vm2, %v1740_v1 }
  0x72   : > { %1607 = vmatmul.mubr.msk.bf16.gmra.mrb[48].mxu0 %vm476_vm3, %v1715_v31 }
  0xe5   : > { %v593_v33 = vpop.f32.mrb[0].mxu0  ;;  %v697_v36 = vpop.f32.mrb[0].mxu1 }
  0xe6   : > { %v594_v34 = vadd.f32 %v1907_v32, %v593_v33  ;;  %v1560_v35 = vpop.f32.mrb[1].mxu0  ;;  %v698_v38 = vadd.f32 %v1907_v32, %v697_v36  ;;  %v1612_v39 = vpop.f32.mrb[1].mxu1 }
  0xe7   : > { %v596_v37 = vpop.f32.mrb[2].mxu0  ;;  %v700_v42 = vpop.f32.mrb[2].mxu1 }
  0xe8   : > { %v597_v40 = vadd.f32 %v1907_v32, %v596_v37  ;;  %v1561_v41 = vpop.f32.mrb[3].mxu0  ;;  %v817_v43 = vmax.f32 %v698_v38, 0.0  ;;  %v701_v44 = vadd.f32 %v1907_v32, %v700_v42  ;;  %v1613_v45 = vpop.f32.mrb[3].mxu1  ;;  %v791_v46 = vmax.f32 %v594_v34, 0.0 }
  0xea   : > { %v792_v47 = vmax.f32 %v597_v40, 0.0  ;;  %v818_v48 = vmax.f32 %v701_v44, 0.0 }
  0xec   : > { %v1387_v49 = vpack.c.bf16 %v792_v47, %v791_v46  ;;  %v1452_v51 = vpack.c.bf16 %v818_v48, %v817_v43 }
  0xed   : > { %v601_v50 = vpop.f32.mrb[4].mxu0  ;;  %v705_v54 = vpop.f32.mrb[4].mxu1 }
  0xee   : > { %1388 = vst [vmem:[%s1918_s29] sm:$0xff] %v1387_v49   ;;  %v602_v52 = vadd.f32 %v1907_v32, %v601_v50  ;;  %v1564_v53 = vpop.f32.mrb[5].mxu0  ;;  %1516 = vst [vmem:[%s1918_s29 + $0x68] sm:$0xff] %v1452_v51   ;;  %v706_v56 = vadd.f32 %v1907_v32, %v705_v54  ;;  %v1616_v57 = vpop.f32.mrb[5].mxu1 }
  0xef   : > { %v604_v55 = vpop.f32.mrb[6].mxu0  ;;  %v708_v60 = vpop.f32.mrb[6].mxu1 }
  0xf0   : > { %v605_v58 = vadd.f32 %v1907_v32, %v604_v55  ;;  %v1565_v59 = vpop.f32.mrb[7].mxu0  ;;  %v819_v61 = vmax.f32 %v706_v56, 0.0  ;;  %v709_v62 = vadd.f32 %v1907_v32, %v708_v60  ;;  %v1617_v63 = vpop.f32.mrb[7].mxu1  ;;  %v793_v0 = vmax.f32 %v602_v52, 0.0 }
  0xf2   : > { %v794_v1 = vmax.f32 %v605_v58, 0.0  ;;  %v820_v2 = vmax.f32 %v709_v62, 0.0 }
  0xf4   : > { %v1392_v3 = vpack.c.bf16 %v794_v1, %v793_v0  ;;  %v1457_v5 = vpack.c.bf16 %v820_v2, %v819_v61 }
  0xf5   : > { %v609_v4 = vpop.f32.mrb[8].mxu0  ;;  %v713_v8 = vpop.f32.mrb[8].mxu1 }
  0xf6   : > { %1504 = vst [vmem:[%s1918_s29 + $0x8] sm:$0xff] %v1392_v3   ;;  %v610_v6 = vadd.f32 %v1907_v32, %v609_v4  ;;  %v1568_v7 = vpop.f32.mrb[9].mxu0  ;;  %1517 = vst [vmem:[%s1918_s29 + $0x70] sm:$0xff] %v1457_v5   ;;  %v714_v10 = vadd.f32 %v1907_v32, %v713_v8  ;;  %v1620_v11 = vpop.f32.mrb[9].mxu1 }
  0xf7   : > { %v612_v9 = vpop.f32.mrb[10].mxu0  ;;  %v716_v14 = vpop.f32.mrb[10].mxu1 }
  0xf8   : > { %v613_v12 = vadd.f32 %v1907_v32, %v612_v9  ;;  %v1569_v13 = vpop.f32.mrb[11].mxu0  ;;  %v821_v15 = vmax.f32 %v714_v10, 0.0  ;;  %v717_v16 = vadd.f32 %v1907_v32, %v716_v14  ;;  %v1621_v17 = vpop.f32.mrb[11].mxu1  ;;  %v795_v18 = vmax.f32 %v610_v6, 0.0 }
  0xfa   : > { %v796_v19 = vmax.f32 %v613_v12, 0.0  ;;  %v822_v20 = vmax.f32 %v717_v16, 0.0 }
  0xfc   : > { %v1397_v21 = vpack.c.bf16 %v796_v19, %v795_v18  ;;  %v1462_v23 = vpack.c.bf16 %v822_v20, %v821_v15 }
  0xfd   : > { %v617_v22 = vpop.f32.mrb[12].mxu0  ;;  %v721_v26 = vpop.f32.mrb[12].mxu1 }
  0xfe   : > { %1505 = vst [vmem:[%s1918_s29 + $0x10] sm:$0xff] %v1397_v21   ;;  %v618_v24 = vadd.f32 %v1907_v32, %v617_v22  ;;  %v1572_v25 = vpop.f32.mrb[13].mxu0  ;;  %1518 = vst [vmem:[%s1918_s29 + $0x78] sm:$0xff] %v1462_v23   ;;  %v722_v28 = vadd.f32 %v1907_v32, %v721_v26  ;;  %v1624_v29 = vpop.f32.mrb[13].mxu1 }
  0xff   : > { %v620_v27 = vpop.f32.mrb[14].mxu0  ;;  %v724_v33 = vpop.f32.mrb[14].mxu1 }
 0x100   : > { %v621_v30 = vadd.f32 %v1907_v32, %v620_v27  ;;  %v1573_v31 = vpop.f32.mrb[15].mxu0  ;;  %v823_v34 = vmax.f32 %v722_v28, 0.0  ;;  %v725_v35 = vadd.f32 %v1907_v32, %v724_v33  ;;  %v1625_v36 = vpop.f32.mrb[15].mxu1  ;;  %v797_v37 = vmax.f32 %v618_v24, 0.0 }
 0x102   : > { %v798_v38 = vmax.f32 %v621_v30, 0.0  ;;  %v824_v39 = vmax.f32 %v725_v35, 0.0 }
 0x104   : > { %v1402_v40 = vpack.c.bf16 %v798_v38, %v797_v37  ;;  %v1467_v42 = vpack.c.bf16 %v824_v39, %v823_v34 }
 0x105   : > { %v625_v41 = vpop.f32.mrb[16].mxu0  ;;  %v729_v45 = vpop.f32.mrb[16].mxu1 }
 0x106   : > { %1506 = vst [vmem:[%s1918_s29 + $0x18] sm:$0xff] %v1402_v40   ;;  %v626_v43 = vadd.f32 %v1907_v32, %v625_v41  ;;  %v1576_v44 = vpop.f32.mrb[17].mxu0  ;;  %1519 = vst [vmem:[%s1918_s29 + $0x80] sm:$0xff] %v1467_v42   ;;  %v730_v47 = vadd.f32 %v1907_v32, %v729_v45  ;;  %v1628_v48 = vpop.f32.mrb[17].mxu1 }
 0x107   : > { %v628_v46 = vpop.f32.mrb[18].mxu0  ;;  %v732_v51 = vpop.f32.mrb[18].mxu1 }
 0x108   : > { %v629_v49 = vadd.f32 %v1907_v32, %v628_v46  ;;  %v1577_v50 = vpop.f32.mrb[19].mxu0  ;;  %v825_v52 = vmax.f32 %v730_v47, 0.0  ;;  %v733_v53 = vadd.f32 %v1907_v32, %v732_v51  ;;  %v1629_v54 = vpop.f32.mrb[19].mxu1  ;;  %v799_v55 = vmax.f32 %v626_v43, 0.0 }
 0x10a   : > { %v800_v56 = vmax.f32 %v629_v49, 0.0  ;;  %v826_v57 = vmax.f32 %v733_v53, 0.0 }
 0x10c   : > { %v1407_v58 = vpack.c.bf16 %v800_v56, %v799_v55  ;;  %v1472_v60 = vpack.c.bf16 %v826_v57, %v825_v52 }
 0x10d   : > { %v633_v59 = vpop.f32.mrb[20].mxu0  ;;  %v737_v63 = vpop.f32.mrb[20].mxu1 }
 0x10e   : > { %1507 = vst [vmem:[%s1918_s29 + $0x20] sm:$0xff] %v1407_v58   ;;  %v634_v61 = vadd.f32 %v1907_v32, %v633_v59  ;;  %v1580_v62 = vpop.f32.mrb[21].mxu0  ;;  %1520 = vst [vmem:[%s1918_s29 + $0x88] sm:$0xff] %v1472_v60   ;;  %v738_v1 = vadd.f32 %v1907_v32, %v737_v63  ;;  %v1632_v2 = vpop.f32.mrb[21].mxu1 }
 0x10f   : > { %v636_v0 = vpop.f32.mrb[22].mxu0  ;;  %v740_v5 = vpop.f32.mrb[22].mxu1 }
 0x110   : > { %v637_v3 = vadd.f32 %v1907_v32, %v636_v0  ;;  %v1581_v4 = vpop.f32.mrb[23].mxu0  ;;  %v827_v6 = vmax.f32 %v738_v1, 0.0  ;;  %v741_v7 = vadd.f32 %v1907_v32, %v740_v5  ;;  %v1633_v8 = vpop.f32.mrb[23].mxu1  ;;  %v801_v9 = vmax.f32 %v634_v61, 0.0 }
 0x112   : > { %v802_v10 = vmax.f32 %v637_v3, 0.0  ;;  %v828_v11 = vmax.f32 %v741_v7, 0.0 }
 0x114   : > { %v1412_v12 = vpack.c.bf16 %v802_v10, %v801_v9  ;;  %v1477_v14 = vpack.c.bf16 %v828_v11, %v827_v6 }
 0x115   : > { %v641_v13 = vpop.f32.mrb[24].mxu0  ;;  %v745_v17 = vpop.f32.mrb[24].mxu1 }
 0x116   : > { %1508 = vst [vmem:[%s1918_s29 + $0x28] sm:$0xff] %v1412_v12   ;;  %v642_v15 = vadd.f32 %v1907_v32, %v641_v13  ;;  %v1584_v16 = vpop.f32.mrb[25].mxu0  ;;  %1521 = vst [vmem:[%s1918_s29 + $0x90] sm:$0xff] %v1477_v14   ;;  %v746_v19 = vadd.f32 %v1907_v32, %v745_v17  ;;  %v1636_v20 = vpop.f32.mrb[25].mxu1 }
 0x117   : > { %v644_v18 = vpop.f32.mrb[26].mxu0  ;;  %v748_v23 = vpop.f32.mrb[26].mxu1 }
 0x118   : > { %v645_v21 = vadd.f32 %v1907_v32, %v644_v18  ;;  %v1585_v22 = vpop.f32.mrb[27].mxu0  ;;  %v829_v24 = vmax.f32 %v746_v19, 0.0  ;;  %v749_v25 = vadd.f32 %v1907_v32, %v748_v23  ;;  %v1637_v26 = vpop.f32.mrb[27].mxu1  ;;  %v803_v27 = vmax.f32 %v642_v15, 0.0 }
 0x11a   : > { %v804_v28 = vmax.f32 %v645_v21, 0.0  ;;  %v830_v29 = vmax.f32 %v749_v25, 0.0 }
 0x11c   : > { %v1417_v30 = vpack.c.bf16 %v804_v28, %v803_v27  ;;  %v1482_v33 = vpack.c.bf16 %v830_v29, %v829_v24 }
 0x11d   : > { %v649_v31 = vpop.f32.mrb[28].mxu0  ;;  %v753_v36 = vpop.f32.mrb[28].mxu1 }
 0x11e   : > { %1509 = vst [vmem:[%s1918_s29 + $0x30] sm:$0xff] %v1417_v30   ;;  %v650_v34 = vadd.f32 %v1907_v32, %v649_v31  ;;  %v1588_v35 = vpop.f32.mrb[29].mxu0  ;;  %1522 = vst [vmem:[%s1918_s29 + $0x98] sm:$0xff] %v1482_v33   ;;  %v754_v38 = vadd.f32 %v1907_v32, %v753_v36  ;;  %v1640_v39 = vpop.f32.mrb[29].mxu1 }
 0x11f   : > { %v652_v37 = vpop.f32.mrb[30].mxu0  ;;  %v756_v42 = vpop.f32.mrb[30].mxu1 }
 0x120   : > { %v653_v40 = vadd.f32 %v1907_v32, %v652_v37  ;;  %v1589_v41 = vpop.f32.mrb[31].mxu0  ;;  %v831_v43 = vmax.f32 %v754_v38, 0.0  ;;  %v757_v44 = vadd.f32 %v1907_v32, %v756_v42  ;;  %v1641_v45 = vpop.f32.mrb[31].mxu1  ;;  %v805_v46 = vmax.f32 %v650_v34, 0.0 }
 0x122   : > { %v806_v47 = vmax.f32 %v653_v40, 0.0  ;;  %v832_v48 = vmax.f32 %v757_v44, 0.0 }
 0x124   : > { %v1422_v49 = vpack.c.bf16 %v806_v47, %v805_v46  ;;  %v1487_v51 = vpack.c.bf16 %v832_v48, %v831_v43 }
 0x125   : > { %v657_v50 = vpop.f32.mrb[32].mxu0  ;;  %v761_v54 = vpop.f32.mrb[32].mxu1 }
 0x126   : > { %1510 = vst [vmem:[%s1918_s29 + $0x38] sm:$0xff] %v1422_v49   ;;  %v658_v52 = vadd.f32 %v1907_v32, %v657_v50  ;;  %v1592_v53 = vpop.f32.mrb[33].mxu0  ;;  %1523 = vst [vmem:[%s1918_s29 + $0xa0] sm:$0xff] %v1487_v51   ;;  %v762_v56 = vadd.f32 %v1907_v32, %v761_v54  ;;  %v1644_v57 = vpop.f32.mrb[33].mxu1 }
 0x127   : > { %v660_v55 = vpop.f32.mrb[34].mxu0  ;;  %v764_v60 = vpop.f32.mrb[34].mxu1 }
 0x128   : > { %v661_v58 = vadd.f32 %v1907_v32, %v660_v55  ;;  %v1593_v59 = vpop.f32.mrb[35].mxu0  ;;  %v833_v61 = vmax.f32 %v762_v56, 0.0  ;;  %v765_v62 = vadd.f32 %v1907_v32, %v764_v60  ;;  %v1645_v63 = vpop.f32.mrb[35].mxu1  ;;  %v807_v0 = vmax.f32 %v658_v52, 0.0 }
 0x12a   : > { %v808_v1 = vmax.f32 %v661_v58, 0.0  ;;  %v834_v2 = vmax.f32 %v765_v62, 0.0 }
 0x12c   : > { %v1427_v3 = vpack.c.bf16 %v808_v1, %v807_v0  ;;  %v1492_v5 = vpack.c.bf16 %v834_v2, %v833_v61 }
 0x12d   : > { %v665_v4 = vpop.f32.mrb[36].mxu0  ;;  %v769_v8 = vpop.f32.mrb[36].mxu1 }
 0x12e   : > { %1511 = vst [vmem:[%s1918_s29 + $0x40] sm:$0xff] %v1427_v3   ;;  %v666_v6 = vadd.f32 %v1907_v32, %v665_v4  ;;  %v1596_v7 = vpop.f32.mrb[37].mxu0  ;;  %1524 = vst [vmem:[%s1918_s29 + $0xa8] sm:$0xff] %v1492_v5   ;;  %v770_v10 = vadd.f32 %v1907_v32, %v769_v8  ;;  %v1648_v11 = vpop.f32.mrb[37].mxu1 }
 0x12f   : > { %v668_v9 = vpop.f32.mrb[38].mxu0  ;;  %v772_v14 = vpop.f32.mrb[38].mxu1 }
 0x130   : > { %v669_v12 = vadd.f32 %v1907_v32, %v668_v9  ;;  %v1597_v13 = vpop.f32.mrb[39].mxu0  ;;  %v835_v15 = vmax.f32 %v770_v10, 0.0  ;;  %v773_v16 = vadd.f32 %v1907_v32, %v772_v14  ;;  %v1649_v17 = vpop.f32.mrb[39].mxu1  ;;  %v809_v18 = vmax.f32 %v666_v6, 0.0 }
 0x132   : > { %v810_v19 = vmax.f32 %v669_v12, 0.0  ;;  %v836_v20 = vmax.f32 %v773_v16, 0.0 }
 0x134   : > { %v1432_v21 = vpack.c.bf16 %v810_v19, %v809_v18  ;;  %v1497_v23 = vpack.c.bf16 %v836_v20, %v835_v15 }
 0x135   : > { %v673_v22 = vpop.f32.mrb[40].mxu0  ;;  %v777_v26 = vpop.f32.mrb[40].mxu1 }
 0x136   : > { %1512 = vst [vmem:[%s1918_s29 + $0x48] sm:$0xff] %v1432_v21   ;;  %v674_v24 = vadd.f32 %v1907_v32, %v673_v22  ;;  %v1600_v25 = vpop.f32.mrb[41].mxu0  ;;  %1525 = vst [vmem:[%s1918_s29 + $0xb0] sm:$0xff] %v1497_v23   ;;  %v778_v28 = vadd.f32 %v1907_v32, %v777_v26  ;;  %v1652_v29 = vpop.f32.mrb[41].mxu1 }
 0x137   : > { %v676_v27 = vpop.f32.mrb[42].mxu0  ;;  %v780_v33 = vpop.f32.mrb[42].mxu1 }
 0x138   : > { %v677_v30 = vadd.f32 %v1907_v32, %v676_v27  ;;  %v1601_v31 = vpop.f32.mrb[43].mxu0  ;;  %v837_v34 = vmax.f32 %v778_v28, 0.0  ;;  %v781_v35 = vadd.f32 %v1907_v32, %v780_v33  ;;  %v1653_v36 = vpop.f32.mrb[43].mxu1  ;;  %v811_v37 = vmax.f32 %v674_v24, 0.0 }
 0x13a   : > { %v812_v38 = vmax.f32 %v677_v30, 0.0  ;;  %v838_v39 = vmax.f32 %v781_v35, 0.0 }
 0x13c   : > { %v1437_v40 = vpack.c.bf16 %v812_v38, %v811_v37  ;;  %v1502_v42 = vpack.c.bf16 %v838_v39, %v837_v34 }
 0x13d   : > { %v681_v41 = vpop.f32.mrb[44].mxu0  ;;  %v785_v45 = vpop.f32.mrb[44].mxu1 }
 0x13e   : > { %1513 = vst [vmem:[%s1918_s29 + $0x50] sm:$0xff] %v1437_v40   ;;  %v682_v43 = vadd.f32 %v1907_v32, %v681_v41  ;;  %v1604_v44 = vpop.f32.mrb[45].mxu0  ;;  %1526 = vst [vmem:[%s1918_s29 + $0xb8] sm:$0xff] %v1502_v42   ;;  %v786_v47 = vadd.f32 %v1907_v32, %v785_v45  ;;  %v1656_v48 = vpop.f32.mrb[45].mxu1 }
 0x13f   : > { %v684_v46 = vpop.f32.mrb[46].mxu0  ;;  %v788_v51 = vpop.f32.mrb[46].mxu1 }
 0x140   : > { %v685_v49 = vadd.f32 %v1907_v32, %v684_v46  ;;  %v1605_v50 = vpop.f32.mrb[47].mxu0  ;;  %v839_v52 = vmax.f32 %v786_v47, 0.0  ;;  %v1657_v53 = vpop.f32.mrb[47].mxu1  ;;  %v813_v54 = vmax.f32 %v682_v43, 0.0 }
 0x142   : > { %v814_v55 = vmax.f32 %v685_v49, 0.0  ;;  %v1383_v56 = vpack.c.bf16 %v839_v52, %v839_v52 }
 0x144   : > { %v1442_v57 = vpack.c.bf16 %v814_v55, %v813_v54  ;;  %1085 = vst [vmem:[%s1918_s29 + $0xc0] sm:$0xf] %v1383_v56 }
 0x145   : > { %v689_v58 = vpop.f32.mrb[48].mxu0 }
 0x146   : > { %1514 = vst [vmem:[%s1918_s29 + $0x58] sm:$0xff] %v1442_v57   ;;  %v690_v59 = vadd.f32 %v1907_v32, %v689_v58  ;;  %v1608_v60 = vpop.f32.mrb[49].mxu0 }
 0x147   : > { %v692_v61 = vpop.f32.mrb[50].mxu0 }
 0x148   : > { %v693_v62 = vadd.f32 %v1907_v32, %v692_v61  ;;  %v1609_v63 = vpop.f32.mrb[51].mxu0  ;;  %v815_v0 = vmax.f32 %v690_v59, 0.0 }
 0x14a   : > { %v816_v1 = vmax.f32 %v693_v62, 0.0 }
 0x14c   : > { %v1447_v2 = vpack.c.bf16 %v816_v1, %v815_v0 }
 0x14e   : > { %1515 = vst [vmem:[%s1918_s29 + $0x60] sm:$0xff] %v1447_v2  }
 0x14f PF: > { %s13_s14 = sadd.s32 1, %s1738_s14   ;;  %s2003_s12 = smov %s1734_s13 }
 0x150   : > { %p10_p5 = scmp.ge.s32.totalorder %s13_s14, 6   ;;  %s2004_s13 = smov %s2006_s15 }
 0x152   :  { %12 = sbr.rel (!%p10_p5) target bundleno = 2 (0x2), region = 68 }

// kernel: triplenet_forward.7
= control target key start
LH: loop header
LB: loop body
LE: loop exit
PB: predicated region body
PF: predicated region fallthrough
CT: control target
= control target key end

     0   :  { %vm572_vm0 = vcmask 1045504   ;;  %s1823_s0 = inlined_call_operand.vmem [shape: bf16[28,2,14,128], index: 0, kind: input, shape index: {}]   ;;  %s1824_s1 = inlined_call_operand.vmem [shape: bf16[28,2,14,128], index: 1, kind: input, shape index: {}]   ;;  %s1825_s2 = inlined_call_operand.vmem [shape: bf16[28,14,128], index: 2, kind: output, shape index: {}]  }
   0x1   :  { %v11_v0 = vld [vmem:[%s1823_s0] ss:$8 sps:$4 sm:$0xff]   ;;  %v12_v2 = vld [vmem:[%s1823_s0 + $0x4] sm:$0x7]  ;;  %v14_v7 = vld [vmem:[%s1823_s0 + $0xc] sm:$0x7] }
   0x2   :  { %v235_v1 = vld [vmem:[%s1824_s1] ss:$8 sps:$4 sm:$0xff]   ;;  %v123_v3 = vunpack.c.l.bf16 %v11_v0  ;;  %v125_v4 = vunpack.c.h.bf16 %v11_v0  ;;  %v236_v8 = vld [vmem:[%s1824_s1 + $0x4] sm:$0x7]  ;;  %v238_v9 = vld [vmem:[%s1824_s1 + $0xc] sm:$0x7]  ;;  %v124_v10 = vunpack.c.l.bf16 %v12_v2  ;;  %v126_v11 = vunpack.c.l.bf16 %v14_v7 }
   0x3   :  { %v347_v5 = vunpack.c.l.bf16 %v235_v1  ;;  %v349_v6 = vunpack.c.h.bf16 %v235_v1  ;;  %v348_v12 = vunpack.c.l.bf16 %v236_v8  ;;  %v350_v13 = vunpack.c.l.bf16 %v238_v9  ;;  %v15_v14 = vld [vmem:[%s1823_s0 + $0x10] ss:$8 sps:$4 sm:$0xff]   ;;  %v16_v16 = vld [vmem:[%s1823_s0 + $0x14] sm:$0x7]  ;;  %v18_v21 = vld [vmem:[%s1823_s0 + $0x1c] sm:$0x7] }
   0x4   :  { %v239_v15 = vld [vmem:[%s1824_s1 + $0x10] ss:$8 sps:$4 sm:$0xff]   ;;  %v127_v19 = vunpack.c.l.bf16 %v15_v14  ;;  %v129_v20 = vunpack.c.h.bf16 %v15_v14  ;;  %v240_v22 = vld [vmem:[%s1824_s1 + $0x14] sm:$0x7]  ;;  %v242_v27 = vld [vmem:[%s1824_s1 + $0x1c] sm:$0x7]  ;;  %v128_v29 = vunpack.c.l.bf16 %v16_v16  ;;  %v130_v30 = vunpack.c.l.bf16 %v18_v21 }
   0x5   :  { %v459_v17 = vmax.f32 %v123_v3, %v347_v5  ;;  %v461_v18 = vmax.f32 %v125_v4, %v349_v6  ;;  %v460_v23 = vmax.f32 %v124_v10, %v348_v12  ;;  %v462_v24 = vmax.f32 %v126_v11, %v350_v13  ;;  %v19_v32 = vld [vmem:[%s1823_s0 + $0x20] ss:$8 sps:$4 sm:$0xff]   ;;  %v20_v42 = vld [vmem:[%s1823_s0 + $0x24] sm:$0x7]  ;;  %v22_v43 = vld [vmem:[%s1823_s0 + $0x2c] sm:$0x7] }
   0x6   :  { %v351_v25 = vunpack.c.l.bf16 %v239_v15  ;;  %v353_v26 = vunpack.c.h.bf16 %v239_v15  ;;  %v352_v31 = vunpack.c.l.bf16 %v240_v22  ;;  %v243_v33 = vld [vmem:[%s1824_s1 + $0x20] ss:$8 sps:$4 sm:$0xff]   ;;  %v354_v40 = vunpack.c.l.bf16 %v242_v27  ;;  %v244_v48 = vld [vmem:[%s1824_s1 + $0x24] sm:$0x7]  ;;  %v246_v49 = vld [vmem:[%s1824_s1 + $0x2c] sm:$0x7] }
   0x7   :  { %v571_v28 = vmax.f32 %v459_v17, %v461_v18  ;;  %v573_v34 = vsel %vm572_vm0, %v460_v23, -inf  ;;  %v574_v35 = vsel %vm572_vm0, %v462_v24, -inf  ;;  %v131_v45 = vunpack.c.l.bf16 %v19_v32  ;;  %v23_v54 = vld [vmem:[%s1823_s0 + $0x30] ss:$8 sps:$4 sm:$0xff]   ;;  %v24_v0 = vld [vmem:[%s1823_s0 + $0x34] sm:$0x7] }
   0x8   :  { %v463_v36 = vmax.f32 %v127_v19, %v351_v25  ;;  %v465_v37 = vmax.f32 %v129_v20, %v353_v26  ;;  %v575_v39 = vmax.f32 %v573_v34, %v574_v35  ;;  %v464_v41 = vmax.f32 %v128_v29, %v352_v31  ;;  %v247_v55 = vld [vmem:[%s1824_s1 + $0x30] ss:$8 sps:$4 sm:$0xff]   ;;  %v26_v1 = vld [vmem:[%s1823_s0 + $0x3c] sm:$0x7]  ;;  %v248_v10 = vld [vmem:[%s1824_s1 + $0x34] sm:$0x7] }
   0x9   :  { %v1024_v38 = vpack.c.bf16 %v571_v28, %v571_v28  ;;  %v133_v46 = vunpack.c.h.bf16 %v19_v32  ;;  %v355_v47 = vunpack.c.l.bf16 %v243_v33  ;;  %v466_v51 = vmax.f32 %v130_v30, %v354_v40  ;;  %v250_v11 = vld [vmem:[%s1824_s1 + $0x3c] sm:$0x7]  ;;  %v27_v12 = vld [vmem:[%s1823_s0 + $0x40] ss:$8 sps:$4 sm:$0xff]   ;;  %v28_v22 = vld [vmem:[%s1823_s0 + $0x44] sm:$0x7] }
   0xa   :  { %v576_v44 = vmax.f32 %v463_v36, %v465_v37  ;;  %v1025_v50 = vpack.c.bf16 %v575_v39, %v575_v39  ;;  %v577_v52 = vsel %vm572_vm0, %v464_v41, -inf  ;;  %v357_v53 = vunpack.c.h.bf16 %v243_v33  ;;  %v251_v17 = vld [vmem:[%s1824_s1 + $0x40] ss:$8 sps:$4 sm:$0xff]   ;;  %v30_v27 = vld [vmem:[%s1823_s0 + $0x4c] sm:$0x7] }
   0xb   :  { %908 = vst [vmem:[%s1825_s2] sm:$0xf] %v1024_v38  ;;  %v467_v57 = vmax.f32 %v131_v45, %v355_v47  ;;  %v132_v58 = vunpack.c.l.bf16 %v20_v42  ;;  %v134_v59 = vunpack.c.l.bf16 %v22_v43  ;;  %v578_v60 = vsel %vm572_vm0, %v466_v51, -inf  ;;  %v252_v32 = vld [vmem:[%s1824_s1 + $0x44] sm:$0x7]  ;;  %v254_v33 = vld [vmem:[%s1824_s1 + $0x4c] sm:$0x7] }
   0xc   :  { %v1026_v56 = vpack.c.bf16 %v576_v44, %v576_v44  ;;  %909 = vst [vmem:[%s1825_s2 + $0x4] sm:$0x7] %v1025_v50  ;;  %v469_v61 = vmax.f32 %v133_v46, %v357_v53  ;;  %v356_v62 = vunpack.c.l.bf16 %v244_v48  ;;  %v358_v63 = vunpack.c.l.bf16 %v246_v49  ;;  %v31_v38 = vld [vmem:[%s1823_s0 + $0x50] ss:$8 sps:$4 sm:$0xff]   ;;  %v32_v48 = vld [vmem:[%s1823_s0 + $0x54] sm:$0x7] }
   0xd   :  { %v579_v2 = vmax.f32 %v577_v52, %v578_v60  ;;  %v135_v3 = vunpack.c.l.bf16 %v23_v54  ;;  %v137_v4 = vunpack.c.h.bf16 %v23_v54  ;;  %v359_v5 = vunpack.c.l.bf16 %v247_v55  ;;  %v255_v43 = vld [vmem:[%s1824_s1 + $0x50] ss:$8 sps:$4 sm:$0xff]   ;;  %v34_v49 = vld [vmem:[%s1823_s0 + $0x5c] sm:$0x7]  ;;  %v35_v60 = vld [vmem:[%s1823_s0 + $0x60] ss:$8 sps:$4 sm:$0xff]  }
   0xe   :  { %910 = vst [vmem:[%s1825_s2 + $0x8] sm:$0xf] %v1026_v56  ;;  %v580_v6 = vmax.f32 %v467_v57, %v469_v61  ;;  %v468_v7 = vmax.f32 %v132_v58, %v356_v62  ;;  %v470_v8 = vmax.f32 %v134_v59, %v358_v63  ;;  %v361_v9 = vunpack.c.h.bf16 %v247_v55  ;;  %v256_v58 = vld [vmem:[%s1824_s1 + $0x54] sm:$0x7]  ;;  %v258_v59 = vld [vmem:[%s1824_s1 + $0x5c] sm:$0x7] }
   0xf   :  { %v1027_v13 = vpack.c.bf16 %v579_v2, %v579_v2  ;;  %v471_v14 = vmax.f32 %v135_v3, %v359_v5  ;;  %v136_v15 = vunpack.c.l.bf16 %v24_v0  ;;  %v138_v16 = vunpack.c.l.bf16 %v26_v1  ;;  %v259_v1 = vld [vmem:[%s1824_s1 + $0x60] ss:$8 sps:$4 sm:$0xff]  }
  0x10   :  { %v1028_v18 = vpack.c.bf16 %v580_v6, %v580_v6  ;;  %v581_v19 = vsel %vm572_vm0, %v468_v7, -inf  ;;  %v582_v20 = vsel %vm572_vm0, %v470_v8, -inf  ;;  %v473_v21 = vmax.f32 %v137_v4, %v361_v9  ;;  %v36_v6 = vld [vmem:[%s1823_s0 + $0x64] sm:$0x7] }
  0x11   :  { %911 = vst [vmem:[%s1825_s2 + $0xc] sm:$0x7] %v1027_v13  ;;  %v583_v23 = vmax.f32 %v581_v19, %v582_v20  ;;  %v360_v24 = vunpack.c.l.bf16 %v248_v10  ;;  %v362_v25 = vunpack.c.l.bf16 %v250_v11  ;;  %v139_v26 = vunpack.c.l.bf16 %v27_v12  ;;  %v38_v11 = vld [vmem:[%s1823_s0 + $0x6c] sm:$0x7] }
  0x12   :  { %912 = vst [vmem:[%s1825_s2 + $0x10] sm:$0xf] %v1028_v18  ;;  %v584_v28 = vmax.f32 %v471_v14, %v473_v21  ;;  %v141_v29 = vunpack.c.h.bf16 %v27_v12  ;;  %v363_v30 = vunpack.c.l.bf16 %v251_v17  ;;  %v365_v31 = vunpack.c.h.bf16 %v251_v17  ;;  %v262_v17 = vld [vmem:[%s1824_s1 + $0x6c] sm:$0x7] }
  0x13   :  { %v1029_v34 = vpack.c.bf16 %v583_v23, %v583_v23  ;;  %v472_v35 = vmax.f32 %v136_v15, %v360_v24  ;;  %v474_v36 = vmax.f32 %v138_v16, %v362_v25  ;;  %v140_v37 = vunpack.c.l.bf16 %v28_v22  ;;  %v260_v16 = vld [vmem:[%s1824_s1 + $0x64] sm:$0x7]  ;;  %v39_v22 = vld [vmem:[%s1823_s0 + $0x70] ss:$8 sps:$4 sm:$0xff]  }
  0x14   :  { %v1030_v39 = vpack.c.bf16 %v584_v28, %v584_v28  ;;  %v475_v40 = vmax.f32 %v139_v26, %v363_v30  ;;  %v477_v41 = vmax.f32 %v141_v29, %v365_v31  ;;  %v142_v42 = vunpack.c.l.bf16 %v30_v27  ;;  %v263_v27 = vld [vmem:[%s1824_s1 + $0x70] ss:$8 sps:$4 sm:$0xff]  }
  0x15   :  { %913 = vst [vmem:[%s1825_s2 + $0x14] sm:$0x7] %v1029_v34  ;;  %v585_v44 = vsel %vm572_vm0, %v472_v35, -inf  ;;  %v586_v45 = vsel %vm572_vm0, %v474_v36, -inf  ;;  %v364_v46 = vunpack.c.l.bf16 %v252_v32  ;;  %v366_v47 = vunpack.c.l.bf16 %v254_v33  ;;  %v40_v32 = vld [vmem:[%s1823_s0 + $0x74] sm:$0x7] }
  0x16   :  { %914 = vst [vmem:[%s1825_s2 + $0x18] sm:$0xf] %v1030_v39  ;;  %v587_v50 = vmax.f32 %v585_v44, %v586_v45  ;;  %v588_v51 = vmax.f32 %v475_v40, %v477_v41  ;;  %v143_v52 = vunpack.c.l.bf16 %v31_v38  ;;  %v145_v53 = vunpack.c.h.bf16 %v31_v38  ;;  %v42_v33 = vld [vmem:[%s1823_s0 + $0x7c] sm:$0x7]  ;;  %v43_v44 = vld [vmem:[%s1823_s0 + $0x80] ss:$8 sps:$4 sm:$0xff]  }
  0x17   :  { %v476_v54 = vmax.f32 %v140_v37, %v364_v46  ;;  %v478_v55 = vmax.f32 %v142_v42, %v366_v47  ;;  %v367_v56 = vunpack.c.l.bf16 %v255_v43  ;;  %v369_v57 = vunpack.c.h.bf16 %v255_v43  ;;  %v264_v42 = vld [vmem:[%s1824_s1 + $0x74] sm:$0x7]  ;;  %v266_v43 = vld [vmem:[%s1824_s1 + $0x7c] sm:$0x7] }
  0x18   :  { %v1031_v61 = vpack.c.bf16 %v587_v50, %v587_v50  ;;  %v1032_v62 = vpack.c.bf16 %v588_v51, %v588_v51  ;;  %v144_v63 = vunpack.c.l.bf16 %v32_v48  ;;  %v146_v0 = vunpack.c.l.bf16 %v34_v49  ;;  %v267_v49 = vld [vmem:[%s1824_s1 + $0x80] ss:$8 sps:$4 sm:$0xff]  }
  0x19   :  { %v589_v2 = vsel %vm572_vm0, %v476_v54, -inf  ;;  %v590_v3 = vsel %vm572_vm0, %v478_v55, -inf  ;;  %v479_v4 = vmax.f32 %v143_v52, %v367_v56  ;;  %v481_v5 = vmax.f32 %v145_v53, %v369_v57  ;;  %v44_v54 = vld [vmem:[%s1823_s0 + $0x84] sm:$0x7] }
  0x1a   :  { %915 = vst [vmem:[%s1825_s2 + $0x1c] sm:$0x7] %v1031_v61  ;;  %916 = vst [vmem:[%s1825_s2 + $0x20] sm:$0xf] %v1032_v62  ;;  %v591_v7 = vmax.f32 %v589_v2, %v590_v3  ;;  %v368_v8 = vunpack.c.l.bf16 %v256_v58  ;;  %v370_v9 = vunpack.c.l.bf16 %v258_v59  ;;  %v147_v10 = vunpack.c.l.bf16 %v35_v60  ;;  %v46_v59 = vld [vmem:[%s1823_s0 + $0x8c] sm:$0x7] }
  0x1b   :  { %v592_v12 = vmax.f32 %v479_v4, %v481_v5  ;;  %v149_v13 = vunpack.c.h.bf16 %v35_v60  ;;  %v371_v14 = vunpack.c.l.bf16 %v259_v1  ;;  %v373_v15 = vunpack.c.h.bf16 %v259_v1  ;;  %v270_v1 = vld [vmem:[%s1824_s1 + $0x8c] sm:$0x7] }
  0x1c   :  { %v1033_v18 = vpack.c.bf16 %v591_v7, %v591_v7  ;;  %v480_v19 = vmax.f32 %v144_v63, %v368_v8  ;;  %v482_v20 = vmax.f32 %v146_v0, %v370_v9  ;;  %v148_v21 = vunpack.c.l.bf16 %v36_v6  ;;  %v268_v0 = vld [vmem:[%s1824_s1 + $0x84] sm:$0x7]  ;;  %v47_v6 = vld [vmem:[%s1823_s0 + $0x90] ss:$8 sps:$4 sm:$0xff]  }
  0x1d   :  { %v1034_v23 = vpack.c.bf16 %v592_v12, %v592_v12  ;;  %v483_v24 = vmax.f32 %v147_v10, %v371_v14  ;;  %v485_v25 = vmax.f32 %v149_v13, %v373_v15  ;;  %v150_v26 = vunpack.c.l.bf16 %v38_v11  ;;  %v271_v11 = vld [vmem:[%s1824_s1 + $0x90] ss:$8 sps:$4 sm:$0xff]  }
  0x1e   :  { %917 = vst [vmem:[%s1825_s2 + $0x24] sm:$0x7] %v1033_v18  ;;  %v593_v28 = vsel %vm572_vm0, %v480_v19, -inf  ;;  %v594_v29 = vsel %vm572_vm0, %v482_v20, -inf  ;;  %v372_v30 = vunpack.c.l.bf16 %v260_v16  ;;  %v374_v31 = vunpack.c.l.bf16 %v262_v17  ;;  %v48_v16 = vld [vmem:[%s1823_s0 + $0x94] sm:$0x7] }
  0x1f   :  { %918 = vst [vmem:[%s1825_s2 + $0x28] sm:$0xf] %v1034_v23  ;;  %v595_v34 = vmax.f32 %v593_v28, %v594_v29  ;;  %v596_v35 = vmax.f32 %v483_v24, %v485_v25  ;;  %v151_v36 = vunpack.c.l.bf16 %v39_v22  ;;  %v153_v37 = vunpack.c.h.bf16 %v39_v22  ;;  %v50_v17 = vld [vmem:[%s1823_s0 + $0x9c] sm:$0x7]  ;;  %v51_v28 = vld [vmem:[%s1823_s0 + $0xa0] ss:$8 sps:$4 sm:$0xff]  }
  0x20   :  { %v484_v38 = vmax.f32 %v148_v21, %v372_v30  ;;  %v486_v39 = vmax.f32 %v150_v26, %v374_v31  ;;  %v375_v40 = vunpack.c.l.bf16 %v263_v27  ;;  %v377_v41 = vunpack.c.h.bf16 %v263_v27  ;;  %v272_v26 = vld [vmem:[%s1824_s1 + $0x94] sm:$0x7]  ;;  %v274_v27 = vld [vmem:[%s1824_s1 + $0x9c] sm:$0x7] }
  0x21   :  { %v1035_v45 = vpack.c.bf16 %v595_v34, %v595_v34  ;;  %v1036_v46 = vpack.c.bf16 %v596_v35, %v596_v35  ;;  %v152_v47 = vunpack.c.l.bf16 %v40_v32  ;;  %v154_v48 = vunpack.c.l.bf16 %v42_v33  ;;  %v275_v33 = vld [vmem:[%s1824_s1 + $0xa0] ss:$8 sps:$4 sm:$0xff]  }
  0x22   :  { %v597_v50 = vsel %vm572_vm0, %v484_v38, -inf  ;;  %v598_v51 = vsel %vm572_vm0, %v486_v39, -inf  ;;  %v487_v52 = vmax.f32 %v151_v36, %v375_v40  ;;  %v489_v53 = vmax.f32 %v153_v37, %v377_v41  ;;  %v52_v38 = vld [vmem:[%s1823_s0 + $0xa4] sm:$0x7] }
  0x23   :  { %919 = vst [vmem:[%s1825_s2 + $0x2c] sm:$0x7] %v1035_v45  ;;  %920 = vst [vmem:[%s1825_s2 + $0x30] sm:$0xf] %v1036_v46  ;;  %v599_v55 = vmax.f32 %v597_v50, %v598_v51  ;;  %v376_v56 = vunpack.c.l.bf16 %v264_v42  ;;  %v378_v57 = vunpack.c.l.bf16 %v266_v43  ;;  %v155_v58 = vunpack.c.l.bf16 %v43_v44  ;;  %v54_v43 = vld [vmem:[%s1823_s0 + $0xac] sm:$0x7] }
  0x24   :  { %v600_v60 = vmax.f32 %v487_v52, %v489_v53  ;;  %v157_v61 = vunpack.c.h.bf16 %v43_v44  ;;  %v379_v62 = vunpack.c.l.bf16 %v267_v49  ;;  %v381_v63 = vunpack.c.h.bf16 %v267_v49  ;;  %v278_v49 = vld [vmem:[%s1824_s1 + $0xac] sm:$0x7] }
  0x25   :  { %v1037_v2 = vpack.c.bf16 %v599_v55, %v599_v55  ;;  %v488_v3 = vmax.f32 %v152_v47, %v376_v56  ;;  %v490_v4 = vmax.f32 %v154_v48, %v378_v57  ;;  %v156_v5 = vunpack.c.l.bf16 %v44_v54  ;;  %v276_v48 = vld [vmem:[%s1824_s1 + $0xa4] sm:$0x7]  ;;  %v55_v54 = vld [vmem:[%s1823_s0 + $0xb0] ss:$8 sps:$4 sm:$0xff]  }
  0x26   :  { %v1038_v7 = vpack.c.bf16 %v600_v60, %v600_v60  ;;  %v491_v8 = vmax.f32 %v155_v58, %v379_v62  ;;  %v493_v9 = vmax.f32 %v157_v61, %v381_v63  ;;  %v158_v10 = vunpack.c.l.bf16 %v46_v59  ;;  %v279_v59 = vld [vmem:[%s1824_s1 + $0xb0] ss:$8 sps:$4 sm:$0xff]  }
  0x27   :  { %921 = vst [vmem:[%s1825_s2 + $0x34] sm:$0x7] %v1037_v2  ;;  %v601_v12 = vsel %vm572_vm0, %v488_v3, -inf  ;;  %v602_v13 = vsel %vm572_vm0, %v490_v4, -inf  ;;  %v380_v14 = vunpack.c.l.bf16 %v268_v0  ;;  %v382_v15 = vunpack.c.l.bf16 %v270_v1  ;;  %v56_v0 = vld [vmem:[%s1823_s0 + $0xb4] sm:$0x7] }
  0x28   :  { %922 = vst [vmem:[%s1825_s2 + $0x38] sm:$0xf] %v1038_v7  ;;  %v603_v18 = vmax.f32 %v601_v12, %v602_v13  ;;  %v604_v19 = vmax.f32 %v491_v8, %v493_v9  ;;  %v159_v20 = vunpack.c.l.bf16 %v47_v6  ;;  %v161_v21 = vunpack.c.h.bf16 %v47_v6  ;;  %v58_v1 = vld [vmem:[%s1823_s0 + $0xbc] sm:$0x7]  ;;  %v59_v12 = vld [vmem:[%s1823_s0 + $0xc0] ss:$8 sps:$4 sm:$0xff]  }
  0x29   :  { %v492_v22 = vmax.f32 %v156_v5, %v380_v14  ;;  %v494_v23 = vmax.f32 %v158_v10, %v382_v15  ;;  %v383_v24 = vunpack.c.l.bf16 %v271_v11  ;;  %v385_v25 = vunpack.c.h.bf16 %v271_v11  ;;  %v280_v10 = vld [vmem:[%s1824_s1 + $0xb4] sm:$0x7]  ;;  %v282_v11 = vld [vmem:[%s1824_s1 + $0xbc] sm:$0x7] }
  0x2a   :  { %v1039_v29 = vpack.c.bf16 %v603_v18, %v603_v18  ;;  %v1040_v30 = vpack.c.bf16 %v604_v19, %v604_v19  ;;  %v160_v31 = vunpack.c.l.bf16 %v48_v16  ;;  %v162_v32 = vunpack.c.l.bf16 %v50_v17  ;;  %v283_v17 = vld [vmem:[%s1824_s1 + $0xc0] ss:$8 sps:$4 sm:$0xff]  }
  0x2b   :  { %v605_v34 = vsel %vm572_vm0, %v492_v22, -inf  ;;  %v606_v35 = vsel %vm572_vm0, %v494_v23, -inf  ;;  %v495_v36 = vmax.f32 %v159_v20, %v383_v24  ;;  %v497_v37 = vmax.f32 %v161_v21, %v385_v25  ;;  %v60_v22 = vld [vmem:[%s1823_s0 + $0xc4] sm:$0x7] }
  0x2c   :  { %923 = vst [vmem:[%s1825_s2 + $0x3c] sm:$0x7] %v1039_v29  ;;  %924 = vst [vmem:[%s1825_s2 + $0x40] sm:$0xf] %v1040_v30  ;;  %v607_v39 = vmax.f32 %v605_v34, %v606_v35  ;;  %v384_v40 = vunpack.c.l.bf16 %v272_v26  ;;  %v386_v41 = vunpack.c.l.bf16 %v274_v27  ;;  %v163_v42 = vunpack.c.l.bf16 %v51_v28  ;;  %v62_v27 = vld [vmem:[%s1823_s0 + $0xcc] sm:$0x7] }
  0x2d   :  { %v608_v44 = vmax.f32 %v495_v36, %v497_v37  ;;  %v165_v45 = vunpack.c.h.bf16 %v51_v28  ;;  %v387_v46 = vunpack.c.l.bf16 %v275_v33  ;;  %v389_v47 = vunpack.c.h.bf16 %v275_v33  ;;  %v286_v33 = vld [vmem:[%s1824_s1 + $0xcc] sm:$0x7] }
  0x2e   :  { %v1041_v50 = vpack.c.bf16 %v607_v39, %v607_v39  ;;  %v496_v51 = vmax.f32 %v160_v31, %v384_v40  ;;  %v498_v52 = vmax.f32 %v162_v32, %v386_v41  ;;  %v164_v53 = vunpack.c.l.bf16 %v52_v38  ;;  %v284_v32 = vld [vmem:[%s1824_s1 + $0xc4] sm:$0x7]  ;;  %v63_v38 = vld [vmem:[%s1823_s0 + $0xd0] ss:$8 sps:$4 sm:$0xff]  }
  0x2f   :  { %v1042_v55 = vpack.c.bf16 %v608_v44, %v608_v44  ;;  %v499_v56 = vmax.f32 %v163_v42, %v387_v46  ;;  %v501_v57 = vmax.f32 %v165_v45, %v389_v47  ;;  %v166_v58 = vunpack.c.l.bf16 %v54_v43  ;;  %v287_v43 = vld [vmem:[%s1824_s1 + $0xd0] ss:$8 sps:$4 sm:$0xff]  }
  0x30   :  { %925 = vst [vmem:[%s1825_s2 + $0x44] sm:$0x7] %v1041_v50  ;;  %v609_v60 = vsel %vm572_vm0, %v496_v51, -inf  ;;  %v610_v61 = vsel %vm572_vm0, %v498_v52, -inf  ;;  %v388_v62 = vunpack.c.l.bf16 %v276_v48  ;;  %v390_v63 = vunpack.c.l.bf16 %v278_v49  ;;  %v64_v48 = vld [vmem:[%s1823_s0 + $0xd4] sm:$0x7] }
  0x31   :  { %926 = vst [vmem:[%s1825_s2 + $0x48] sm:$0xf] %v1042_v55  ;;  %v611_v2 = vmax.f32 %v609_v60, %v610_v61  ;;  %v612_v3 = vmax.f32 %v499_v56, %v501_v57  ;;  %v167_v4 = vunpack.c.l.bf16 %v55_v54  ;;  %v169_v5 = vunpack.c.h.bf16 %v55_v54  ;;  %v66_v49 = vld [vmem:[%s1823_s0 + $0xdc] sm:$0x7]  ;;  %v67_v60 = vld [vmem:[%s1823_s0 + $0xe0] ss:$8 sps:$4 sm:$0xff]  }
  0x32   :  { %v500_v6 = vmax.f32 %v164_v53, %v388_v62  ;;  %v502_v7 = vmax.f32 %v166_v58, %v390_v63  ;;  %v391_v8 = vunpack.c.l.bf16 %v279_v59  ;;  %v393_v9 = vunpack.c.h.bf16 %v279_v59  ;;  %v288_v58 = vld [vmem:[%s1824_s1 + $0xd4] sm:$0x7]  ;;  %v290_v59 = vld [vmem:[%s1824_s1 + $0xdc] sm:$0x7] }
  0x33   :  { %v1043_v13 = vpack.c.bf16 %v611_v2, %v611_v2  ;;  %v1044_v14 = vpack.c.bf16 %v612_v3, %v612_v3  ;;  %v168_v15 = vunpack.c.l.bf16 %v56_v0  ;;  %v170_v16 = vunpack.c.l.bf16 %v58_v1  ;;  %v291_v1 = vld [vmem:[%s1824_s1 + $0xe0] ss:$8 sps:$4 sm:$0xff]  }
  0x34   :  { %v613_v18 = vsel %vm572_vm0, %v500_v6, -inf  ;;  %v614_v19 = vsel %vm572_vm0, %v502_v7, -inf  ;;  %v503_v20 = vmax.f32 %v167_v4, %v391_v8  ;;  %v505_v21 = vmax.f32 %v169_v5, %v393_v9  ;;  %v68_v6 = vld [vmem:[%s1823_s0 + $0xe4] sm:$0x7] }
  0x35   :  { %927 = vst [vmem:[%s1825_s2 + $0x4c] sm:$0x7] %v1043_v13  ;;  %928 = vst [vmem:[%s1825_s2 + $0x50] sm:$0xf] %v1044_v14  ;;  %v615_v23 = vmax.f32 %v613_v18, %v614_v19  ;;  %v392_v24 = vunpack.c.l.bf16 %v280_v10  ;;  %v394_v25 = vunpack.c.l.bf16 %v282_v11  ;;  %v171_v26 = vunpack.c.l.bf16 %v59_v12  ;;  %v70_v11 = vld [vmem:[%s1823_s0 + $0xec] sm:$0x7] }
  0x36   :  { %v616_v28 = vmax.f32 %v503_v20, %v505_v21  ;;  %v173_v29 = vunpack.c.h.bf16 %v59_v12  ;;  %v395_v30 = vunpack.c.l.bf16 %v283_v17  ;;  %v397_v31 = vunpack.c.h.bf16 %v283_v17  ;;  %v294_v17 = vld [vmem:[%s1824_s1 + $0xec] sm:$0x7] }
  0x37   :  { %v1045_v34 = vpack.c.bf16 %v615_v23, %v615_v23  ;;  %v504_v35 = vmax.f32 %v168_v15, %v392_v24  ;;  %v506_v36 = vmax.f32 %v170_v16, %v394_v25  ;;  %v172_v37 = vunpack.c.l.bf16 %v60_v22  ;;  %v292_v16 = vld [vmem:[%s1824_s1 + $0xe4] sm:$0x7]  ;;  %v71_v22 = vld [vmem:[%s1823_s0 + $0xf0] ss:$8 sps:$4 sm:$0xff]  }
  0x38   :  { %v1046_v39 = vpack.c.bf16 %v616_v28, %v616_v28  ;;  %v507_v40 = vmax.f32 %v171_v26, %v395_v30  ;;  %v509_v41 = vmax.f32 %v173_v29, %v397_v31  ;;  %v174_v42 = vunpack.c.l.bf16 %v62_v27  ;;  %v295_v27 = vld [vmem:[%s1824_s1 + $0xf0] ss:$8 sps:$4 sm:$0xff]  }
  0x39   :  { %929 = vst [vmem:[%s1825_s2 + $0x54] sm:$0x7] %v1045_v34  ;;  %v617_v44 = vsel %vm572_vm0, %v504_v35, -inf  ;;  %v618_v45 = vsel %vm572_vm0, %v506_v36, -inf  ;;  %v396_v46 = vunpack.c.l.bf16 %v284_v32  ;;  %v398_v47 = vunpack.c.l.bf16 %v286_v33  ;;  %v72_v32 = vld [vmem:[%s1823_s0 + $0xf4] sm:$0x7] }
  0x3a   :  { %930 = vst [vmem:[%s1825_s2 + $0x58] sm:$0xf] %v1046_v39  ;;  %v619_v50 = vmax.f32 %v617_v44, %v618_v45  ;;  %v620_v51 = vmax.f32 %v507_v40, %v509_v41  ;;  %v175_v52 = vunpack.c.l.bf16 %v63_v38  ;;  %v177_v53 = vunpack.c.h.bf16 %v63_v38  ;;  %v74_v33 = vld [vmem:[%s1823_s0 + $0xfc] sm:$0x7]  ;;  %v75_v44 = vld [vmem:[%s1823_s0 + $0x100] ss:$8 sps:$4 sm:$0xff]  }
  0x3b   :  { %v508_v54 = vmax.f32 %v172_v37, %v396_v46  ;;  %v510_v55 = vmax.f32 %v174_v42, %v398_v47  ;;  %v399_v56 = vunpack.c.l.bf16 %v287_v43  ;;  %v401_v57 = vunpack.c.h.bf16 %v287_v43  ;;  %v296_v42 = vld [vmem:[%s1824_s1 + $0xf4] sm:$0x7]  ;;  %v298_v43 = vld [vmem:[%s1824_s1 + $0xfc] sm:$0x7] }
  0x3c   :  { %v1047_v61 = vpack.c.bf16 %v619_v50, %v619_v50  ;;  %v1048_v62 = vpack.c.bf16 %v620_v51, %v620_v51  ;;  %v176_v63 = vunpack.c.l.bf16 %v64_v48  ;;  %v178_v0 = vunpack.c.l.bf16 %v66_v49  ;;  %v299_v49 = vld [vmem:[%s1824_s1 + $0x100] ss:$8 sps:$4 sm:$0xff]  }
  0x3d   :  { %v621_v2 = vsel %vm572_vm0, %v508_v54, -inf  ;;  %v622_v3 = vsel %vm572_vm0, %v510_v55, -inf  ;;  %v511_v4 = vmax.f32 %v175_v52, %v399_v56  ;;  %v513_v5 = vmax.f32 %v177_v53, %v401_v57  ;;  %v76_v54 = vld [vmem:[%s1823_s0 + $0x104] sm:$0x7] }
  0x3e   :  { %931 = vst [vmem:[%s1825_s2 + $0x5c] sm:$0x7] %v1047_v61  ;;  %932 = vst [vmem:[%s1825_s2 + $0x60] sm:$0xf] %v1048_v62  ;;  %v623_v7 = vmax.f32 %v621_v2, %v622_v3  ;;  %v400_v8 = vunpack.c.l.bf16 %v288_v58  ;;  %v402_v9 = vunpack.c.l.bf16 %v290_v59  ;;  %v179_v10 = vunpack.c.l.bf16 %v67_v60  ;;  %v78_v59 = vld [vmem:[%s1823_s0 + $0x10c] sm:$0x7] }
  0x3f   :  { %v624_v12 = vmax.f32 %v511_v4, %v513_v5  ;;  %v181_v13 = vunpack.c.h.bf16 %v67_v60  ;;  %v403_v14 = vunpack.c.l.bf16 %v291_v1  ;;  %v405_v15 = vunpack.c.h.bf16 %v291_v1  ;;  %v302_v1 = vld [vmem:[%s1824_s1 + $0x10c] sm:$0x7] }
  0x40   :  { %v1049_v18 = vpack.c.bf16 %v623_v7, %v623_v7  ;;  %v512_v19 = vmax.f32 %v176_v63, %v400_v8  ;;  %v514_v20 = vmax.f32 %v178_v0, %v402_v9  ;;  %v180_v21 = vunpack.c.l.bf16 %v68_v6  ;;  %v300_v0 = vld [vmem:[%s1824_s1 + $0x104] sm:$0x7]  ;;  %v79_v6 = vld [vmem:[%s1823_s0 + $0x110] ss:$8 sps:$4 sm:$0xff]  }
  0x41   :  { %v1050_v23 = vpack.c.bf16 %v624_v12, %v624_v12  ;;  %v515_v24 = vmax.f32 %v179_v10, %v403_v14  ;;  %v517_v25 = vmax.f32 %v181_v13, %v405_v15  ;;  %v182_v26 = vunpack.c.l.bf16 %v70_v11  ;;  %v303_v11 = vld [vmem:[%s1824_s1 + $0x110] ss:$8 sps:$4 sm:$0xff]  }
  0x42   :  { %933 = vst [vmem:[%s1825_s2 + $0x64] sm:$0x7] %v1049_v18  ;;  %v625_v28 = vsel %vm572_vm0, %v512_v19, -inf  ;;  %v626_v29 = vsel %vm572_vm0, %v514_v20, -inf  ;;  %v404_v30 = vunpack.c.l.bf16 %v292_v16  ;;  %v406_v31 = vunpack.c.l.bf16 %v294_v17  ;;  %v80_v16 = vld [vmem:[%s1823_s0 + $0x114] sm:$0x7] }
  0x43   :  { %934 = vst [vmem:[%s1825_s2 + $0x68] sm:$0xf] %v1050_v23  ;;  %v627_v34 = vmax.f32 %v625_v28, %v626_v29  ;;  %v628_v35 = vmax.f32 %v515_v24, %v517_v25  ;;  %v183_v36 = vunpack.c.l.bf16 %v71_v22  ;;  %v185_v37 = vunpack.c.h.bf16 %v71_v22  ;;  %v82_v17 = vld [vmem:[%s1823_s0 + $0x11c] sm:$0x7]  ;;  %v83_v28 = vld [vmem:[%s1823_s0 + $0x120] ss:$8 sps:$4 sm:$0xff]  }
  0x44   :  { %v516_v38 = vmax.f32 %v180_v21, %v404_v30  ;;  %v518_v39 = vmax.f32 %v182_v26, %v406_v31  ;;  %v407_v40 = vunpack.c.l.bf16 %v295_v27  ;;  %v409_v41 = vunpack.c.h.bf16 %v295_v27  ;;  %v304_v26 = vld [vmem:[%s1824_s1 + $0x114] sm:$0x7]  ;;  %v306_v27 = vld [vmem:[%s1824_s1 + $0x11c] sm:$0x7] }
  0x45   :  { %v1051_v45 = vpack.c.bf16 %v627_v34, %v627_v34  ;;  %v1052_v46 = vpack.c.bf16 %v628_v35, %v628_v35  ;;  %v184_v47 = vunpack.c.l.bf16 %v72_v32  ;;  %v186_v48 = vunpack.c.l.bf16 %v74_v33  ;;  %v307_v33 = vld [vmem:[%s1824_s1 + $0x120] ss:$8 sps:$4 sm:$0xff]  }
  0x46   :  { %v629_v50 = vsel %vm572_vm0, %v516_v38, -inf  ;;  %v630_v51 = vsel %vm572_vm0, %v518_v39, -inf  ;;  %v519_v52 = vmax.f32 %v183_v36, %v407_v40  ;;  %v521_v53 = vmax.f32 %v185_v37, %v409_v41  ;;  %v84_v38 = vld [vmem:[%s1823_s0 + $0x124] sm:$0x7] }
  0x47   :  { %935 = vst [vmem:[%s1825_s2 + $0x6c] sm:$0x7] %v1051_v45  ;;  %936 = vst [vmem:[%s1825_s2 + $0x70] sm:$0xf] %v1052_v46  ;;  %v631_v55 = vmax.f32 %v629_v50, %v630_v51  ;;  %v408_v56 = vunpack.c.l.bf16 %v296_v42  ;;  %v410_v57 = vunpack.c.l.bf16 %v298_v43  ;;  %v187_v58 = vunpack.c.l.bf16 %v75_v44  ;;  %v86_v43 = vld [vmem:[%s1823_s0 + $0x12c] sm:$0x7] }
  0x48   :  { %v632_v60 = vmax.f32 %v519_v52, %v521_v53  ;;  %v189_v61 = vunpack.c.h.bf16 %v75_v44  ;;  %v411_v62 = vunpack.c.l.bf16 %v299_v49  ;;  %v413_v63 = vunpack.c.h.bf16 %v299_v49  ;;  %v310_v49 = vld [vmem:[%s1824_s1 + $0x12c] sm:$0x7] }
  0x49   :  { %v1053_v2 = vpack.c.bf16 %v631_v55, %v631_v55  ;;  %v520_v3 = vmax.f32 %v184_v47, %v408_v56  ;;  %v522_v4 = vmax.f32 %v186_v48, %v410_v57  ;;  %v188_v5 = vunpack.c.l.bf16 %v76_v54  ;;  %v308_v48 = vld [vmem:[%s1824_s1 + $0x124] sm:$0x7]  ;;  %v87_v54 = vld [vmem:[%s1823_s0 + $0x130] ss:$8 sps:$4 sm:$0xff]  }
  0x4a   :  { %v1054_v7 = vpack.c.bf16 %v632_v60, %v632_v60  ;;  %v523_v8 = vmax.f32 %v187_v58, %v411_v62  ;;  %v525_v9 = vmax.f32 %v189_v61, %v413_v63  ;;  %v190_v10 = vunpack.c.l.bf16 %v78_v59  ;;  %v311_v59 = vld [vmem:[%s1824_s1 + $0x130] ss:$8 sps:$4 sm:$0xff]  }
  0x4b   :  { %937 = vst [vmem:[%s1825_s2 + $0x74] sm:$0x7] %v1053_v2  ;;  %v633_v12 = vsel %vm572_vm0, %v520_v3, -inf  ;;  %v634_v13 = vsel %vm572_vm0, %v522_v4, -inf  ;;  %v412_v14 = vunpack.c.l.bf16 %v300_v0  ;;  %v414_v15 = vunpack.c.l.bf16 %v302_v1  ;;  %v88_v0 = vld [vmem:[%s1823_s0 + $0x134] sm:$0x7] }
  0x4c   :  { %938 = vst [vmem:[%s1825_s2 + $0x78] sm:$0xf] %v1054_v7  ;;  %v635_v18 = vmax.f32 %v633_v12, %v634_v13  ;;  %v636_v19 = vmax.f32 %v523_v8, %v525_v9  ;;  %v191_v20 = vunpack.c.l.bf16 %v79_v6  ;;  %v193_v21 = vunpack.c.h.bf16 %v79_v6  ;;  %v90_v1 = vld [vmem:[%s1823_s0 + $0x13c] sm:$0x7]  ;;  %v91_v12 = vld [vmem:[%s1823_s0 + $0x140] ss:$8 sps:$4 sm:$0xff]  }
  0x4d   :  { %v524_v22 = vmax.f32 %v188_v5, %v412_v14  ;;  %v526_v23 = vmax.f32 %v190_v10, %v414_v15  ;;  %v415_v24 = vunpack.c.l.bf16 %v303_v11  ;;  %v417_v25 = vunpack.c.h.bf16 %v303_v11  ;;  %v312_v10 = vld [vmem:[%s1824_s1 + $0x134] sm:$0x7]  ;;  %v314_v11 = vld [vmem:[%s1824_s1 + $0x13c] sm:$0x7] }
  0x4e   :  { %v1055_v29 = vpack.c.bf16 %v635_v18, %v635_v18  ;;  %v1056_v30 = vpack.c.bf16 %v636_v19, %v636_v19  ;;  %v192_v31 = vunpack.c.l.bf16 %v80_v16  ;;  %v194_v32 = vunpack.c.l.bf16 %v82_v17  ;;  %v315_v17 = vld [vmem:[%s1824_s1 + $0x140] ss:$8 sps:$4 sm:$0xff]  }
  0x4f   :  { %v637_v34 = vsel %vm572_vm0, %v524_v22, -inf  ;;  %v638_v35 = vsel %vm572_vm0, %v526_v23, -inf  ;;  %v527_v36 = vmax.f32 %v191_v20, %v415_v24  ;;  %v529_v37 = vmax.f32 %v193_v21, %v417_v25  ;;  %v92_v22 = vld [vmem:[%s1823_s0 + $0x144] sm:$0x7] }
  0x50   :  { %939 = vst [vmem:[%s1825_s2 + $0x7c] sm:$0x7] %v1055_v29  ;;  %940 = vst [vmem:[%s1825_s2 + $0x80] sm:$0xf] %v1056_v30  ;;  %v639_v39 = vmax.f32 %v637_v34, %v638_v35  ;;  %v416_v40 = vunpack.c.l.bf16 %v304_v26  ;;  %v418_v41 = vunpack.c.l.bf16 %v306_v27  ;;  %v195_v42 = vunpack.c.l.bf16 %v83_v28  ;;  %v94_v27 = vld [vmem:[%s1823_s0 + $0x14c] sm:$0x7] }
  0x51   :  { %v640_v44 = vmax.f32 %v527_v36, %v529_v37  ;;  %v197_v45 = vunpack.c.h.bf16 %v83_v28  ;;  %v419_v46 = vunpack.c.l.bf16 %v307_v33  ;;  %v421_v47 = vunpack.c.h.bf16 %v307_v33  ;;  %v318_v33 = vld [vmem:[%s1824_s1 + $0x14c] sm:$0x7] }
  0x52   :  { %v1057_v50 = vpack.c.bf16 %v639_v39, %v639_v39  ;;  %v528_v51 = vmax.f32 %v192_v31, %v416_v40  ;;  %v530_v52 = vmax.f32 %v194_v32, %v418_v41  ;;  %v196_v53 = vunpack.c.l.bf16 %v84_v38  ;;  %v316_v32 = vld [vmem:[%s1824_s1 + $0x144] sm:$0x7]  ;;  %v95_v38 = vld [vmem:[%s1823_s0 + $0x150] ss:$8 sps:$4 sm:$0xff]  }
  0x53   :  { %v1058_v55 = vpack.c.bf16 %v640_v44, %v640_v44  ;;  %v531_v56 = vmax.f32 %v195_v42, %v419_v46  ;;  %v533_v57 = vmax.f32 %v197_v45, %v421_v47  ;;  %v198_v58 = vunpack.c.l.bf16 %v86_v43  ;;  %v319_v43 = vld [vmem:[%s1824_s1 + $0x150] ss:$8 sps:$4 sm:$0xff]  }
  0x54   :  { %941 = vst [vmem:[%s1825_s2 + $0x84] sm:$0x7] %v1057_v50  ;;  %v641_v60 = vsel %vm572_vm0, %v528_v51, -inf  ;;  %v642_v61 = vsel %vm572_vm0, %v530_v52, -inf  ;;  %v420_v62 = vunpack.c.l.bf16 %v308_v48  ;;  %v422_v63 = vunpack.c.l.bf16 %v310_v49  ;;  %v96_v48 = vld [vmem:[%s1823_s0 + $0x154] sm:$0x7] }
  0x55   :  { %942 = vst [vmem:[%s1825_s2 + $0x88] sm:$0xf] %v1058_v55  ;;  %v643_v2 = vmax.f32 %v641_v60, %v642_v61  ;;  %v644_v3 = vmax.f32 %v531_v56, %v533_v57  ;;  %v199_v4 = vunpack.c.l.bf16 %v87_v54  ;;  %v201_v5 = vunpack.c.h.bf16 %v87_v54  ;;  %v98_v49 = vld [vmem:[%s1823_s0 + $0x15c] sm:$0x7]  ;;  %v99_v60 = vld [vmem:[%s1823_s0 + $0x160] ss:$8 sps:$4 sm:$0xff]  }
  0x56   :  { %v532_v6 = vmax.f32 %v196_v53, %v420_v62  ;;  %v534_v7 = vmax.f32 %v198_v58, %v422_v63  ;;  %v423_v8 = vunpack.c.l.bf16 %v311_v59  ;;  %v425_v9 = vunpack.c.h.bf16 %v311_v59  ;;  %v320_v58 = vld [vmem:[%s1824_s1 + $0x154] sm:$0x7]  ;;  %v322_v59 = vld [vmem:[%s1824_s1 + $0x15c] sm:$0x7] }
  0x57   :  { %v1059_v13 = vpack.c.bf16 %v643_v2, %v643_v2  ;;  %v1060_v14 = vpack.c.bf16 %v644_v3, %v644_v3  ;;  %v200_v15 = vunpack.c.l.bf16 %v88_v0  ;;  %v202_v16 = vunpack.c.l.bf16 %v90_v1  ;;  %v323_v1 = vld [vmem:[%s1824_s1 + $0x160] ss:$8 sps:$4 sm:$0xff]  }
  0x58   :  { %v645_v18 = vsel %vm572_vm0, %v532_v6, -inf  ;;  %v646_v19 = vsel %vm572_vm0, %v534_v7, -inf  ;;  %v535_v20 = vmax.f32 %v199_v4, %v423_v8  ;;  %v537_v21 = vmax.f32 %v201_v5, %v425_v9  ;;  %v100_v6 = vld [vmem:[%s1823_s0 + $0x164] sm:$0x7] }
  0x59   :  { %943 = vst [vmem:[%s1825_s2 + $0x8c] sm:$0x7] %v1059_v13  ;;  %944 = vst [vmem:[%s1825_s2 + $0x90] sm:$0xf] %v1060_v14  ;;  %v647_v23 = vmax.f32 %v645_v18, %v646_v19  ;;  %v424_v24 = vunpack.c.l.bf16 %v312_v10  ;;  %v426_v25 = vunpack.c.l.bf16 %v314_v11  ;;  %v203_v26 = vunpack.c.l.bf16 %v91_v12  ;;  %v102_v11 = vld [vmem:[%s1823_s0 + $0x16c] sm:$0x7] }
  0x5a   :  { %v648_v28 = vmax.f32 %v535_v20, %v537_v21  ;;  %v205_v29 = vunpack.c.h.bf16 %v91_v12  ;;  %v427_v30 = vunpack.c.l.bf16 %v315_v17  ;;  %v429_v31 = vunpack.c.h.bf16 %v315_v17  ;;  %v326_v17 = vld [vmem:[%s1824_s1 + $0x16c] sm:$0x7] }
  0x5b   :  { %v1061_v34 = vpack.c.bf16 %v647_v23, %v647_v23  ;;  %v536_v35 = vmax.f32 %v200_v15, %v424_v24  ;;  %v538_v36 = vmax.f32 %v202_v16, %v426_v25  ;;  %v204_v37 = vunpack.c.l.bf16 %v92_v22  ;;  %v324_v16 = vld [vmem:[%s1824_s1 + $0x164] sm:$0x7]  ;;  %v103_v22 = vld [vmem:[%s1823_s0 + $0x170] ss:$8 sps:$4 sm:$0xff]  }
  0x5c   :  { %v1062_v39 = vpack.c.bf16 %v648_v28, %v648_v28  ;;  %v539_v40 = vmax.f32 %v203_v26, %v427_v30  ;;  %v541_v41 = vmax.f32 %v205_v29, %v429_v31  ;;  %v206_v42 = vunpack.c.l.bf16 %v94_v27  ;;  %v327_v27 = vld [vmem:[%s1824_s1 + $0x170] ss:$8 sps:$4 sm:$0xff]  }
  0x5d   :  { %945 = vst [vmem:[%s1825_s2 + $0x94] sm:$0x7] %v1061_v34  ;;  %v649_v44 = vsel %vm572_vm0, %v536_v35, -inf  ;;  %v650_v45 = vsel %vm572_vm0, %v538_v36, -inf  ;;  %v428_v46 = vunpack.c.l.bf16 %v316_v32  ;;  %v430_v47 = vunpack.c.l.bf16 %v318_v33  ;;  %v104_v32 = vld [vmem:[%s1823_s0 + $0x174] sm:$0x7] }
  0x5e   :  { %946 = vst [vmem:[%s1825_s2 + $0x98] sm:$0xf] %v1062_v39  ;;  %v651_v50 = vmax.f32 %v649_v44, %v650_v45  ;;  %v652_v51 = vmax.f32 %v539_v40, %v541_v41  ;;  %v207_v52 = vunpack.c.l.bf16 %v95_v38  ;;  %v209_v53 = vunpack.c.h.bf16 %v95_v38  ;;  %v106_v33 = vld [vmem:[%s1823_s0 + $0x17c] sm:$0x7]  ;;  %v107_v44 = vld [vmem:[%s1823_s0 + $0x180] ss:$8 sps:$4 sm:$0xff]  }
  0x5f   :  { %v540_v54 = vmax.f32 %v204_v37, %v428_v46  ;;  %v542_v55 = vmax.f32 %v206_v42, %v430_v47  ;;  %v431_v56 = vunpack.c.l.bf16 %v319_v43  ;;  %v433_v57 = vunpack.c.h.bf16 %v319_v43  ;;  %v328_v42 = vld [vmem:[%s1824_s1 + $0x174] sm:$0x7]  ;;  %v330_v43 = vld [vmem:[%s1824_s1 + $0x17c] sm:$0x7] }
  0x60   :  { %v1063_v61 = vpack.c.bf16 %v651_v50, %v651_v50  ;;  %v1064_v62 = vpack.c.bf16 %v652_v51, %v652_v51  ;;  %v208_v63 = vunpack.c.l.bf16 %v96_v48  ;;  %v210_v0 = vunpack.c.l.bf16 %v98_v49  ;;  %v331_v49 = vld [vmem:[%s1824_s1 + $0x180] ss:$8 sps:$4 sm:$0xff]  }
  0x61   :  { %v653_v2 = vsel %vm572_vm0, %v540_v54, -inf  ;;  %v654_v3 = vsel %vm572_vm0, %v542_v55, -inf  ;;  %v543_v4 = vmax.f32 %v207_v52, %v431_v56  ;;  %v545_v5 = vmax.f32 %v209_v53, %v433_v57  ;;  %v108_v54 = vld [vmem:[%s1823_s0 + $0x184] sm:$0x7] }
  0x62   :  { %947 = vst [vmem:[%s1825_s2 + $0x9c] sm:$0x7] %v1063_v61  ;;  %948 = vst [vmem:[%s1825_s2 + $0xa0] sm:$0xf] %v1064_v62  ;;  %v655_v7 = vmax.f32 %v653_v2, %v654_v3  ;;  %v432_v8 = vunpack.c.l.bf16 %v320_v58  ;;  %v434_v9 = vunpack.c.l.bf16 %v322_v59  ;;  %v211_v10 = vunpack.c.l.bf16 %v99_v60  ;;  %v110_v59 = vld [vmem:[%s1823_s0 + $0x18c] sm:$0x7] }
  0x63   :  { %v656_v12 = vmax.f32 %v543_v4, %v545_v5  ;;  %v213_v13 = vunpack.c.h.bf16 %v99_v60  ;;  %v435_v14 = vunpack.c.l.bf16 %v323_v1  ;;  %v437_v15 = vunpack.c.h.bf16 %v323_v1  ;;  %v334_v1 = vld [vmem:[%s1824_s1 + $0x18c] sm:$0x7] }
  0x64   :  { %v1065_v18 = vpack.c.bf16 %v655_v7, %v655_v7  ;;  %v544_v19 = vmax.f32 %v208_v63, %v432_v8  ;;  %v546_v20 = vmax.f32 %v210_v0, %v434_v9  ;;  %v212_v21 = vunpack.c.l.bf16 %v100_v6  ;;  %v332_v0 = vld [vmem:[%s1824_s1 + $0x184] sm:$0x7]  ;;  %v111_v6 = vld [vmem:[%s1823_s0 + $0x190] ss:$8 sps:$4 sm:$0xff]  }
  0x65   :  { %v1066_v23 = vpack.c.bf16 %v656_v12, %v656_v12  ;;  %v547_v24 = vmax.f32 %v211_v10, %v435_v14  ;;  %v549_v25 = vmax.f32 %v213_v13, %v437_v15  ;;  %v214_v26 = vunpack.c.l.bf16 %v102_v11  ;;  %v335_v11 = vld [vmem:[%s1824_s1 + $0x190] ss:$8 sps:$4 sm:$0xff]  }
  0x66   :  { %949 = vst [vmem:[%s1825_s2 + $0xa4] sm:$0x7] %v1065_v18  ;;  %v657_v28 = vsel %vm572_vm0, %v544_v19, -inf  ;;  %v658_v29 = vsel %vm572_vm0, %v546_v20, -inf  ;;  %v436_v30 = vunpack.c.l.bf16 %v324_v16  ;;  %v438_v31 = vunpack.c.l.bf16 %v326_v17  ;;  %v112_v16 = vld [vmem:[%s1823_s0 + $0x194] sm:$0x7] }
  0x67   :  { %950 = vst [vmem:[%s1825_s2 + $0xa8] sm:$0xf] %v1066_v23  ;;  %v659_v34 = vmax.f32 %v657_v28, %v658_v29  ;;  %v660_v35 = vmax.f32 %v547_v24, %v549_v25  ;;  %v215_v36 = vunpack.c.l.bf16 %v103_v22  ;;  %v217_v37 = vunpack.c.h.bf16 %v103_v22  ;;  %v114_v17 = vld [vmem:[%s1823_s0 + $0x19c] sm:$0x7]  ;;  %v115_v28 = vld [vmem:[%s1823_s0 + $0x1a0] ss:$8 sps:$4 sm:$0xff]  }
  0x68   :  { %v548_v38 = vmax.f32 %v212_v21, %v436_v30  ;;  %v550_v39 = vmax.f32 %v214_v26, %v438_v31  ;;  %v439_v40 = vunpack.c.l.bf16 %v327_v27  ;;  %v441_v41 = vunpack.c.h.bf16 %v327_v27  ;;  %v336_v26 = vld [vmem:[%s1824_s1 + $0x194] sm:$0x7]  ;;  %v338_v27 = vld [vmem:[%s1824_s1 + $0x19c] sm:$0x7] }
  0x69   :  { %v1067_v45 = vpack.c.bf16 %v659_v34, %v659_v34  ;;  %v1068_v46 = vpack.c.bf16 %v660_v35, %v660_v35  ;;  %v216_v47 = vunpack.c.l.bf16 %v104_v32  ;;  %v218_v48 = vunpack.c.l.bf16 %v106_v33  ;;  %v339_v33 = vld [vmem:[%s1824_s1 + $0x1a0] ss:$8 sps:$4 sm:$0xff]  }
  0x6a   :  { %v661_v50 = vsel %vm572_vm0, %v548_v38, -inf  ;;  %v662_v51 = vsel %vm572_vm0, %v550_v39, -inf  ;;  %v551_v52 = vmax.f32 %v215_v36, %v439_v40  ;;  %v553_v53 = vmax.f32 %v217_v37, %v441_v41  ;;  %v116_v38 = vld [vmem:[%s1823_s0 + $0x1a4] sm:$0x7] }
  0x6b   :  { %951 = vst [vmem:[%s1825_s2 + $0xac] sm:$0x7] %v1067_v45  ;;  %952 = vst [vmem:[%s1825_s2 + $0xb0] sm:$0xf] %v1068_v46  ;;  %v663_v55 = vmax.f32 %v661_v50, %v662_v51  ;;  %v440_v56 = vunpack.c.l.bf16 %v328_v42  ;;  %v442_v57 = vunpack.c.l.bf16 %v330_v43  ;;  %v219_v58 = vunpack.c.l.bf16 %v107_v44  ;;  %v118_v43 = vld [vmem:[%s1823_s0 + $0x1ac] sm:$0x7] }
  0x6c   :  { %v664_v60 = vmax.f32 %v551_v52, %v553_v53  ;;  %v221_v61 = vunpack.c.h.bf16 %v107_v44  ;;  %v443_v62 = vunpack.c.l.bf16 %v331_v49  ;;  %v445_v63 = vunpack.c.h.bf16 %v331_v49  ;;  %v342_v49 = vld [vmem:[%s1824_s1 + $0x1ac] sm:$0x7] }
  0x6d   :  { %v1069_v2 = vpack.c.bf16 %v663_v55, %v663_v55  ;;  %v552_v3 = vmax.f32 %v216_v47, %v440_v56  ;;  %v554_v4 = vmax.f32 %v218_v48, %v442_v57  ;;  %v220_v5 = vunpack.c.l.bf16 %v108_v54  ;;  %v340_v48 = vld [vmem:[%s1824_s1 + $0x1a4] sm:$0x7]  ;;  %v119_v54 = vld [vmem:[%s1823_s0 + $0x1b0] ss:$8 sps:$4 sm:$0xff]  }
  0x6e   :  { %v1070_v7 = vpack.c.bf16 %v664_v60, %v664_v60  ;;  %v555_v8 = vmax.f32 %v219_v58, %v443_v62  ;;  %v557_v9 = vmax.f32 %v221_v61, %v445_v63  ;;  %v222_v10 = vunpack.c.l.bf16 %v110_v59  ;;  %v343_v59 = vld [vmem:[%s1824_s1 + $0x1b0] ss:$8 sps:$4 sm:$0xff]  }
  0x6f   :  { %953 = vst [vmem:[%s1825_s2 + $0xb4] sm:$0x7] %v1069_v2  ;;  %v665_v12 = vsel %vm572_vm0, %v552_v3, -inf  ;;  %v666_v13 = vsel %vm572_vm0, %v554_v4, -inf  ;;  %v444_v14 = vunpack.c.l.bf16 %v332_v0  ;;  %v446_v15 = vunpack.c.l.bf16 %v334_v1  ;;  %v120_v0 = vld [vmem:[%s1823_s0 + $0x1b4] sm:$0x7] }
  0x70   :  { %954 = vst [vmem:[%s1825_s2 + $0xb8] sm:$0xf] %v1070_v7  ;;  %v667_v18 = vmax.f32 %v665_v12, %v666_v13  ;;  %v668_v19 = vmax.f32 %v555_v8, %v557_v9  ;;  %v223_v20 = vunpack.c.l.bf16 %v111_v6  ;;  %v225_v21 = vunpack.c.h.bf16 %v111_v6  ;;  %v122_v1 = vld [vmem:[%s1823_s0 + $0x1bc] sm:$0x7] }
  0x71   :  { %v556_v22 = vmax.f32 %v220_v5, %v444_v14  ;;  %v558_v23 = vmax.f32 %v222_v10, %v446_v15  ;;  %v447_v24 = vunpack.c.l.bf16 %v335_v11  ;;  %v449_v25 = vunpack.c.h.bf16 %v335_v11  ;;  %v344_v10 = vld [vmem:[%s1824_s1 + $0x1b4] sm:$0x7]  ;;  %v346_v11 = vld [vmem:[%s1824_s1 + $0x1bc] sm:$0x7] }
  0x72   :  { %v1071_v29 = vpack.c.bf16 %v667_v18, %v667_v18  ;;  %v1072_v30 = vpack.c.bf16 %v668_v19, %v668_v19  ;;  %v224_v31 = vunpack.c.l.bf16 %v112_v16  ;;  %v226_v32 = vunpack.c.l.bf16 %v114_v17 }
  0x73   :  { %v669_v34 = vsel %vm572_vm0, %v556_v22, -inf  ;;  %v670_v35 = vsel %vm572_vm0, %v558_v23, -inf  ;;  %v559_v36 = vmax.f32 %v223_v20, %v447_v24  ;;  %v561_v37 = vmax.f32 %v225_v21, %v449_v25 }
  0x74   :  { %955 = vst [vmem:[%s1825_s2 + $0xbc] sm:$0x7] %v1071_v29  ;;  %956 = vst [vmem:[%s1825_s2 + $0xc0] sm:$0xf] %v1072_v30  ;;  %v671_v39 = vmax.f32 %v669_v34, %v670_v35  ;;  %v448_v40 = vunpack.c.l.bf16 %v336_v26  ;;  %v450_v41 = vunpack.c.l.bf16 %v338_v27  ;;  %v227_v42 = vunpack.c.l.bf16 %v115_v28 }
  0x75   :  { %v672_v44 = vmax.f32 %v559_v36, %v561_v37  ;;  %v229_v45 = vunpack.c.h.bf16 %v115_v28  ;;  %v451_v46 = vunpack.c.l.bf16 %v339_v33  ;;  %v453_v47 = vunpack.c.h.bf16 %v339_v33 }
  0x76   :  { %v1073_v50 = vpack.c.bf16 %v671_v39, %v671_v39  ;;  %v560_v51 = vmax.f32 %v224_v31, %v448_v40  ;;  %v562_v52 = vmax.f32 %v226_v32, %v450_v41  ;;  %v228_v53 = vunpack.c.l.bf16 %v116_v38 }
  0x77   :  { %v1074_v55 = vpack.c.bf16 %v672_v44, %v672_v44  ;;  %v563_v56 = vmax.f32 %v227_v42, %v451_v46  ;;  %v565_v57 = vmax.f32 %v229_v45, %v453_v47  ;;  %v230_v58 = vunpack.c.l.bf16 %v118_v43 }
  0x78   :  { %957 = vst [vmem:[%s1825_s2 + $0xc4] sm:$0x7] %v1073_v50  ;;  %v673_v60 = vsel %vm572_vm0, %v560_v51, -inf  ;;  %v674_v61 = vsel %vm572_vm0, %v562_v52, -inf  ;;  %v452_v62 = vunpack.c.l.bf16 %v340_v48  ;;  %v454_v63 = vunpack.c.l.bf16 %v342_v49 }
  0x79   :  { %958 = vst [vmem:[%s1825_s2 + $0xc8] sm:$0xf] %v1074_v55  ;;  %v675_v2 = vmax.f32 %v673_v60, %v674_v61  ;;  %v676_v3 = vmax.f32 %v563_v56, %v565_v57  ;;  %v231_v4 = vunpack.c.l.bf16 %v119_v54  ;;  %v233_v5 = vunpack.c.h.bf16 %v119_v54 }
  0x7a   :  { %v564_v6 = vmax.f32 %v228_v53, %v452_v62  ;;  %v566_v7 = vmax.f32 %v230_v58, %v454_v63  ;;  %v455_v8 = vunpack.c.l.bf16 %v343_v59  ;;  %v457_v9 = vunpack.c.h.bf16 %v343_v59 }
  0x7b   :  { %v1075_v12 = vpack.c.bf16 %v675_v2, %v675_v2  ;;  %v1076_v13 = vpack.c.bf16 %v676_v3, %v676_v3  ;;  %v232_v14 = vunpack.c.l.bf16 %v120_v0  ;;  %v234_v15 = vunpack.c.l.bf16 %v122_v1 }
  0x7c   :  { %v677_v16 = vsel %vm572_vm0, %v564_v6, -inf  ;;  %v678_v17 = vsel %vm572_vm0, %v566_v7, -inf  ;;  %v567_v18 = vmax.f32 %v231_v4, %v455_v8  ;;  %v569_v19 = vmax.f32 %v233_v5, %v457_v9 }
  0x7d   :  { %959 = vst [vmem:[%s1825_s2 + $0xcc] sm:$0x7] %v1075_v12  ;;  %960 = vst [vmem:[%s1825_s2 + $0xd0] sm:$0xf] %v1076_v13  ;;  %v679_v20 = vmax.f32 %v677_v16, %v678_v17  ;;  %v456_v21 = vunpack.c.l.bf16 %v344_v10  ;;  %v458_v22 = vunpack.c.l.bf16 %v346_v11 }
  0x7e   :  { %v680_v23 = vmax.f32 %v567_v18, %v569_v19 }
  0x7f   :  { %v1077_v24 = vpack.c.bf16 %v679_v20, %v679_v20  ;;  %v568_v25 = vmax.f32 %v232_v14, %v456_v21  ;;  %v570_v26 = vmax.f32 %v234_v15, %v458_v22 }
  0x80   :  { %v1078_v27 = vpack.c.bf16 %v680_v23, %v680_v23 }
  0x81   :  { %961 = vst [vmem:[%s1825_s2 + $0xd4] sm:$0x7] %v1077_v24  ;;  %v681_v28 = vsel %vm572_vm0, %v568_v25, -inf  ;;  %v682_v29 = vsel %vm572_vm0, %v570_v26, -inf }
  0x82   :  { %962 = vst [vmem:[%s1825_s2 + $0xd8] sm:$0xf] %v1078_v27  ;;  %v683_v30 = vmax.f32 %v681_v28, %v682_v29 }
  0x84   :  { %v1079_v31 = vpack.c.bf16 %v683_v30, %v683_v30 }
  0x86   :  { %963 = vst [vmem:[%s1825_s2 + $0xdc] sm:$0x7] %v1079_v31 }

// kernel: triplenet_forward.8
= control target key start
LH: loop header
LB: loop body
LE: loop exit
PB: predicated region body
PF: predicated region fallthrough
CT: control target
= control target key end

     0   :  { %s4347_s12 = smov 0   ;;  %s4349_s13 = smov 0   ;;  %s4894_s0 = inlined_call_operand.vmem [shape: bf16[3,392,800], index: 0, kind: input, shape index: {}]   ;;  %s4895_s1 = inlined_call_operand.vmem [shape: bf16[3,800,64], index: 1, kind: input, shape index: {}]   ;;  %s4896_s2 = inlined_call_operand.vmem [shape: f32[3,1,64], index: 2, kind: input, shape index: {}]   ;;  %s4897_s3 = inlined_call_operand.vmem [shape: bf16[3,392,64], index: 3, kind: output, shape index: {}]  }
   0x1   :  { %s4351_s14 = smov 0  }
   0x2 LB: > { %s32_s15 = sadd.s32 1, %s4318_s13  ;;  %p3189_p0 = scmp.ge.s32.totalorder %s4322_s14, 1  ;;  %s4322_s14 = sphi %s4351_s14, %s13_s14   ;;  %s4318_s13 = sphi %s4349_s13, %s4899_s13   ;;  %s4314_s12 = sphi %s4347_s12, %s4898_s12  }
   0x3   : > { %p34_p1 = scmp.ge.s32.totalorder %s32_s15, 3  ;;  %p196_p2 = scmp.lt.s32.totalorder %s4322_s14, 4 }
   0x5   : > { %s4901_s15 = smov (%p34_p1, %s32_s15), 0  ;;  %p197_p3 = pnand %p3189_p0, %p196_p2 }
   0x6   : > { %p247_p4 = scmp.lt.s32.totalorder (!%p197_p3), %s4314_s12, 2  ;;  %v4324_v0 = vmov (!%p197_p3), 0   ;;  %v4325_v40 = vmov (!%p197_p3), 0.0   ;;  %vm4326_vm0 = vmmov (!%p197_p3), 0   ;;  %vm1752_vm1 = vcmask (!%p197_p3), 261120  }
   0x7   : > { %200 = sbr.rel (%p197_p3) target bundleno = 695 (0x2b7), region = 32  ;;  %1828 = vmatprep.subr.bf16.mxu1 (!%p197_p3), %v4324_v0  ;;  %2292 = vmatprep.subr.bf16.mxu0 (!%p197_p3), %v4324_v0  ;;  %vm3002_vm2 = vcmask (!%p197_p3), 519168  }
   0xe   : > { %s4903_s12 = smov (!%p247_p4, %s4314_s12), 2 }
   0xf   : > { %s3974_s16 = smul.u32 400, %s4903_s12  ;;  %s270_s26 = scalar_lea.vmem %s4896_s2, %s4903_s12 }
  0x10   : > { %s3973_s20 = smul.u32 1372, %s4903_s12 }
  0x11   : > { %s4373_s19 = scalar_lea.vmem %s4895_s1, %s3974_s16  ;;  %s3975_s27 = smul.u32 196, %s4903_s12 }
  0x12   : > { %v4003_v1 = vld [vmem:[%s4373_s19] sm:$0xff]   ;;  %v4005_v3 = vld [vmem:[%s4373_s19 + $0x8] sm:$0xff]   ;;  %v4007_v5 = vld [vmem:[%s4373_s19 + $0x10] sm:$0xff]   ;;  %s4410_s23 = scalar_lea.vmem %s4894_s0, %s3973_s20 }
  0x13   : > { %v4004_v2 = vld [vmem:[%s4373_s19 + $0x100] sm:$0xff]   ;;  %1829 = vmatpush1.bf16.msra.mxu1 %v4003_v1  ;;  %v4006_v4 = vld [vmem:[%s4373_s19 + $0x108] sm:$0xff]   ;;  %v4008_v6 = vld [vmem:[%s4373_s19 + $0x110] sm:$0xff]   ;;  %s4738_s30 = scalar_lea.vmem %s4897_s3, %s3975_s27 }
  0x14   : > { %2293 = vmatpush1.bf16.msra.mxu0 %v4004_v2  ;;  %1830 = vmatprep.subr.bf16.mxu1 %v4324_v0  ;;  %v4009_v7 = vld [vmem:[%s4373_s19 + $0x18] sm:$0xff]   ;;  %v4011_v9 = vld [vmem:[%s4373_s19 + $0x20] sm:$0xff]   ;;  %v4013_v11 = vld [vmem:[%s4373_s19 + $0x28] sm:$0xff]  }
  0x15   : > { %2294 = vmatprep.subr.bf16.mxu0 %v4324_v0  ;;  %v4010_v8 = vld [vmem:[%s4373_s19 + $0x118] sm:$0xff]   ;;  %v4012_v10 = vld [vmem:[%s4373_s19 + $0x120] sm:$0xff]   ;;  %v4014_v12 = vld [vmem:[%s4373_s19 + $0x128] sm:$0xff]  }
  0x16   : > { %v4015_v13 = vld [vmem:[%s4373_s19 + $0x30] sm:$0xff]   ;;  %v4017_v15 = vld [vmem:[%s4373_s19 + $0x38] sm:$0xff]   ;;  %v4019_v17 = vld [vmem:[%s4373_s19 + $0x40] sm:$0xff]  }
  0x17   : > { %1831 = vmatpush1.bf16.msra.mxu1 %v4005_v3  ;;  %v4016_v14 = vld [vmem:[%s4373_s19 + $0x130] sm:$0xff]   ;;  %v4018_v16 = vld [vmem:[%s4373_s19 + $0x138] sm:$0xff]   ;;  %v4020_v18 = vld [vmem:[%s4373_s19 + $0x140] sm:$0xff]  }
  0x18   : > { %2295 = vmatpush1.bf16.msra.mxu0 %v4006_v4  ;;  %1832 = vmatprep.subr.bf16.mxu1 %v4324_v0  ;;  %v4037_v19 = vld [vmem:[%s4410_s23 + $0x4] ss:$28 sps:$4 sm:$0xff]   ;;  %v4021_v20 = vld [vmem:[%s4373_s19 + $0x48] sm:$0xff]   ;;  %v4040_v21 = vld [vmem:[%s4410_s23 + $0x14] ss:$28 sps:$4 sm:$0xff]  }
  0x19   : > { %2296 = vmatprep.subr.bf16.mxu0 %v4324_v0  ;;  %v4022_v22 = vld [vmem:[%s4373_s19 + $0x148] sm:$0xff]   ;;  %1860 = vmatprep.mubr.bf16.mxu1 %v4037_v19  ;;  %v4023_v23 = vld [vmem:[%s4373_s19 + $0x50] sm:$0xff]   ;;  %v4025_v25 = vld [vmem:[%s4373_s19 + $0x58] sm:$0xff]  }
  0x1a   : > { %2324 = vmatprep.mubr.bf16.mxu0 %v4040_v21  ;;  %v4024_v24 = vld [vmem:[%s4373_s19 + $0x150] sm:$0xff]   ;;  %v4026_v26 = vld [vmem:[%s4373_s19 + $0x158] sm:$0xff]   ;;  %v4027_v27 = vld [vmem:[%s4373_s19 + $0x60] sm:$0xff]  }
  0x1b   : > { %1833 = vmatpush1.bf16.msra.mxu1 %v4007_v5  ;;  %v4028_v28 = vld [vmem:[%s4373_s19 + $0x160] sm:$0xff]   ;;  %v4029_v29 = vld [vmem:[%s4373_s19 + $0x68] sm:$0xff]   ;;  %v4031_v31 = vld [vmem:[%s4373_s19 + $0x70] sm:$0xff]  }
  0x1c   : > { %2297 = vmatpush1.bf16.msra.mxu0 %v4008_v6  ;;  %1834 = vmatprep.subr.bf16.mxu1 %v4324_v0  ;;  %v4030_v30 = vld [vmem:[%s4373_s19 + $0x168] sm:$0xff]   ;;  %v4032_v32 = vld [vmem:[%s4373_s19 + $0x170] sm:$0xff]   ;;  %v4033_v33 = vld [vmem:[%s4373_s19 + $0x78] sm:$0xff]  }
  0x1d   : > { %2298 = vmatprep.subr.bf16.mxu0 %v4324_v0  ;;  %v4034_v34 = vld [vmem:[%s4373_s19 + $0x178] sm:$0xff]   ;;  %v4038_v36 = vld [vmem:[%s4410_s23 + $0x10] ss:$28 sps:$4 sm:$0xff]   ;;  %v4041_v37 = vld [vmem:[%s4373_s19 + $0x80] sm:$0xff]  }
  0x1e   : > { %v4035_v35 = vld [vmem:[%s4410_s23] ss:$28 sps:$4 sm:$0xff]   ;;  %v4045_v41 = vld [vmem:[%s4410_s23 + $0x4c] ss:$28 sps:$4 sm:$0xff]   ;;  %v4047_v43 = vld [vmem:[%s4410_s23 + $0x38] ss:$28 sps:$4 sm:$0xff]  }
  0x1f   : > { %1835 = vmatpush1.bf16.msra.mxu1 %v4009_v7  ;;  %v4042_v38 = vld [vmem:[%s4373_s19 + $0x180] sm:$0xff]   ;;  %v4043_v39 = vld [vmem:[%s4410_s23 + $0x3c] ss:$28 sps:$4 sm:$0xff]   ;;  %v4049_v42 = vld [vmem:[%s4373_s19 + $0x88] sm:$0xff]  }
  0x20   : > { %2299 = vmatpush1.bf16.msra.mxu0 %v4010_v8  ;;  %1836 = vmatprep.subr.bf16.mxu1 %v4324_v0  ;;  %v4048_v44 = vld [vmem:[%s4410_s23 + $0x48] ss:$28 sps:$4 sm:$0xff]   ;;  %v4050_v45 = vld [vmem:[%s4410_s23 + $0x74] ss:$28 sps:$4 sm:$0xff]   ;;  %v4071_v49 = vld [vmem:[%s4373_s19 + $0x98] sm:$0xff]  }
  0x21   : > { %2300 = vmatprep.subr.bf16.mxu0 %v4324_v0  ;;  %v4052_v46 = vld [vmem:[%s4410_s23 + $0x84] ss:$28 sps:$4 sm:$0xff]   ;;  %v4062_v47 = vld [vmem:[%s4373_s19 + $0x90] sm:$0xff]   ;;  %v4056_v51 = vld [vmem:[%s4410_s23 + $0xac] ss:$28 sps:$4 sm:$0xff]  }
  0x22   : > { %v4054_v48 = vld [vmem:[%s4410_s23 + $0x70] ss:$28 sps:$4 sm:$0xff]   ;;  %v4055_v50 = vld [vmem:[%s4410_s23 + $0x80] ss:$28 sps:$4 sm:$0xff]   ;;  %v4060_v56 = vld [vmem:[%s4410_s23 + $0xa8] ss:$28 sps:$4 sm:$0xff]  }
  0x23   : > { %1837 = vmatpush1.bf16.msra.mxu1 %v4011_v9  ;;  %v4058_v52 = vld [vmem:[%s4410_s23 + $0xbc] ss:$28 sps:$4 sm:$0xff]   ;;  %v4082_v53 = vld [vmem:[%s4373_s19 + $0xa0] sm:$0xff]   ;;  %v4127_v54 = vld [vmem:[%s4373_s19 + $0x188] sm:$0xff]  }
  0x24   : > { %2301 = vmatpush1.bf16.msra.mxu0 %v4012_v10  ;;  %1838 = vmatprep.subr.bf16.mxu1 %v4324_v0  ;;  %v4094_v55 = vld [vmem:[%s4373_s19 + $0xa8] sm:$0xff]   ;;  %v4061_v57 = vld [vmem:[%s4410_s23 + $0xb8] ss:$28 sps:$4 sm:$0xff]   ;;  %v4063_v58 = vld [vmem:[%s4410_s23 + $0xe4] ss:$28 sps:$4 sm:$0xff]  }
  0x25   : > { %2302 = vmatprep.subr.bf16.mxu0 %v4324_v0  ;;  %v4065_v59 = vld [vmem:[%s4410_s23 + $0xf4] ss:$28 sps:$4 sm:$0xff]   ;;  %v4115_v61 = vld [vmem:[%s4373_s19 + $0xb8] sm:$0xff]   ;;  %v4072_v2 = vld [vmem:[%s4410_s23 + $0x12c] ss:$28 sps:$4 sm:$0xff]  }
  0x26   : > { %v4102_v60 = vld [vmem:[%s4373_s19 + $0xb0] sm:$0xff]   ;;  %v4067_v62 = vld [vmem:[%s4410_s23 + $0xe0] ss:$28 sps:$4 sm:$0xff]   ;;  %v4136_v4 = vld [vmem:[%s4373_s19 + $0xc8] sm:$0xff]  }
  0x27   : > { %1839 = vmatpush1.bf16.msra.mxu1 %v4013_v11  ;;  %v4068_v63 = vld [vmem:[%s4410_s23 + $0xf0] ss:$28 sps:$4 sm:$0xff]   ;;  %v4069_v1 = vld [vmem:[%s4410_s23 + $0x11c] ss:$28 sps:$4 sm:$0xff]   ;;  %v4122_v3 = vld [vmem:[%s4373_s19 + $0xc0] sm:$0xff]  }
  0x28   : > { %2303 = vmatpush1.bf16.msra.mxu0 %v4014_v12  ;;  %1840 = vmatprep.subr.bf16.mxu1 %v4324_v0  ;;  %v4074_v5 = vld [vmem:[%s4410_s23 + $0x118] ss:$28 sps:$4 sm:$0xff]   ;;  %v4075_v6 = vld [vmem:[%s4410_s23 + $0x128] ss:$28 sps:$4 sm:$0xff]   ;;  %v4080_v10 = vld [vmem:[%s4410_s23 + $0x150] ss:$28 sps:$4 sm:$0xff]  }
  0x29   : > { %2304 = vmatprep.subr.bf16.mxu0 %v4324_v0  ;;  %v4076_v7 = vld [vmem:[%s4410_s23 + $0x154] ss:$28 sps:$4 sm:$0xff]   ;;  %v4078_v8 = vld [vmem:[%s4410_s23 + $0x164] ss:$28 sps:$4 sm:$0xff]   ;;  %v4156_v11 = vld [vmem:[%s4373_s19 + $0xd8] sm:$0xff]  }
  0x2a   : > { %v4143_v9 = vld [vmem:[%s4373_s19 + $0xd0] sm:$0xff]   ;;  %v4081_v12 = vld [vmem:[%s4410_s23 + $0x160] ss:$28 sps:$4 sm:$0xff]  }
  0x2b   : > { %1841 = vmatpush1.bf16.msra.mxu1 %v4015_v13  ;;  %v4083_v13 = vld [vmem:[%s4410_s23 + $0x18c] ss:$28 sps:$4 sm:$0xff]   ;;  %v4089_v19 = vld [vmem:[%s4410_s23 + $0x1c4] ss:$28 sps:$4 sm:$0xff]   ;;  %v4188_v21 = vld [vmem:[%s4373_s19 + $0xf0] sm:$0xff]  }
  0x2c   : > { %2305 = vmatpush1.bf16.msra.mxu0 %v4016_v14  ;;  %1842 = vmatprep.subr.bf16.mxu1 %v4324_v0  ;;  %v4085_v14 = vld [vmem:[%s4410_s23 + $0x19c] ss:$28 sps:$4 sm:$0xff]  }
  0x2d   : > { %2306 = vmatprep.subr.bf16.mxu0 %v4324_v0 }
  0x2f   : > { %1843 = vmatpush1.bf16.msra.mxu1 %v4017_v15  ;;  %v4165_v15 = vld [vmem:[%s4373_s19 + $0xe0] sm:$0xff]  }
  0x30   : > { %2307 = vmatpush1.bf16.msra.mxu0 %v4018_v16  ;;  %1844 = vmatprep.subr.bf16.mxu1 %v4324_v0  ;;  %v4087_v16 = vld [vmem:[%s4410_s23 + $0x188] ss:$28 sps:$4 sm:$0xff]  }
  0x31   : > { %2308 = vmatprep.subr.bf16.mxu0 %v4324_v0 }
  0x33   : > { %1845 = vmatpush1.bf16.msra.mxu1 %v4019_v17  ;;  %v4176_v17 = vld [vmem:[%s4373_s19 + $0xe8] sm:$0xff]  }
  0x34   : > { %2309 = vmatpush1.bf16.msra.mxu0 %v4020_v18  ;;  %1846 = vmatprep.subr.bf16.mxu1 %v4324_v0  ;;  %v4088_v18 = vld [vmem:[%s4410_s23 + $0x198] ss:$28 sps:$4 sm:$0xff]  }
  0x35   : > { %2310 = vmatprep.subr.bf16.mxu0 %v4324_v0 }
  0x37   : > { %1847 = vmatpush1.bf16.msra.mxu1 %v4021_v20  ;;  %v4091_v20 = vld [vmem:[%s4410_s23 + $0x1d4] ss:$28 sps:$4 sm:$0xff]  }
  0x38   : > { %2311 = vmatpush1.bf16.msra.mxu0 %v4022_v22  ;;  %1848 = vmatprep.subr.bf16.mxu1 %v4324_v0  ;;  %v4196_v22 = vld [vmem:[%s4373_s19 + $0xf8] sm:$0xff]  }
  0x39   : > { %2312 = vmatprep.subr.bf16.mxu0 %v4324_v0 }
  0x3b   : > { %1849 = vmatpush1.bf16.msra.mxu1 %v4023_v23  ;;  %v4093_v23 = vld [vmem:[%s4410_s23 + $0x1c0] ss:$28 sps:$4 sm:$0xff]  }
  0x3c   : > { %2313 = vmatpush1.bf16.msra.mxu0 %v4024_v24  ;;  %1850 = vmatprep.subr.bf16.mxu1 %v4324_v0  ;;  %v4095_v24 = vld [vmem:[%s4410_s23 + $0x1d0] ss:$28 sps:$4 sm:$0xff]  }
  0x3d   : > { %2314 = vmatprep.subr.bf16.mxu0 %v4324_v0 }
  0x3f   : > { %1851 = vmatpush1.bf16.msra.mxu1 %v4025_v25  ;;  %v4096_v25 = vld [vmem:[%s4410_s23 + $0x1fc] ss:$28 sps:$4 sm:$0xff]  }
  0x40   : > { %2315 = vmatpush1.bf16.msra.mxu0 %v4026_v26  ;;  %1852 = vmatprep.subr.bf16.mxu1 %v4324_v0  ;;  %v4098_v26 = vld [vmem:[%s4410_s23 + $0x20c] ss:$28 sps:$4 sm:$0xff]  }
  0x41   : > { %2316 = vmatprep.subr.bf16.mxu0 %v4324_v0 }
  0x43   : > { %1853 = vmatpush1.bf16.msra.mxu1 %v4027_v27  ;;  %v4100_v27 = vld [vmem:[%s4410_s23 + $0x1f8] ss:$28 sps:$4 sm:$0xff]  }
  0x44   : > { %2317 = vmatpush1.bf16.msra.mxu0 %v4028_v28  ;;  %1854 = vmatprep.subr.bf16.mxu1 %v4324_v0  ;;  %v4101_v28 = vld [vmem:[%s4410_s23 + $0x208] ss:$28 sps:$4 sm:$0xff]  }
  0x45   : > { %2318 = vmatprep.subr.bf16.mxu0 %v4324_v0 }
  0x47   : > { %1855 = vmatpush1.bf16.msra.mxu1 %v4029_v29  ;;  %v4103_v29 = vld [vmem:[%s4410_s23 + $0x234] ss:$28 sps:$4 sm:$0xff]  }
  0x48   : > { %2319 = vmatpush1.bf16.msra.mxu0 %v4030_v30  ;;  %1856 = vmatprep.subr.bf16.mxu1 %v4324_v0  ;;  %v4105_v30 = vld [vmem:[%s4410_s23 + $0x244] ss:$28 sps:$4 sm:$0xff]  }
  0x49   : > { %2320 = vmatprep.subr.bf16.mxu0 %v4324_v0 }
  0x4b   : > { %1857 = vmatpush1.bf16.msra.mxu1 %v4031_v31  ;;  %v4108_v31 = vld [vmem:[%s4410_s23 + $0x240] ss:$28 sps:$4 sm:$0xff]  }
  0x4c   : > { %2321 = vmatpush1.bf16.msra.mxu0 %v4032_v32  ;;  %1858 = vmatprep.subr.bf16.mxu1 %v4324_v0  ;;  %v4109_v32 = vld [vmem:[%s4410_s23 + $0x26c] ss:$28 sps:$4 sm:$0xff]  }
  0x4d   : > { %2322 = vmatprep.subr.bf16.mxu0 %v4324_v0 }
  0x4f   : > { %1859 = vmatpush1.bf16.msra.mxu1 %v4033_v33  ;;  %v4111_v33 = vld [vmem:[%s4410_s23 + $0x27c] ss:$28 sps:$4 sm:$0xff]  }
  0x50   : > { %2323 = vmatpush1.bf16.msra.mxu0 %v4034_v34  ;;  %2060 = vmatprep.subr.bf16.mxu1 %v4324_v0  ;;  %v4113_v34 = vld [vmem:[%s4410_s23 + $0x268] ss:$28 sps:$4 sm:$0xff]  }
  0x51   : > { %3571 = vmatprep.subr.bf16.mxu0 %v4325_v40 }
  0x52   : > { %1861 = vmatmul.mubr.bf16.vlgmr.msra.gmra.mrb[0].mxu1 %v4035_v35  ;;  %v4114_v35 = vld [vmem:[%s4410_s23 + $0x278] ss:$28 sps:$4 sm:$0xff]  }
  0x53   : > { %2325 = vmatmul.mubr.bf16.vlgmr.msra.gmra.mrb[0].mxu0 %v4038_v36  ;;  %2061 = vmatpush1.bf16.msra.mxu1 %v4041_v37  ;;  %v4116_v36 = vld [vmem:[%s4410_s23 + $0x2a4] ss:$28 sps:$4 sm:$0xff]   ;;  %v4118_v37 = vld [vmem:[%s4410_s23 + $0x2b4] ss:$28 sps:$4 sm:$0xff]  }
  0x54   : > { %3572 = vmatpush3.bf16.msra.mxu0 %v4042_v38  ;;  %1868 = vmatprep.mubr.bf16.mxu1 %v4043_v39  ;;  %v4120_v38 = vld [vmem:[%s4410_s23 + $0x2a0] ss:$28 sps:$4 sm:$0xff]   ;;  %v4121_v39 = vld [vmem:[%s4410_s23 + $0x2b0] ss:$28 sps:$4 sm:$0xff]  }
  0x55   : > { %2332 = vmatprep.mubr.bf16.mxu0 %v4045_v41  ;;  %2062 = vmatprep.subr.bf16.mxu1 %v4324_v0  ;;  %v4123_v41 = vld [vmem:[%s4410_s23 + $0x2dc] ss:$28 sps:$4 sm:$0xff]  }
  0x56   : > { %3573 = vmatprep.subr.bf16.mxu0 %v4325_v40 }
  0x57   : > { %2063 = vmatpush1.bf16.msra.mxu1 %v4049_v42  ;;  %v4125_v42 = vld [vmem:[%s4410_s23 + $0x2ec] ss:$28 sps:$4 sm:$0xff]  }
  0x58   : > { %2064 = vmatprep.subr.bf16.mxu1 %v4324_v0  ;;  %3574 = vmatpush3.bf16.msra.mxu0 %v4127_v54  ;;  %v4146_v54 = vld [vmem:[%s4410_s23 + $0x394] ss:$28 sps:$4 sm:$0xff]  }
  0x5a   : > { %1869 = vmatmul.mubr.bf16.gmra.mrb[4].mxu1 %v4047_v43  ;;  %v4128_v43 = vld [vmem:[%s4410_s23 + $0x2d8] ss:$28 sps:$4 sm:$0xff]  }
  0x5b   : > { %2333 = vmatmul.mubr.bf16.gmra.mrb[4].mxu0 %v4048_v44  ;;  %1876 = vmatprep.mubr.bf16.mxu1 %v4050_v45  ;;  %v4129_v44 = vld [vmem:[%s4410_s23 + $0x2e8] ss:$28 sps:$4 sm:$0xff]   ;;  %v4130_v45 = vld [vmem:[%s4410_s23 + $0x314] ss:$28 sps:$4 sm:$0xff]  }
  0x5c   : > { %2340 = vmatprep.mubr.bf16.mxu0 %v4052_v46  ;;  %2065 = vmatpush1.bf16.msra.mxu1 %v4062_v47  ;;  %v4132_v46 = vld [vmem:[%s4410_s23 + $0x324] ss:$28 sps:$4 sm:$0xff]   ;;  %v4134_v47 = vld [vmem:[%s4410_s23 + $0x310] ss:$28 sps:$4 sm:$0xff]  }
  0x5d   : > { %2066 = vmatprep.subr.bf16.mxu1 %v4324_v0 }
  0x60   : > { %2067 = vmatpush1.bf16.msra.mxu1 %v4071_v49  ;;  %v4137_v49 = vld [vmem:[%s4410_s23 + $0x34c] ss:$28 sps:$4 sm:$0xff]  }
  0x61   : > { %2068 = vmatprep.subr.bf16.mxu1 %v4324_v0 }
  0x62   : > { %1877 = vmatmul.mubr.bf16.gmra.mrb[8].mxu1 %v4054_v48  ;;  %v4135_v48 = vld [vmem:[%s4410_s23 + $0x320] ss:$28 sps:$4 sm:$0xff]  }
  0x63   : > { %2341 = vmatmul.mubr.bf16.gmra.mrb[8].mxu0 %v4055_v50  ;;  %1884 = vmatprep.mubr.bf16.mxu1 %v4056_v51  ;;  %v4139_v50 = vld [vmem:[%s4410_s23 + $0x35c] ss:$28 sps:$4 sm:$0xff]   ;;  %v4141_v51 = vld [vmem:[%s4410_s23 + $0x348] ss:$28 sps:$4 sm:$0xff]  }
  0x64   : > { %2348 = vmatprep.mubr.bf16.mxu0 %v4058_v52  ;;  %2069 = vmatpush1.bf16.msra.mxu1 %v4082_v53  ;;  %v4142_v52 = vld [vmem:[%s4410_s23 + $0x358] ss:$28 sps:$4 sm:$0xff]   ;;  %v4144_v53 = vld [vmem:[%s4410_s23 + $0x384] ss:$28 sps:$4 sm:$0xff]  }
  0x65   : > { %2070 = vmatprep.subr.bf16.mxu1 %v4324_v0 }
  0x68   : > { %2071 = vmatpush1.bf16.msra.mxu1 %v4094_v55  ;;  %v4148_v55 = vld [vmem:[%s4410_s23 + $0x380] ss:$28 sps:$4 sm:$0xff]  }
  0x69   : > { %2072 = vmatprep.subr.bf16.mxu1 %v4324_v0 }
  0x6a   : > { %1885 = vmatmul.mubr.bf16.gmra.mrb[12].mxu1 %v4060_v56  ;;  %v4149_v56 = vld [vmem:[%s4410_s23 + $0x390] ss:$28 sps:$4 sm:$0xff]  }
  0x6b   : > { %2349 = vmatmul.mubr.bf16.gmra.mrb[12].mxu0 %v4061_v57  ;;  %1892 = vmatprep.mubr.bf16.mxu1 %v4063_v58  ;;  %v4150_v57 = vld [vmem:[%s4410_s23 + $0x3bc] ss:$28 sps:$4 sm:$0xff]   ;;  %v4152_v58 = vld [vmem:[%s4410_s23 + $0x3cc] ss:$28 sps:$4 sm:$0xff]  }
  0x6c   : > { %2356 = vmatprep.mubr.bf16.mxu0 %v4065_v59  ;;  %2073 = vmatpush1.bf16.msra.mxu1 %v4102_v60  ;;  %v4154_v59 = vld [vmem:[%s4410_s23 + $0x3b8] ss:$28 sps:$4 sm:$0xff]   ;;  %v4155_v60 = vld [vmem:[%s4410_s23 + $0x3c8] ss:$28 sps:$4 sm:$0xff]  }
  0x6d   : > { %2074 = vmatprep.subr.bf16.mxu1 %v4324_v0 }
  0x70   : > { %2075 = vmatpush1.bf16.msra.mxu1 %v4115_v61  ;;  %v4157_v61 = vld [vmem:[%s4410_s23 + $0x3f4] ss:$28 sps:$4 sm:$0xff]  }
  0x71   : > { %2076 = vmatprep.subr.bf16.mxu1 %v4324_v0 }
  0x72   : > { %1893 = vmatmul.mubr.bf16.gmra.mrb[16].mxu1 %v4067_v62  ;;  %v4159_v62 = vld [vmem:[%s4410_s23 + $0x404] ss:$28 sps:$4 sm:$0xff]  }
  0x73   : > { %2357 = vmatmul.mubr.bf16.gmra.mrb[16].mxu0 %v4068_v63  ;;  %1900 = vmatprep.mubr.bf16.mxu1 %v4069_v1  ;;  %v4161_v63 = vld [vmem:[%s4410_s23 + $0x3f0] ss:$28 sps:$4 sm:$0xff]   ;;  %v4162_v1 = vld [vmem:[%s4410_s23 + $0x400] ss:$28 sps:$4 sm:$0xff]  }
  0x74   : > { %2364 = vmatprep.mubr.bf16.mxu0 %v4072_v2  ;;  %2077 = vmatpush1.bf16.msra.mxu1 %v4122_v3  ;;  %v4163_v2 = vld [vmem:[%s4410_s23 + $0x42c] ss:$28 sps:$4 sm:$0xff]   ;;  %v4166_v3 = vld [vmem:[%s4410_s23 + $0x43c] ss:$28 sps:$4 sm:$0xff]  }
  0x75   : > { %2078 = vmatprep.subr.bf16.mxu1 %v4324_v0 }
  0x78   : > { %2079 = vmatpush1.bf16.msra.mxu1 %v4136_v4  ;;  %v4168_v4 = vld [vmem:[%s4410_s23 + $0x428] ss:$28 sps:$4 sm:$0xff]  }
  0x79   : > { %2080 = vmatprep.subr.bf16.mxu1 %v4324_v0 }
  0x7a   : > { %1901 = vmatmul.mubr.bf16.gmra.mrb[20].mxu1 %v4074_v5  ;;  %v4169_v5 = vld [vmem:[%s4410_s23 + $0x438] ss:$28 sps:$4 sm:$0xff]  }
  0x7b   : > { %2365 = vmatmul.mubr.bf16.gmra.mrb[20].mxu0 %v4075_v6  ;;  %1908 = vmatprep.mubr.bf16.mxu1 %v4076_v7  ;;  %v4170_v6 = vld [vmem:[%s4410_s23 + $0x464] ss:$28 sps:$4 sm:$0xff]   ;;  %v4172_v7 = vld [vmem:[%s4410_s23 + $0x474] ss:$28 sps:$4 sm:$0xff]  }
  0x7c   : > { %2372 = vmatprep.mubr.bf16.mxu0 %v4078_v8  ;;  %2081 = vmatpush1.bf16.msra.mxu1 %v4143_v9  ;;  %v4174_v8 = vld [vmem:[%s4410_s23 + $0x460] ss:$28 sps:$4 sm:$0xff]   ;;  %v4175_v9 = vld [vmem:[%s4410_s23 + $0x470] ss:$28 sps:$4 sm:$0xff]  }
  0x7d   : > { %2082 = vmatprep.subr.bf16.mxu1 %v4324_v0 }
  0x80   : > { %2083 = vmatpush1.bf16.msra.mxu1 %v4156_v11  ;;  %v4179_v11 = vld [vmem:[%s4410_s23 + $0x4ac] ss:$28 sps:$4 sm:$0xff]  }
  0x81   : > { %2084 = vmatprep.subr.bf16.mxu1 %v4324_v0 }
  0x82   : > { %1909 = vmatmul.mubr.bf16.gmra.mrb[24].mxu1 %v4080_v10  ;;  %v4177_v10 = vld [vmem:[%s4410_s23 + $0x49c] ss:$28 sps:$4 sm:$0xff]  }
  0x83   : > { %2373 = vmatmul.mubr.bf16.gmra.mrb[24].mxu0 %v4081_v12  ;;  %1916 = vmatprep.mubr.bf16.mxu1 %v4083_v13  ;;  %v4181_v12 = vld [vmem:[%s4410_s23 + $0x498] ss:$28 sps:$4 sm:$0xff]   ;;  %v4182_v13 = vld [vmem:[%s4410_s23 + $0x4a8] ss:$28 sps:$4 sm:$0xff]  }
  0x84   : > { %2380 = vmatprep.mubr.bf16.mxu0 %v4085_v14  ;;  %2085 = vmatpush1.bf16.msra.mxu1 %v4165_v15  ;;  %v4183_v14 = vld [vmem:[%s4410_s23 + $0x4d4] ss:$28 sps:$4 sm:$0xff]   ;;  %v4185_v15 = vld [vmem:[%s4410_s23 + $0x4e4] ss:$28 sps:$4 sm:$0xff]  }
  0x85   : > { %2086 = vmatprep.subr.bf16.mxu1 %v4324_v0 }
  0x88   : > { %2087 = vmatpush1.bf16.msra.mxu1 %v4176_v17  ;;  %v4189_v17 = vld [vmem:[%s4410_s23 + $0x4e0] ss:$28 sps:$4 sm:$0xff]  }
  0x89   : > { %2088 = vmatprep.subr.bf16.mxu1 %v4324_v0 }
  0x8a   : > { %1917 = vmatmul.mubr.bf16.gmra.mrb[28].mxu1 %v4087_v16  ;;  %v4187_v16 = vld [vmem:[%s4410_s23 + $0x4d0] ss:$28 sps:$4 sm:$0xff]  }
  0x8b   : > { %2381 = vmatmul.mubr.bf16.gmra.mrb[28].mxu0 %v4088_v18  ;;  %1924 = vmatprep.mubr.bf16.mxu1 %v4089_v19  ;;  %v4190_v18 = vld [vmem:[%s4410_s23 + $0x50c] ss:$28 sps:$4 sm:$0xff]   ;;  %v4192_v19 = vld [vmem:[%s4410_s23 + $0x51c] ss:$28 sps:$4 sm:$0xff]  }
  0x8c   : > { %2388 = vmatprep.mubr.bf16.mxu0 %v4091_v20  ;;  %2089 = vmatpush1.bf16.msra.mxu1 %v4188_v21  ;;  %v477_v20 = vld [vmem:[%s4410_s23 + $0x540] sm:$0xff]  ;;  %v479_v21 = vld [vmem:[%s4410_s23 + $0x550] sm:$0xff] }
  0x8d   : > { %2090 = vmatprep.subr.bf16.mxu1 %v4324_v0  ;;  %v4107_v0 = vld [vmem:[%s4410_s23 + $0x230] ss:$28 sps:$4 sm:$0xff]  }
  0x90   : > { %2091 = vmatpush1.bf16.msra.mxu1 %v4196_v22  ;;  %v4194_v22 = vld [vmem:[%s4410_s23 + $0x508] ss:$28 sps:$4 sm:$0xff]  }
  0x92   : > { %1925 = vmatmul.mubr.bf16.gmra.mrb[32].mxu1 %v4093_v23  ;;  %v4195_v23 = vld [vmem:[%s4410_s23 + $0x518] ss:$28 sps:$4 sm:$0xff]  }
  0x93   : > { %2389 = vmatmul.mubr.bf16.gmra.mrb[32].mxu0 %v4095_v24  ;;  %1932 = vmatprep.mubr.bf16.mxu1 %v4096_v25  ;;  %v3363_v24 = vcombine.high %v477_v20, %v477_v20  ;;  %v3367_v25 = vcombine.high %v479_v21, %v479_v21 }
  0x94   : > { %2396 = vmatprep.mubr.bf16.mxu0 %v4098_v26  ;;  %v3362_v26 = vcombine.low %v477_v20, %v477_v20  ;;  %v4275_v20 = vld [vmem:[%s4410_s23 + $0x3f8] ss:$28 sps:$4 sm:$0xff]  }
  0x9a   : > { %1933 = vmatmul.mubr.bf16.gmra.mrb[36].mxu1 %v4100_v27  ;;  %v3366_v27 = vcombine.low %v479_v21, %v479_v21  ;;  %v4276_v21 = vld [vmem:[%s4410_s23 + $0x408] ss:$28 sps:$4 sm:$0xff]  }
  0x9b   : > { %2397 = vmatmul.mubr.bf16.gmra.mrb[36].mxu0 %v4101_v28  ;;  %1940 = vmatprep.mubr.bf16.mxu1 %v4103_v29  ;;  %v4203_v28 = vld [vmem:[%s4410_s23 + $0xc] ss:$28 sps:$4 sm:$0xff]  }
  0x9c   : > { %2404 = vmatprep.mubr.bf16.mxu0 %v4105_v30  ;;  %v4201_v29 = vld [vmem:[%s4410_s23 + $0x8] ss:$28 sps:$4 sm:$0xff]   ;;  %v4204_v30 = vld [vmem:[%s4410_s23 + $0x18] ss:$28 sps:$4 sm:$0xff]  }
  0xa2   : > { %1941 = vmatmul.mubr.bf16.gmra.mrb[40].mxu1 %v4107_v0  ;;  %v4205_v0 = vld [vmem:[%s4410_s23 + $0x44] ss:$28 sps:$4 sm:$0xff]  }
  0xa3   : > { %2405 = vmatmul.mubr.bf16.gmra.mrb[40].mxu0 %v4108_v31  ;;  %1948 = vmatprep.mubr.bf16.mxu1 %v4109_v32  ;;  %v4207_v31 = vld [vmem:[%s4410_s23 + $0x40] ss:$28 sps:$4 sm:$0xff]   ;;  %v4208_v32 = vld [vmem:[%s4410_s23 + $0x50] ss:$28 sps:$4 sm:$0xff]  }
  0xa4   : > { %2412 = vmatprep.mubr.bf16.mxu0 %v4111_v33  ;;  %v4209_v33 = vld [vmem:[%s4410_s23 + $0x7c] ss:$28 sps:$4 sm:$0xff]  }
  0xaa   : > { %1949 = vmatmul.mubr.bf16.gmra.mrb[44].mxu1 %v4113_v34  ;;  %v4211_v34 = vld [vmem:[%s4410_s23 + $0x78] ss:$28 sps:$4 sm:$0xff]  }
  0xab   : > { %2413 = vmatmul.mubr.bf16.gmra.mrb[44].mxu0 %v4114_v35  ;;  %1956 = vmatprep.mubr.bf16.mxu1 %v4116_v36  ;;  %v4212_v35 = vld [vmem:[%s4410_s23 + $0x88] ss:$28 sps:$4 sm:$0xff]   ;;  %v4213_v36 = vld [vmem:[%s4410_s23 + $0xb4] ss:$28 sps:$4 sm:$0xff]  }
  0xac   : > { %2420 = vmatprep.mubr.bf16.mxu0 %v4118_v37  ;;  %v4215_v37 = vld [vmem:[%s4410_s23 + $0xb0] ss:$28 sps:$4 sm:$0xff]  }
  0xb2   : > { %1957 = vmatmul.mubr.bf16.gmra.mrb[48].mxu1 %v4120_v38  ;;  %v4216_v38 = vld [vmem:[%s4410_s23 + $0xc0] ss:$28 sps:$4 sm:$0xff]  }
  0xb3   : > { %2421 = vmatmul.mubr.bf16.gmra.mrb[48].mxu0 %v4121_v39  ;;  %1964 = vmatprep.mubr.bf16.mxu1 %v4123_v41  ;;  %v4217_v39 = vld [vmem:[%s4410_s23 + $0xec] ss:$28 sps:$4 sm:$0xff]  }
  0xb4   : > { %2428 = vmatprep.mubr.bf16.mxu0 %v4125_v42  ;;  %v4219_v41 = vld [vmem:[%s4410_s23 + $0xe8] ss:$28 sps:$4 sm:$0xff]   ;;  %v4220_v42 = vld [vmem:[%s4410_s23 + $0xf8] ss:$28 sps:$4 sm:$0xff]  }
  0xba   : > { %1965 = vmatmul.mubr.bf16.gmra.mrb[52].mxu1 %v4128_v43  ;;  %v4221_v43 = vld [vmem:[%s4410_s23 + $0x124] ss:$28 sps:$4 sm:$0xff]  }
  0xbb   : > { %2429 = vmatmul.mubr.bf16.gmra.mrb[52].mxu0 %v4129_v44  ;;  %1972 = vmatprep.mubr.bf16.mxu1 %v4130_v45  ;;  %v4223_v44 = vld [vmem:[%s4410_s23 + $0x120] ss:$28 sps:$4 sm:$0xff]   ;;  %v4224_v45 = vld [vmem:[%s4410_s23 + $0x130] ss:$28 sps:$4 sm:$0xff]  }
  0xbc   : > { %2436 = vmatprep.mubr.bf16.mxu0 %v4132_v46  ;;  %v4225_v46 = vld [vmem:[%s4410_s23 + $0x15c] ss:$28 sps:$4 sm:$0xff]  }
  0xc2   : > { %1973 = vmatmul.mubr.bf16.gmra.mrb[56].mxu1 %v4134_v47  ;;  %v4227_v47 = vld [vmem:[%s4410_s23 + $0x158] ss:$28 sps:$4 sm:$0xff]  }
  0xc3   : > { %2437 = vmatmul.mubr.bf16.gmra.mrb[56].mxu0 %v4135_v48  ;;  %1980 = vmatprep.mubr.bf16.mxu1 %v4137_v49  ;;  %v4228_v48 = vld [vmem:[%s4410_s23 + $0x168] ss:$28 sps:$4 sm:$0xff]   ;;  %v4229_v49 = vld [vmem:[%s4410_s23 + $0x194] ss:$28 sps:$4 sm:$0xff]  }
  0xc4   : > { %2444 = vmatprep.mubr.bf16.mxu0 %v4139_v50  ;;  %v4231_v50 = vld [vmem:[%s4410_s23 + $0x190] ss:$28 sps:$4 sm:$0xff]  }
  0xca   : > { %1981 = vmatmul.mubr.bf16.gmra.mrb[60].mxu1 %v4141_v51  ;;  %v4232_v51 = vld [vmem:[%s4410_s23 + $0x1a0] ss:$28 sps:$4 sm:$0xff]  }
  0xcb   : > { %2445 = vmatmul.mubr.bf16.gmra.mrb[60].mxu0 %v4142_v52  ;;  %1988 = vmatprep.mubr.bf16.mxu1 %v4144_v53  ;;  %v4233_v52 = vld [vmem:[%s4410_s23 + $0x1cc] ss:$28 sps:$4 sm:$0xff]  }
  0xcc   : > { %2452 = vmatprep.mubr.bf16.mxu0 %v4146_v54  ;;  %v4235_v53 = vld [vmem:[%s4410_s23 + $0x1c8] ss:$28 sps:$4 sm:$0xff]   ;;  %v4236_v54 = vld [vmem:[%s4410_s23 + $0x1d8] ss:$28 sps:$4 sm:$0xff]  }
  0xd2   : > { %1989 = vmatmul.mubr.bf16.gmra.mrb[64].mxu1 %v4148_v55  ;;  %v4237_v55 = vld [vmem:[%s4410_s23 + $0x204] ss:$28 sps:$4 sm:$0xff]  }
  0xd3   : > { %2453 = vmatmul.mubr.bf16.gmra.mrb[64].mxu0 %v4149_v56  ;;  %1996 = vmatprep.mubr.bf16.mxu1 %v4150_v57  ;;  %v4239_v56 = vld [vmem:[%s4410_s23 + $0x200] ss:$28 sps:$4 sm:$0xff]   ;;  %v4240_v57 = vld [vmem:[%s4410_s23 + $0x210] ss:$28 sps:$4 sm:$0xff]  }
  0xd4   : > { %2460 = vmatprep.mubr.bf16.mxu0 %v4152_v58  ;;  %v4241_v58 = vld [vmem:[%s4410_s23 + $0x23c] ss:$28 sps:$4 sm:$0xff]  }
  0xda   : > { %1997 = vmatmul.mubr.bf16.gmra.mrb[68].mxu1 %v4154_v59  ;;  %v4243_v59 = vld [vmem:[%s4410_s23 + $0x238] ss:$28 sps:$4 sm:$0xff]  }
  0xdb   : > { %2461 = vmatmul.mubr.bf16.gmra.mrb[68].mxu0 %v4155_v60  ;;  %2004 = vmatprep.mubr.bf16.mxu1 %v4157_v61  ;;  %v4244_v60 = vld [vmem:[%s4410_s23 + $0x248] ss:$28 sps:$4 sm:$0xff]   ;;  %v4245_v61 = vld [vmem:[%s4410_s23 + $0x274] ss:$28 sps:$4 sm:$0xff]  }
  0xdc   : > { %2468 = vmatprep.mubr.bf16.mxu0 %v4159_v62  ;;  %v4247_v62 = vld [vmem:[%s4410_s23 + $0x270] ss:$28 sps:$4 sm:$0xff]  }
  0xe2   : > { %2005 = vmatmul.mubr.bf16.gmra.mrb[72].mxu1 %v4161_v63  ;;  %v4248_v63 = vld [vmem:[%s4410_s23 + $0x280] ss:$28 sps:$4 sm:$0xff]  }
  0xe3   : > { %2469 = vmatmul.mubr.bf16.gmra.mrb[72].mxu0 %v4162_v1  ;;  %2012 = vmatprep.mubr.bf16.mxu1 %v4163_v2  ;;  %v4249_v1 = vld [vmem:[%s4410_s23 + $0x2ac] ss:$28 sps:$4 sm:$0xff]  }
  0xe4   : > { %2476 = vmatprep.mubr.bf16.mxu0 %v4166_v3  ;;  %v4251_v2 = vld [vmem:[%s4410_s23 + $0x2a8] ss:$28 sps:$4 sm:$0xff]   ;;  %v4252_v3 = vld [vmem:[%s4410_s23 + $0x2b8] ss:$28 sps:$4 sm:$0xff]  }
  0xea   : > { %2013 = vmatmul.mubr.bf16.gmra.mrb[76].mxu1 %v4168_v4  ;;  %v4253_v4 = vld [vmem:[%s4410_s23 + $0x2e4] ss:$28 sps:$4 sm:$0xff]  }
  0xeb   : > { %2477 = vmatmul.mubr.bf16.gmra.mrb[76].mxu0 %v4169_v5  ;;  %2020 = vmatprep.mubr.bf16.mxu1 %v4170_v6  ;;  %v4255_v5 = vld [vmem:[%s4410_s23 + $0x2e0] ss:$28 sps:$4 sm:$0xff]   ;;  %v4256_v6 = vld [vmem:[%s4410_s23 + $0x2f0] ss:$28 sps:$4 sm:$0xff]  }
  0xec   : > { %2484 = vmatprep.mubr.bf16.mxu0 %v4172_v7  ;;  %v4257_v7 = vld [vmem:[%s4410_s23 + $0x31c] ss:$28 sps:$4 sm:$0xff]  }
  0xf2   : > { %2021 = vmatmul.mubr.bf16.gmra.mrb[80].mxu1 %v4174_v8  ;;  %v4259_v8 = vld [vmem:[%s4410_s23 + $0x318] ss:$28 sps:$4 sm:$0xff]  }
  0xf3   : > { %2485 = vmatmul.mubr.bf16.gmra.mrb[80].mxu0 %v4175_v9  ;;  %2028 = vmatprep.mubr.bf16.mxu1 %v4177_v10  ;;  %v4260_v9 = vld [vmem:[%s4410_s23 + $0x328] ss:$28 sps:$4 sm:$0xff]   ;;  %v4261_v10 = vld [vmem:[%s4410_s23 + $0x354] ss:$28 sps:$4 sm:$0xff]  }
  0xf4   : > { %2492 = vmatprep.mubr.bf16.mxu0 %v4179_v11  ;;  %v4263_v11 = vld [vmem:[%s4410_s23 + $0x350] ss:$28 sps:$4 sm:$0xff]  }
  0xfa   : > { %2029 = vmatmul.mubr.bf16.gmra.mrb[84].mxu1 %v4181_v12  ;;  %v4264_v12 = vld [vmem:[%s4410_s23 + $0x360] ss:$28 sps:$4 sm:$0xff]  }
  0xfb   : > { %2493 = vmatmul.mubr.bf16.gmra.mrb[84].mxu0 %v4182_v13  ;;  %2036 = vmatprep.mubr.bf16.mxu1 %v4183_v14  ;;  %v4265_v13 = vld [vmem:[%s4410_s23 + $0x38c] ss:$28 sps:$4 sm:$0xff]  }
  0xfc   : > { %2500 = vmatprep.mubr.bf16.mxu0 %v4185_v15  ;;  %v4267_v14 = vld [vmem:[%s4410_s23 + $0x388] ss:$28 sps:$4 sm:$0xff]   ;;  %v4268_v15 = vld [vmem:[%s4410_s23 + $0x398] ss:$28 sps:$4 sm:$0xff]  }
 0x102   : > { %2037 = vmatmul.mubr.bf16.gmra.mrb[88].mxu1 %v4187_v16  ;;  %v4269_v16 = vld [vmem:[%s4410_s23 + $0x3c4] ss:$28 sps:$4 sm:$0xff]  }
 0x103   : > { %2501 = vmatmul.mubr.bf16.gmra.mrb[88].mxu0 %v4189_v17  ;;  %2044 = vmatprep.mubr.bf16.mxu1 %v4190_v18  ;;  %v4271_v17 = vld [vmem:[%s4410_s23 + $0x3c0] ss:$28 sps:$4 sm:$0xff]   ;;  %v4272_v18 = vld [vmem:[%s4410_s23 + $0x3d0] ss:$28 sps:$4 sm:$0xff]  }
 0x104   : > { %2508 = vmatprep.mubr.bf16.mxu0 %v4192_v19  ;;  %v4273_v19 = vld [vmem:[%s4410_s23 + $0x3fc] ss:$28 sps:$4 sm:$0xff]  }
 0x10a   : > { %2045 = vmatmul.mubr.bf16.gmra.mrb[92].mxu1 %v4194_v22  ;;  %v4277_v22 = vld [vmem:[%s4410_s23 + $0x434] ss:$28 sps:$4 sm:$0xff]  }
 0x10b   : > { %2509 = vmatmul.mubr.bf16.gmra.mrb[92].mxu0 %v4195_v23  ;;  %2052 = vmatprep.mubr.bf16.mxu1 %v3363_v24  ;;  %v4279_v23 = vld [vmem:[%s4410_s23 + $0x430] ss:$28 sps:$4 sm:$0xff]   ;;  %v4280_v24 = vld [vmem:[%s4410_s23 + $0x440] ss:$28 sps:$4 sm:$0xff]  }
 0x10c   : > { %2516 = vmatprep.mubr.bf16.mxu0 %v3367_v25  ;;  %v4281_v25 = vld [vmem:[%s4410_s23 + $0x46c] ss:$28 sps:$4 sm:$0xff]  }
 0x112   : > { %2053 = vmatmul.mubr.bf16.gmra.mrb[96].mxu1 %v3362_v26  ;;  %v4283_v26 = vld [vmem:[%s4410_s23 + $0x468] ss:$28 sps:$4 sm:$0xff]  }
 0x113   : > { %2517 = vmatmul.mubr.bf16.gmra.mrb[96].mxu0 %v3366_v27  ;;  %2092 = vmatprep.mubr.bf16.mxu1 %v4203_v28  ;;  %v4284_v27 = vld [vmem:[%s4410_s23 + $0x478] ss:$28 sps:$4 sm:$0xff]   ;;  %v4285_v28 = vld [vmem:[%s4410_s23 + $0x4a4] ss:$28 sps:$4 sm:$0xff]  }
 0x114   : > { %3575 = vmatprep.mubr.msk.bf16.mxu0 %vm4326_vm0, %v4325_v40 }
 0x11a   : > { %2093 = vmatmul.mubr.bf16.vlgmr.msra.gmra.mrb[0].mxu1 %v4201_v29  ;;  %v4287_v29 = vld [vmem:[%s4410_s23 + $0x4a0] ss:$28 sps:$4 sm:$0xff]  }
 0x11b   : > { %3576 = vmatmul.mubr.msk.bf16.vlgmr.msra.gmra.mrb[0].mxu0 %vm1752_vm1, %v4204_v30  ;;  %2100 = vmatprep.mubr.bf16.mxu1 %v4205_v0  ;;  %v4288_v30 = vld [vmem:[%s4410_s23 + $0x4b0] ss:$28 sps:$4 sm:$0xff]   ;;  %v4289_v0 = vld [vmem:[%s4410_s23 + $0x4dc] ss:$28 sps:$4 sm:$0xff]  }
 0x11c   : > { %3579 = vmatprep.mubr.msk.bf16.mxu0 %vm4326_vm0, %v4325_v40 }
 0x122   : > { %2101 = vmatmul.mubr.bf16.gmra.mrb[4].mxu1 %v4207_v31  ;;  %v4291_v31 = vld [vmem:[%s4410_s23 + $0x4d8] ss:$28 sps:$4 sm:$0xff]  }
 0x123   : > { %3580 = vmatmul.mubr.msk.bf16.gmra.mrb[4].mxu0 %vm1752_vm1, %v4208_v32  ;;  %2108 = vmatprep.mubr.bf16.mxu1 %v4209_v33  ;;  %v4292_v32 = vld [vmem:[%s4410_s23 + $0x4e8] ss:$28 sps:$4 sm:$0xff]   ;;  %v4293_v33 = vld [vmem:[%s4410_s23 + $0x514] ss:$28 sps:$4 sm:$0xff]  }
 0x124   : > { %3583 = vmatprep.mubr.msk.bf16.mxu0 %vm4326_vm0, %v4325_v40 }
 0x12a   : > { %2109 = vmatmul.mubr.bf16.gmra.mrb[8].mxu1 %v4211_v34  ;;  %v478_v34 = vld [vmem:[%s4410_s23 + $0x548] sm:$0xff] }
 0x12b   : > { %3584 = vmatmul.mubr.msk.bf16.gmra.mrb[8].mxu0 %vm1752_vm1, %v4212_v35  ;;  %2116 = vmatprep.mubr.bf16.mxu1 %v4213_v36  ;;  %v4295_v35 = vld [vmem:[%s4410_s23 + $0x510] ss:$28 sps:$4 sm:$0xff]   ;;  %v4296_v36 = vld [vmem:[%s4410_s23 + $0x520] ss:$28 sps:$4 sm:$0xff]  }
 0x12c   : > { %3587 = vmatprep.mubr.msk.bf16.mxu0 %vm4326_vm0, %v4325_v40 }
 0x132   : > { %2117 = vmatmul.mubr.bf16.gmra.mrb[12].mxu1 %v4215_v37  ;;  %v3365_v37 = vcombine.high %v478_v34, %v478_v34 }
 0x133   : > { %3588 = vmatmul.mubr.msk.bf16.gmra.mrb[12].mxu0 %vm1752_vm1, %v4216_v38  ;;  %2124 = vmatprep.mubr.bf16.mxu1 %v4217_v39  ;;  %v3364_v38 = vcombine.low %v478_v34, %v478_v34  ;;  %v4299_v39 = vld [vmem:[%s4410_s23 + $0x558] ss:$0 sps:$4 sm:$0xff]  }
 0x134   : > { %3591 = vmatprep.mubr.msk.bf16.mxu0 %vm4326_vm0, %v4325_v40 }
 0x13a   : > { %2125 = vmatmul.mubr.bf16.gmra.mrb[16].mxu1 %v4219_v41  ;;  %v4730_v41 = vld [vmem:[%s270_s26] ss:$0 sm:$0xff] }
 0x13b   : > { %3592 = vmatmul.mubr.msk.bf16.gmra.mrb[16].mxu0 %vm1752_vm1, %v4220_v42  ;;  %2132 = vmatprep.mubr.bf16.mxu1 %v4221_v43 }
 0x13c   : > { %3595 = vmatprep.mubr.msk.bf16.mxu0 %vm4326_vm0, %v4325_v40 }
 0x142   : > { %2133 = vmatmul.mubr.bf16.gmra.mrb[20].mxu1 %v4223_v44 }
 0x143   : > { %3596 = vmatmul.mubr.msk.bf16.gmra.mrb[20].mxu0 %vm1752_vm1, %v4224_v45  ;;  %2140 = vmatprep.mubr.bf16.mxu1 %v4225_v46 }
 0x144   : > { %3599 = vmatprep.mubr.msk.bf16.mxu0 %vm4326_vm0, %v4325_v40 }
 0x14a   : > { %2141 = vmatmul.mubr.bf16.gmra.mrb[24].mxu1 %v4227_v47 }
 0x14b   : > { %3600 = vmatmul.mubr.msk.bf16.gmra.mrb[24].mxu0 %vm1752_vm1, %v4228_v48  ;;  %2148 = vmatprep.mubr.bf16.mxu1 %v4229_v49 }
 0x14c   : > { %3603 = vmatprep.mubr.msk.bf16.mxu0 %vm4326_vm0, %v4325_v40 }
 0x152   : > { %2149 = vmatmul.mubr.bf16.gmra.mrb[28].mxu1 %v4231_v50 }
 0x153   : > { %3604 = vmatmul.mubr.msk.bf16.gmra.mrb[28].mxu0 %vm1752_vm1, %v4232_v51  ;;  %2156 = vmatprep.mubr.bf16.mxu1 %v4233_v52 }
 0x154   : > { %3607 = vmatprep.mubr.msk.bf16.mxu0 %vm4326_vm0, %v4325_v40 }
 0x15a   : > { %2157 = vmatmul.mubr.bf16.gmra.mrb[32].mxu1 %v4235_v53 }
 0x15b   : > { %3608 = vmatmul.mubr.msk.bf16.gmra.mrb[32].mxu0 %vm1752_vm1, %v4236_v54  ;;  %2164 = vmatprep.mubr.bf16.mxu1 %v4237_v55 }
 0x15c   : > { %3611 = vmatprep.mubr.msk.bf16.mxu0 %vm4326_vm0, %v4325_v40 }
 0x162   : > { %2165 = vmatmul.mubr.bf16.gmra.mrb[36].mxu1 %v4239_v56 }
 0x163   : > { %3612 = vmatmul.mubr.msk.bf16.gmra.mrb[36].mxu0 %vm1752_vm1, %v4240_v57  ;;  %2172 = vmatprep.mubr.bf16.mxu1 %v4241_v58 }
 0x164   : > { %3615 = vmatprep.mubr.msk.bf16.mxu0 %vm4326_vm0, %v4325_v40 }
 0x16a   : > { %2173 = vmatmul.mubr.bf16.gmra.mrb[40].mxu1 %v4243_v59 }
 0x16b   : > { %3616 = vmatmul.mubr.msk.bf16.gmra.mrb[40].mxu0 %vm1752_vm1, %v4244_v60  ;;  %2180 = vmatprep.mubr.bf16.mxu1 %v4245_v61 }
 0x16c   : > { %3619 = vmatprep.mubr.msk.bf16.mxu0 %vm4326_vm0, %v4325_v40 }
 0x172   : > { %2181 = vmatmul.mubr.bf16.gmra.mrb[44].mxu1 %v4247_v62 }
 0x173   : > { %3620 = vmatmul.mubr.msk.bf16.gmra.mrb[44].mxu0 %vm1752_vm1, %v4248_v63  ;;  %2188 = vmatprep.mubr.bf16.mxu1 %v4249_v1 }
 0x174   : > { %3623 = vmatprep.mubr.msk.bf16.mxu0 %vm4326_vm0, %v4325_v40 }
 0x17a   : > { %2189 = vmatmul.mubr.bf16.gmra.mrb[48].mxu1 %v4251_v2 }
 0x17b   : > { %3624 = vmatmul.mubr.msk.bf16.gmra.mrb[48].mxu0 %vm1752_vm1, %v4252_v3  ;;  %2196 = vmatprep.mubr.bf16.mxu1 %v4253_v4 }
 0x17c   : > { %3627 = vmatprep.mubr.msk.bf16.mxu0 %vm4326_vm0, %v4325_v40 }
 0x182   : > { %2197 = vmatmul.mubr.bf16.gmra.mrb[52].mxu1 %v4255_v5 }
 0x183   : > { %3628 = vmatmul.mubr.msk.bf16.gmra.mrb[52].mxu0 %vm1752_vm1, %v4256_v6  ;;  %2204 = vmatprep.mubr.bf16.mxu1 %v4257_v7 }
 0x184   : > { %3631 = vmatprep.mubr.msk.bf16.mxu0 %vm4326_vm0, %v4325_v40 }
 0x18a   : > { %2205 = vmatmul.mubr.bf16.gmra.mrb[56].mxu1 %v4259_v8 }
 0x18b   : > { %3632 = vmatmul.mubr.msk.bf16.gmra.mrb[56].mxu0 %vm1752_vm1, %v4260_v9  ;;  %2212 = vmatprep.mubr.bf16.mxu1 %v4261_v10 }
 0x18c   : > { %3635 = vmatprep.mubr.msk.bf16.mxu0 %vm4326_vm0, %v4325_v40 }
 0x192   : > { %2213 = vmatmul.mubr.bf16.gmra.mrb[60].mxu1 %v4263_v11 }
 0x193   : > { %3636 = vmatmul.mubr.msk.bf16.gmra.mrb[60].mxu0 %vm1752_vm1, %v4264_v12  ;;  %2220 = vmatprep.mubr.bf16.mxu1 %v4265_v13 }
 0x194   : > { %3639 = vmatprep.mubr.msk.bf16.mxu0 %vm4326_vm0, %v4325_v40 }
 0x19a   : > { %2221 = vmatmul.mubr.bf16.gmra.mrb[64].mxu1 %v4267_v14 }
 0x19b   : > { %3640 = vmatmul.mubr.msk.bf16.gmra.mrb[64].mxu0 %vm1752_vm1, %v4268_v15  ;;  %2228 = vmatprep.mubr.bf16.mxu1 %v4269_v16 }
 0x19c   : > { %3643 = vmatprep.mubr.msk.bf16.mxu0 %vm4326_vm0, %v4325_v40 }
 0x1a2   : > { %2229 = vmatmul.mubr.bf16.gmra.mrb[68].mxu1 %v4271_v17 }
 0x1a3   : > { %3644 = vmatmul.mubr.msk.bf16.gmra.mrb[68].mxu0 %vm1752_vm1, %v4272_v18  ;;  %2236 = vmatprep.mubr.bf16.mxu1 %v4273_v19 }
 0x1a4   : > { %3647 = vmatprep.mubr.msk.bf16.mxu0 %vm4326_vm0, %v4325_v40 }
 0x1aa   : > { %2237 = vmatmul.mubr.bf16.gmra.mrb[72].mxu1 %v4275_v20 }
 0x1ab   : > { %3648 = vmatmul.mubr.msk.bf16.gmra.mrb[72].mxu0 %vm1752_vm1, %v4276_v21  ;;  %2244 = vmatprep.mubr.bf16.mxu1 %v4277_v22 }
 0x1ac   : > { %3651 = vmatprep.mubr.msk.bf16.mxu0 %vm4326_vm0, %v4325_v40 }
 0x1b2   : > { %2245 = vmatmul.mubr.bf16.gmra.mrb[76].mxu1 %v4279_v23 }
 0x1b3   : > { %3652 = vmatmul.mubr.msk.bf16.gmra.mrb[76].mxu0 %vm1752_vm1, %v4280_v24  ;;  %2252 = vmatprep.mubr.bf16.mxu1 %v4281_v25 }
 0x1b4   : > { %3655 = vmatprep.mubr.msk.bf16.mxu0 %vm4326_vm0, %v4325_v40 }
 0x1ba   : > { %2253 = vmatmul.mubr.bf16.gmra.mrb[80].mxu1 %v4283_v26 }
 0x1bb   : > { %3656 = vmatmul.mubr.msk.bf16.gmra.mrb[80].mxu0 %vm1752_vm1, %v4284_v27  ;;  %2260 = vmatprep.mubr.bf16.mxu1 %v4285_v28 }
 0x1bc   : > { %3659 = vmatprep.mubr.msk.bf16.mxu0 %vm4326_vm0, %v4325_v40 }
 0x1c2   : > { %2261 = vmatmul.mubr.bf16.gmra.mrb[84].mxu1 %v4287_v29 }
 0x1c3   : > { %3660 = vmatmul.mubr.msk.bf16.gmra.mrb[84].mxu0 %vm1752_vm1, %v4288_v30  ;;  %2268 = vmatprep.mubr.bf16.mxu1 %v4289_v0 }
 0x1c4   : > { %3663 = vmatprep.mubr.msk.bf16.mxu0 %vm4326_vm0, %v4325_v40 }
 0x1ca   : > { %2269 = vmatmul.mubr.bf16.gmra.mrb[88].mxu1 %v4291_v31 }
 0x1cb   : > { %3664 = vmatmul.mubr.msk.bf16.gmra.mrb[88].mxu0 %vm1752_vm1, %v4292_v32  ;;  %2276 = vmatprep.mubr.bf16.mxu1 %v4293_v33 }
 0x1cc   : > { %3667 = vmatprep.mubr.msk.bf16.mxu0 %vm4326_vm0, %v4325_v40 }
 0x1d2   : > { %2277 = vmatmul.mubr.bf16.gmra.mrb[92].mxu1 %v4295_v35 }
 0x1d3   : > { %3668 = vmatmul.mubr.msk.bf16.gmra.mrb[92].mxu0 %vm1752_vm1, %v4296_v36  ;;  %2284 = vmatprep.mubr.bf16.mxu1 %v3365_v37 }
 0x1d4   : > { %3671 = vmatprep.mubr.msk.bf16.mxu0 %vm4326_vm0, %v4325_v40 }
 0x1da   : > { %2285 = vmatmul.mubr.bf16.gmra.mrb[96].mxu1 %v3364_v38 }
 0x1db   : > { %3672 = vmatmul.mubr.msk.bf16.gmra.mrb[96].mxu0 %vm1752_vm1, %v4299_v39 }
 0x1ed   : > { %v2094_v42 = vpop.f32.mrb[0].mxu1 }
 0x1ee   : > { %v3675_v43 = vadd.f32 %v4730_v41, %v2094_v42  ;;  %v2558_v44 = vpop.f32.mrb[0].mxu0  ;;  %v2096_v45 = vpop.f32.mrb[1].mxu1 }
 0x1ef   : > { %v3577_v46 = vpop.f32.mrb[1].mxu0  ;;  %v2097_v47 = vpop.f32.mrb[2].mxu1 }
 0x1f0   : > { %v3676_v40 = vadd.f32 %v3675_v43, %v2558_v44  ;;  %v3677_v48 = vadd.f32 %v4730_v41, %v2097_v47  ;;  %v2561_v49 = vpop.f32.mrb[2].mxu0  ;;  %v2099_v50 = vpop.f32.mrb[3].mxu1 }
 0x1f1   : > { %v3578_v51 = vpop.f32.mrb[3].mxu0 }
 0x1f2   : > { %v2756_v52 = vmax.f32 %v3676_v40, 0.0  ;;  %v3678_v53 = vadd.f32 %v3677_v48, %v2561_v49 }
 0x1f4   : > { %v3495_v54 = vpack.c.bf16 %v2756_v52, %v2756_v52  ;;  %v2757_v55 = vmax.f32 %v3678_v53, 0.0 }
 0x1f5   : > { %v2102_v56 = vpop.f32.mrb[4].mxu1 }
 0x1f6   : > { %3003 = vst.msk [vmem:[%s4738_s30] sm:$0xf] %vm3002_vm2, %v3495_v54  ;;  %v3496_v57 = vpack.c.bf16 %v2757_v55, %v2757_v55  ;;  %v3679_v58 = vadd.f32 %v4730_v41, %v2102_v56  ;;  %v2566_v59 = vpop.f32.mrb[4].mxu0  ;;  %v2104_v60 = vpop.f32.mrb[5].mxu1 }
 0x1f7   : > { %v3581_v61 = vpop.f32.mrb[5].mxu0  ;;  %v2105_v62 = vpop.f32.mrb[6].mxu1 }
 0x1f8   : > { %3004 = vst.msk [vmem:[%s4738_s30 + $0x4] sm:$0xf] %vm3002_vm2, %v3496_v57  ;;  %v3680_v63 = vadd.f32 %v3679_v58, %v2566_v59  ;;  %v3681_v1 = vadd.f32 %v4730_v41, %v2105_v62  ;;  %v2569_v2 = vpop.f32.mrb[6].mxu0  ;;  %v2107_v3 = vpop.f32.mrb[7].mxu1 }
 0x1f9   : > { %v3582_v4 = vpop.f32.mrb[7].mxu0 }
 0x1fa   : > { %v2758_v5 = vmax.f32 %v3680_v63, 0.0  ;;  %v3682_v6 = vadd.f32 %v3681_v1, %v2569_v2 }
 0x1fc   : > { %v3497_v7 = vpack.c.bf16 %v2758_v5, %v2758_v5  ;;  %v2759_v8 = vmax.f32 %v3682_v6, 0.0 }
 0x1fd   : > { %v2110_v9 = vpop.f32.mrb[8].mxu1 }
 0x1fe   : > { %3005 = vst.msk [vmem:[%s4738_s30 + $0x8] sm:$0xf] %vm3002_vm2, %v3497_v7  ;;  %v3498_v10 = vpack.c.bf16 %v2759_v8, %v2759_v8  ;;  %v3683_v11 = vadd.f32 %v4730_v41, %v2110_v9  ;;  %v2574_v12 = vpop.f32.mrb[8].mxu0  ;;  %v2112_v13 = vpop.f32.mrb[9].mxu1 }
 0x1ff   : > { %v3585_v14 = vpop.f32.mrb[9].mxu0  ;;  %v2113_v15 = vpop.f32.mrb[10].mxu1 }
 0x200   : > { %3006 = vst.msk [vmem:[%s4738_s30 + $0xc] sm:$0xf] %vm3002_vm2, %v3498_v10  ;;  %v3684_v16 = vadd.f32 %v3683_v11, %v2574_v12  ;;  %v3685_v17 = vadd.f32 %v4730_v41, %v2113_v15  ;;  %v2577_v18 = vpop.f32.mrb[10].mxu0  ;;  %v2115_v19 = vpop.f32.mrb[11].mxu1 }
 0x201   : > { %v3586_v20 = vpop.f32.mrb[11].mxu0 }
 0x202   : > { %v2760_v21 = vmax.f32 %v3684_v16, 0.0  ;;  %v3686_v22 = vadd.f32 %v3685_v17, %v2577_v18 }
 0x204   : > { %v3499_v23 = vpack.c.bf16 %v2760_v21, %v2760_v21  ;;  %v2761_v24 = vmax.f32 %v3686_v22, 0.0 }
 0x205   : > { %v2118_v25 = vpop.f32.mrb[12].mxu1 }
 0x206   : > { %3007 = vst.msk [vmem:[%s4738_s30 + $0x10] sm:$0xf] %vm3002_vm2, %v3499_v23  ;;  %v3500_v26 = vpack.c.bf16 %v2761_v24, %v2761_v24  ;;  %v3687_v27 = vadd.f32 %v4730_v41, %v2118_v25  ;;  %v2582_v28 = vpop.f32.mrb[12].mxu0  ;;  %v2120_v29 = vpop.f32.mrb[13].mxu1 }
 0x207   : > { %v3589_v30 = vpop.f32.mrb[13].mxu0  ;;  %v2121_v0 = vpop.f32.mrb[14].mxu1 }
 0x208   : > { %3008 = vst.msk [vmem:[%s4738_s30 + $0x14] sm:$0xf] %vm3002_vm2, %v3500_v26  ;;  %v3688_v31 = vadd.f32 %v3687_v27, %v2582_v28  ;;  %v3689_v32 = vadd.f32 %v4730_v41, %v2121_v0  ;;  %v2585_v33 = vpop.f32.mrb[14].mxu0  ;;  %v2123_v34 = vpop.f32.mrb[15].mxu1 }
 0x209   : > { %v3590_v35 = vpop.f32.mrb[15].mxu0 }
 0x20a   : > { %v2762_v36 = vmax.f32 %v3688_v31, 0.0  ;;  %v3690_v37 = vadd.f32 %v3689_v32, %v2585_v33 }
 0x20c   : > { %v3501_v38 = vpack.c.bf16 %v2762_v36, %v2762_v36  ;;  %v2763_v39 = vmax.f32 %v3690_v37, 0.0 }
 0x20d   : > { %v2126_v42 = vpop.f32.mrb[16].mxu1 }
 0x20e   : > { %3009 = vst.msk [vmem:[%s4738_s30 + $0x18] sm:$0xf] %vm3002_vm2, %v3501_v38  ;;  %v3502_v43 = vpack.c.bf16 %v2763_v39, %v2763_v39  ;;  %v3691_v44 = vadd.f32 %v4730_v41, %v2126_v42  ;;  %v2590_v45 = vpop.f32.mrb[16].mxu0  ;;  %v2128_v46 = vpop.f32.mrb[17].mxu1 }
 0x20f   : > { %v3593_v47 = vpop.f32.mrb[17].mxu0  ;;  %v2129_v40 = vpop.f32.mrb[18].mxu1 }
 0x210   : > { %3010 = vst.msk [vmem:[%s4738_s30 + $0x1c] sm:$0xf] %vm3002_vm2, %v3502_v43  ;;  %v3692_v48 = vadd.f32 %v3691_v44, %v2590_v45  ;;  %v3693_v49 = vadd.f32 %v4730_v41, %v2129_v40  ;;  %v2593_v50 = vpop.f32.mrb[18].mxu0  ;;  %v2131_v51 = vpop.f32.mrb[19].mxu1 }
 0x211   : > { %v3594_v52 = vpop.f32.mrb[19].mxu0 }
 0x212   : > { %v2764_v53 = vmax.f32 %v3692_v48, 0.0  ;;  %v3694_v54 = vadd.f32 %v3693_v49, %v2593_v50 }
 0x214   : > { %v3503_v55 = vpack.c.bf16 %v2764_v53, %v2764_v53  ;;  %v2765_v56 = vmax.f32 %v3694_v54, 0.0 }
 0x215   : > { %v2134_v57 = vpop.f32.mrb[20].mxu1 }
 0x216   : > { %3011 = vst.msk [vmem:[%s4738_s30 + $0x20] sm:$0xf] %vm3002_vm2, %v3503_v55  ;;  %v3504_v58 = vpack.c.bf16 %v2765_v56, %v2765_v56  ;;  %v3695_v59 = vadd.f32 %v4730_v41, %v2134_v57  ;;  %v2598_v60 = vpop.f32.mrb[20].mxu0  ;;  %v2136_v61 = vpop.f32.mrb[21].mxu1 }
 0x217   : > { %v3597_v62 = vpop.f32.mrb[21].mxu0  ;;  %v2137_v63 = vpop.f32.mrb[22].mxu1 }
 0x218   : > { %3012 = vst.msk [vmem:[%s4738_s30 + $0x24] sm:$0xf] %vm3002_vm2, %v3504_v58  ;;  %v3696_v1 = vadd.f32 %v3695_v59, %v2598_v60  ;;  %v3697_v2 = vadd.f32 %v4730_v41, %v2137_v63  ;;  %v2601_v3 = vpop.f32.mrb[22].mxu0  ;;  %v2139_v4 = vpop.f32.mrb[23].mxu1 }
 0x219   : > { %v3598_v5 = vpop.f32.mrb[23].mxu0 }
 0x21a   : > { %v2766_v6 = vmax.f32 %v3696_v1, 0.0  ;;  %v3698_v7 = vadd.f32 %v3697_v2, %v2601_v3 }
 0x21c   : > { %v3505_v8 = vpack.c.bf16 %v2766_v6, %v2766_v6  ;;  %v2767_v9 = vmax.f32 %v3698_v7, 0.0 }
 0x21d   : > { %v2142_v10 = vpop.f32.mrb[24].mxu1 }
 0x21e   : > { %3013 = vst.msk [vmem:[%s4738_s30 + $0x28] sm:$0xf] %vm3002_vm2, %v3505_v8  ;;  %v3506_v11 = vpack.c.bf16 %v2767_v9, %v2767_v9  ;;  %v3699_v12 = vadd.f32 %v4730_v41, %v2142_v10  ;;  %v2606_v13 = vpop.f32.mrb[24].mxu0  ;;  %v2144_v14 = vpop.f32.mrb[25].mxu1 }
 0x21f   : > { %v3601_v15 = vpop.f32.mrb[25].mxu0  ;;  %v2145_v16 = vpop.f32.mrb[26].mxu1 }
 0x220   : > { %3014 = vst.msk [vmem:[%s4738_s30 + $0x2c] sm:$0xf] %vm3002_vm2, %v3506_v11  ;;  %v3700_v17 = vadd.f32 %v3699_v12, %v2606_v13  ;;  %v3701_v18 = vadd.f32 %v4730_v41, %v2145_v16  ;;  %v2609_v19 = vpop.f32.mrb[26].mxu0  ;;  %v2147_v20 = vpop.f32.mrb[27].mxu1 }
 0x221   : > { %v3602_v21 = vpop.f32.mrb[27].mxu0 }
 0x222   : > { %v2768_v22 = vmax.f32 %v3700_v17, 0.0  ;;  %v3702_v23 = vadd.f32 %v3701_v18, %v2609_v19 }
 0x224   : > { %v3507_v24 = vpack.c.bf16 %v2768_v22, %v2768_v22  ;;  %v2769_v25 = vmax.f32 %v3702_v23, 0.0 }
 0x225   : > { %v2150_v26 = vpop.f32.mrb[28].mxu1 }
 0x226   : > { %3015 = vst.msk [vmem:[%s4738_s30 + $0x30] sm:$0xf] %vm3002_vm2, %v3507_v24  ;;  %v3508_v27 = vpack.c.bf16 %v2769_v25, %v2769_v25  ;;  %v3703_v28 = vadd.f32 %v4730_v41, %v2150_v26  ;;  %v2614_v29 = vpop.f32.mrb[28].mxu0  ;;  %v2152_v30 = vpop.f32.mrb[29].mxu1 }
 0x227   : > { %v3605_v0 = vpop.f32.mrb[29].mxu0  ;;  %v2153_v31 = vpop.f32.mrb[30].mxu1 }
 0x228   : > { %3016 = vst.msk [vmem:[%s4738_s30 + $0x34] sm:$0xf] %vm3002_vm2, %v3508_v27  ;;  %v3704_v32 = vadd.f32 %v3703_v28, %v2614_v29  ;;  %v3705_v33 = vadd.f32 %v4730_v41, %v2153_v31  ;;  %v2617_v34 = vpop.f32.mrb[30].mxu0  ;;  %v2155_v35 = vpop.f32.mrb[31].mxu1 }
 0x229   : > { %v3606_v36 = vpop.f32.mrb[31].mxu0 }
 0x22a   : > { %v2770_v37 = vmax.f32 %v3704_v32, 0.0  ;;  %v3706_v38 = vadd.f32 %v3705_v33, %v2617_v34 }
 0x22c   : > { %v3509_v39 = vpack.c.bf16 %v2770_v37, %v2770_v37  ;;  %v2771_v42 = vmax.f32 %v3706_v38, 0.0 }
 0x22d   : > { %v2158_v43 = vpop.f32.mrb[32].mxu1 }
 0x22e   : > { %3017 = vst.msk [vmem:[%s4738_s30 + $0x38] sm:$0xf] %vm3002_vm2, %v3509_v39  ;;  %v3510_v44 = vpack.c.bf16 %v2771_v42, %v2771_v42  ;;  %v3707_v45 = vadd.f32 %v4730_v41, %v2158_v43  ;;  %v2622_v46 = vpop.f32.mrb[32].mxu0  ;;  %v2160_v47 = vpop.f32.mrb[33].mxu1 }
 0x22f   : > { %v3609_v40 = vpop.f32.mrb[33].mxu0  ;;  %v2161_v48 = vpop.f32.mrb[34].mxu1 }
 0x230   : > { %3018 = vst.msk [vmem:[%s4738_s30 + $0x3c] sm:$0xf] %vm3002_vm2, %v3510_v44  ;;  %v3708_v49 = vadd.f32 %v3707_v45, %v2622_v46  ;;  %v3709_v50 = vadd.f32 %v4730_v41, %v2161_v48  ;;  %v2625_v51 = vpop.f32.mrb[34].mxu0  ;;  %v2163_v52 = vpop.f32.mrb[35].mxu1 }
 0x231   : > { %v3610_v53 = vpop.f32.mrb[35].mxu0 }
 0x232   : > { %v2772_v54 = vmax.f32 %v3708_v49, 0.0  ;;  %v3710_v55 = vadd.f32 %v3709_v50, %v2625_v51 }
 0x234   : > { %v3511_v56 = vpack.c.bf16 %v2772_v54, %v2772_v54  ;;  %v2773_v57 = vmax.f32 %v3710_v55, 0.0 }
 0x235   : > { %v2166_v58 = vpop.f32.mrb[36].mxu1 }
 0x236   : > { %3019 = vst.msk [vmem:[%s4738_s30 + $0x40] sm:$0xf] %vm3002_vm2, %v3511_v56  ;;  %v3512_v59 = vpack.c.bf16 %v2773_v57, %v2773_v57  ;;  %v3711_v60 = vadd.f32 %v4730_v41, %v2166_v58  ;;  %v2630_v61 = vpop.f32.mrb[36].mxu0  ;;  %v2168_v62 = vpop.f32.mrb[37].mxu1 }
 0x237   : > { %v3613_v63 = vpop.f32.mrb[37].mxu0  ;;  %v2169_v1 = vpop.f32.mrb[38].mxu1 }
 0x238   : > { %3020 = vst.msk [vmem:[%s4738_s30 + $0x44] sm:$0xf] %vm3002_vm2, %v3512_v59  ;;  %v3712_v2 = vadd.f32 %v3711_v60, %v2630_v61  ;;  %v3713_v3 = vadd.f32 %v4730_v41, %v2169_v1  ;;  %v2633_v4 = vpop.f32.mrb[38].mxu0  ;;  %v2171_v5 = vpop.f32.mrb[39].mxu1 }
 0x239   : > { %v3614_v6 = vpop.f32.mrb[39].mxu0 }
 0x23a   : > { %v2774_v7 = vmax.f32 %v3712_v2, 0.0  ;;  %v3714_v8 = vadd.f32 %v3713_v3, %v2633_v4 }
 0x23c   : > { %v3513_v9 = vpack.c.bf16 %v2774_v7, %v2774_v7  ;;  %v2775_v10 = vmax.f32 %v3714_v8, 0.0 }
 0x23d   : > { %v2174_v11 = vpop.f32.mrb[40].mxu1 }
 0x23e   : > { %3021 = vst.msk [vmem:[%s4738_s30 + $0x48] sm:$0xf] %vm3002_vm2, %v3513_v9  ;;  %v3514_v12 = vpack.c.bf16 %v2775_v10, %v2775_v10  ;;  %v3715_v13 = vadd.f32 %v4730_v41, %v2174_v11  ;;  %v2638_v14 = vpop.f32.mrb[40].mxu0  ;;  %v2176_v15 = vpop.f32.mrb[41].mxu1 }
 0x23f   : > { %v3617_v16 = vpop.f32.mrb[41].mxu0  ;;  %v2177_v17 = vpop.f32.mrb[42].mxu1 }
 0x240   : > { %3022 = vst.msk [vmem:[%s4738_s30 + $0x4c] sm:$0xf] %vm3002_vm2, %v3514_v12  ;;  %v3716_v18 = vadd.f32 %v3715_v13, %v2638_v14  ;;  %v3717_v19 = vadd.f32 %v4730_v41, %v2177_v17  ;;  %v2641_v20 = vpop.f32.mrb[42].mxu0  ;;  %v2179_v21 = vpop.f32.mrb[43].mxu1 }
 0x241   : > { %v3618_v22 = vpop.f32.mrb[43].mxu0 }
 0x242   : > { %v2776_v23 = vmax.f32 %v3716_v18, 0.0  ;;  %v3718_v24 = vadd.f32 %v3717_v19, %v2641_v20 }
 0x244   : > { %v3515_v25 = vpack.c.bf16 %v2776_v23, %v2776_v23  ;;  %v2777_v26 = vmax.f32 %v3718_v24, 0.0 }
 0x245   : > { %v2182_v27 = vpop.f32.mrb[44].mxu1 }
 0x246   : > { %3023 = vst.msk [vmem:[%s4738_s30 + $0x50] sm:$0xf] %vm3002_vm2, %v3515_v25  ;;  %v3516_v28 = vpack.c.bf16 %v2777_v26, %v2777_v26  ;;  %v3719_v29 = vadd.f32 %v4730_v41, %v2182_v27  ;;  %v2646_v30 = vpop.f32.mrb[44].mxu0  ;;  %v2184_v0 = vpop.f32.mrb[45].mxu1 }
 0x247   : > { %v3621_v31 = vpop.f32.mrb[45].mxu0  ;;  %v2185_v32 = vpop.f32.mrb[46].mxu1 }
 0x248   : > { %3024 = vst.msk [vmem:[%s4738_s30 + $0x54] sm:$0xf] %vm3002_vm2, %v3516_v28  ;;  %v3720_v33 = vadd.f32 %v3719_v29, %v2646_v30  ;;  %v3721_v34 = vadd.f32 %v4730_v41, %v2185_v32  ;;  %v2649_v35 = vpop.f32.mrb[46].mxu0  ;;  %v2187_v36 = vpop.f32.mrb[47].mxu1 }
 0x249   : > { %v3622_v37 = vpop.f32.mrb[47].mxu0 }
 0x24a   : > { %v2778_v38 = vmax.f32 %v3720_v33, 0.0  ;;  %v3722_v39 = vadd.f32 %v3721_v34, %v2649_v35 }
 0x24c   : > { %v3517_v42 = vpack.c.bf16 %v2778_v38, %v2778_v38  ;;  %v2779_v43 = vmax.f32 %v3722_v39, 0.0 }
 0x24d   : > { %v2190_v44 = vpop.f32.mrb[48].mxu1 }
 0x24e   : > { %3025 = vst.msk [vmem:[%s4738_s30 + $0x58] sm:$0xf] %vm3002_vm2, %v3517_v42  ;;  %v3518_v45 = vpack.c.bf16 %v2779_v43, %v2779_v43  ;;  %v3723_v46 = vadd.f32 %v4730_v41, %v2190_v44  ;;  %v2654_v47 = vpop.f32.mrb[48].mxu0  ;;  %v2192_v40 = vpop.f32.mrb[49].mxu1 }
 0x24f   : > { %v3625_v48 = vpop.f32.mrb[49].mxu0  ;;  %v2193_v49 = vpop.f32.mrb[50].mxu1 }
 0x250   : > { %3026 = vst.msk [vmem:[%s4738_s30 + $0x5c] sm:$0xf] %vm3002_vm2, %v3518_v45  ;;  %v3724_v50 = vadd.f32 %v3723_v46, %v2654_v47  ;;  %v3725_v51 = vadd.f32 %v4730_v41, %v2193_v49  ;;  %v2657_v52 = vpop.f32.mrb[50].mxu0  ;;  %v2195_v53 = vpop.f32.mrb[51].mxu1 }
 0x251   : > { %v3626_v54 = vpop.f32.mrb[51].mxu0 }
 0x252   : > { %v2780_v55 = vmax.f32 %v3724_v50, 0.0  ;;  %v3726_v56 = vadd.f32 %v3725_v51, %v2657_v52 }
 0x254   : > { %v3519_v57 = vpack.c.bf16 %v2780_v55, %v2780_v55  ;;  %v2781_v58 = vmax.f32 %v3726_v56, 0.0 }
 0x255   : > { %v2198_v59 = vpop.f32.mrb[52].mxu1 }
 0x256   : > { %3027 = vst.msk [vmem:[%s4738_s30 + $0x60] sm:$0xf] %vm3002_vm2, %v3519_v57  ;;  %v3520_v60 = vpack.c.bf16 %v2781_v58, %v2781_v58  ;;  %v3727_v61 = vadd.f32 %v4730_v41, %v2198_v59  ;;  %v2662_v62 = vpop.f32.mrb[52].mxu0  ;;  %v2200_v63 = vpop.f32.mrb[53].mxu1 }
 0x257   : > { %v3629_v1 = vpop.f32.mrb[53].mxu0  ;;  %v2201_v2 = vpop.f32.mrb[54].mxu1 }
 0x258   : > { %3028 = vst.msk [vmem:[%s4738_s30 + $0x64] sm:$0xf] %vm3002_vm2, %v3520_v60  ;;  %v3728_v3 = vadd.f32 %v3727_v61, %v2662_v62  ;;  %v3729_v4 = vadd.f32 %v4730_v41, %v2201_v2  ;;  %v2665_v5 = vpop.f32.mrb[54].mxu0  ;;  %v2203_v6 = vpop.f32.mrb[55].mxu1 }
 0x259   : > { %v3630_v7 = vpop.f32.mrb[55].mxu0 }
 0x25a   : > { %v2782_v8 = vmax.f32 %v3728_v3, 0.0  ;;  %v3730_v9 = vadd.f32 %v3729_v4, %v2665_v5 }
 0x25c   : > { %v3521_v10 = vpack.c.bf16 %v2782_v8, %v2782_v8  ;;  %v2783_v11 = vmax.f32 %v3730_v9, 0.0 }
 0x25d   : > { %v2206_v12 = vpop.f32.mrb[56].mxu1 }
 0x25e   : > { %3029 = vst.msk [vmem:[%s4738_s30 + $0x68] sm:$0xf] %vm3002_vm2, %v3521_v10  ;;  %v3522_v13 = vpack.c.bf16 %v2783_v11, %v2783_v11  ;;  %v3731_v14 = vadd.f32 %v4730_v41, %v2206_v12  ;;  %v2670_v15 = vpop.f32.mrb[56].mxu0  ;;  %v2208_v16 = vpop.f32.mrb[57].mxu1 }
 0x25f   : > { %v3633_v17 = vpop.f32.mrb[57].mxu0  ;;  %v2209_v18 = vpop.f32.mrb[58].mxu1 }
 0x260   : > { %3030 = vst.msk [vmem:[%s4738_s30 + $0x6c] sm:$0xf] %vm3002_vm2, %v3522_v13  ;;  %v3732_v19 = vadd.f32 %v3731_v14, %v2670_v15  ;;  %v3733_v20 = vadd.f32 %v4730_v41, %v2209_v18  ;;  %v2673_v21 = vpop.f32.mrb[58].mxu0  ;;  %v2211_v22 = vpop.f32.mrb[59].mxu1 }
 0x261   : > { %v3634_v23 = vpop.f32.mrb[59].mxu0 }
 0x262   : > { %v2784_v24 = vmax.f32 %v3732_v19, 0.0  ;;  %v3734_v25 = vadd.f32 %v3733_v20, %v2673_v21 }
 0x264   : > { %v3523_v26 = vpack.c.bf16 %v2784_v24, %v2784_v24  ;;  %v2785_v27 = vmax.f32 %v3734_v25, 0.0 }
 0x265   : > { %v2214_v28 = vpop.f32.mrb[60].mxu1 }
 0x266   : > { %3031 = vst.msk [vmem:[%s4738_s30 + $0x70] sm:$0xf] %vm3002_vm2, %v3523_v26  ;;  %v3524_v29 = vpack.c.bf16 %v2785_v27, %v2785_v27  ;;  %v3735_v30 = vadd.f32 %v4730_v41, %v2214_v28  ;;  %v2678_v0 = vpop.f32.mrb[60].mxu0  ;;  %v2216_v31 = vpop.f32.mrb[61].mxu1 }
 0x267   : > { %v3637_v32 = vpop.f32.mrb[61].mxu0  ;;  %v2217_v33 = vpop.f32.mrb[62].mxu1 }
 0x268   : > { %3032 = vst.msk [vmem:[%s4738_s30 + $0x74] sm:$0xf] %vm3002_vm2, %v3524_v29  ;;  %v3736_v34 = vadd.f32 %v3735_v30, %v2678_v0  ;;  %v3737_v35 = vadd.f32 %v4730_v41, %v2217_v33  ;;  %v2681_v36 = vpop.f32.mrb[62].mxu0  ;;  %v2219_v37 = vpop.f32.mrb[63].mxu1 }
 0x269   : > { %v3638_v38 = vpop.f32.mrb[63].mxu0 }
 0x26a   : > { %v2786_v39 = vmax.f32 %v3736_v34, 0.0  ;;  %v3738_v42 = vadd.f32 %v3737_v35, %v2681_v36 }
 0x26c   : > { %v3525_v43 = vpack.c.bf16 %v2786_v39, %v2786_v39  ;;  %v2787_v44 = vmax.f32 %v3738_v42, 0.0 }
 0x26d   : > { %v2222_v45 = vpop.f32.mrb[64].mxu1 }
 0x26e   : > { %3033 = vst.msk [vmem:[%s4738_s30 + $0x78] sm:$0xf] %vm3002_vm2, %v3525_v43  ;;  %v3526_v46 = vpack.c.bf16 %v2787_v44, %v2787_v44  ;;  %v3739_v47 = vadd.f32 %v4730_v41, %v2222_v45  ;;  %v2686_v40 = vpop.f32.mrb[64].mxu0  ;;  %v2224_v48 = vpop.f32.mrb[65].mxu1 }
 0x26f   : > { %v3641_v49 = vpop.f32.mrb[65].mxu0  ;;  %v2225_v50 = vpop.f32.mrb[66].mxu1 }
 0x270   : > { %3034 = vst.msk [vmem:[%s4738_s30 + $0x7c] sm:$0xf] %vm3002_vm2, %v3526_v46  ;;  %v3740_v51 = vadd.f32 %v3739_v47, %v2686_v40  ;;  %v3741_v52 = vadd.f32 %v4730_v41, %v2225_v50  ;;  %v2689_v53 = vpop.f32.mrb[66].mxu0  ;;  %v2227_v54 = vpop.f32.mrb[67].mxu1 }
 0x271   : > { %v3642_v55 = vpop.f32.mrb[67].mxu0 }
 0x272   : > { %v2788_v56 = vmax.f32 %v3740_v51, 0.0  ;;  %v3742_v57 = vadd.f32 %v3741_v52, %v2689_v53 }
 0x274   : > { %v3527_v58 = vpack.c.bf16 %v2788_v56, %v2788_v56  ;;  %v2789_v59 = vmax.f32 %v3742_v57, 0.0 }
 0x275   : > { %v2230_v60 = vpop.f32.mrb[68].mxu1 }
 0x276   : > { %3035 = vst.msk [vmem:[%s4738_s30 + $0x80] sm:$0xf] %vm3002_vm2, %v3527_v58  ;;  %v3528_v61 = vpack.c.bf16 %v2789_v59, %v2789_v59  ;;  %v3743_v62 = vadd.f32 %v4730_v41, %v2230_v60  ;;  %v2694_v63 = vpop.f32.mrb[68].mxu0  ;;  %v2232_v1 = vpop.f32.mrb[69].mxu1 }
 0x277   : > { %v3645_v2 = vpop.f32.mrb[69].mxu0  ;;  %v2233_v3 = vpop.f32.mrb[70].mxu1 }
 0x278   : > { %3036 = vst.msk [vmem:[%s4738_s30 + $0x84] sm:$0xf] %vm3002_vm2, %v3528_v61  ;;  %v3744_v4 = vadd.f32 %v3743_v62, %v2694_v63  ;;  %v3745_v5 = vadd.f32 %v4730_v41, %v2233_v3  ;;  %v2697_v6 = vpop.f32.mrb[70].mxu0  ;;  %v2235_v7 = vpop.f32.mrb[71].mxu1 }
 0x279   : > { %v3646_v8 = vpop.f32.mrb[71].mxu0 }
 0x27a   : > { %v2790_v9 = vmax.f32 %v3744_v4, 0.0  ;;  %v3746_v10 = vadd.f32 %v3745_v5, %v2697_v6 }
 0x27c   : > { %v3529_v11 = vpack.c.bf16 %v2790_v9, %v2790_v9  ;;  %v2791_v12 = vmax.f32 %v3746_v10, 0.0 }
 0x27d   : > { %v2238_v13 = vpop.f32.mrb[72].mxu1 }
 0x27e   : > { %3037 = vst.msk [vmem:[%s4738_s30 + $0x88] sm:$0xf] %vm3002_vm2, %v3529_v11  ;;  %v3530_v14 = vpack.c.bf16 %v2791_v12, %v2791_v12  ;;  %v3747_v15 = vadd.f32 %v4730_v41, %v2238_v13  ;;  %v2702_v16 = vpop.f32.mrb[72].mxu0  ;;  %v2240_v17 = vpop.f32.mrb[73].mxu1 }
 0x27f   : > { %v3649_v18 = vpop.f32.mrb[73].mxu0  ;;  %v2241_v19 = vpop.f32.mrb[74].mxu1 }
 0x280   : > { %3038 = vst.msk [vmem:[%s4738_s30 + $0x8c] sm:$0xf] %vm3002_vm2, %v3530_v14  ;;  %v3748_v20 = vadd.f32 %v3747_v15, %v2702_v16  ;;  %v3749_v21 = vadd.f32 %v4730_v41, %v2241_v19  ;;  %v2705_v22 = vpop.f32.mrb[74].mxu0  ;;  %v2243_v23 = vpop.f32.mrb[75].mxu1 }
 0x281   : > { %v3650_v24 = vpop.f32.mrb[75].mxu0 }
 0x282   : > { %v2792_v25 = vmax.f32 %v3748_v20, 0.0  ;;  %v3750_v26 = vadd.f32 %v3749_v21, %v2705_v22 }
 0x284   : > { %v3531_v27 = vpack.c.bf16 %v2792_v25, %v2792_v25  ;;  %v2793_v28 = vmax.f32 %v3750_v26, 0.0 }
 0x285   : > { %v2246_v29 = vpop.f32.mrb[76].mxu1 }
 0x286   : > { %3039 = vst.msk [vmem:[%s4738_s30 + $0x90] sm:$0xf] %vm3002_vm2, %v3531_v27  ;;  %v3532_v30 = vpack.c.bf16 %v2793_v28, %v2793_v28  ;;  %v3751_v0 = vadd.f32 %v4730_v41, %v2246_v29  ;;  %v2710_v31 = vpop.f32.mrb[76].mxu0  ;;  %v2248_v32 = vpop.f32.mrb[77].mxu1 }
 0x287   : > { %v3653_v33 = vpop.f32.mrb[77].mxu0  ;;  %v2249_v34 = vpop.f32.mrb[78].mxu1 }
 0x288   : > { %3040 = vst.msk [vmem:[%s4738_s30 + $0x94] sm:$0xf] %vm3002_vm2, %v3532_v30  ;;  %v3752_v35 = vadd.f32 %v3751_v0, %v2710_v31  ;;  %v3753_v36 = vadd.f32 %v4730_v41, %v2249_v34  ;;  %v2713_v37 = vpop.f32.mrb[78].mxu0  ;;  %v2251_v38 = vpop.f32.mrb[79].mxu1 }
 0x289   : > { %v3654_v39 = vpop.f32.mrb[79].mxu0 }
 0x28a   : > { %v2794_v42 = vmax.f32 %v3752_v35, 0.0  ;;  %v3754_v43 = vadd.f32 %v3753_v36, %v2713_v37 }
 0x28c   : > { %v3533_v44 = vpack.c.bf16 %v2794_v42, %v2794_v42  ;;  %v2795_v45 = vmax.f32 %v3754_v43, 0.0 }
 0x28d   : > { %v2254_v46 = vpop.f32.mrb[80].mxu1 }
 0x28e   : > { %3041 = vst.msk [vmem:[%s4738_s30 + $0x98] sm:$0xf] %vm3002_vm2, %v3533_v44  ;;  %v3534_v47 = vpack.c.bf16 %v2795_v45, %v2795_v45  ;;  %v3755_v40 = vadd.f32 %v4730_v41, %v2254_v46  ;;  %v2718_v48 = vpop.f32.mrb[80].mxu0  ;;  %v2256_v49 = vpop.f32.mrb[81].mxu1 }
 0x28f   : > { %v3657_v50 = vpop.f32.mrb[81].mxu0  ;;  %v2257_v51 = vpop.f32.mrb[82].mxu1 }
 0x290   : > { %3042 = vst.msk [vmem:[%s4738_s30 + $0x9c] sm:$0xf] %vm3002_vm2, %v3534_v47  ;;  %v3756_v52 = vadd.f32 %v3755_v40, %v2718_v48  ;;  %v3757_v53 = vadd.f32 %v4730_v41, %v2257_v51  ;;  %v2721_v54 = vpop.f32.mrb[82].mxu0  ;;  %v2259_v55 = vpop.f32.mrb[83].mxu1 }
 0x291   : > { %v3658_v56 = vpop.f32.mrb[83].mxu0 }
 0x292   : > { %v2796_v57 = vmax.f32 %v3756_v52, 0.0  ;;  %v3758_v58 = vadd.f32 %v3757_v53, %v2721_v54 }
 0x294   : > { %v3535_v59 = vpack.c.bf16 %v2796_v57, %v2796_v57  ;;  %v2797_v60 = vmax.f32 %v3758_v58, 0.0 }
 0x295   : > { %v2262_v61 = vpop.f32.mrb[84].mxu1 }
 0x296   : > { %3043 = vst.msk [vmem:[%s4738_s30 + $0xa0] sm:$0xf] %vm3002_vm2, %v3535_v59  ;;  %v3536_v62 = vpack.c.bf16 %v2797_v60, %v2797_v60  ;;  %v3759_v63 = vadd.f32 %v4730_v41, %v2262_v61  ;;  %v2726_v1 = vpop.f32.mrb[84].mxu0  ;;  %v2264_v2 = vpop.f32.mrb[85].mxu1 }
 0x297   : > { %v3661_v3 = vpop.f32.mrb[85].mxu0  ;;  %v2265_v4 = vpop.f32.mrb[86].mxu1 }
 0x298   : > { %3044 = vst.msk [vmem:[%s4738_s30 + $0xa4] sm:$0xf] %vm3002_vm2, %v3536_v62  ;;  %v3760_v5 = vadd.f32 %v3759_v63, %v2726_v1  ;;  %v3761_v6 = vadd.f32 %v4730_v41, %v2265_v4  ;;  %v2729_v7 = vpop.f32.mrb[86].mxu0  ;;  %v2267_v8 = vpop.f32.mrb[87].mxu1 }
 0x299   : > { %v3662_v9 = vpop.f32.mrb[87].mxu0 }
 0x29a   : > { %v2798_v10 = vmax.f32 %v3760_v5, 0.0  ;;  %v3762_v11 = vadd.f32 %v3761_v6, %v2729_v7 }
 0x29c   : > { %v3537_v12 = vpack.c.bf16 %v2798_v10, %v2798_v10  ;;  %v2799_v13 = vmax.f32 %v3762_v11, 0.0 }
 0x29d   : > { %v2270_v14 = vpop.f32.mrb[88].mxu1 }
 0x29e   : > { %3045 = vst.msk [vmem:[%s4738_s30 + $0xa8] sm:$0xf] %vm3002_vm2, %v3537_v12  ;;  %v3538_v15 = vpack.c.bf16 %v2799_v13, %v2799_v13  ;;  %v3763_v16 = vadd.f32 %v4730_v41, %v2270_v14  ;;  %v2734_v17 = vpop.f32.mrb[88].mxu0  ;;  %v2272_v18 = vpop.f32.mrb[89].mxu1 }
 0x29f   : > { %v3665_v19 = vpop.f32.mrb[89].mxu0  ;;  %v2273_v20 = vpop.f32.mrb[90].mxu1 }
 0x2a0   : > { %3046 = vst.msk [vmem:[%s4738_s30 + $0xac] sm:$0xf] %vm3002_vm2, %v3538_v15  ;;  %v3764_v21 = vadd.f32 %v3763_v16, %v2734_v17  ;;  %v3765_v22 = vadd.f32 %v4730_v41, %v2273_v20  ;;  %v2737_v23 = vpop.f32.mrb[90].mxu0  ;;  %v2275_v24 = vpop.f32.mrb[91].mxu1 }
 0x2a1   : > { %v3666_v25 = vpop.f32.mrb[91].mxu0 }
 0x2a2   : > { %v2800_v26 = vmax.f32 %v3764_v21, 0.0  ;;  %v3766_v27 = vadd.f32 %v3765_v22, %v2737_v23 }
 0x2a4   : > { %v3539_v28 = vpack.c.bf16 %v2800_v26, %v2800_v26  ;;  %v2801_v29 = vmax.f32 %v3766_v27, 0.0 }
 0x2a5   : > { %v2278_v30 = vpop.f32.mrb[92].mxu1 }
 0x2a6   : > { %3047 = vst.msk [vmem:[%s4738_s30 + $0xb0] sm:$0xf] %vm3002_vm2, %v3539_v28  ;;  %v3540_v0 = vpack.c.bf16 %v2801_v29, %v2801_v29  ;;  %v3767_v31 = vadd.f32 %v4730_v41, %v2278_v30  ;;  %v2742_v32 = vpop.f32.mrb[92].mxu0  ;;  %v2280_v33 = vpop.f32.mrb[93].mxu1 }
 0x2a7   : > { %v3669_v34 = vpop.f32.mrb[93].mxu0  ;;  %v2281_v35 = vpop.f32.mrb[94].mxu1 }
 0x2a8   : > { %3048 = vst.msk [vmem:[%s4738_s30 + $0xb4] sm:$0xf] %vm3002_vm2, %v3540_v0  ;;  %v3768_v36 = vadd.f32 %v3767_v31, %v2742_v32  ;;  %v3769_v37 = vadd.f32 %v4730_v41, %v2281_v35  ;;  %v2745_v38 = vpop.f32.mrb[94].mxu0  ;;  %v2283_v39 = vpop.f32.mrb[95].mxu1 }
 0x2a9   : > { %v3670_v42 = vpop.f32.mrb[95].mxu0 }
 0x2aa   : > { %v2802_v43 = vmax.f32 %v3768_v36, 0.0  ;;  %v3770_v44 = vadd.f32 %v3769_v37, %v2745_v38 }
 0x2ac   : > { %v3541_v45 = vpack.c.bf16 %v2802_v43, %v2802_v43  ;;  %v2803_v46 = vmax.f32 %v3770_v44, 0.0 }
 0x2ad   : > { %v2286_v47 = vpop.f32.mrb[96].mxu1 }
 0x2ae   : > { %3049 = vst.msk [vmem:[%s4738_s30 + $0xb8] sm:$0xf] %vm3002_vm2, %v3541_v45  ;;  %v3542_v40 = vpack.c.bf16 %v2803_v46, %v2803_v46  ;;  %v3771_v48 = vadd.f32 %v4730_v41, %v2286_v47  ;;  %v2750_v49 = vpop.f32.mrb[96].mxu0  ;;  %v2288_v50 = vpop.f32.mrb[97].mxu1 }
 0x2af   : > { %v3673_v51 = vpop.f32.mrb[97].mxu0  ;;  %v2289_v52 = vpop.f32.mrb[98].mxu1 }
 0x2b0   : > { %3050 = vst.msk [vmem:[%s4738_s30 + $0xbc] sm:$0xf] %vm3002_vm2, %v3542_v40  ;;  %v3772_v53 = vadd.f32 %v3771_v48, %v2750_v49  ;;  %v2753_v54 = vpop.f32.mrb[98].mxu0  ;;  %v2290_v55 = vpop.f32.mrb[99].mxu1 }
 0x2b1   : > { %v3674_v56 = vpop.f32.mrb[99].mxu0 }
 0x2b2   : > { %v2804_v57 = vmax.f32 %v3772_v53, 0.0 }
 0x2b4   : > { %v3543_v58 = vpack.c.bf16 %v2804_v57, %v2804_v57 }
 0x2b6   : > { %3051 = vst.msk [vmem:[%s4738_s30 + $0xc0] sm:$0xf] %vm3002_vm2, %v3543_v58 }
 0x2b7 PF: > { %s13_s14 = sadd.s32 1, %s4322_s14   ;;  %s4898_s12 = smov %s4318_s13 }
 0x2b8   : > { %p10_p5 = scmp.ge.s32.totalorder %s13_s14, 5   ;;  %s4899_s13 = smov %s4901_s15 }
 0x2ba   :  { %12 = sbr.rel (!%p10_p5) target bundleno = 2 (0x2), region = 68 }

// kernel: triplenet_forward.9
= control target key start
LH: loop header
LB: loop body
LE: loop exit
PB: predicated region body
PF: predicated region fallthrough
CT: control target
= control target key end

     0   :  { %vm431_vm0 = vcmask 522240   ;;  %vm600_vm1 = vcmask 519168   ;;  %vm601_vm2 = vsmask.f32 3328  ;;  %s1844_s0 = inlined_call_operand.vmem [shape: bf16[42,2,7,64], index: 0, kind: input, shape index: {}]   ;;  %s1845_s1 = inlined_call_operand.vmem [shape: bf16[42,2,7,64], index: 1, kind: input, shape index: {}]   ;;  %s1846_s2 = inlined_call_operand.vmem [shape: bf16[42,7,64], index: 2, kind: output, shape index: {}]  }
   0x1   :  { %v734_v0 = vld [vmem:[%s1844_s0] sm:$0xff]   ;;  %v1069_v6 = vld [vmem:[%s1844_s0 + $0x8] sm:$0xff]   ;;  %v1070_v12 = vld [vmem:[%s1844_s0 + $0x10] sm:$0xff]  }
   0x2   :  { %v902_v1 = vld [vmem:[%s1845_s1] sm:$0xff]   ;;  %v735_v2 = vunpack.c.l.bf16 %v734_v0  ;;  %v736_v3 = vunpack.c.h.bf16 %v734_v0  ;;  %v1110_v7 = vld [vmem:[%s1845_s1 + $0x8] sm:$0xff]   ;;  %v739_v8 = vunpack.c.l.bf16 %v1069_v6  ;;  %v740_v9 = vunpack.c.h.bf16 %v1069_v6  ;;  %v1111_v13 = vld [vmem:[%s1845_s1 + $0x10] sm:$0xff]  }
   0x3   :  { %v903_v4 = vunpack.c.l.bf16 %v902_v1  ;;  %v904_v5 = vunpack.c.h.bf16 %v902_v1  ;;  %v907_v10 = vunpack.c.l.bf16 %v1110_v7  ;;  %v908_v11 = vunpack.c.h.bf16 %v1110_v7  ;;  %v1071_v18 = vld [vmem:[%s1844_s0 + $0x18] sm:$0xff]   ;;  %v1072_v28 = vld [vmem:[%s1844_s0 + $0x20] sm:$0xff]   ;;  %vm1199_vm3 = vmand %vm600_vm1, %vm601_vm2 }
   0x4   :  { %v743_v16 = vunpack.c.l.bf16 %v1070_v12  ;;  %v744_v17 = vunpack.c.h.bf16 %v1070_v12  ;;  %v911_v21 = vunpack.c.l.bf16 %v1111_v13  ;;  %v912_v22 = vunpack.c.h.bf16 %v1111_v13  ;;  %v1112_v23 = vld [vmem:[%s1845_s1 + $0x18] sm:$0xff]   ;;  %v603_v34 = vld [vmem:[%s1846_s2] sm:$0xf]  ;;  %v606_v41 = vld [vmem:[%s1846_s2 + $0x4] sm:$0xf] }
   0x5   :  { %v347_v14 = vmax.f32 %v735_v2, %v903_v4  ;;  %v348_v15 = vmax.f32 %v736_v3, %v904_v5  ;;  %v349_v19 = vmax.f32 %v739_v8, %v907_v10  ;;  %v350_v20 = vmax.f32 %v740_v9, %v908_v11  ;;  %v1113_v39 = vld [vmem:[%s1845_s1 + $0x20] sm:$0xff]   ;;  %v1073_v45 = vld [vmem:[%s1844_s0 + $0x28] sm:$0xff]   ;;  %v1074_v55 = vld [vmem:[%s1844_s0 + $0x30] sm:$0xff]  }
   0x6   :  { %v747_v26 = vunpack.c.l.bf16 %v1071_v18  ;;  %v748_v27 = vunpack.c.h.bf16 %v1071_v18  ;;  %v351_v32 = vmax.f32 %v743_v16, %v911_v21  ;;  %v352_v36 = vmax.f32 %v744_v17, %v912_v22  ;;  %v1114_v54 = vld [vmem:[%s1845_s1 + $0x28] sm:$0xff]   ;;  %v1115_v6 = vld [vmem:[%s1845_s1 + $0x30] sm:$0xff]   ;;  %v1075_v7 = vld [vmem:[%s1844_s0 + $0x38] sm:$0xff]  }
   0x7   :  { %v432_v24 = vsel %vm431_vm0, %v347_v14, -inf  ;;  %v433_v25 = vsel %vm431_vm0, %v348_v15, -inf  ;;  %v435_v30 = vsel %vm431_vm0, %v349_v19, -inf  ;;  %v436_v31 = vsel %vm431_vm0, %v350_v20, -inf  ;;  %v609_v57 = vld [vmem:[%s1846_s2 + $0x8] sm:$0xf] }
   0x8   :  { %v434_v29 = vmax.f32 %v432_v24, %v433_v25  ;;  %v437_v35 = vmax.f32 %v435_v30, %v436_v31  ;;  %v915_v37 = vunpack.c.l.bf16 %v1112_v23  ;;  %v916_v38 = vunpack.c.h.bf16 %v1112_v23  ;;  %v612_v1 = vld [vmem:[%s1846_s2 + $0xc] sm:$0xf]  ;;  %v1116_v16 = vld [vmem:[%s1845_s1 + $0x38] sm:$0xff]   ;;  %v615_v18 = vld [vmem:[%s1846_s2 + $0x10] sm:$0xf] }
   0x9   :  { %v438_v42 = vsel %vm431_vm0, %v351_v32, -inf  ;;  %v751_v43 = vunpack.c.l.bf16 %v1072_v28  ;;  %v752_v44 = vunpack.c.h.bf16 %v1072_v28  ;;  %v439_v47 = vsel %vm431_vm0, %v352_v36, -inf  ;;  %v1076_v22 = vld [vmem:[%s1844_s0 + $0x40] sm:$0xff]  }
   0xa   :  { %v558_v40 = vpack.c.bf16 %v434_v29, %v434_v29  ;;  %v559_v46 = vpack.c.bf16 %v437_v35, %v437_v35  ;;  %v353_v48 = vmax.f32 %v747_v26, %v915_v37  ;;  %v354_v49 = vmax.f32 %v748_v27, %v916_v38  ;;  %v1117_v31 = vld [vmem:[%s1845_s1 + $0x40] sm:$0xff]   ;;  %v1077_v38 = vld [vmem:[%s1844_s0 + $0x48] sm:$0xff]  }
   0xb   :  { %v440_v51 = vmax.f32 %v438_v42, %v439_v47  ;;  %v919_v52 = vunpack.c.l.bf16 %v1113_v39  ;;  %v920_v53 = vunpack.c.h.bf16 %v1113_v39  ;;  %v755_v60 = vunpack.c.l.bf16 %v1073_v45  ;;  %v1118_v47 = vld [vmem:[%s1845_s1 + $0x48] sm:$0xff]  }
   0xc   :  { %v604_v50 = vsel %vm1199_vm3, %v558_v40, %v603_v34  ;;  %v607_v56 = vsel %vm1199_vm3, %v559_v46, %v606_v41  ;;  %v441_v58 = vsel %vm431_vm0, %v353_v48, -inf  ;;  %v442_v59 = vsel %vm431_vm0, %v354_v49, -inf  ;;  %v618_v34 = vld [vmem:[%s1846_s2 + $0x14] sm:$0xf] }
   0xd   :  { %605 = vst [vmem:[%s1846_s2] sm:$0xf] %v604_v50  ;;  %608 = vst [vmem:[%s1846_s2 + $0x4] sm:$0xf] %v607_v56  ;;  %v560_v61 = vpack.c.bf16 %v440_v51, %v440_v51  ;;  %v443_v62 = vmax.f32 %v441_v58, %v442_v59  ;;  %v355_v63 = vmax.f32 %v751_v43, %v919_v52  ;;  %v756_v2 = vunpack.c.h.bf16 %v1073_v45  ;;  %v1078_v48 = vld [vmem:[%s1844_s0 + $0x50] sm:$0xff]   ;;  %v621_v50 = vld [vmem:[%s1846_s2 + $0x18] sm:$0xf] }
   0xe   :  { %v356_v0 = vmax.f32 %v752_v44, %v920_v53  ;;  %v923_v3 = vunpack.c.l.bf16 %v1114_v54  ;;  %v924_v4 = vunpack.c.h.bf16 %v1114_v54  ;;  %v759_v5 = vunpack.c.l.bf16 %v1074_v55 }
   0xf   :  { %v610_v8 = vsel %vm1199_vm3, %v560_v61, %v609_v57  ;;  %v561_v9 = vpack.c.bf16 %v443_v62, %v443_v62  ;;  %v444_v10 = vsel %vm431_vm0, %v355_v63, -inf  ;;  %v760_v15 = vunpack.c.h.bf16 %v1074_v55  ;;  %v1119_v62 = vld [vmem:[%s1845_s1 + $0x50] sm:$0xff]   ;;  %v1079_v63 = vld [vmem:[%s1844_s0 + $0x58] sm:$0xff]  }
  0x10   :  { %v445_v11 = vsel %vm431_vm0, %v356_v0, -inf  ;;  %611 = vst [vmem:[%s1846_s2 + $0x8] sm:$0xf] %v610_v8  ;;  %v357_v13 = vmax.f32 %v755_v60, %v923_v3  ;;  %v358_v14 = vmax.f32 %v756_v2, %v924_v4  ;;  %v927_v19 = vunpack.c.l.bf16 %v1115_v6 }
  0x11   :  { %v446_v12 = vmax.f32 %v444_v10, %v445_v11  ;;  %v613_v17 = vsel %vm1199_vm3, %v561_v9, %v612_v1  ;;  %v928_v20 = vunpack.c.h.bf16 %v1115_v6  ;;  %v763_v21 = vunpack.c.l.bf16 %v1075_v7  ;;  %v624_v1 = vld [vmem:[%s1846_s2 + $0x1c] sm:$0xf]  ;;  %v627_v10 = vld [vmem:[%s1846_s2 + $0x20] sm:$0xf] }
  0x12   :  { %614 = vst [vmem:[%s1846_s2 + $0xc] sm:$0xf] %v613_v17  ;;  %v447_v24 = vsel %vm431_vm0, %v357_v13, -inf  ;;  %v448_v25 = vsel %vm431_vm0, %v358_v14, -inf  ;;  %v764_v26 = vunpack.c.h.bf16 %v1075_v7  ;;  %v359_v28 = vmax.f32 %v759_v5, %v927_v19  ;;  %v1120_v9 = vld [vmem:[%s1845_s1 + $0x58] sm:$0xff]  }
  0x13   :  { %v562_v23 = vpack.c.bf16 %v446_v12, %v446_v12  ;;  %v449_v27 = vmax.f32 %v447_v24, %v448_v25  ;;  %v360_v29 = vmax.f32 %v760_v15, %v928_v20  ;;  %v931_v30 = vunpack.c.l.bf16 %v1116_v16  ;;  %v1080_v15 = vld [vmem:[%s1844_s0 + $0x60] sm:$0xff]  }
  0x14   :  { %v932_v35 = vunpack.c.h.bf16 %v1116_v16  ;;  %v767_v36 = vunpack.c.l.bf16 %v1076_v22  ;;  %v768_v37 = vunpack.c.h.bf16 %v1076_v22  ;;  %v450_v40 = vsel %vm431_vm0, %v359_v28, -inf  ;;  %v1121_v24 = vld [vmem:[%s1845_s1 + $0x60] sm:$0xff]  }
  0x15   :  { %v616_v32 = vsel %vm1199_vm3, %v562_v23, %v615_v18  ;;  %v563_v39 = vpack.c.bf16 %v449_v27, %v449_v27  ;;  %v451_v41 = vsel %vm431_vm0, %v360_v29, -inf  ;;  %v361_v42 = vmax.f32 %v763_v21, %v931_v30  ;;  %v1081_v30 = vld [vmem:[%s1844_s0 + $0x68] sm:$0xff]  }
  0x16   :  { %617 = vst [vmem:[%s1846_s2 + $0x10] sm:$0xf] %v616_v32  ;;  %v452_v43 = vmax.f32 %v450_v40, %v451_v41  ;;  %v362_v44 = vmax.f32 %v764_v26, %v932_v35  ;;  %v935_v45 = vunpack.c.l.bf16 %v1117_v31  ;;  %v936_v46 = vunpack.c.h.bf16 %v1117_v31  ;;  %v630_v26 = vld [vmem:[%s1846_s2 + $0x24] sm:$0xf]  ;;  %v1122_v40 = vld [vmem:[%s1845_s1 + $0x68] sm:$0xff]   ;;  %v1082_v41 = vld [vmem:[%s1844_s0 + $0x70] sm:$0xff]  }
  0x17   :  { %v619_v49 = vsel %vm1199_vm3, %v563_v39, %v618_v34  ;;  %v453_v51 = vsel %vm431_vm0, %v361_v42, -inf  ;;  %v771_v52 = vunpack.c.l.bf16 %v1077_v38  ;;  %v772_v53 = vunpack.c.h.bf16 %v1077_v38 }
  0x18   :  { %620 = vst [vmem:[%s1846_s2 + $0x14] sm:$0xf] %v619_v49  ;;  %v564_v54 = vpack.c.bf16 %v452_v43, %v452_v43  ;;  %v454_v55 = vsel %vm431_vm0, %v362_v44, -inf  ;;  %v363_v56 = vmax.f32 %v767_v36, %v935_v45  ;;  %v364_v57 = vmax.f32 %v768_v37, %v936_v46  ;;  %v633_v43 = vld [vmem:[%s1846_s2 + $0x28] sm:$0xf] }
  0x19   :  { %v455_v58 = vmax.f32 %v453_v51, %v454_v55  ;;  %v939_v59 = vunpack.c.l.bf16 %v1118_v47  ;;  %v940_v60 = vunpack.c.h.bf16 %v1118_v47  ;;  %v775_v61 = vunpack.c.l.bf16 %v1078_v48  ;;  %v1123_v55 = vld [vmem:[%s1845_s1 + $0x70] sm:$0xff]  }
  0x1a   :  { %v622_v0 = vsel %vm1199_vm3, %v564_v54, %v621_v50  ;;  %v456_v2 = vsel %vm431_vm0, %v363_v56, -inf  ;;  %v457_v3 = vsel %vm431_vm0, %v364_v57, -inf  ;;  %v776_v4 = vunpack.c.h.bf16 %v1078_v48  ;;  %v1083_v56 = vld [vmem:[%s1844_s0 + $0x78] sm:$0xff]  }
  0x1b   :  { %623 = vst [vmem:[%s1846_s2 + $0x18] sm:$0xf] %v622_v0  ;;  %v565_v5 = vpack.c.bf16 %v455_v58, %v455_v58  ;;  %v458_v6 = vmax.f32 %v456_v2, %v457_v3  ;;  %v365_v7 = vmax.f32 %v771_v52, %v939_v59  ;;  %v366_v8 = vmax.f32 %v772_v53, %v940_v60  ;;  %v636_v58 = vld [vmem:[%s1846_s2 + $0x2c] sm:$0xf]  ;;  %v1124_v2 = vld [vmem:[%s1845_s1 + $0x78] sm:$0xff]  }
  0x1c   :  { %v943_v11 = vunpack.c.l.bf16 %v1119_v62  ;;  %v944_v12 = vunpack.c.h.bf16 %v1119_v62  ;;  %v779_v13 = vunpack.c.l.bf16 %v1079_v63  ;;  %v780_v14 = vunpack.c.h.bf16 %v1079_v63  ;;  %v639_v3 = vld [vmem:[%s1846_s2 + $0x30] sm:$0xf] }
  0x1d   :  { %v625_v16 = vsel %vm1199_vm3, %v565_v5, %v624_v1  ;;  %v566_v17 = vpack.c.bf16 %v458_v6, %v458_v6  ;;  %v459_v18 = vsel %vm431_vm0, %v365_v7, -inf  ;;  %v460_v19 = vsel %vm431_vm0, %v366_v8, -inf  ;;  %v1084_v8 = vld [vmem:[%s1844_s0 + $0x80] sm:$0xff]  }
  0x1e   :  { %626 = vst [vmem:[%s1846_s2 + $0x1c] sm:$0xf] %v625_v16  ;;  %v461_v20 = vmax.f32 %v459_v18, %v460_v19  ;;  %v367_v21 = vmax.f32 %v775_v61, %v943_v11  ;;  %v368_v22 = vmax.f32 %v776_v4, %v944_v12  ;;  %v947_v23 = vunpack.c.l.bf16 %v1120_v9  ;;  %v642_v19 = vld [vmem:[%s1846_s2 + $0x34] sm:$0xf] }
  0x1f   :  { %v628_v25 = vsel %vm1199_vm3, %v566_v17, %v627_v10  ;;  %v948_v27 = vunpack.c.h.bf16 %v1120_v9  ;;  %v783_v28 = vunpack.c.l.bf16 %v1080_v15  ;;  %v784_v29 = vunpack.c.h.bf16 %v1080_v15  ;;  %v1125_v17 = vld [vmem:[%s1845_s1 + $0x80] sm:$0xff]  }
  0x20   :  { %629 = vst [vmem:[%s1846_s2 + $0x20] sm:$0xf] %v628_v25  ;;  %v567_v31 = vpack.c.bf16 %v461_v20, %v461_v20  ;;  %v462_v32 = vsel %vm431_vm0, %v367_v21, -inf  ;;  %v463_v34 = vsel %vm431_vm0, %v368_v22, -inf  ;;  %v369_v35 = vmax.f32 %v779_v13, %v947_v23  ;;  %v1085_v23 = vld [vmem:[%s1844_s0 + $0x88] sm:$0xff]  }
  0x21   :  { %v464_v36 = vmax.f32 %v462_v32, %v463_v34  ;;  %v370_v37 = vmax.f32 %v780_v14, %v948_v27  ;;  %v951_v38 = vunpack.c.l.bf16 %v1121_v24  ;;  %v952_v39 = vunpack.c.h.bf16 %v1121_v24  ;;  %v1126_v32 = vld [vmem:[%s1845_s1 + $0x88] sm:$0xff]   ;;  %v1086_v34 = vld [vmem:[%s1844_s0 + $0x90] sm:$0xff]  }
  0x22   :  { %v631_v42 = vsel %vm1199_vm3, %v567_v31, %v630_v26  ;;  %v465_v44 = vsel %vm431_vm0, %v369_v35, -inf  ;;  %v787_v45 = vunpack.c.l.bf16 %v1081_v30  ;;  %v788_v46 = vunpack.c.h.bf16 %v1081_v30 }
  0x23   :  { %632 = vst [vmem:[%s1846_s2 + $0x24] sm:$0xf] %v631_v42  ;;  %v568_v47 = vpack.c.bf16 %v464_v36, %v464_v36  ;;  %v466_v48 = vsel %vm431_vm0, %v370_v37, -inf  ;;  %v371_v49 = vmax.f32 %v783_v28, %v951_v38  ;;  %v372_v50 = vmax.f32 %v784_v29, %v952_v39  ;;  %v645_v36 = vld [vmem:[%s1846_s2 + $0x38] sm:$0xf] }
  0x24   :  { %v467_v51 = vmax.f32 %v465_v44, %v466_v48  ;;  %v955_v52 = vunpack.c.l.bf16 %v1122_v40  ;;  %v956_v53 = vunpack.c.h.bf16 %v1122_v40  ;;  %v791_v54 = vunpack.c.l.bf16 %v1082_v41  ;;  %v1127_v48 = vld [vmem:[%s1845_s1 + $0x90] sm:$0xff]  }
  0x25   :  { %v634_v57 = vsel %vm1199_vm3, %v568_v47, %v633_v43  ;;  %v468_v59 = vsel %vm431_vm0, %v371_v49, -inf  ;;  %v469_v60 = vsel %vm431_vm0, %v372_v50, -inf  ;;  %v792_v61 = vunpack.c.h.bf16 %v1082_v41  ;;  %v1087_v49 = vld [vmem:[%s1844_s0 + $0x98] sm:$0xff]  }
  0x26   :  { %635 = vst [vmem:[%s1846_s2 + $0x28] sm:$0xf] %v634_v57  ;;  %v569_v62 = vpack.c.bf16 %v467_v51, %v467_v51  ;;  %v470_v63 = vmax.f32 %v468_v59, %v469_v60  ;;  %v373_v0 = vmax.f32 %v787_v45, %v955_v52  ;;  %v374_v1 = vmax.f32 %v788_v46, %v956_v53  ;;  %v648_v51 = vld [vmem:[%s1846_s2 + $0x3c] sm:$0xf]  ;;  %v651_v60 = vld [vmem:[%s1846_s2 + $0x40] sm:$0xf] }
  0x27   :  { %v959_v4 = vunpack.c.l.bf16 %v1123_v55  ;;  %v960_v5 = vunpack.c.h.bf16 %v1123_v55  ;;  %v795_v6 = vunpack.c.l.bf16 %v1083_v56  ;;  %v796_v7 = vunpack.c.h.bf16 %v1083_v56  ;;  %v1128_v59 = vld [vmem:[%s1845_s1 + $0x98] sm:$0xff]  }
  0x28   :  { %v637_v9 = vsel %vm1199_vm3, %v569_v62, %v636_v58  ;;  %v570_v10 = vpack.c.bf16 %v470_v63, %v470_v63  ;;  %v471_v11 = vsel %vm431_vm0, %v373_v0, -inf  ;;  %v472_v12 = vsel %vm431_vm0, %v374_v1, -inf  ;;  %v1088_v1 = vld [vmem:[%s1844_s0 + $0xa0] sm:$0xff]  }
  0x29   :  { %638 = vst [vmem:[%s1846_s2 + $0x2c] sm:$0xf] %v637_v9  ;;  %v473_v13 = vmax.f32 %v471_v11, %v472_v12  ;;  %v375_v14 = vmax.f32 %v791_v54, %v959_v4  ;;  %v376_v15 = vmax.f32 %v792_v61, %v960_v5  ;;  %v963_v16 = vunpack.c.l.bf16 %v1124_v2  ;;  %v654_v12 = vld [vmem:[%s1846_s2 + $0x44] sm:$0xf] }
  0x2a   :  { %v640_v18 = vsel %vm1199_vm3, %v570_v10, %v639_v3  ;;  %v964_v20 = vunpack.c.h.bf16 %v1124_v2  ;;  %v799_v21 = vunpack.c.l.bf16 %v1084_v8  ;;  %v800_v22 = vunpack.c.h.bf16 %v1084_v8  ;;  %v1129_v10 = vld [vmem:[%s1845_s1 + $0xa0] sm:$0xff]  }
  0x2b   :  { %641 = vst [vmem:[%s1846_s2 + $0x30] sm:$0xf] %v640_v18  ;;  %v571_v24 = vpack.c.bf16 %v473_v13, %v473_v13  ;;  %v474_v25 = vsel %vm431_vm0, %v375_v14, -inf  ;;  %v475_v26 = vsel %vm431_vm0, %v376_v15, -inf  ;;  %v377_v27 = vmax.f32 %v795_v6, %v963_v16  ;;  %v1089_v16 = vld [vmem:[%s1844_s0 + $0xa8] sm:$0xff]  }
  0x2c   :  { %v476_v28 = vmax.f32 %v474_v25, %v475_v26  ;;  %v378_v29 = vmax.f32 %v796_v7, %v964_v20  ;;  %v967_v30 = vunpack.c.l.bf16 %v1125_v17  ;;  %v968_v31 = vunpack.c.h.bf16 %v1125_v17  ;;  %v1130_v25 = vld [vmem:[%s1845_s1 + $0xa8] sm:$0xff]   ;;  %v1090_v26 = vld [vmem:[%s1844_s0 + $0xb0] sm:$0xff]  }
  0x2d   :  { %v643_v35 = vsel %vm1199_vm3, %v571_v24, %v642_v19  ;;  %v477_v37 = vsel %vm431_vm0, %v377_v27, -inf  ;;  %v803_v38 = vunpack.c.l.bf16 %v1085_v23  ;;  %v804_v39 = vunpack.c.h.bf16 %v1085_v23 }
  0x2e   :  { %644 = vst [vmem:[%s1846_s2 + $0x34] sm:$0xf] %v643_v35  ;;  %v572_v40 = vpack.c.bf16 %v476_v28, %v476_v28  ;;  %v478_v41 = vsel %vm431_vm0, %v378_v29, -inf  ;;  %v379_v42 = vmax.f32 %v799_v21, %v967_v30  ;;  %v380_v43 = vmax.f32 %v800_v22, %v968_v31  ;;  %v657_v28 = vld [vmem:[%s1846_s2 + $0x48] sm:$0xf] }
  0x2f   :  { %v479_v44 = vmax.f32 %v477_v37, %v478_v41  ;;  %v971_v45 = vunpack.c.l.bf16 %v1126_v32  ;;  %v972_v46 = vunpack.c.h.bf16 %v1126_v32  ;;  %v807_v47 = vunpack.c.l.bf16 %v1086_v34  ;;  %v1131_v41 = vld [vmem:[%s1845_s1 + $0xb0] sm:$0xff]  }
  0x30   :  { %v646_v50 = vsel %vm1199_vm3, %v572_v40, %v645_v36  ;;  %v480_v52 = vsel %vm431_vm0, %v379_v42, -inf  ;;  %v481_v53 = vsel %vm431_vm0, %v380_v43, -inf  ;;  %v808_v54 = vunpack.c.h.bf16 %v1086_v34  ;;  %v1091_v42 = vld [vmem:[%s1844_s0 + $0xb8] sm:$0xff]  }
  0x31   :  { %647 = vst [vmem:[%s1846_s2 + $0x38] sm:$0xf] %v646_v50  ;;  %v573_v55 = vpack.c.bf16 %v479_v44, %v479_v44  ;;  %v482_v56 = vmax.f32 %v480_v52, %v481_v53  ;;  %v381_v57 = vmax.f32 %v803_v38, %v971_v45  ;;  %v382_v58 = vmax.f32 %v804_v39, %v972_v46  ;;  %v660_v44 = vld [vmem:[%s1846_s2 + $0x4c] sm:$0xf]  ;;  %v1132_v52 = vld [vmem:[%s1845_s1 + $0xb8] sm:$0xff]  }
  0x32   :  { %v975_v61 = vunpack.c.l.bf16 %v1127_v48  ;;  %v976_v62 = vunpack.c.h.bf16 %v1127_v48  ;;  %v811_v63 = vunpack.c.l.bf16 %v1087_v49  ;;  %v812_v0 = vunpack.c.h.bf16 %v1087_v49  ;;  %v663_v53 = vld [vmem:[%s1846_s2 + $0x50] sm:$0xf] }
  0x33   :  { %v649_v2 = vsel %vm1199_vm3, %v573_v55, %v648_v51  ;;  %v574_v3 = vpack.c.bf16 %v482_v56, %v482_v56  ;;  %v483_v4 = vsel %vm431_vm0, %v381_v57, -inf  ;;  %v484_v5 = vsel %vm431_vm0, %v382_v58, -inf  ;;  %v1092_v58 = vld [vmem:[%s1844_s0 + $0xc0] sm:$0xff]  }
  0x34   :  { %650 = vst [vmem:[%s1846_s2 + $0x3c] sm:$0xf] %v649_v2  ;;  %v485_v6 = vmax.f32 %v483_v4, %v484_v5  ;;  %v383_v7 = vmax.f32 %v807_v47, %v975_v61  ;;  %v384_v8 = vmax.f32 %v808_v54, %v976_v62  ;;  %v979_v9 = vunpack.c.l.bf16 %v1128_v59  ;;  %v666_v5 = vld [vmem:[%s1846_s2 + $0x54] sm:$0xf] }
  0x35   :  { %v652_v11 = vsel %vm1199_vm3, %v574_v3, %v651_v60  ;;  %v980_v13 = vunpack.c.h.bf16 %v1128_v59  ;;  %v815_v14 = vunpack.c.l.bf16 %v1088_v1  ;;  %v816_v15 = vunpack.c.h.bf16 %v1088_v1  ;;  %v1133_v3 = vld [vmem:[%s1845_s1 + $0xc0] sm:$0xff]  }
  0x36   :  { %653 = vst [vmem:[%s1846_s2 + $0x40] sm:$0xf] %v652_v11  ;;  %v575_v17 = vpack.c.bf16 %v485_v6, %v485_v6  ;;  %v486_v18 = vsel %vm431_vm0, %v383_v7, -inf  ;;  %v487_v19 = vsel %vm431_vm0, %v384_v8, -inf  ;;  %v385_v20 = vmax.f32 %v811_v63, %v979_v9  ;;  %v1093_v9 = vld [vmem:[%s1844_s0 + $0xc8] sm:$0xff]  }
  0x37   :  { %v488_v21 = vmax.f32 %v486_v18, %v487_v19  ;;  %v386_v22 = vmax.f32 %v812_v0, %v980_v13  ;;  %v983_v23 = vunpack.c.l.bf16 %v1129_v10  ;;  %v984_v24 = vunpack.c.h.bf16 %v1129_v10  ;;  %v1134_v18 = vld [vmem:[%s1845_s1 + $0xc8] sm:$0xff]   ;;  %v1094_v19 = vld [vmem:[%s1844_s0 + $0xd0] sm:$0xff]  }
  0x38   :  { %v655_v27 = vsel %vm1199_vm3, %v575_v17, %v654_v12  ;;  %v489_v29 = vsel %vm431_vm0, %v385_v20, -inf  ;;  %v819_v30 = vunpack.c.l.bf16 %v1089_v16  ;;  %v820_v31 = vunpack.c.h.bf16 %v1089_v16 }
  0x39   :  { %656 = vst [vmem:[%s1846_s2 + $0x44] sm:$0xf] %v655_v27  ;;  %v576_v32 = vpack.c.bf16 %v488_v21, %v488_v21  ;;  %v490_v34 = vsel %vm431_vm0, %v386_v22, -inf  ;;  %v387_v35 = vmax.f32 %v815_v14, %v983_v23  ;;  %v388_v36 = vmax.f32 %v816_v15, %v984_v24  ;;  %v669_v21 = vld [vmem:[%s1846_s2 + $0x58] sm:$0xf] }
  0x3a   :  { %v491_v37 = vmax.f32 %v489_v29, %v490_v34  ;;  %v987_v38 = vunpack.c.l.bf16 %v1130_v25  ;;  %v988_v39 = vunpack.c.h.bf16 %v1130_v25  ;;  %v823_v40 = vunpack.c.l.bf16 %v1090_v26  ;;  %v1135_v34 = vld [vmem:[%s1845_s1 + $0xd0] sm:$0xff]  }
  0x3b   :  { %v658_v43 = vsel %vm1199_vm3, %v576_v32, %v657_v28  ;;  %v492_v45 = vsel %vm431_vm0, %v387_v35, -inf  ;;  %v493_v46 = vsel %vm431_vm0, %v388_v36, -inf  ;;  %v824_v47 = vunpack.c.h.bf16 %v1090_v26  ;;  %v1095_v35 = vld [vmem:[%s1844_s0 + $0xd8] sm:$0xff]  }
  0x3c   :  { %659 = vst [vmem:[%s1846_s2 + $0x48] sm:$0xf] %v658_v43  ;;  %v577_v48 = vpack.c.bf16 %v491_v37, %v491_v37  ;;  %v494_v49 = vmax.f32 %v492_v45, %v493_v46  ;;  %v389_v50 = vmax.f32 %v819_v30, %v987_v38  ;;  %v390_v51 = vmax.f32 %v820_v31, %v988_v39  ;;  %v672_v37 = vld [vmem:[%s1846_s2 + $0x5c] sm:$0xf]  ;;  %v675_v46 = vld [vmem:[%s1846_s2 + $0x60] sm:$0xf] }
  0x3d   :  { %v991_v54 = vunpack.c.l.bf16 %v1131_v41  ;;  %v992_v55 = vunpack.c.h.bf16 %v1131_v41  ;;  %v827_v56 = vunpack.c.l.bf16 %v1091_v42  ;;  %v828_v57 = vunpack.c.h.bf16 %v1091_v42  ;;  %v1136_v45 = vld [vmem:[%s1845_s1 + $0xd8] sm:$0xff]  }
  0x3e   :  { %v661_v59 = vsel %vm1199_vm3, %v577_v48, %v660_v44  ;;  %v578_v60 = vpack.c.bf16 %v494_v49, %v494_v49  ;;  %v495_v61 = vsel %vm431_vm0, %v389_v50, -inf  ;;  %v496_v62 = vsel %vm431_vm0, %v390_v51, -inf  ;;  %v1096_v51 = vld [vmem:[%s1844_s0 + $0xe0] sm:$0xff]  }
  0x3f   :  { %662 = vst [vmem:[%s1846_s2 + $0x4c] sm:$0xf] %v661_v59  ;;  %v497_v63 = vmax.f32 %v495_v61, %v496_v62  ;;  %v391_v0 = vmax.f32 %v823_v40, %v991_v54  ;;  %v392_v1 = vmax.f32 %v824_v47, %v992_v55  ;;  %v995_v2 = vunpack.c.l.bf16 %v1132_v52  ;;  %v678_v62 = vld [vmem:[%s1846_s2 + $0x64] sm:$0xf] }
  0x40   :  { %v664_v4 = vsel %vm1199_vm3, %v578_v60, %v663_v53  ;;  %v996_v6 = vunpack.c.h.bf16 %v1132_v52  ;;  %v831_v7 = vunpack.c.l.bf16 %v1092_v58  ;;  %v832_v8 = vunpack.c.h.bf16 %v1092_v58  ;;  %v1137_v60 = vld [vmem:[%s1845_s1 + $0xe0] sm:$0xff]  }
  0x41   :  { %665 = vst [vmem:[%s1846_s2 + $0x50] sm:$0xf] %v664_v4  ;;  %v579_v10 = vpack.c.bf16 %v497_v63, %v497_v63  ;;  %v498_v11 = vsel %vm431_vm0, %v391_v0, -inf  ;;  %v499_v12 = vsel %vm431_vm0, %v392_v1, -inf  ;;  %v393_v13 = vmax.f32 %v827_v56, %v995_v2  ;;  %v1097_v2 = vld [vmem:[%s1844_s0 + $0xe8] sm:$0xff]  }
  0x42   :  { %v500_v14 = vmax.f32 %v498_v11, %v499_v12  ;;  %v394_v15 = vmax.f32 %v828_v57, %v996_v6  ;;  %v999_v16 = vunpack.c.l.bf16 %v1133_v3  ;;  %v1000_v17 = vunpack.c.h.bf16 %v1133_v3  ;;  %v1138_v11 = vld [vmem:[%s1845_s1 + $0xe8] sm:$0xff]   ;;  %v1098_v12 = vld [vmem:[%s1844_s0 + $0xf0] sm:$0xff]  }
  0x43   :  { %v667_v20 = vsel %vm1199_vm3, %v579_v10, %v666_v5  ;;  %v501_v22 = vsel %vm431_vm0, %v393_v13, -inf  ;;  %v835_v23 = vunpack.c.l.bf16 %v1093_v9  ;;  %v836_v24 = vunpack.c.h.bf16 %v1093_v9 }
  0x44   :  { %668 = vst [vmem:[%s1846_s2 + $0x54] sm:$0xf] %v667_v20  ;;  %v580_v25 = vpack.c.bf16 %v500_v14, %v500_v14  ;;  %v502_v26 = vsel %vm431_vm0, %v394_v15, -inf  ;;  %v395_v27 = vmax.f32 %v831_v7, %v999_v16  ;;  %v396_v28 = vmax.f32 %v832_v8, %v1000_v17  ;;  %v681_v14 = vld [vmem:[%s1846_s2 + $0x68] sm:$0xf] }
  0x45   :  { %v503_v29 = vmax.f32 %v501_v22, %v502_v26  ;;  %v1003_v30 = vunpack.c.l.bf16 %v1134_v18  ;;  %v1004_v31 = vunpack.c.h.bf16 %v1134_v18  ;;  %v839_v32 = vunpack.c.l.bf16 %v1094_v19  ;;  %v1139_v26 = vld [vmem:[%s1845_s1 + $0xf0] sm:$0xff]  }
  0x46   :  { %v670_v36 = vsel %vm1199_vm3, %v580_v25, %v669_v21  ;;  %v504_v38 = vsel %vm431_vm0, %v395_v27, -inf  ;;  %v505_v39 = vsel %vm431_vm0, %v396_v28, -inf  ;;  %v840_v40 = vunpack.c.h.bf16 %v1094_v19  ;;  %v1099_v27 = vld [vmem:[%s1844_s0 + $0xf8] sm:$0xff]  }
  0x47   :  { %671 = vst [vmem:[%s1846_s2 + $0x58] sm:$0xf] %v670_v36  ;;  %v581_v41 = vpack.c.bf16 %v503_v29, %v503_v29  ;;  %v506_v42 = vmax.f32 %v504_v38, %v505_v39  ;;  %v397_v43 = vmax.f32 %v835_v23, %v1003_v30  ;;  %v398_v44 = vmax.f32 %v836_v24, %v1004_v31  ;;  %v684_v29 = vld [vmem:[%s1846_s2 + $0x6c] sm:$0xf]  ;;  %v1140_v38 = vld [vmem:[%s1845_s1 + $0xf8] sm:$0xff]  }
  0x48   :  { %v1007_v47 = vunpack.c.l.bf16 %v1135_v34  ;;  %v1008_v48 = vunpack.c.h.bf16 %v1135_v34  ;;  %v843_v49 = vunpack.c.l.bf16 %v1095_v35  ;;  %v844_v50 = vunpack.c.h.bf16 %v1095_v35  ;;  %v687_v39 = vld [vmem:[%s1846_s2 + $0x70] sm:$0xf] }
  0x49   :  { %v673_v52 = vsel %vm1199_vm3, %v581_v41, %v672_v37  ;;  %v582_v53 = vpack.c.bf16 %v506_v42, %v506_v42  ;;  %v507_v54 = vsel %vm431_vm0, %v397_v43, -inf  ;;  %v508_v55 = vsel %vm431_vm0, %v398_v44, -inf  ;;  %v1100_v44 = vld [vmem:[%s1844_s0 + $0x100] sm:$0xff]  }
  0x4a   :  { %674 = vst [vmem:[%s1846_s2 + $0x5c] sm:$0xf] %v673_v52  ;;  %v509_v56 = vmax.f32 %v507_v54, %v508_v55  ;;  %v399_v57 = vmax.f32 %v839_v32, %v1007_v47  ;;  %v400_v58 = vmax.f32 %v840_v40, %v1008_v48  ;;  %v1011_v59 = vunpack.c.l.bf16 %v1136_v45  ;;  %v690_v55 = vld [vmem:[%s1846_s2 + $0x74] sm:$0xf] }
  0x4b   :  { %v676_v61 = vsel %vm1199_vm3, %v582_v53, %v675_v46  ;;  %v1012_v63 = vunpack.c.h.bf16 %v1136_v45  ;;  %v847_v0 = vunpack.c.l.bf16 %v1096_v51  ;;  %v848_v1 = vunpack.c.h.bf16 %v1096_v51  ;;  %v1141_v53 = vld [vmem:[%s1845_s1 + $0x100] sm:$0xff]  }
  0x4c   :  { %677 = vst [vmem:[%s1846_s2 + $0x60] sm:$0xf] %v676_v61  ;;  %v583_v3 = vpack.c.bf16 %v509_v56, %v509_v56  ;;  %v510_v4 = vsel %vm431_vm0, %v399_v57, -inf  ;;  %v511_v5 = vsel %vm431_vm0, %v400_v58, -inf  ;;  %v401_v6 = vmax.f32 %v843_v49, %v1011_v59  ;;  %v1101_v59 = vld [vmem:[%s1844_s0 + $0x108] sm:$0xff]  }
  0x4d   :  { %v512_v7 = vmax.f32 %v510_v4, %v511_v5  ;;  %v402_v8 = vmax.f32 %v844_v50, %v1012_v63  ;;  %v1015_v9 = vunpack.c.l.bf16 %v1137_v60  ;;  %v1016_v10 = vunpack.c.h.bf16 %v1137_v60  ;;  %v1142_v4 = vld [vmem:[%s1845_s1 + $0x108] sm:$0xff]   ;;  %v1102_v5 = vld [vmem:[%s1844_s0 + $0x110] sm:$0xff]  }
  0x4e   :  { %v679_v13 = vsel %vm1199_vm3, %v583_v3, %v678_v62  ;;  %v513_v15 = vsel %vm431_vm0, %v401_v6, -inf  ;;  %v851_v16 = vunpack.c.l.bf16 %v1097_v2  ;;  %v852_v17 = vunpack.c.h.bf16 %v1097_v2 }
  0x4f   :  { %680 = vst [vmem:[%s1846_s2 + $0x64] sm:$0xf] %v679_v13  ;;  %v584_v18 = vpack.c.bf16 %v512_v7, %v512_v7  ;;  %v514_v19 = vsel %vm431_vm0, %v402_v8, -inf  ;;  %v403_v20 = vmax.f32 %v847_v0, %v1015_v9  ;;  %v404_v21 = vmax.f32 %v848_v1, %v1016_v10  ;;  %v693_v7 = vld [vmem:[%s1846_s2 + $0x78] sm:$0xf] }
  0x50   :  { %v515_v22 = vmax.f32 %v513_v15, %v514_v19  ;;  %v1019_v23 = vunpack.c.l.bf16 %v1138_v11  ;;  %v1020_v24 = vunpack.c.h.bf16 %v1138_v11  ;;  %v855_v25 = vunpack.c.l.bf16 %v1098_v12  ;;  %v1143_v19 = vld [vmem:[%s1845_s1 + $0x110] sm:$0xff]  }
  0x51   :  { %v682_v28 = vsel %vm1199_vm3, %v584_v18, %v681_v14  ;;  %v516_v30 = vsel %vm431_vm0, %v403_v20, -inf  ;;  %v517_v31 = vsel %vm431_vm0, %v404_v21, -inf  ;;  %v856_v32 = vunpack.c.h.bf16 %v1098_v12  ;;  %v1103_v20 = vld [vmem:[%s1844_s0 + $0x118] sm:$0xff]  }
  0x52   :  { %683 = vst [vmem:[%s1846_s2 + $0x68] sm:$0xf] %v682_v28  ;;  %v585_v34 = vpack.c.bf16 %v515_v22, %v515_v22  ;;  %v518_v35 = vmax.f32 %v516_v30, %v517_v31  ;;  %v405_v36 = vmax.f32 %v851_v16, %v1019_v23  ;;  %v406_v37 = vmax.f32 %v852_v17, %v1020_v24  ;;  %v696_v22 = vld [vmem:[%s1846_s2 + $0x7c] sm:$0xf]  ;;  %v699_v31 = vld [vmem:[%s1846_s2 + $0x80] sm:$0xf] }
  0x53   :  { %v1023_v40 = vunpack.c.l.bf16 %v1139_v26  ;;  %v1024_v41 = vunpack.c.h.bf16 %v1139_v26  ;;  %v859_v42 = vunpack.c.l.bf16 %v1099_v27  ;;  %v860_v43 = vunpack.c.h.bf16 %v1099_v27  ;;  %v1144_v30 = vld [vmem:[%s1845_s1 + $0x118] sm:$0xff]  }
  0x54   :  { %v685_v45 = vsel %vm1199_vm3, %v585_v34, %v684_v29  ;;  %v586_v46 = vpack.c.bf16 %v518_v35, %v518_v35  ;;  %v519_v47 = vsel %vm431_vm0, %v405_v36, -inf  ;;  %v520_v48 = vsel %vm431_vm0, %v406_v37, -inf  ;;  %v1104_v37 = vld [vmem:[%s1844_s0 + $0x120] sm:$0xff]  }
  0x55   :  { %686 = vst [vmem:[%s1846_s2 + $0x6c] sm:$0xf] %v685_v45  ;;  %v521_v49 = vmax.f32 %v519_v47, %v520_v48  ;;  %v407_v50 = vmax.f32 %v855_v25, %v1023_v40  ;;  %v408_v51 = vmax.f32 %v856_v32, %v1024_v41  ;;  %v1027_v52 = vunpack.c.l.bf16 %v1140_v38  ;;  %v702_v48 = vld [vmem:[%s1846_s2 + $0x84] sm:$0xf] }
  0x56   :  { %v688_v54 = vsel %vm1199_vm3, %v586_v46, %v687_v39  ;;  %v1028_v56 = vunpack.c.h.bf16 %v1140_v38  ;;  %v863_v57 = vunpack.c.l.bf16 %v1100_v44  ;;  %v864_v58 = vunpack.c.h.bf16 %v1100_v44  ;;  %v1145_v46 = vld [vmem:[%s1845_s1 + $0x120] sm:$0xff]  }
  0x57   :  { %689 = vst [vmem:[%s1846_s2 + $0x70] sm:$0xf] %v688_v54  ;;  %v587_v60 = vpack.c.bf16 %v521_v49, %v521_v49  ;;  %v522_v61 = vsel %vm431_vm0, %v407_v50, -inf  ;;  %v523_v62 = vsel %vm431_vm0, %v408_v51, -inf  ;;  %v409_v63 = vmax.f32 %v859_v42, %v1027_v52  ;;  %v1105_v52 = vld [vmem:[%s1844_s0 + $0x128] sm:$0xff]  }
  0x58   :  { %v524_v0 = vmax.f32 %v522_v61, %v523_v62  ;;  %v410_v1 = vmax.f32 %v860_v43, %v1028_v56  ;;  %v1031_v2 = vunpack.c.l.bf16 %v1141_v53  ;;  %v1032_v3 = vunpack.c.h.bf16 %v1141_v53  ;;  %v1146_v61 = vld [vmem:[%s1845_s1 + $0x128] sm:$0xff]   ;;  %v1106_v62 = vld [vmem:[%s1844_s0 + $0x130] sm:$0xff]  }
  0x59   :  { %v691_v6 = vsel %vm1199_vm3, %v587_v60, %v690_v55  ;;  %v525_v8 = vsel %vm431_vm0, %v409_v63, -inf  ;;  %v867_v9 = vunpack.c.l.bf16 %v1101_v59  ;;  %v868_v10 = vunpack.c.h.bf16 %v1101_v59 }
  0x5a   :  { %692 = vst [vmem:[%s1846_s2 + $0x74] sm:$0xf] %v691_v6  ;;  %v588_v11 = vpack.c.bf16 %v524_v0, %v524_v0  ;;  %v526_v12 = vsel %vm431_vm0, %v410_v1, -inf  ;;  %v411_v13 = vmax.f32 %v863_v57, %v1031_v2  ;;  %v412_v14 = vmax.f32 %v864_v58, %v1032_v3  ;;  %v705_v0 = vld [vmem:[%s1846_s2 + $0x88] sm:$0xf] }
  0x5b   :  { %v527_v15 = vmax.f32 %v525_v8, %v526_v12  ;;  %v1035_v16 = vunpack.c.l.bf16 %v1142_v4  ;;  %v1036_v17 = vunpack.c.h.bf16 %v1142_v4  ;;  %v871_v18 = vunpack.c.l.bf16 %v1102_v5  ;;  %v1147_v12 = vld [vmem:[%s1845_s1 + $0x130] sm:$0xff]  }
  0x5c   :  { %v694_v21 = vsel %vm1199_vm3, %v588_v11, %v693_v7  ;;  %v528_v23 = vsel %vm431_vm0, %v411_v13, -inf  ;;  %v529_v24 = vsel %vm431_vm0, %v412_v14, -inf  ;;  %v872_v25 = vunpack.c.h.bf16 %v1102_v5  ;;  %v1107_v13 = vld [vmem:[%s1844_s0 + $0x138] sm:$0xff]  }
  0x5d   :  { %695 = vst [vmem:[%s1846_s2 + $0x78] sm:$0xf] %v694_v21  ;;  %v589_v26 = vpack.c.bf16 %v527_v15, %v527_v15  ;;  %v530_v27 = vmax.f32 %v528_v23, %v529_v24  ;;  %v413_v28 = vmax.f32 %v867_v9, %v1035_v16  ;;  %v414_v29 = vmax.f32 %v868_v10, %v1036_v17  ;;  %v708_v15 = vld [vmem:[%s1846_s2 + $0x8c] sm:$0xf]  ;;  %v1148_v23 = vld [vmem:[%s1845_s1 + $0x138] sm:$0xff]  }
  0x5e   :  { %v1039_v32 = vunpack.c.l.bf16 %v1143_v19  ;;  %v1040_v34 = vunpack.c.h.bf16 %v1143_v19  ;;  %v875_v35 = vunpack.c.l.bf16 %v1103_v20  ;;  %v876_v36 = vunpack.c.h.bf16 %v1103_v20  ;;  %v711_v24 = vld [vmem:[%s1846_s2 + $0x90] sm:$0xf] }
  0x5f   :  { %v697_v38 = vsel %vm1199_vm3, %v589_v26, %v696_v22  ;;  %v590_v39 = vpack.c.bf16 %v530_v27, %v530_v27  ;;  %v531_v40 = vsel %vm431_vm0, %v413_v28, -inf  ;;  %v532_v41 = vsel %vm431_vm0, %v414_v29, -inf  ;;  %v1108_v29 = vld [vmem:[%s1844_s0 + $0x140] sm:$0xff]  }
  0x60   :  { %698 = vst [vmem:[%s1846_s2 + $0x7c] sm:$0xf] %v697_v38  ;;  %v533_v42 = vmax.f32 %v531_v40, %v532_v41  ;;  %v415_v43 = vmax.f32 %v871_v18, %v1039_v32  ;;  %v416_v44 = vmax.f32 %v872_v25, %v1040_v34  ;;  %v1043_v45 = vunpack.c.l.bf16 %v1144_v30  ;;  %v714_v41 = vld [vmem:[%s1846_s2 + $0x94] sm:$0xf] }
  0x61   :  { %v700_v47 = vsel %vm1199_vm3, %v590_v39, %v699_v31  ;;  %v1044_v49 = vunpack.c.h.bf16 %v1144_v30  ;;  %v879_v50 = vunpack.c.l.bf16 %v1104_v37  ;;  %v880_v51 = vunpack.c.h.bf16 %v1104_v37  ;;  %v1149_v39 = vld [vmem:[%s1845_s1 + $0x140] sm:$0xff]  }
  0x62   :  { %701 = vst [vmem:[%s1846_s2 + $0x80] sm:$0xf] %v700_v47  ;;  %v591_v53 = vpack.c.bf16 %v533_v42, %v533_v42  ;;  %v534_v54 = vsel %vm431_vm0, %v415_v43, -inf  ;;  %v535_v55 = vsel %vm431_vm0, %v416_v44, -inf  ;;  %v417_v56 = vmax.f32 %v875_v35, %v1043_v45  ;;  %v1109_v45 = vld [vmem:[%s1844_s0 + $0x148] sm:$0xff]  }
  0x63   :  { %v536_v57 = vmax.f32 %v534_v54, %v535_v55  ;;  %v418_v58 = vmax.f32 %v876_v36, %v1044_v49  ;;  %v1047_v59 = vunpack.c.l.bf16 %v1145_v46  ;;  %v1048_v60 = vunpack.c.h.bf16 %v1145_v46  ;;  %v1150_v54 = vld [vmem:[%s1845_s1 + $0x148] sm:$0xff]  }
  0x64   :  { %v703_v63 = vsel %vm1199_vm3, %v591_v53, %v702_v48  ;;  %v537_v1 = vsel %vm431_vm0, %v417_v56, -inf  ;;  %v883_v2 = vunpack.c.l.bf16 %v1105_v52  ;;  %v884_v3 = vunpack.c.h.bf16 %v1105_v52  ;;  %v717_v56 = vld [vmem:[%s1846_s2 + $0x98] sm:$0xf] }
  0x65   :  { %704 = vst [vmem:[%s1846_s2 + $0x84] sm:$0xf] %v703_v63  ;;  %v592_v4 = vpack.c.bf16 %v536_v57, %v536_v57  ;;  %v538_v5 = vsel %vm431_vm0, %v418_v58, -inf  ;;  %v419_v6 = vmax.f32 %v879_v50, %v1047_v59  ;;  %v420_v7 = vmax.f32 %v880_v51, %v1048_v60 }
  0x66   :  { %v539_v8 = vmax.f32 %v537_v1, %v538_v5  ;;  %v1051_v9 = vunpack.c.l.bf16 %v1146_v61  ;;  %v1052_v10 = vunpack.c.h.bf16 %v1146_v61  ;;  %v887_v11 = vunpack.c.l.bf16 %v1106_v62 }
  0x67   :  { %v706_v14 = vsel %vm1199_vm3, %v592_v4, %v705_v0  ;;  %v540_v16 = vsel %vm431_vm0, %v419_v6, -inf  ;;  %v541_v17 = vsel %vm431_vm0, %v420_v7, -inf  ;;  %v888_v18 = vunpack.c.h.bf16 %v1106_v62  ;;  %v720_v4 = vld [vmem:[%s1846_s2 + $0x9c] sm:$0xf] }
  0x68   :  { %707 = vst [vmem:[%s1846_s2 + $0x88] sm:$0xf] %v706_v14  ;;  %v593_v19 = vpack.c.bf16 %v539_v8, %v539_v8  ;;  %v542_v20 = vmax.f32 %v540_v16, %v541_v17  ;;  %v421_v21 = vmax.f32 %v883_v2, %v1051_v9  ;;  %v422_v22 = vmax.f32 %v884_v3, %v1052_v10 }
  0x69   :  { %v1055_v25 = vunpack.c.l.bf16 %v1147_v12  ;;  %v1056_v26 = vunpack.c.h.bf16 %v1147_v12  ;;  %v891_v27 = vunpack.c.l.bf16 %v1107_v13  ;;  %v892_v28 = vunpack.c.h.bf16 %v1107_v13 }
  0x6a   :  { %v709_v30 = vsel %vm1199_vm3, %v593_v19, %v708_v15  ;;  %v594_v31 = vpack.c.bf16 %v542_v20, %v542_v20  ;;  %v543_v32 = vsel %vm431_vm0, %v421_v21, -inf  ;;  %v544_v34 = vsel %vm431_vm0, %v422_v22, -inf }
  0x6b   :  { %710 = vst [vmem:[%s1846_s2 + $0x8c] sm:$0xf] %v709_v30  ;;  %v545_v35 = vmax.f32 %v543_v32, %v544_v34  ;;  %v423_v36 = vmax.f32 %v887_v11, %v1055_v25  ;;  %v424_v37 = vmax.f32 %v888_v18, %v1056_v26  ;;  %v1059_v38 = vunpack.c.l.bf16 %v1148_v23  ;;  %v723_v11 = vld [vmem:[%s1846_s2 + $0xa0] sm:$0xf]  ;;  %v726_v18 = vld [vmem:[%s1846_s2 + $0xa4] sm:$0xf] }
  0x6c   :  { %v712_v40 = vsel %vm1199_vm3, %v594_v31, %v711_v24  ;;  %v1060_v42 = vunpack.c.h.bf16 %v1148_v23  ;;  %v895_v43 = vunpack.c.l.bf16 %v1108_v29  ;;  %v896_v44 = vunpack.c.h.bf16 %v1108_v29 }
  0x6d   :  { %713 = vst [vmem:[%s1846_s2 + $0x90] sm:$0xf] %v712_v40  ;;  %v595_v46 = vpack.c.bf16 %v545_v35, %v545_v35  ;;  %v546_v47 = vsel %vm431_vm0, %v423_v36, -inf  ;;  %v547_v48 = vsel %vm431_vm0, %v424_v37, -inf  ;;  %v425_v49 = vmax.f32 %v891_v27, %v1059_v38 }
  0x6e   :  { %v548_v50 = vmax.f32 %v546_v47, %v547_v48  ;;  %v426_v51 = vmax.f32 %v892_v28, %v1060_v42  ;;  %v1063_v52 = vunpack.c.l.bf16 %v1149_v39  ;;  %v1064_v53 = vunpack.c.h.bf16 %v1149_v39 }
  0x6f   :  { %v715_v55 = vsel %vm1199_vm3, %v595_v46, %v714_v41  ;;  %v549_v57 = vsel %vm431_vm0, %v425_v49, -inf  ;;  %v899_v58 = vunpack.c.l.bf16 %v1109_v45  ;;  %v900_v59 = vunpack.c.h.bf16 %v1109_v45 }
  0x70   :  { %716 = vst [vmem:[%s1846_s2 + $0x94] sm:$0xf] %v715_v55  ;;  %v596_v60 = vpack.c.bf16 %v548_v50, %v548_v50  ;;  %v550_v61 = vsel %vm431_vm0, %v426_v51, -inf  ;;  %v427_v62 = vmax.f32 %v895_v43, %v1063_v52  ;;  %v428_v63 = vmax.f32 %v896_v44, %v1064_v53 }
  0x71   :  { %v551_v0 = vmax.f32 %v549_v57, %v550_v61  ;;  %v1067_v1 = vunpack.c.l.bf16 %v1150_v54  ;;  %v1068_v2 = vunpack.c.h.bf16 %v1150_v54 }
  0x72   :  { %v718_v3 = vsel %vm1199_vm3, %v596_v60, %v717_v56  ;;  %v552_v5 = vsel %vm431_vm0, %v427_v62, -inf  ;;  %v553_v6 = vsel %vm431_vm0, %v428_v63, -inf }
  0x73   :  { %719 = vst [vmem:[%s1846_s2 + $0x98] sm:$0xf] %v718_v3  ;;  %v597_v7 = vpack.c.bf16 %v551_v0, %v551_v0  ;;  %v554_v8 = vmax.f32 %v552_v5, %v553_v6  ;;  %v429_v9 = vmax.f32 %v899_v58, %v1067_v1  ;;  %v430_v10 = vmax.f32 %v900_v59, %v1068_v2 }
  0x75   :  { %v721_v12 = vsel %vm1199_vm3, %v597_v7, %v720_v4  ;;  %v598_v13 = vpack.c.bf16 %v554_v8, %v554_v8  ;;  %v555_v14 = vsel %vm431_vm0, %v429_v9, -inf  ;;  %v556_v15 = vsel %vm431_vm0, %v430_v10, -inf }
  0x76   :  { %722 = vst [vmem:[%s1846_s2 + $0x9c] sm:$0xf] %v721_v12  ;;  %v557_v16 = vmax.f32 %v555_v14, %v556_v15 }
  0x77   :  { %v724_v17 = vsel %vm1199_vm3, %v598_v13, %v723_v11 }
  0x78   :  { %725 = vst [vmem:[%s1846_s2 + $0xa0] sm:$0xf] %v724_v17  ;;  %v599_v19 = vpack.c.bf16 %v557_v16, %v557_v16 }
  0x7a   :  { %v727_v20 = vsel %vm1199_vm3, %v599_v19, %v726_v18 }
  0x7b   :  { %728 = vst [vmem:[%s1846_s2 + $0xa4] sm:$0xf] %v727_v20 }

// kernel: triplenet_forward.10
= control target key start
LH: loop header
LB: loop body
LE: loop exit
PB: predicated region body
PF: predicated region fallthrough
CT: control target
= control target key end

     0   :  { %s6322_s12 = smov 0   ;;  %s6324_s13 = smov 0   ;;  %s7717_s0 = inlined_call_operand.vmem [shape: bf16[3,2,3136], index: 0, kind: input, shape index: {}]   ;;  %s7718_s1 = inlined_call_operand.vmem [shape: bf16[3,3136,1024], index: 1, kind: input, shape index: {}]   ;;  %s7719_s2 = inlined_call_operand.vmem [shape: f32[3,1,1024], index: 2, kind: input, shape index: {}]   ;;  %s7720_s3 = inlined_call_operand.vmem [shape: bf16[3,2,1024], index: 3, kind: output, shape index: {}]  }
   0x1   :  { %s6326_s14 = smov 0   ;;  %s6328_s15 = smov 0  }
   0x2   :  { %s6330_s16 = smov 0   ;;  %s6332_s17 = smov 0  }
   0x3   :  { %s6334_s18 = smov 0  }
   0x4 LB: > { %s25_s19 = sadd.s32 1, %s6290_s16  ;;  %s32_s20 = sadd.s32 1, %s6294_s17  ;;  %s6298_s18 = sphi %s6334_s18, %s13_s18   ;;  %s6294_s17 = sphi %s6332_s17, %s7726_s17   ;;  %s6290_s16 = sphi %s6330_s16, %s7725_s16   ;;  %s6286_s15 = sphi %s6328_s15, %s7724_s15   ;;  %s6282_s14 = sphi %s6326_s14, %s7723_s14   ;;  %s6278_s13 = sphi %s6324_s13, %s7722_s13   ;;  %s6274_s12 = sphi %s6322_s12, %s7721_s12  }
   0x5   : > { %p26_p0 = scmp.ge.s32.totalorder %s25_s19, 4  ;;  %p76_p1 = scmp.ne.s32.totalorder %s6278_s13, %s6274_s12 }
   0x6   : > { %p77_p2 = scmp.eq.s32.totalorder %s6298_s18, 0  ;;  %s69_s24 = sadd.s32 1, %s6278_s13 }
   0x7   : > { %s7728_s19 = smov (%p26_p0, %s25_s19), 0  ;;  %s7730_s20 = smov (!%p26_p0, %s32_s20), %s6294_s17 }
   0x8   : > { %p78_p3 = por %p77_p2, %p76_p1  ;;  %p34_p4 = scmp.ge.s32.totalorder %s7730_s20, 3 }
   0x9   : > { %s65_s21 = ssub.s32 %s6290_s16, %s7728_s19  ;;  %p5135_p6 = scmp.ge.s32.totalorder %s6298_s18, 12 }
   0xa   : > { %s7732_s20 = smov (%p34_p4, %s7730_s20), 0 }
   0xb   : > { %s64_s22 = ssub.s32 %s6294_s17, %s7732_s20  ;;  %160 = sbr.rel (%p5135_p6) target bundleno = 418 (0x1a2), region = 16 }
   0xc   : > { %s66_s23 = sor.u32 %s65_s21, %s64_s22 }
   0xd   : > { %p67_p5 = scmp.eq.s32.totalorder %s66_s23, 0 }
   0xf   : > { %s6373_s25 = scalar_select %p67_p5, %s6278_s13, %s69_s24  }
  0x12   : > { %174 = sbr.rel (!%p78_p3) target bundleno = 418 (0x1a2), region = 24  ;;  %s176_s26 = sand.u32 (%p78_p3), 1, %s6278_s13  }
  0x13   : > { %s5589_s27 = smul.u32 (%p78_p3), 3136, %s176_s26  ;;  %s5136_s28 = sshll.u32 (%p78_p3), %s6290_s16, 1 }
  0x14   : > { %s5590_s29 = smul.u32 (%p78_p3), 3136, %s6294_s17 }
  0x15   : > { %s6387_s8 = scalar_lea.vmem (%p78_p3), [#allocation2], %s5589_s27 }
  0x16   : > { %s181_s30 = sadd.s32 (%p78_p3), %s5590_s29, %s5136_s28 }
  0x17   : > { %s5137_s4 = sshll.u32 (%p78_p3), %s181_s30, 2 }
  0x18   : > { %s6382_s7 = scalar_lea.vmem (%p78_p3), %s7718_s1, %s5137_s4 }
  0x19   : > { %v993_v0 = vld [vmem:[%s6382_s7] sm:$0xff] }
  0x1a   : > { %v995_v1 = vld [vmem:[%s6382_s7 + $0x20] sm:$0xff]  ;;  %994 = vst [vmem:[%s6387_s8] sm:$0xff] %v993_v0 }
  0x1b   : > { %v997_v2 = vld [vmem:[%s6382_s7 + $0x40] sm:$0xff]  ;;  %996 = vst [vmem:[%s6387_s8 + $0x8] sm:$0xff] %v995_v1 }
  0x1c   : > { %998 = vst [vmem:[%s6387_s8 + $0x10] sm:$0xff] %v997_v2  ;;  %v999_v3 = vld [vmem:[%s6382_s7 + $0x60] sm:$0xff] }
  0x1d   : > { %v1001_v4 = vld [vmem:[%s6382_s7 + $0x80] sm:$0xff]  ;;  %1000 = vst [vmem:[%s6387_s8 + $0x18] sm:$0xff] %v999_v3 }
  0x1e   : > { %v1003_v5 = vld [vmem:[%s6382_s7 + $0xa0] sm:$0xff]  ;;  %1002 = vst [vmem:[%s6387_s8 + $0x20] sm:$0xff] %v1001_v4 }
  0x1f   : > { %1004 = vst [vmem:[%s6387_s8 + $0x28] sm:$0xff] %v1003_v5  ;;  %v1005_v6 = vld [vmem:[%s6382_s7 + $0xc0] sm:$0xff] }
  0x20   : > { %v1007_v7 = vld [vmem:[%s6382_s7 + $0xe0] sm:$0xff]  ;;  %1006 = vst [vmem:[%s6387_s8 + $0x30] sm:$0xff] %v1005_v6 }
  0x21   : > { %v1009_v8 = vld [vmem:[%s6382_s7 + $0x100] sm:$0xff]  ;;  %1008 = vst [vmem:[%s6387_s8 + $0x38] sm:$0xff] %v1007_v7 }
  0x22   : > { %1010 = vst [vmem:[%s6387_s8 + $0x40] sm:$0xff] %v1009_v8  ;;  %v1011_v9 = vld [vmem:[%s6382_s7 + $0x120] sm:$0xff] }
  0x23   : > { %v1013_v10 = vld [vmem:[%s6382_s7 + $0x140] sm:$0xff]  ;;  %1012 = vst [vmem:[%s6387_s8 + $0x48] sm:$0xff] %v1011_v9 }
  0x24   : > { %v1015_v11 = vld [vmem:[%s6382_s7 + $0x160] sm:$0xff]  ;;  %1014 = vst [vmem:[%s6387_s8 + $0x50] sm:$0xff] %v1013_v10 }
  0x25   : > { %1016 = vst [vmem:[%s6387_s8 + $0x58] sm:$0xff] %v1015_v11  ;;  %v1017_v12 = vld [vmem:[%s6382_s7 + $0x180] sm:$0xff] }
  0x26   : > { %v1019_v13 = vld [vmem:[%s6382_s7 + $0x1a0] sm:$0xff]  ;;  %1018 = vst [vmem:[%s6387_s8 + $0x60] sm:$0xff] %v1017_v12 }
  0x27   : > { %v1021_v14 = vld [vmem:[%s6382_s7 + $0x1c0] sm:$0xff]  ;;  %1020 = vst [vmem:[%s6387_s8 + $0x68] sm:$0xff] %v1019_v13 }
  0x28   : > { %1022 = vst [vmem:[%s6387_s8 + $0x70] sm:$0xff] %v1021_v14  ;;  %v1023_v15 = vld [vmem:[%s6382_s7 + $0x1e0] sm:$0xff] }
  0x29   : > { %v1025_v16 = vld [vmem:[%s6382_s7 + $0x200] sm:$0xff]  ;;  %1024 = vst [vmem:[%s6387_s8 + $0x78] sm:$0xff] %v1023_v15 }
  0x2a   : > { %v1027_v17 = vld [vmem:[%s6382_s7 + $0x220] sm:$0xff]  ;;  %1026 = vst [vmem:[%s6387_s8 + $0x80] sm:$0xff] %v1025_v16 }
  0x2b   : > { %1028 = vst [vmem:[%s6387_s8 + $0x88] sm:$0xff] %v1027_v17  ;;  %v1029_v18 = vld [vmem:[%s6382_s7 + $0x240] sm:$0xff] }
  0x2c   : > { %v1031_v19 = vld [vmem:[%s6382_s7 + $0x260] sm:$0xff]  ;;  %1030 = vst [vmem:[%s6387_s8 + $0x90] sm:$0xff] %v1029_v18 }
  0x2d   : > { %v1033_v20 = vld [vmem:[%s6382_s7 + $0x280] sm:$0xff]  ;;  %1032 = vst [vmem:[%s6387_s8 + $0x98] sm:$0xff] %v1031_v19 }
  0x2e   : > { %1034 = vst [vmem:[%s6387_s8 + $0xa0] sm:$0xff] %v1033_v20  ;;  %v1035_v21 = vld [vmem:[%s6382_s7 + $0x2a0] sm:$0xff] }
  0x2f   : > { %v1037_v22 = vld [vmem:[%s6382_s7 + $0x2c0] sm:$0xff]  ;;  %1036 = vst [vmem:[%s6387_s8 + $0xa8] sm:$0xff] %v1035_v21 }
  0x30   : > { %v1039_v23 = vld [vmem:[%s6382_s7 + $0x2e0] sm:$0xff]  ;;  %1038 = vst [vmem:[%s6387_s8 + $0xb0] sm:$0xff] %v1037_v22 }
  0x31   : > { %1040 = vst [vmem:[%s6387_s8 + $0xb8] sm:$0xff] %v1039_v23  ;;  %v1041_v24 = vld [vmem:[%s6382_s7 + $0x300] sm:$0xff] }
  0x32   : > { %v1043_v25 = vld [vmem:[%s6382_s7 + $0x320] sm:$0xff]  ;;  %1042 = vst [vmem:[%s6387_s8 + $0xc0] sm:$0xff] %v1041_v24 }
  0x33   : > { %v1045_v26 = vld [vmem:[%s6382_s7 + $0x340] sm:$0xff]  ;;  %1044 = vst [vmem:[%s6387_s8 + $0xc8] sm:$0xff] %v1043_v25 }
  0x34   : > { %1046 = vst [vmem:[%s6387_s8 + $0xd0] sm:$0xff] %v1045_v26  ;;  %v1047_v27 = vld [vmem:[%s6382_s7 + $0x360] sm:$0xff] }
  0x35   : > { %v1049_v28 = vld [vmem:[%s6382_s7 + $0x380] sm:$0xff]  ;;  %1048 = vst [vmem:[%s6387_s8 + $0xd8] sm:$0xff] %v1047_v27 }
  0x36   : > { %v1051_v29 = vld [vmem:[%s6382_s7 + $0x3a0] sm:$0xff]  ;;  %1050 = vst [vmem:[%s6387_s8 + $0xe0] sm:$0xff] %v1049_v28 }
  0x37   : > { %1052 = vst [vmem:[%s6387_s8 + $0xe8] sm:$0xff] %v1051_v29  ;;  %v1053_v30 = vld [vmem:[%s6382_s7 + $0x3c0] sm:$0xff] }
  0x38   : > { %v1055_v31 = vld [vmem:[%s6382_s7 + $0x3e0] sm:$0xff]  ;;  %1054 = vst [vmem:[%s6387_s8 + $0xf0] sm:$0xff] %v1053_v30 }
  0x39   : > { %v1057_v32 = vld [vmem:[%s6382_s7 + $0x400] sm:$0xff]  ;;  %1056 = vst [vmem:[%s6387_s8 + $0xf8] sm:$0xff] %v1055_v31 }
  0x3a   : > { %1058 = vst [vmem:[%s6387_s8 + $0x100] sm:$0xff] %v1057_v32  ;;  %v1059_v33 = vld [vmem:[%s6382_s7 + $0x420] sm:$0xff] }
  0x3b   : > { %v1061_v34 = vld [vmem:[%s6382_s7 + $0x440] sm:$0xff]  ;;  %1060 = vst [vmem:[%s6387_s8 + $0x108] sm:$0xff] %v1059_v33 }
  0x3c   : > { %v1063_v35 = vld [vmem:[%s6382_s7 + $0x460] sm:$0xff]  ;;  %1062 = vst [vmem:[%s6387_s8 + $0x110] sm:$0xff] %v1061_v34 }
  0x3d   : > { %1064 = vst [vmem:[%s6387_s8 + $0x118] sm:$0xff] %v1063_v35  ;;  %v1065_v36 = vld [vmem:[%s6382_s7 + $0x480] sm:$0xff] }
  0x3e   : > { %v1067_v37 = vld [vmem:[%s6382_s7 + $0x4a0] sm:$0xff]  ;;  %1066 = vst [vmem:[%s6387_s8 + $0x120] sm:$0xff] %v1065_v36 }
  0x3f   : > { %v1069_v38 = vld [vmem:[%s6382_s7 + $0x4c0] sm:$0xff]  ;;  %1068 = vst [vmem:[%s6387_s8 + $0x128] sm:$0xff] %v1067_v37 }
  0x40   : > { %1070 = vst [vmem:[%s6387_s8 + $0x130] sm:$0xff] %v1069_v38  ;;  %v1071_v39 = vld [vmem:[%s6382_s7 + $0x4e0] sm:$0xff] }
  0x41   : > { %v1073_v40 = vld [vmem:[%s6382_s7 + $0x500] sm:$0xff]  ;;  %1072 = vst [vmem:[%s6387_s8 + $0x138] sm:$0xff] %v1071_v39 }
  0x42   : > { %v1075_v41 = vld [vmem:[%s6382_s7 + $0x520] sm:$0xff]  ;;  %1074 = vst [vmem:[%s6387_s8 + $0x140] sm:$0xff] %v1073_v40 }
  0x43   : > { %1076 = vst [vmem:[%s6387_s8 + $0x148] sm:$0xff] %v1075_v41  ;;  %v1077_v42 = vld [vmem:[%s6382_s7 + $0x540] sm:$0xff] }
  0x44   : > { %v1079_v43 = vld [vmem:[%s6382_s7 + $0x560] sm:$0xff]  ;;  %1078 = vst [vmem:[%s6387_s8 + $0x150] sm:$0xff] %v1077_v42 }
  0x45   : > { %v1081_v44 = vld [vmem:[%s6382_s7 + $0x580] sm:$0xff]  ;;  %1080 = vst [vmem:[%s6387_s8 + $0x158] sm:$0xff] %v1079_v43 }
  0x46   : > { %1082 = vst [vmem:[%s6387_s8 + $0x160] sm:$0xff] %v1081_v44  ;;  %v1083_v45 = vld [vmem:[%s6382_s7 + $0x5a0] sm:$0xff] }
  0x47   : > { %v1085_v46 = vld [vmem:[%s6382_s7 + $0x5c0] sm:$0xff]  ;;  %1084 = vst [vmem:[%s6387_s8 + $0x168] sm:$0xff] %v1083_v45 }
  0x48   : > { %v1087_v47 = vld [vmem:[%s6382_s7 + $0x5e0] sm:$0xff]  ;;  %1086 = vst [vmem:[%s6387_s8 + $0x170] sm:$0xff] %v1085_v46 }
  0x49   : > { %1088 = vst [vmem:[%s6387_s8 + $0x178] sm:$0xff] %v1087_v47  ;;  %v1089_v48 = vld [vmem:[%s6382_s7 + $0x600] sm:$0xff] }
  0x4a   : > { %v1091_v49 = vld [vmem:[%s6382_s7 + $0x620] sm:$0xff]  ;;  %1090 = vst [vmem:[%s6387_s8 + $0x180] sm:$0xff] %v1089_v48 }
  0x4b   : > { %v1093_v50 = vld [vmem:[%s6382_s7 + $0x640] sm:$0xff]  ;;  %1092 = vst [vmem:[%s6387_s8 + $0x188] sm:$0xff] %v1091_v49 }
  0x4c   : > { %1094 = vst [vmem:[%s6387_s8 + $0x190] sm:$0xff] %v1093_v50  ;;  %v1095_v51 = vld [vmem:[%s6382_s7 + $0x660] sm:$0xff] }
  0x4d   : > { %v1097_v52 = vld [vmem:[%s6382_s7 + $0x680] sm:$0xff]  ;;  %1096 = vst [vmem:[%s6387_s8 + $0x198] sm:$0xff] %v1095_v51 }
  0x4e   : > { %v1099_v53 = vld [vmem:[%s6382_s7 + $0x6a0] sm:$0xff]  ;;  %1098 = vst [vmem:[%s6387_s8 + $0x1a0] sm:$0xff] %v1097_v52 }
  0x4f   : > { %1100 = vst [vmem:[%s6387_s8 + $0x1a8] sm:$0xff] %v1099_v53  ;;  %v1101_v54 = vld [vmem:[%s6382_s7 + $0x6c0] sm:$0xff] }
  0x50   : > { %v1103_v55 = vld [vmem:[%s6382_s7 + $0x6e0] sm:$0xff]  ;;  %1102 = vst [vmem:[%s6387_s8 + $0x1b0] sm:$0xff] %v1101_v54 }
  0x51   : > { %v1105_v56 = vld [vmem:[%s6382_s7 + $0x700] sm:$0xff]  ;;  %1104 = vst [vmem:[%s6387_s8 + $0x1b8] sm:$0xff] %v1103_v55 }
  0x52   : > { %1106 = vst [vmem:[%s6387_s8 + $0x1c0] sm:$0xff] %v1105_v56  ;;  %v1107_v57 = vld [vmem:[%s6382_s7 + $0x720] sm:$0xff] }
  0x53   : > { %v1109_v58 = vld [vmem:[%s6382_s7 + $0x740] sm:$0xff]  ;;  %1108 = vst [vmem:[%s6387_s8 + $0x1c8] sm:$0xff] %v1107_v57 }
  0x54   : > { %v1111_v59 = vld [vmem:[%s6382_s7 + $0x760] sm:$0xff]  ;;  %1110 = vst [vmem:[%s6387_s8 + $0x1d0] sm:$0xff] %v1109_v58 }
  0x55   : > { %1112 = vst [vmem:[%s6387_s8 + $0x1d8] sm:$0xff] %v1111_v59  ;;  %v1113_v60 = vld [vmem:[%s6382_s7 + $0x780] sm:$0xff] }
  0x56   : > { %v1115_v61 = vld [vmem:[%s6382_s7 + $0x7a0] sm:$0xff]  ;;  %1114 = vst [vmem:[%s6387_s8 + $0x1e0] sm:$0xff] %v1113_v60 }
  0x57   : > { %v1117_v62 = vld [vmem:[%s6382_s7 + $0x7c0] sm:$0xff]  ;;  %1116 = vst [vmem:[%s6387_s8 + $0x1e8] sm:$0xff] %v1115_v61 }
  0x58   : > { %1118 = vst [vmem:[%s6387_s8 + $0x1f0] sm:$0xff] %v1117_v62  ;;  %v1119_v63 = vld [vmem:[%s6382_s7 + $0x7e0] sm:$0xff] }
  0x59   : > { %v1121_v0 = vld [vmem:[%s6382_s7 + $0x800] sm:$0xff]  ;;  %1120 = vst [vmem:[%s6387_s8 + $0x1f8] sm:$0xff] %v1119_v63 }
  0x5a   : > { %v1123_v1 = vld [vmem:[%s6382_s7 + $0x820] sm:$0xff]  ;;  %1122 = vst [vmem:[%s6387_s8 + $0x200] sm:$0xff] %v1121_v0 }
  0x5b   : > { %1124 = vst [vmem:[%s6387_s8 + $0x208] sm:$0xff] %v1123_v1  ;;  %v1125_v2 = vld [vmem:[%s6382_s7 + $0x840] sm:$0xff] }
  0x5c   : > { %v1127_v3 = vld [vmem:[%s6382_s7 + $0x860] sm:$0xff]  ;;  %1126 = vst [vmem:[%s6387_s8 + $0x210] sm:$0xff] %v1125_v2 }
  0x5d   : > { %v1129_v4 = vld [vmem:[%s6382_s7 + $0x880] sm:$0xff]  ;;  %1128 = vst [vmem:[%s6387_s8 + $0x218] sm:$0xff] %v1127_v3 }
  0x5e   : > { %1130 = vst [vmem:[%s6387_s8 + $0x220] sm:$0xff] %v1129_v4  ;;  %v1131_v5 = vld [vmem:[%s6382_s7 + $0x8a0] sm:$0xff] }
  0x5f   : > { %v1133_v6 = vld [vmem:[%s6382_s7 + $0x8c0] sm:$0xff]  ;;  %1132 = vst [vmem:[%s6387_s8 + $0x228] sm:$0xff] %v1131_v5 }
  0x60   : > { %v1135_v7 = vld [vmem:[%s6382_s7 + $0x8e0] sm:$0xff]  ;;  %1134 = vst [vmem:[%s6387_s8 + $0x230] sm:$0xff] %v1133_v6 }
  0x61   : > { %1136 = vst [vmem:[%s6387_s8 + $0x238] sm:$0xff] %v1135_v7  ;;  %v1137_v8 = vld [vmem:[%s6382_s7 + $0x900] sm:$0xff] }
  0x62   : > { %v1139_v9 = vld [vmem:[%s6382_s7 + $0x920] sm:$0xff]  ;;  %1138 = vst [vmem:[%s6387_s8 + $0x240] sm:$0xff] %v1137_v8 }
  0x63   : > { %v1141_v10 = vld [vmem:[%s6382_s7 + $0x940] sm:$0xff]  ;;  %1140 = vst [vmem:[%s6387_s8 + $0x248] sm:$0xff] %v1139_v9 }
  0x64   : > { %1142 = vst [vmem:[%s6387_s8 + $0x250] sm:$0xff] %v1141_v10  ;;  %v1143_v11 = vld [vmem:[%s6382_s7 + $0x960] sm:$0xff] }
  0x65   : > { %v1145_v12 = vld [vmem:[%s6382_s7 + $0x980] sm:$0xff]  ;;  %1144 = vst [vmem:[%s6387_s8 + $0x258] sm:$0xff] %v1143_v11 }
  0x66   : > { %v1147_v13 = vld [vmem:[%s6382_s7 + $0x9a0] sm:$0xff]  ;;  %1146 = vst [vmem:[%s6387_s8 + $0x260] sm:$0xff] %v1145_v12 }
  0x67   : > { %1148 = vst [vmem:[%s6387_s8 + $0x268] sm:$0xff] %v1147_v13  ;;  %v1149_v14 = vld [vmem:[%s6382_s7 + $0x9c0] sm:$0xff] }
  0x68   : > { %v1151_v15 = vld [vmem:[%s6382_s7 + $0x9e0] sm:$0xff]  ;;  %1150 = vst [vmem:[%s6387_s8 + $0x270] sm:$0xff] %v1149_v14 }
  0x69   : > { %v1153_v16 = vld [vmem:[%s6382_s7 + $0xa00] sm:$0xff]  ;;  %1152 = vst [vmem:[%s6387_s8 + $0x278] sm:$0xff] %v1151_v15 }
  0x6a   : > { %1154 = vst [vmem:[%s6387_s8 + $0x280] sm:$0xff] %v1153_v16  ;;  %v1155_v17 = vld [vmem:[%s6382_s7 + $0xa20] sm:$0xff] }
  0x6b   : > { %v1157_v18 = vld [vmem:[%s6382_s7 + $0xa40] sm:$0xff]  ;;  %1156 = vst [vmem:[%s6387_s8 + $0x288] sm:$0xff] %v1155_v17 }
  0x6c   : > { %v1159_v19 = vld [vmem:[%s6382_s7 + $0xa60] sm:$0xff]  ;;  %1158 = vst [vmem:[%s6387_s8 + $0x290] sm:$0xff] %v1157_v18 }
  0x6d   : > { %1160 = vst [vmem:[%s6387_s8 + $0x298] sm:$0xff] %v1159_v19  ;;  %v1161_v20 = vld [vmem:[%s6382_s7 + $0xa80] sm:$0xff] }
  0x6e   : > { %v1163_v21 = vld [vmem:[%s6382_s7 + $0xaa0] sm:$0xff]  ;;  %1162 = vst [vmem:[%s6387_s8 + $0x2a0] sm:$0xff] %v1161_v20 }
  0x6f   : > { %v1165_v22 = vld [vmem:[%s6382_s7 + $0xac0] sm:$0xff]  ;;  %1164 = vst [vmem:[%s6387_s8 + $0x2a8] sm:$0xff] %v1163_v21 }
  0x70   : > { %1166 = vst [vmem:[%s6387_s8 + $0x2b0] sm:$0xff] %v1165_v22  ;;  %v1167_v23 = vld [vmem:[%s6382_s7 + $0xae0] sm:$0xff] }
  0x71   : > { %v1169_v24 = vld [vmem:[%s6382_s7 + $0xb00] sm:$0xff]  ;;  %1168 = vst [vmem:[%s6387_s8 + $0x2b8] sm:$0xff] %v1167_v23 }
  0x72   : > { %v1171_v25 = vld [vmem:[%s6382_s7 + $0xb20] sm:$0xff]  ;;  %1170 = vst [vmem:[%s6387_s8 + $0x2c0] sm:$0xff] %v1169_v24 }
  0x73   : > { %1172 = vst [vmem:[%s6387_s8 + $0x2c8] sm:$0xff] %v1171_v25  ;;  %v1173_v26 = vld [vmem:[%s6382_s7 + $0xb40] sm:$0xff] }
  0x74   : > { %v1175_v27 = vld [vmem:[%s6382_s7 + $0xb60] sm:$0xff]  ;;  %1174 = vst [vmem:[%s6387_s8 + $0x2d0] sm:$0xff] %v1173_v26 }
  0x75   : > { %v1177_v28 = vld [vmem:[%s6382_s7 + $0xb80] sm:$0xff]  ;;  %1176 = vst [vmem:[%s6387_s8 + $0x2d8] sm:$0xff] %v1175_v27 }
  0x76   : > { %1178 = vst [vmem:[%s6387_s8 + $0x2e0] sm:$0xff] %v1177_v28  ;;  %v1179_v29 = vld [vmem:[%s6382_s7 + $0xba0] sm:$0xff] }
  0x77   : > { %v1181_v30 = vld [vmem:[%s6382_s7 + $0xbc0] sm:$0xff]  ;;  %1180 = vst [vmem:[%s6387_s8 + $0x2e8] sm:$0xff] %v1179_v29 }
  0x78   : > { %v1183_v31 = vld [vmem:[%s6382_s7 + $0xbe0] sm:$0xff]  ;;  %1182 = vst [vmem:[%s6387_s8 + $0x2f0] sm:$0xff] %v1181_v30 }
  0x79   : > { %1184 = vst [vmem:[%s6387_s8 + $0x2f8] sm:$0xff] %v1183_v31  ;;  %v1185_v32 = vld [vmem:[%s6382_s7 + $0xc00] sm:$0xff] }
  0x7a   : > { %v1187_v33 = vld [vmem:[%s6382_s7 + $0xc20] sm:$0xff]  ;;  %1186 = vst [vmem:[%s6387_s8 + $0x300] sm:$0xff] %v1185_v32 }
  0x7b   : > { %v1189_v34 = vld [vmem:[%s6382_s7 + $0xc40] sm:$0xff]  ;;  %1188 = vst [vmem:[%s6387_s8 + $0x308] sm:$0xff] %v1187_v33 }
  0x7c   : > { %1190 = vst [vmem:[%s6387_s8 + $0x310] sm:$0xff] %v1189_v34  ;;  %v1191_v35 = vld [vmem:[%s6382_s7 + $0xc60] sm:$0xff] }
  0x7d   : > { %v1193_v36 = vld [vmem:[%s6382_s7 + $0xc80] sm:$0xff]  ;;  %1192 = vst [vmem:[%s6387_s8 + $0x318] sm:$0xff] %v1191_v35 }
  0x7e   : > { %v1195_v37 = vld [vmem:[%s6382_s7 + $0xca0] sm:$0xff]  ;;  %1194 = vst [vmem:[%s6387_s8 + $0x320] sm:$0xff] %v1193_v36 }
  0x7f   : > { %1196 = vst [vmem:[%s6387_s8 + $0x328] sm:$0xff] %v1195_v37  ;;  %v1197_v38 = vld [vmem:[%s6382_s7 + $0xcc0] sm:$0xff] }
  0x80   : > { %v1199_v39 = vld [vmem:[%s6382_s7 + $0xce0] sm:$0xff]  ;;  %1198 = vst [vmem:[%s6387_s8 + $0x330] sm:$0xff] %v1197_v38 }
  0x81   : > { %v1201_v40 = vld [vmem:[%s6382_s7 + $0xd00] sm:$0xff]  ;;  %1200 = vst [vmem:[%s6387_s8 + $0x338] sm:$0xff] %v1199_v39 }
  0x82   : > { %1202 = vst [vmem:[%s6387_s8 + $0x340] sm:$0xff] %v1201_v40  ;;  %v1203_v41 = vld [vmem:[%s6382_s7 + $0xd20] sm:$0xff] }
  0x83   : > { %v1205_v42 = vld [vmem:[%s6382_s7 + $0xd40] sm:$0xff]  ;;  %1204 = vst [vmem:[%s6387_s8 + $0x348] sm:$0xff] %v1203_v41 }
  0x84   : > { %v1207_v43 = vld [vmem:[%s6382_s7 + $0xd60] sm:$0xff]  ;;  %1206 = vst [vmem:[%s6387_s8 + $0x350] sm:$0xff] %v1205_v42 }
  0x85   : > { %1208 = vst [vmem:[%s6387_s8 + $0x358] sm:$0xff] %v1207_v43  ;;  %v1209_v44 = vld [vmem:[%s6382_s7 + $0xd80] sm:$0xff] }
  0x86   : > { %v1211_v45 = vld [vmem:[%s6382_s7 + $0xda0] sm:$0xff]  ;;  %1210 = vst [vmem:[%s6387_s8 + $0x360] sm:$0xff] %v1209_v44 }
  0x87   : > { %v1213_v46 = vld [vmem:[%s6382_s7 + $0xdc0] sm:$0xff]  ;;  %1212 = vst [vmem:[%s6387_s8 + $0x368] sm:$0xff] %v1211_v45 }
  0x88   : > { %1214 = vst [vmem:[%s6387_s8 + $0x370] sm:$0xff] %v1213_v46  ;;  %v1215_v47 = vld [vmem:[%s6382_s7 + $0xde0] sm:$0xff] }
  0x89   : > { %v1217_v48 = vld [vmem:[%s6382_s7 + $0xe00] sm:$0xff]  ;;  %1216 = vst [vmem:[%s6387_s8 + $0x378] sm:$0xff] %v1215_v47 }
  0x8a   : > { %v1219_v49 = vld [vmem:[%s6382_s7 + $0xe20] sm:$0xff]  ;;  %1218 = vst [vmem:[%s6387_s8 + $0x380] sm:$0xff] %v1217_v48 }
  0x8b   : > { %1220 = vst [vmem:[%s6387_s8 + $0x388] sm:$0xff] %v1219_v49  ;;  %v1221_v50 = vld [vmem:[%s6382_s7 + $0xe40] sm:$0xff] }
  0x8c   : > { %v1223_v51 = vld [vmem:[%s6382_s7 + $0xe60] sm:$0xff]  ;;  %1222 = vst [vmem:[%s6387_s8 + $0x390] sm:$0xff] %v1221_v50 }
  0x8d   : > { %v1225_v52 = vld [vmem:[%s6382_s7 + $0xe80] sm:$0xff]  ;;  %1224 = vst [vmem:[%s6387_s8 + $0x398] sm:$0xff] %v1223_v51 }
  0x8e   : > { %1226 = vst [vmem:[%s6387_s8 + $0x3a0] sm:$0xff] %v1225_v52  ;;  %v1227_v53 = vld [vmem:[%s6382_s7 + $0xea0] sm:$0xff] }
  0x8f   : > { %v1229_v54 = vld [vmem:[%s6382_s7 + $0xec0] sm:$0xff]  ;;  %1228 = vst [vmem:[%s6387_s8 + $0x3a8] sm:$0xff] %v1227_v53 }
  0x90   : > { %v1231_v55 = vld [vmem:[%s6382_s7 + $0xee0] sm:$0xff]  ;;  %1230 = vst [vmem:[%s6387_s8 + $0x3b0] sm:$0xff] %v1229_v54 }
  0x91   : > { %1232 = vst [vmem:[%s6387_s8 + $0x3b8] sm:$0xff] %v1231_v55  ;;  %v1233_v56 = vld [vmem:[%s6382_s7 + $0xf00] sm:$0xff] }
  0x92   : > { %v1235_v57 = vld [vmem:[%s6382_s7 + $0xf20] sm:$0xff]  ;;  %1234 = vst [vmem:[%s6387_s8 + $0x3c0] sm:$0xff] %v1233_v56 }
  0x93   : > { %v1237_v58 = vld [vmem:[%s6382_s7 + $0xf40] sm:$0xff]  ;;  %1236 = vst [vmem:[%s6387_s8 + $0x3c8] sm:$0xff] %v1235_v57 }
  0x94   : > { %1238 = vst [vmem:[%s6387_s8 + $0x3d0] sm:$0xff] %v1237_v58  ;;  %v1239_v59 = vld [vmem:[%s6382_s7 + $0xf60] sm:$0xff] }
  0x95   : > { %v1241_v60 = vld [vmem:[%s6382_s7 + $0xf80] sm:$0xff]  ;;  %1240 = vst [vmem:[%s6387_s8 + $0x3d8] sm:$0xff] %v1239_v59 }
  0x96   : > { %v1243_v61 = vld [vmem:[%s6382_s7 + $0xfa0] sm:$0xff]  ;;  %1242 = vst [vmem:[%s6387_s8 + $0x3e0] sm:$0xff] %v1241_v60 }
  0x97   : > { %1244 = vst [vmem:[%s6387_s8 + $0x3e8] sm:$0xff] %v1243_v61  ;;  %v1245_v62 = vld [vmem:[%s6382_s7 + $0xfc0] sm:$0xff] }
  0x98   : > { %v1247_v63 = vld [vmem:[%s6382_s7 + $0xfe0] sm:$0xff]  ;;  %1246 = vst [vmem:[%s6387_s8 + $0x3f0] sm:$0xff] %v1245_v62 }
  0x99   : > { %v1249_v0 = vld [vmem:[%s6382_s7 + $0x1000] sm:$0xff]  ;;  %1248 = vst [vmem:[%s6387_s8 + $0x3f8] sm:$0xff] %v1247_v63 }
  0x9a   : > { %1250 = vst [vmem:[%s6387_s8 + $0x400] sm:$0xff] %v1249_v0  ;;  %v1251_v1 = vld [vmem:[%s6382_s7 + $0x1020] sm:$0xff] }
  0x9b   : > { %v1253_v2 = vld [vmem:[%s6382_s7 + $0x1040] sm:$0xff]  ;;  %1252 = vst [vmem:[%s6387_s8 + $0x408] sm:$0xff] %v1251_v1 }
  0x9c   : > { %v1255_v3 = vld [vmem:[%s6382_s7 + $0x1060] sm:$0xff]  ;;  %1254 = vst [vmem:[%s6387_s8 + $0x410] sm:$0xff] %v1253_v2 }
  0x9d   : > { %1256 = vst [vmem:[%s6387_s8 + $0x418] sm:$0xff] %v1255_v3  ;;  %v1257_v4 = vld [vmem:[%s6382_s7 + $0x1080] sm:$0xff] }
  0x9e   : > { %v1259_v5 = vld [vmem:[%s6382_s7 + $0x10a0] sm:$0xff]  ;;  %1258 = vst [vmem:[%s6387_s8 + $0x420] sm:$0xff] %v1257_v4 }
  0x9f   : > { %v1261_v6 = vld [vmem:[%s6382_s7 + $0x10c0] sm:$0xff]  ;;  %1260 = vst [vmem:[%s6387_s8 + $0x428] sm:$0xff] %v1259_v5 }
  0xa0   : > { %1262 = vst [vmem:[%s6387_s8 + $0x430] sm:$0xff] %v1261_v6  ;;  %v1263_v7 = vld [vmem:[%s6382_s7 + $0x10e0] sm:$0xff] }
  0xa1   : > { %v1265_v8 = vld [vmem:[%s6382_s7 + $0x1100] sm:$0xff]  ;;  %1264 = vst [vmem:[%s6387_s8 + $0x438] sm:$0xff] %v1263_v7 }
  0xa2   : > { %v1267_v9 = vld [vmem:[%s6382_s7 + $0x1120] sm:$0xff]  ;;  %1266 = vst [vmem:[%s6387_s8 + $0x440] sm:$0xff] %v1265_v8 }
  0xa3   : > { %1268 = vst [vmem:[%s6387_s8 + $0x448] sm:$0xff] %v1267_v9  ;;  %v1269_v10 = vld [vmem:[%s6382_s7 + $0x1140] sm:$0xff] }
  0xa4   : > { %v1271_v11 = vld [vmem:[%s6382_s7 + $0x1160] sm:$0xff]  ;;  %1270 = vst [vmem:[%s6387_s8 + $0x450] sm:$0xff] %v1269_v10 }
  0xa5   : > { %v1273_v12 = vld [vmem:[%s6382_s7 + $0x1180] sm:$0xff]  ;;  %1272 = vst [vmem:[%s6387_s8 + $0x458] sm:$0xff] %v1271_v11 }
  0xa6   : > { %1274 = vst [vmem:[%s6387_s8 + $0x460] sm:$0xff] %v1273_v12  ;;  %v1275_v13 = vld [vmem:[%s6382_s7 + $0x11a0] sm:$0xff] }
  0xa7   : > { %v1277_v14 = vld [vmem:[%s6382_s7 + $0x11c0] sm:$0xff]  ;;  %1276 = vst [vmem:[%s6387_s8 + $0x468] sm:$0xff] %v1275_v13 }
  0xa8   : > { %v1279_v15 = vld [vmem:[%s6382_s7 + $0x11e0] sm:$0xff]  ;;  %1278 = vst [vmem:[%s6387_s8 + $0x470] sm:$0xff] %v1277_v14 }
  0xa9   : > { %1280 = vst [vmem:[%s6387_s8 + $0x478] sm:$0xff] %v1279_v15  ;;  %v1281_v16 = vld [vmem:[%s6382_s7 + $0x1200] sm:$0xff] }
  0xaa   : > { %v1283_v17 = vld [vmem:[%s6382_s7 + $0x1220] sm:$0xff]  ;;  %1282 = vst [vmem:[%s6387_s8 + $0x480] sm:$0xff] %v1281_v16 }
  0xab   : > { %v1285_v18 = vld [vmem:[%s6382_s7 + $0x1240] sm:$0xff]  ;;  %1284 = vst [vmem:[%s6387_s8 + $0x488] sm:$0xff] %v1283_v17 }
  0xac   : > { %1286 = vst [vmem:[%s6387_s8 + $0x490] sm:$0xff] %v1285_v18  ;;  %v1287_v19 = vld [vmem:[%s6382_s7 + $0x1260] sm:$0xff] }
  0xad   : > { %v1289_v20 = vld [vmem:[%s6382_s7 + $0x1280] sm:$0xff]  ;;  %1288 = vst [vmem:[%s6387_s8 + $0x498] sm:$0xff] %v1287_v19 }
  0xae   : > { %v1291_v21 = vld [vmem:[%s6382_s7 + $0x12a0] sm:$0xff]  ;;  %1290 = vst [vmem:[%s6387_s8 + $0x4a0] sm:$0xff] %v1289_v20 }
  0xaf   : > { %1292 = vst [vmem:[%s6387_s8 + $0x4a8] sm:$0xff] %v1291_v21  ;;  %v1293_v22 = vld [vmem:[%s6382_s7 + $0x12c0] sm:$0xff] }
  0xb0   : > { %v1295_v23 = vld [vmem:[%s6382_s7 + $0x12e0] sm:$0xff]  ;;  %1294 = vst [vmem:[%s6387_s8 + $0x4b0] sm:$0xff] %v1293_v22 }
  0xb1   : > { %v1297_v24 = vld [vmem:[%s6382_s7 + $0x1300] sm:$0xff]  ;;  %1296 = vst [vmem:[%s6387_s8 + $0x4b8] sm:$0xff] %v1295_v23 }
  0xb2   : > { %1298 = vst [vmem:[%s6387_s8 + $0x4c0] sm:$0xff] %v1297_v24  ;;  %v1299_v25 = vld [vmem:[%s6382_s7 + $0x1320] sm:$0xff] }
  0xb3   : > { %v1301_v26 = vld [vmem:[%s6382_s7 + $0x1340] sm:$0xff]  ;;  %1300 = vst [vmem:[%s6387_s8 + $0x4c8] sm:$0xff] %v1299_v25 }
  0xb4   : > { %v1303_v27 = vld [vmem:[%s6382_s7 + $0x1360] sm:$0xff]  ;;  %1302 = vst [vmem:[%s6387_s8 + $0x4d0] sm:$0xff] %v1301_v26 }
  0xb5   : > { %1304 = vst [vmem:[%s6387_s8 + $0x4d8] sm:$0xff] %v1303_v27  ;;  %v1305_v28 = vld [vmem:[%s6382_s7 + $0x1380] sm:$0xff] }
  0xb6   : > { %v1307_v29 = vld [vmem:[%s6382_s7 + $0x13a0] sm:$0xff]  ;;  %1306 = vst [vmem:[%s6387_s8 + $0x4e0] sm:$0xff] %v1305_v28 }
  0xb7   : > { %v1309_v30 = vld [vmem:[%s6382_s7 + $0x13c0] sm:$0xff]  ;;  %1308 = vst [vmem:[%s6387_s8 + $0x4e8] sm:$0xff] %v1307_v29 }
  0xb8   : > { %1310 = vst [vmem:[%s6387_s8 + $0x4f0] sm:$0xff] %v1309_v30  ;;  %v1311_v31 = vld [vmem:[%s6382_s7 + $0x13e0] sm:$0xff] }
  0xb9   : > { %v1313_v32 = vld [vmem:[%s6382_s7 + $0x1400] sm:$0xff]  ;;  %1312 = vst [vmem:[%s6387_s8 + $0x4f8] sm:$0xff] %v1311_v31 }
  0xba   : > { %v1315_v33 = vld [vmem:[%s6382_s7 + $0x1420] sm:$0xff]  ;;  %1314 = vst [vmem:[%s6387_s8 + $0x500] sm:$0xff] %v1313_v32 }
  0xbb   : > { %1316 = vst [vmem:[%s6387_s8 + $0x508] sm:$0xff] %v1315_v33  ;;  %v1317_v34 = vld [vmem:[%s6382_s7 + $0x1440] sm:$0xff] }
  0xbc   : > { %v1319_v35 = vld [vmem:[%s6382_s7 + $0x1460] sm:$0xff]  ;;  %1318 = vst [vmem:[%s6387_s8 + $0x510] sm:$0xff] %v1317_v34 }
  0xbd   : > { %v1321_v36 = vld [vmem:[%s6382_s7 + $0x1480] sm:$0xff]  ;;  %1320 = vst [vmem:[%s6387_s8 + $0x518] sm:$0xff] %v1319_v35 }
  0xbe   : > { %1322 = vst [vmem:[%s6387_s8 + $0x520] sm:$0xff] %v1321_v36  ;;  %v1323_v37 = vld [vmem:[%s6382_s7 + $0x14a0] sm:$0xff] }
  0xbf   : > { %v1325_v38 = vld [vmem:[%s6382_s7 + $0x14c0] sm:$0xff]  ;;  %1324 = vst [vmem:[%s6387_s8 + $0x528] sm:$0xff] %v1323_v37 }
  0xc0   : > { %v1327_v39 = vld [vmem:[%s6382_s7 + $0x14e0] sm:$0xff]  ;;  %1326 = vst [vmem:[%s6387_s8 + $0x530] sm:$0xff] %v1325_v38 }
  0xc1   : > { %1328 = vst [vmem:[%s6387_s8 + $0x538] sm:$0xff] %v1327_v39  ;;  %v1329_v40 = vld [vmem:[%s6382_s7 + $0x1500] sm:$0xff] }
  0xc2   : > { %v1331_v41 = vld [vmem:[%s6382_s7 + $0x1520] sm:$0xff]  ;;  %1330 = vst [vmem:[%s6387_s8 + $0x540] sm:$0xff] %v1329_v40 }
  0xc3   : > { %v1333_v42 = vld [vmem:[%s6382_s7 + $0x1540] sm:$0xff]  ;;  %1332 = vst [vmem:[%s6387_s8 + $0x548] sm:$0xff] %v1331_v41 }
  0xc4   : > { %1334 = vst [vmem:[%s6387_s8 + $0x550] sm:$0xff] %v1333_v42  ;;  %v1335_v43 = vld [vmem:[%s6382_s7 + $0x1560] sm:$0xff] }
  0xc5   : > { %v1337_v44 = vld [vmem:[%s6382_s7 + $0x1580] sm:$0xff]  ;;  %1336 = vst [vmem:[%s6387_s8 + $0x558] sm:$0xff] %v1335_v43 }
  0xc6   : > { %v1339_v45 = vld [vmem:[%s6382_s7 + $0x15a0] sm:$0xff]  ;;  %1338 = vst [vmem:[%s6387_s8 + $0x560] sm:$0xff] %v1337_v44 }
  0xc7   : > { %1340 = vst [vmem:[%s6387_s8 + $0x568] sm:$0xff] %v1339_v45  ;;  %v1341_v46 = vld [vmem:[%s6382_s7 + $0x15c0] sm:$0xff] }
  0xc8   : > { %v1343_v47 = vld [vmem:[%s6382_s7 + $0x15e0] sm:$0xff]  ;;  %1342 = vst [vmem:[%s6387_s8 + $0x570] sm:$0xff] %v1341_v46 }
  0xc9   : > { %v1345_v48 = vld [vmem:[%s6382_s7 + $0x1600] sm:$0xff]  ;;  %1344 = vst [vmem:[%s6387_s8 + $0x578] sm:$0xff] %v1343_v47 }
  0xca   : > { %1346 = vst [vmem:[%s6387_s8 + $0x580] sm:$0xff] %v1345_v48  ;;  %v1347_v49 = vld [vmem:[%s6382_s7 + $0x1620] sm:$0xff] }
  0xcb   : > { %v1349_v50 = vld [vmem:[%s6382_s7 + $0x1640] sm:$0xff]  ;;  %1348 = vst [vmem:[%s6387_s8 + $0x588] sm:$0xff] %v1347_v49 }
  0xcc   : > { %v1351_v51 = vld [vmem:[%s6382_s7 + $0x1660] sm:$0xff]  ;;  %1350 = vst [vmem:[%s6387_s8 + $0x590] sm:$0xff] %v1349_v50 }
  0xcd   : > { %1352 = vst [vmem:[%s6387_s8 + $0x598] sm:$0xff] %v1351_v51  ;;  %v1353_v52 = vld [vmem:[%s6382_s7 + $0x1680] sm:$0xff] }
  0xce   : > { %v1355_v53 = vld [vmem:[%s6382_s7 + $0x16a0] sm:$0xff]  ;;  %1354 = vst [vmem:[%s6387_s8 + $0x5a0] sm:$0xff] %v1353_v52 }
  0xcf   : > { %v1357_v54 = vld [vmem:[%s6382_s7 + $0x16c0] sm:$0xff]  ;;  %1356 = vst [vmem:[%s6387_s8 + $0x5a8] sm:$0xff] %v1355_v53 }
  0xd0   : > { %1358 = vst [vmem:[%s6387_s8 + $0x5b0] sm:$0xff] %v1357_v54  ;;  %v1359_v55 = vld [vmem:[%s6382_s7 + $0x16e0] sm:$0xff] }
  0xd1   : > { %v1361_v56 = vld [vmem:[%s6382_s7 + $0x1700] sm:$0xff]  ;;  %1360 = vst [vmem:[%s6387_s8 + $0x5b8] sm:$0xff] %v1359_v55 }
  0xd2   : > { %v1363_v57 = vld [vmem:[%s6382_s7 + $0x1720] sm:$0xff]  ;;  %1362 = vst [vmem:[%s6387_s8 + $0x5c0] sm:$0xff] %v1361_v56 }
  0xd3   : > { %1364 = vst [vmem:[%s6387_s8 + $0x5c8] sm:$0xff] %v1363_v57  ;;  %v1365_v58 = vld [vmem:[%s6382_s7 + $0x1740] sm:$0xff] }
  0xd4   : > { %v1367_v59 = vld [vmem:[%s6382_s7 + $0x1760] sm:$0xff]  ;;  %1366 = vst [vmem:[%s6387_s8 + $0x5d0] sm:$0xff] %v1365_v58 }
  0xd5   : > { %v1369_v60 = vld [vmem:[%s6382_s7 + $0x1780] sm:$0xff]  ;;  %1368 = vst [vmem:[%s6387_s8 + $0x5d8] sm:$0xff] %v1367_v59 }
  0xd6   : > { %1370 = vst [vmem:[%s6387_s8 + $0x5e0] sm:$0xff] %v1369_v60  ;;  %v1371_v61 = vld [vmem:[%s6382_s7 + $0x17a0] sm:$0xff] }
  0xd7   : > { %v1373_v62 = vld [vmem:[%s6382_s7 + $0x17c0] sm:$0xff]  ;;  %1372 = vst [vmem:[%s6387_s8 + $0x5e8] sm:$0xff] %v1371_v61 }
  0xd8   : > { %v1375_v63 = vld [vmem:[%s6382_s7 + $0x17e0] sm:$0xff]  ;;  %1374 = vst [vmem:[%s6387_s8 + $0x5f0] sm:$0xff] %v1373_v62 }
  0xd9   : > { %1376 = vst [vmem:[%s6387_s8 + $0x5f8] sm:$0xff] %v1375_v63  ;;  %v1377_v0 = vld [vmem:[%s6382_s7 + $0x1800] sm:$0xff] }
  0xda   : > { %v1379_v1 = vld [vmem:[%s6382_s7 + $0x1820] sm:$0xff]  ;;  %1378 = vst [vmem:[%s6387_s8 + $0x600] sm:$0xff] %v1377_v0 }
  0xdb   : > { %v1381_v2 = vld [vmem:[%s6382_s7 + $0x1840] sm:$0xff]  ;;  %1380 = vst [vmem:[%s6387_s8 + $0x608] sm:$0xff] %v1379_v1 }
  0xdc   : > { %1382 = vst [vmem:[%s6387_s8 + $0x610] sm:$0xff] %v1381_v2  ;;  %v1383_v3 = vld [vmem:[%s6382_s7 + $0x1860] sm:$0xff] }
  0xdd   : > { %v1385_v4 = vld [vmem:[%s6382_s7 + $0x1880] sm:$0xff]  ;;  %1384 = vst [vmem:[%s6387_s8 + $0x618] sm:$0xff] %v1383_v3 }
  0xde   : > { %v1387_v5 = vld [vmem:[%s6382_s7 + $0x18a0] sm:$0xff]  ;;  %1386 = vst [vmem:[%s6387_s8 + $0x620] sm:$0xff] %v1385_v4 }
  0xdf   : > { %1388 = vst [vmem:[%s6387_s8 + $0x628] sm:$0xff] %v1387_v5  ;;  %v1389_v6 = vld [vmem:[%s6382_s7 + $0x18c0] sm:$0xff] }
  0xe0   : > { %v1391_v7 = vld [vmem:[%s6382_s7 + $0x18e0] sm:$0xff]  ;;  %1390 = vst [vmem:[%s6387_s8 + $0x630] sm:$0xff] %v1389_v6 }
  0xe1   : > { %v1393_v8 = vld [vmem:[%s6382_s7 + $0x1900] sm:$0xff]  ;;  %1392 = vst [vmem:[%s6387_s8 + $0x638] sm:$0xff] %v1391_v7 }
  0xe2   : > { %1394 = vst [vmem:[%s6387_s8 + $0x640] sm:$0xff] %v1393_v8  ;;  %v1395_v9 = vld [vmem:[%s6382_s7 + $0x1920] sm:$0xff] }
  0xe3   : > { %v1397_v10 = vld [vmem:[%s6382_s7 + $0x1940] sm:$0xff]  ;;  %1396 = vst [vmem:[%s6387_s8 + $0x648] sm:$0xff] %v1395_v9 }
  0xe4   : > { %v1399_v11 = vld [vmem:[%s6382_s7 + $0x1960] sm:$0xff]  ;;  %1398 = vst [vmem:[%s6387_s8 + $0x650] sm:$0xff] %v1397_v10 }
  0xe5   : > { %1400 = vst [vmem:[%s6387_s8 + $0x658] sm:$0xff] %v1399_v11  ;;  %v1401_v12 = vld [vmem:[%s6382_s7 + $0x1980] sm:$0xff] }
  0xe6   : > { %v1403_v13 = vld [vmem:[%s6382_s7 + $0x19a0] sm:$0xff]  ;;  %1402 = vst [vmem:[%s6387_s8 + $0x660] sm:$0xff] %v1401_v12 }
  0xe7   : > { %v1405_v14 = vld [vmem:[%s6382_s7 + $0x19c0] sm:$0xff]  ;;  %1404 = vst [vmem:[%s6387_s8 + $0x668] sm:$0xff] %v1403_v13 }
  0xe8   : > { %1406 = vst [vmem:[%s6387_s8 + $0x670] sm:$0xff] %v1405_v14  ;;  %v1407_v15 = vld [vmem:[%s6382_s7 + $0x19e0] sm:$0xff] }
  0xe9   : > { %v1409_v16 = vld [vmem:[%s6382_s7 + $0x1a00] sm:$0xff]  ;;  %1408 = vst [vmem:[%s6387_s8 + $0x678] sm:$0xff] %v1407_v15 }
  0xea   : > { %v1411_v17 = vld [vmem:[%s6382_s7 + $0x1a20] sm:$0xff]  ;;  %1410 = vst [vmem:[%s6387_s8 + $0x680] sm:$0xff] %v1409_v16 }
  0xeb   : > { %1412 = vst [vmem:[%s6387_s8 + $0x688] sm:$0xff] %v1411_v17  ;;  %v1413_v18 = vld [vmem:[%s6382_s7 + $0x1a40] sm:$0xff] }
  0xec   : > { %v1415_v19 = vld [vmem:[%s6382_s7 + $0x1a60] sm:$0xff]  ;;  %1414 = vst [vmem:[%s6387_s8 + $0x690] sm:$0xff] %v1413_v18 }
  0xed   : > { %v1417_v20 = vld [vmem:[%s6382_s7 + $0x1a80] sm:$0xff]  ;;  %1416 = vst [vmem:[%s6387_s8 + $0x698] sm:$0xff] %v1415_v19 }
  0xee   : > { %1418 = vst [vmem:[%s6387_s8 + $0x6a0] sm:$0xff] %v1417_v20  ;;  %v1419_v21 = vld [vmem:[%s6382_s7 + $0x1aa0] sm:$0xff] }
  0xef   : > { %v1421_v22 = vld [vmem:[%s6382_s7 + $0x1ac0] sm:$0xff]  ;;  %1420 = vst [vmem:[%s6387_s8 + $0x6a8] sm:$0xff] %v1419_v21 }
  0xf0   : > { %v1423_v23 = vld [vmem:[%s6382_s7 + $0x1ae0] sm:$0xff]  ;;  %1422 = vst [vmem:[%s6387_s8 + $0x6b0] sm:$0xff] %v1421_v22 }
  0xf1   : > { %1424 = vst [vmem:[%s6387_s8 + $0x6b8] sm:$0xff] %v1423_v23  ;;  %v1425_v24 = vld [vmem:[%s6382_s7 + $0x1b00] sm:$0xff] }
  0xf2   : > { %v1427_v25 = vld [vmem:[%s6382_s7 + $0x1b20] sm:$0xff]  ;;  %1426 = vst [vmem:[%s6387_s8 + $0x6c0] sm:$0xff] %v1425_v24 }
  0xf3   : > { %v1429_v26 = vld [vmem:[%s6382_s7 + $0x1b40] sm:$0xff]  ;;  %1428 = vst [vmem:[%s6387_s8 + $0x6c8] sm:$0xff] %v1427_v25 }
  0xf4   : > { %1430 = vst [vmem:[%s6387_s8 + $0x6d0] sm:$0xff] %v1429_v26  ;;  %v1431_v27 = vld [vmem:[%s6382_s7 + $0x1b60] sm:$0xff] }
  0xf5   : > { %v1433_v28 = vld [vmem:[%s6382_s7 + $0x1b80] sm:$0xff]  ;;  %1432 = vst [vmem:[%s6387_s8 + $0x6d8] sm:$0xff] %v1431_v27 }
  0xf6   : > { %v1435_v29 = vld [vmem:[%s6382_s7 + $0x1ba0] sm:$0xff]  ;;  %1434 = vst [vmem:[%s6387_s8 + $0x6e0] sm:$0xff] %v1433_v28 }
  0xf7   : > { %1436 = vst [vmem:[%s6387_s8 + $0x6e8] sm:$0xff] %v1435_v29  ;;  %v1437_v30 = vld [vmem:[%s6382_s7 + $0x1bc0] sm:$0xff] }
  0xf8   : > { %v1439_v31 = vld [vmem:[%s6382_s7 + $0x1be0] sm:$0xff]  ;;  %1438 = vst [vmem:[%s6387_s8 + $0x6f0] sm:$0xff] %v1437_v30 }
  0xf9   : > { %v1441_v32 = vld [vmem:[%s6382_s7 + $0x1c00] sm:$0xff]  ;;  %1440 = vst [vmem:[%s6387_s8 + $0x6f8] sm:$0xff] %v1439_v31 }
  0xfa   : > { %1442 = vst [vmem:[%s6387_s8 + $0x700] sm:$0xff] %v1441_v32  ;;  %v1443_v33 = vld [vmem:[%s6382_s7 + $0x1c20] sm:$0xff] }
  0xfb   : > { %v1445_v34 = vld [vmem:[%s6382_s7 + $0x1c40] sm:$0xff]  ;;  %1444 = vst [vmem:[%s6387_s8 + $0x708] sm:$0xff] %v1443_v33 }
  0xfc   : > { %v1447_v35 = vld [vmem:[%s6382_s7 + $0x1c60] sm:$0xff]  ;;  %1446 = vst [vmem:[%s6387_s8 + $0x710] sm:$0xff] %v1445_v34 }
  0xfd   : > { %1448 = vst [vmem:[%s6387_s8 + $0x718] sm:$0xff] %v1447_v35  ;;  %v1449_v36 = vld [vmem:[%s6382_s7 + $0x1c80] sm:$0xff] }
  0xfe   : > { %v1451_v37 = vld [vmem:[%s6382_s7 + $0x1ca0] sm:$0xff]  ;;  %1450 = vst [vmem:[%s6387_s8 + $0x720] sm:$0xff] %v1449_v36 }
  0xff   : > { %v1453_v38 = vld [vmem:[%s6382_s7 + $0x1cc0] sm:$0xff]  ;;  %1452 = vst [vmem:[%s6387_s8 + $0x728] sm:$0xff] %v1451_v37 }
 0x100   : > { %1454 = vst [vmem:[%s6387_s8 + $0x730] sm:$0xff] %v1453_v38  ;;  %v1455_v39 = vld [vmem:[%s6382_s7 + $0x1ce0] sm:$0xff] }
 0x101   : > { %v1457_v40 = vld [vmem:[%s6382_s7 + $0x1d00] sm:$0xff]  ;;  %1456 = vst [vmem:[%s6387_s8 + $0x738] sm:$0xff] %v1455_v39 }
 0x102   : > { %v1459_v41 = vld [vmem:[%s6382_s7 + $0x1d20] sm:$0xff]  ;;  %1458 = vst [vmem:[%s6387_s8 + $0x740] sm:$0xff] %v1457_v40 }
 0x103   : > { %1460 = vst [vmem:[%s6387_s8 + $0x748] sm:$0xff] %v1459_v41  ;;  %v1461_v42 = vld [vmem:[%s6382_s7 + $0x1d40] sm:$0xff] }
 0x104   : > { %v1463_v43 = vld [vmem:[%s6382_s7 + $0x1d60] sm:$0xff]  ;;  %1462 = vst [vmem:[%s6387_s8 + $0x750] sm:$0xff] %v1461_v42 }
 0x105   : > { %v1465_v44 = vld [vmem:[%s6382_s7 + $0x1d80] sm:$0xff]  ;;  %1464 = vst [vmem:[%s6387_s8 + $0x758] sm:$0xff] %v1463_v43 }
 0x106   : > { %1466 = vst [vmem:[%s6387_s8 + $0x760] sm:$0xff] %v1465_v44  ;;  %v1467_v45 = vld [vmem:[%s6382_s7 + $0x1da0] sm:$0xff] }
 0x107   : > { %v1469_v46 = vld [vmem:[%s6382_s7 + $0x1dc0] sm:$0xff]  ;;  %1468 = vst [vmem:[%s6387_s8 + $0x768] sm:$0xff] %v1467_v45 }
 0x108   : > { %v1471_v47 = vld [vmem:[%s6382_s7 + $0x1de0] sm:$0xff]  ;;  %1470 = vst [vmem:[%s6387_s8 + $0x770] sm:$0xff] %v1469_v46 }
 0x109   : > { %1472 = vst [vmem:[%s6387_s8 + $0x778] sm:$0xff] %v1471_v47  ;;  %v1473_v48 = vld [vmem:[%s6382_s7 + $0x1e00] sm:$0xff] }
 0x10a   : > { %v1475_v49 = vld [vmem:[%s6382_s7 + $0x1e20] sm:$0xff]  ;;  %1474 = vst [vmem:[%s6387_s8 + $0x780] sm:$0xff] %v1473_v48 }
 0x10b   : > { %v1477_v50 = vld [vmem:[%s6382_s7 + $0x1e40] sm:$0xff]  ;;  %1476 = vst [vmem:[%s6387_s8 + $0x788] sm:$0xff] %v1475_v49 }
 0x10c   : > { %1478 = vst [vmem:[%s6387_s8 + $0x790] sm:$0xff] %v1477_v50  ;;  %v1479_v51 = vld [vmem:[%s6382_s7 + $0x1e60] sm:$0xff] }
 0x10d   : > { %v1481_v52 = vld [vmem:[%s6382_s7 + $0x1e80] sm:$0xff]  ;;  %1480 = vst [vmem:[%s6387_s8 + $0x798] sm:$0xff] %v1479_v51 }
 0x10e   : > { %v1483_v53 = vld [vmem:[%s6382_s7 + $0x1ea0] sm:$0xff]  ;;  %1482 = vst [vmem:[%s6387_s8 + $0x7a0] sm:$0xff] %v1481_v52 }
 0x10f   : > { %1484 = vst [vmem:[%s6387_s8 + $0x7a8] sm:$0xff] %v1483_v53  ;;  %v1485_v54 = vld [vmem:[%s6382_s7 + $0x1ec0] sm:$0xff] }
 0x110   : > { %v1487_v55 = vld [vmem:[%s6382_s7 + $0x1ee0] sm:$0xff]  ;;  %1486 = vst [vmem:[%s6387_s8 + $0x7b0] sm:$0xff] %v1485_v54 }
 0x111   : > { %v1489_v56 = vld [vmem:[%s6382_s7 + $0x1f00] sm:$0xff]  ;;  %1488 = vst [vmem:[%s6387_s8 + $0x7b8] sm:$0xff] %v1487_v55 }
 0x112   : > { %1490 = vst [vmem:[%s6387_s8 + $0x7c0] sm:$0xff] %v1489_v56  ;;  %v1491_v57 = vld [vmem:[%s6382_s7 + $0x1f20] sm:$0xff] }
 0x113   : > { %v1493_v58 = vld [vmem:[%s6382_s7 + $0x1f40] sm:$0xff]  ;;  %1492 = vst [vmem:[%s6387_s8 + $0x7c8] sm:$0xff] %v1491_v57 }
 0x114   : > { %v1495_v59 = vld [vmem:[%s6382_s7 + $0x1f60] sm:$0xff]  ;;  %1494 = vst [vmem:[%s6387_s8 + $0x7d0] sm:$0xff] %v1493_v58 }
 0x115   : > { %1496 = vst [vmem:[%s6387_s8 + $0x7d8] sm:$0xff] %v1495_v59  ;;  %v1497_v60 = vld [vmem:[%s6382_s7 + $0x1f80] sm:$0xff] }
 0x116   : > { %v1499_v61 = vld [vmem:[%s6382_s7 + $0x1fa0] sm:$0xff]  ;;  %1498 = vst [vmem:[%s6387_s8 + $0x7e0] sm:$0xff] %v1497_v60 }
 0x117   : > { %v1501_v62 = vld [vmem:[%s6382_s7 + $0x1fc0] sm:$0xff]  ;;  %1500 = vst [vmem:[%s6387_s8 + $0x7e8] sm:$0xff] %v1499_v61 }
 0x118   : > { %1502 = vst [vmem:[%s6387_s8 + $0x7f0] sm:$0xff] %v1501_v62  ;;  %v1503_v63 = vld [vmem:[%s6382_s7 + $0x1fe0] sm:$0xff] }
 0x119   : > { %v1505_v0 = vld [vmem:[%s6382_s7 + $0x2000] sm:$0xff]  ;;  %1504 = vst [vmem:[%s6387_s8 + $0x7f8] sm:$0xff] %v1503_v63 }
 0x11a   : > { %v1507_v1 = vld [vmem:[%s6382_s7 + $0x2020] sm:$0xff]  ;;  %1506 = vst [vmem:[%s6387_s8 + $0x800] sm:$0xff] %v1505_v0 }
 0x11b   : > { %1508 = vst [vmem:[%s6387_s8 + $0x808] sm:$0xff] %v1507_v1  ;;  %v1509_v2 = vld [vmem:[%s6382_s7 + $0x2040] sm:$0xff] }
 0x11c   : > { %v1511_v3 = vld [vmem:[%s6382_s7 + $0x2060] sm:$0xff]  ;;  %1510 = vst [vmem:[%s6387_s8 + $0x810] sm:$0xff] %v1509_v2 }
 0x11d   : > { %v1513_v4 = vld [vmem:[%s6382_s7 + $0x2080] sm:$0xff]  ;;  %1512 = vst [vmem:[%s6387_s8 + $0x818] sm:$0xff] %v1511_v3 }
 0x11e   : > { %1514 = vst [vmem:[%s6387_s8 + $0x820] sm:$0xff] %v1513_v4  ;;  %v1515_v5 = vld [vmem:[%s6382_s7 + $0x20a0] sm:$0xff] }
 0x11f   : > { %v1517_v6 = vld [vmem:[%s6382_s7 + $0x20c0] sm:$0xff]  ;;  %1516 = vst [vmem:[%s6387_s8 + $0x828] sm:$0xff] %v1515_v5 }
 0x120   : > { %v1519_v7 = vld [vmem:[%s6382_s7 + $0x20e0] sm:$0xff]  ;;  %1518 = vst [vmem:[%s6387_s8 + $0x830] sm:$0xff] %v1517_v6 }
 0x121   : > { %1520 = vst [vmem:[%s6387_s8 + $0x838] sm:$0xff] %v1519_v7  ;;  %v1521_v8 = vld [vmem:[%s6382_s7 + $0x2100] sm:$0xff] }
 0x122   : > { %v1523_v9 = vld [vmem:[%s6382_s7 + $0x2120] sm:$0xff]  ;;  %1522 = vst [vmem:[%s6387_s8 + $0x840] sm:$0xff] %v1521_v8 }
 0x123   : > { %v1525_v10 = vld [vmem:[%s6382_s7 + $0x2140] sm:$0xff]  ;;  %1524 = vst [vmem:[%s6387_s8 + $0x848] sm:$0xff] %v1523_v9 }
 0x124   : > { %1526 = vst [vmem:[%s6387_s8 + $0x850] sm:$0xff] %v1525_v10  ;;  %v1527_v11 = vld [vmem:[%s6382_s7 + $0x2160] sm:$0xff] }
 0x125   : > { %v1529_v12 = vld [vmem:[%s6382_s7 + $0x2180] sm:$0xff]  ;;  %1528 = vst [vmem:[%s6387_s8 + $0x858] sm:$0xff] %v1527_v11 }
 0x126   : > { %v1531_v13 = vld [vmem:[%s6382_s7 + $0x21a0] sm:$0xff]  ;;  %1530 = vst [vmem:[%s6387_s8 + $0x860] sm:$0xff] %v1529_v12 }
 0x127   : > { %1532 = vst [vmem:[%s6387_s8 + $0x868] sm:$0xff] %v1531_v13  ;;  %v1533_v14 = vld [vmem:[%s6382_s7 + $0x21c0] sm:$0xff] }
 0x128   : > { %v1535_v15 = vld [vmem:[%s6382_s7 + $0x21e0] sm:$0xff]  ;;  %1534 = vst [vmem:[%s6387_s8 + $0x870] sm:$0xff] %v1533_v14 }
 0x129   : > { %v1537_v16 = vld [vmem:[%s6382_s7 + $0x2200] sm:$0xff]  ;;  %1536 = vst [vmem:[%s6387_s8 + $0x878] sm:$0xff] %v1535_v15 }
 0x12a   : > { %1538 = vst [vmem:[%s6387_s8 + $0x880] sm:$0xff] %v1537_v16  ;;  %v1539_v17 = vld [vmem:[%s6382_s7 + $0x2220] sm:$0xff] }
 0x12b   : > { %v1541_v18 = vld [vmem:[%s6382_s7 + $0x2240] sm:$0xff]  ;;  %1540 = vst [vmem:[%s6387_s8 + $0x888] sm:$0xff] %v1539_v17 }
 0x12c   : > { %v1543_v19 = vld [vmem:[%s6382_s7 + $0x2260] sm:$0xff]  ;;  %1542 = vst [vmem:[%s6387_s8 + $0x890] sm:$0xff] %v1541_v18 }
 0x12d   : > { %1544 = vst [vmem:[%s6387_s8 + $0x898] sm:$0xff] %v1543_v19  ;;  %v1545_v20 = vld [vmem:[%s6382_s7 + $0x2280] sm:$0xff] }
 0x12e   : > { %v1547_v21 = vld [vmem:[%s6382_s7 + $0x22a0] sm:$0xff]  ;;  %1546 = vst [vmem:[%s6387_s8 + $0x8a0] sm:$0xff] %v1545_v20 }
 0x12f   : > { %v1549_v22 = vld [vmem:[%s6382_s7 + $0x22c0] sm:$0xff]  ;;  %1548 = vst [vmem:[%s6387_s8 + $0x8a8] sm:$0xff] %v1547_v21 }
 0x130   : > { %1550 = vst [vmem:[%s6387_s8 + $0x8b0] sm:$0xff] %v1549_v22  ;;  %v1551_v23 = vld [vmem:[%s6382_s7 + $0x22e0] sm:$0xff] }
 0x131   : > { %v1553_v24 = vld [vmem:[%s6382_s7 + $0x2300] sm:$0xff]  ;;  %1552 = vst [vmem:[%s6387_s8 + $0x8b8] sm:$0xff] %v1551_v23 }
 0x132   : > { %v1555_v25 = vld [vmem:[%s6382_s7 + $0x2320] sm:$0xff]  ;;  %1554 = vst [vmem:[%s6387_s8 + $0x8c0] sm:$0xff] %v1553_v24 }
 0x133   : > { %1556 = vst [vmem:[%s6387_s8 + $0x8c8] sm:$0xff] %v1555_v25  ;;  %v1557_v26 = vld [vmem:[%s6382_s7 + $0x2340] sm:$0xff] }
 0x134   : > { %v1559_v27 = vld [vmem:[%s6382_s7 + $0x2360] sm:$0xff]  ;;  %1558 = vst [vmem:[%s6387_s8 + $0x8d0] sm:$0xff] %v1557_v26 }
 0x135   : > { %v1561_v28 = vld [vmem:[%s6382_s7 + $0x2380] sm:$0xff]  ;;  %1560 = vst [vmem:[%s6387_s8 + $0x8d8] sm:$0xff] %v1559_v27 }
 0x136   : > { %1562 = vst [vmem:[%s6387_s8 + $0x8e0] sm:$0xff] %v1561_v28  ;;  %v1563_v29 = vld [vmem:[%s6382_s7 + $0x23a0] sm:$0xff] }
 0x137   : > { %v1565_v30 = vld [vmem:[%s6382_s7 + $0x23c0] sm:$0xff]  ;;  %1564 = vst [vmem:[%s6387_s8 + $0x8e8] sm:$0xff] %v1563_v29 }
 0x138   : > { %v1567_v31 = vld [vmem:[%s6382_s7 + $0x23e0] sm:$0xff]  ;;  %1566 = vst [vmem:[%s6387_s8 + $0x8f0] sm:$0xff] %v1565_v30 }
 0x139   : > { %1568 = vst [vmem:[%s6387_s8 + $0x8f8] sm:$0xff] %v1567_v31  ;;  %v1569_v32 = vld [vmem:[%s6382_s7 + $0x2400] sm:$0xff] }
 0x13a   : > { %v1571_v33 = vld [vmem:[%s6382_s7 + $0x2420] sm:$0xff]  ;;  %1570 = vst [vmem:[%s6387_s8 + $0x900] sm:$0xff] %v1569_v32 }
 0x13b   : > { %v1573_v34 = vld [vmem:[%s6382_s7 + $0x2440] sm:$0xff]  ;;  %1572 = vst [vmem:[%s6387_s8 + $0x908] sm:$0xff] %v1571_v33 }
 0x13c   : > { %1574 = vst [vmem:[%s6387_s8 + $0x910] sm:$0xff] %v1573_v34  ;;  %v1575_v35 = vld [vmem:[%s6382_s7 + $0x2460] sm:$0xff] }
 0x13d   : > { %v1577_v36 = vld [vmem:[%s6382_s7 + $0x2480] sm:$0xff]  ;;  %1576 = vst [vmem:[%s6387_s8 + $0x918] sm:$0xff] %v1575_v35 }
 0x13e   : > { %v1579_v37 = vld [vmem:[%s6382_s7 + $0x24a0] sm:$0xff]  ;;  %1578 = vst [vmem:[%s6387_s8 + $0x920] sm:$0xff] %v1577_v36 }
 0x13f   : > { %1580 = vst [vmem:[%s6387_s8 + $0x928] sm:$0xff] %v1579_v37  ;;  %v1581_v38 = vld [vmem:[%s6382_s7 + $0x24c0] sm:$0xff] }
 0x140   : > { %v1583_v39 = vld [vmem:[%s6382_s7 + $0x24e0] sm:$0xff]  ;;  %1582 = vst [vmem:[%s6387_s8 + $0x930] sm:$0xff] %v1581_v38 }
 0x141   : > { %v1585_v40 = vld [vmem:[%s6382_s7 + $0x2500] sm:$0xff]  ;;  %1584 = vst [vmem:[%s6387_s8 + $0x938] sm:$0xff] %v1583_v39 }
 0x142   : > { %1586 = vst [vmem:[%s6387_s8 + $0x940] sm:$0xff] %v1585_v40  ;;  %v1587_v41 = vld [vmem:[%s6382_s7 + $0x2520] sm:$0xff] }
 0x143   : > { %v1589_v42 = vld [vmem:[%s6382_s7 + $0x2540] sm:$0xff]  ;;  %1588 = vst [vmem:[%s6387_s8 + $0x948] sm:$0xff] %v1587_v41 }
 0x144   : > { %v1591_v43 = vld [vmem:[%s6382_s7 + $0x2560] sm:$0xff]  ;;  %1590 = vst [vmem:[%s6387_s8 + $0x950] sm:$0xff] %v1589_v42 }
 0x145   : > { %1592 = vst [vmem:[%s6387_s8 + $0x958] sm:$0xff] %v1591_v43  ;;  %v1593_v44 = vld [vmem:[%s6382_s7 + $0x2580] sm:$0xff] }
 0x146   : > { %v1595_v45 = vld [vmem:[%s6382_s7 + $0x25a0] sm:$0xff]  ;;  %1594 = vst [vmem:[%s6387_s8 + $0x960] sm:$0xff] %v1593_v44 }
 0x147   : > { %v1597_v46 = vld [vmem:[%s6382_s7 + $0x25c0] sm:$0xff]  ;;  %1596 = vst [vmem:[%s6387_s8 + $0x968] sm:$0xff] %v1595_v45 }
 0x148   : > { %1598 = vst [vmem:[%s6387_s8 + $0x970] sm:$0xff] %v1597_v46  ;;  %v1599_v47 = vld [vmem:[%s6382_s7 + $0x25e0] sm:$0xff] }
 0x149   : > { %v1601_v48 = vld [vmem:[%s6382_s7 + $0x2600] sm:$0xff]  ;;  %1600 = vst [vmem:[%s6387_s8 + $0x978] sm:$0xff] %v1599_v47 }
 0x14a   : > { %v1603_v49 = vld [vmem:[%s6382_s7 + $0x2620] sm:$0xff]  ;;  %1602 = vst [vmem:[%s6387_s8 + $0x980] sm:$0xff] %v1601_v48 }
 0x14b   : > { %1604 = vst [vmem:[%s6387_s8 + $0x988] sm:$0xff] %v1603_v49  ;;  %v1605_v50 = vld [vmem:[%s6382_s7 + $0x2640] sm:$0xff] }
 0x14c   : > { %v1607_v51 = vld [vmem:[%s6382_s7 + $0x2660] sm:$0xff]  ;;  %1606 = vst [vmem:[%s6387_s8 + $0x990] sm:$0xff] %v1605_v50 }
 0x14d   : > { %v1609_v52 = vld [vmem:[%s6382_s7 + $0x2680] sm:$0xff]  ;;  %1608 = vst [vmem:[%s6387_s8 + $0x998] sm:$0xff] %v1607_v51 }
 0x14e   : > { %1610 = vst [vmem:[%s6387_s8 + $0x9a0] sm:$0xff] %v1609_v52  ;;  %v1611_v53 = vld [vmem:[%s6382_s7 + $0x26a0] sm:$0xff] }
 0x14f   : > { %v1613_v54 = vld [vmem:[%s6382_s7 + $0x26c0] sm:$0xff]  ;;  %1612 = vst [vmem:[%s6387_s8 + $0x9a8] sm:$0xff] %v1611_v53 }
 0x150   : > { %v1615_v55 = vld [vmem:[%s6382_s7 + $0x26e0] sm:$0xff]  ;;  %1614 = vst [vmem:[%s6387_s8 + $0x9b0] sm:$0xff] %v1613_v54 }
 0x151   : > { %1616 = vst [vmem:[%s6387_s8 + $0x9b8] sm:$0xff] %v1615_v55  ;;  %v1617_v56 = vld [vmem:[%s6382_s7 + $0x2700] sm:$0xff] }
 0x152   : > { %v1619_v57 = vld [vmem:[%s6382_s7 + $0x2720] sm:$0xff]  ;;  %1618 = vst [vmem:[%s6387_s8 + $0x9c0] sm:$0xff] %v1617_v56 }
 0x153   : > { %v1621_v58 = vld [vmem:[%s6382_s7 + $0x2740] sm:$0xff]  ;;  %1620 = vst [vmem:[%s6387_s8 + $0x9c8] sm:$0xff] %v1619_v57 }
 0x154   : > { %1622 = vst [vmem:[%s6387_s8 + $0x9d0] sm:$0xff] %v1621_v58  ;;  %v1623_v59 = vld [vmem:[%s6382_s7 + $0x2760] sm:$0xff] }
 0x155   : > { %v1625_v60 = vld [vmem:[%s6382_s7 + $0x2780] sm:$0xff]  ;;  %1624 = vst [vmem:[%s6387_s8 + $0x9d8] sm:$0xff] %v1623_v59 }
 0x156   : > { %v1627_v61 = vld [vmem:[%s6382_s7 + $0x27a0] sm:$0xff]  ;;  %1626 = vst [vmem:[%s6387_s8 + $0x9e0] sm:$0xff] %v1625_v60 }
 0x157   : > { %1628 = vst [vmem:[%s6387_s8 + $0x9e8] sm:$0xff] %v1627_v61  ;;  %v1629_v62 = vld [vmem:[%s6382_s7 + $0x27c0] sm:$0xff] }
 0x158   : > { %v1631_v63 = vld [vmem:[%s6382_s7 + $0x27e0] sm:$0xff]  ;;  %1630 = vst [vmem:[%s6387_s8 + $0x9f0] sm:$0xff] %v1629_v62 }
 0x159   : > { %v1633_v0 = vld [vmem:[%s6382_s7 + $0x2800] sm:$0xff]  ;;  %1632 = vst [vmem:[%s6387_s8 + $0x9f8] sm:$0xff] %v1631_v63 }
 0x15a   : > { %1634 = vst [vmem:[%s6387_s8 + $0xa00] sm:$0xff] %v1633_v0  ;;  %v1635_v1 = vld [vmem:[%s6382_s7 + $0x2820] sm:$0xff] }
 0x15b   : > { %v1637_v2 = vld [vmem:[%s6382_s7 + $0x2840] sm:$0xff]  ;;  %1636 = vst [vmem:[%s6387_s8 + $0xa08] sm:$0xff] %v1635_v1 }
 0x15c   : > { %v1639_v3 = vld [vmem:[%s6382_s7 + $0x2860] sm:$0xff]  ;;  %1638 = vst [vmem:[%s6387_s8 + $0xa10] sm:$0xff] %v1637_v2 }
 0x15d   : > { %1640 = vst [vmem:[%s6387_s8 + $0xa18] sm:$0xff] %v1639_v3  ;;  %v1641_v4 = vld [vmem:[%s6382_s7 + $0x2880] sm:$0xff] }
 0x15e   : > { %v1643_v5 = vld [vmem:[%s6382_s7 + $0x28a0] sm:$0xff]  ;;  %1642 = vst [vmem:[%s6387_s8 + $0xa20] sm:$0xff] %v1641_v4 }
 0x15f   : > { %v1645_v6 = vld [vmem:[%s6382_s7 + $0x28c0] sm:$0xff]  ;;  %1644 = vst [vmem:[%s6387_s8 + $0xa28] sm:$0xff] %v1643_v5 }
 0x160   : > { %1646 = vst [vmem:[%s6387_s8 + $0xa30] sm:$0xff] %v1645_v6  ;;  %v1647_v7 = vld [vmem:[%s6382_s7 + $0x28e0] sm:$0xff] }
 0x161   : > { %v1649_v8 = vld [vmem:[%s6382_s7 + $0x2900] sm:$0xff]  ;;  %1648 = vst [vmem:[%s6387_s8 + $0xa38] sm:$0xff] %v1647_v7 }
 0x162   : > { %v1651_v9 = vld [vmem:[%s6382_s7 + $0x2920] sm:$0xff]  ;;  %1650 = vst [vmem:[%s6387_s8 + $0xa40] sm:$0xff] %v1649_v8 }
 0x163   : > { %1652 = vst [vmem:[%s6387_s8 + $0xa48] sm:$0xff] %v1651_v9  ;;  %v1653_v10 = vld [vmem:[%s6382_s7 + $0x2940] sm:$0xff] }
 0x164   : > { %v1655_v11 = vld [vmem:[%s6382_s7 + $0x2960] sm:$0xff]  ;;  %1654 = vst [vmem:[%s6387_s8 + $0xa50] sm:$0xff] %v1653_v10 }
 0x165   : > { %v1657_v12 = vld [vmem:[%s6382_s7 + $0x2980] sm:$0xff]  ;;  %1656 = vst [vmem:[%s6387_s8 + $0xa58] sm:$0xff] %v1655_v11 }
 0x166   : > { %1658 = vst [vmem:[%s6387_s8 + $0xa60] sm:$0xff] %v1657_v12  ;;  %v1659_v13 = vld [vmem:[%s6382_s7 + $0x29a0] sm:$0xff] }
 0x167   : > { %v1661_v14 = vld [vmem:[%s6382_s7 + $0x29c0] sm:$0xff]  ;;  %1660 = vst [vmem:[%s6387_s8 + $0xa68] sm:$0xff] %v1659_v13 }
 0x168   : > { %v1663_v15 = vld [vmem:[%s6382_s7 + $0x29e0] sm:$0xff]  ;;  %1662 = vst [vmem:[%s6387_s8 + $0xa70] sm:$0xff] %v1661_v14 }
 0x169   : > { %1664 = vst [vmem:[%s6387_s8 + $0xa78] sm:$0xff] %v1663_v15  ;;  %v1665_v16 = vld [vmem:[%s6382_s7 + $0x2a00] sm:$0xff] }
 0x16a   : > { %v1667_v17 = vld [vmem:[%s6382_s7 + $0x2a20] sm:$0xff]  ;;  %1666 = vst [vmem:[%s6387_s8 + $0xa80] sm:$0xff] %v1665_v16 }
 0x16b   : > { %v1669_v18 = vld [vmem:[%s6382_s7 + $0x2a40] sm:$0xff]  ;;  %1668 = vst [vmem:[%s6387_s8 + $0xa88] sm:$0xff] %v1667_v17 }
 0x16c   : > { %1670 = vst [vmem:[%s6387_s8 + $0xa90] sm:$0xff] %v1669_v18  ;;  %v1671_v19 = vld [vmem:[%s6382_s7 + $0x2a60] sm:$0xff] }
 0x16d   : > { %v1673_v20 = vld [vmem:[%s6382_s7 + $0x2a80] sm:$0xff]  ;;  %1672 = vst [vmem:[%s6387_s8 + $0xa98] sm:$0xff] %v1671_v19 }
 0x16e   : > { %v1675_v21 = vld [vmem:[%s6382_s7 + $0x2aa0] sm:$0xff]  ;;  %1674 = vst [vmem:[%s6387_s8 + $0xaa0] sm:$0xff] %v1673_v20 }
 0x16f   : > { %1676 = vst [vmem:[%s6387_s8 + $0xaa8] sm:$0xff] %v1675_v21  ;;  %v1677_v22 = vld [vmem:[%s6382_s7 + $0x2ac0] sm:$0xff] }
 0x170   : > { %v1679_v23 = vld [vmem:[%s6382_s7 + $0x2ae0] sm:$0xff]  ;;  %1678 = vst [vmem:[%s6387_s8 + $0xab0] sm:$0xff] %v1677_v22 }
 0x171   : > { %v1681_v24 = vld [vmem:[%s6382_s7 + $0x2b00] sm:$0xff]  ;;  %1680 = vst [vmem:[%s6387_s8 + $0xab8] sm:$0xff] %v1679_v23 }
 0x172   : > { %1682 = vst [vmem:[%s6387_s8 + $0xac0] sm:$0xff] %v1681_v24  ;;  %v1683_v25 = vld [vmem:[%s6382_s7 + $0x2b20] sm:$0xff] }
 0x173   : > { %v1685_v26 = vld [vmem:[%s6382_s7 + $0x2b40] sm:$0xff]  ;;  %1684 = vst [vmem:[%s6387_s8 + $0xac8] sm:$0xff] %v1683_v25 }
 0x174   : > { %v1687_v27 = vld [vmem:[%s6382_s7 + $0x2b60] sm:$0xff]  ;;  %1686 = vst [vmem:[%s6387_s8 + $0xad0] sm:$0xff] %v1685_v26 }
 0x175   : > { %1688 = vst [vmem:[%s6387_s8 + $0xad8] sm:$0xff] %v1687_v27  ;;  %v1689_v28 = vld [vmem:[%s6382_s7 + $0x2b80] sm:$0xff] }
 0x176   : > { %v1691_v29 = vld [vmem:[%s6382_s7 + $0x2ba0] sm:$0xff]  ;;  %1690 = vst [vmem:[%s6387_s8 + $0xae0] sm:$0xff] %v1689_v28 }
 0x177   : > { %v1693_v30 = vld [vmem:[%s6382_s7 + $0x2bc0] sm:$0xff]  ;;  %1692 = vst [vmem:[%s6387_s8 + $0xae8] sm:$0xff] %v1691_v29 }
 0x178   : > { %1694 = vst [vmem:[%s6387_s8 + $0xaf0] sm:$0xff] %v1693_v30  ;;  %v1695_v31 = vld [vmem:[%s6382_s7 + $0x2be0] sm:$0xff] }
 0x179   : > { %v1697_v32 = vld [vmem:[%s6382_s7 + $0x2c00] sm:$0xff]  ;;  %1696 = vst [vmem:[%s6387_s8 + $0xaf8] sm:$0xff] %v1695_v31 }
 0x17a   : > { %v1699_v33 = vld [vmem:[%s6382_s7 + $0x2c20] sm:$0xff]  ;;  %1698 = vst [vmem:[%s6387_s8 + $0xb00] sm:$0xff] %v1697_v32 }
 0x17b   : > { %1700 = vst [vmem:[%s6387_s8 + $0xb08] sm:$0xff] %v1699_v33  ;;  %v1701_v34 = vld [vmem:[%s6382_s7 + $0x2c40] sm:$0xff] }
 0x17c   : > { %v1703_v35 = vld [vmem:[%s6382_s7 + $0x2c60] sm:$0xff]  ;;  %1702 = vst [vmem:[%s6387_s8 + $0xb10] sm:$0xff] %v1701_v34 }
 0x17d   : > { %v1705_v36 = vld [vmem:[%s6382_s7 + $0x2c80] sm:$0xff]  ;;  %1704 = vst [vmem:[%s6387_s8 + $0xb18] sm:$0xff] %v1703_v35 }
 0x17e   : > { %1706 = vst [vmem:[%s6387_s8 + $0xb20] sm:$0xff] %v1705_v36  ;;  %v1707_v37 = vld [vmem:[%s6382_s7 + $0x2ca0] sm:$0xff] }
 0x17f   : > { %v1709_v38 = vld [vmem:[%s6382_s7 + $0x2cc0] sm:$0xff]  ;;  %1708 = vst [vmem:[%s6387_s8 + $0xb28] sm:$0xff] %v1707_v37 }
 0x180   : > { %v1711_v39 = vld [vmem:[%s6382_s7 + $0x2ce0] sm:$0xff]  ;;  %1710 = vst [vmem:[%s6387_s8 + $0xb30] sm:$0xff] %v1709_v38 }
 0x181   : > { %1712 = vst [vmem:[%s6387_s8 + $0xb38] sm:$0xff] %v1711_v39  ;;  %v1713_v40 = vld [vmem:[%s6382_s7 + $0x2d00] sm:$0xff] }
 0x182   : > { %v1715_v41 = vld [vmem:[%s6382_s7 + $0x2d20] sm:$0xff]  ;;  %1714 = vst [vmem:[%s6387_s8 + $0xb40] sm:$0xff] %v1713_v40 }
 0x183   : > { %v1717_v42 = vld [vmem:[%s6382_s7 + $0x2d40] sm:$0xff]  ;;  %1716 = vst [vmem:[%s6387_s8 + $0xb48] sm:$0xff] %v1715_v41 }
 0x184   : > { %1718 = vst [vmem:[%s6387_s8 + $0xb50] sm:$0xff] %v1717_v42  ;;  %v1719_v43 = vld [vmem:[%s6382_s7 + $0x2d60] sm:$0xff] }
 0x185   : > { %v1721_v44 = vld [vmem:[%s6382_s7 + $0x2d80] sm:$0xff]  ;;  %1720 = vst [vmem:[%s6387_s8 + $0xb58] sm:$0xff] %v1719_v43 }
 0x186   : > { %v1723_v45 = vld [vmem:[%s6382_s7 + $0x2da0] sm:$0xff]  ;;  %1722 = vst [vmem:[%s6387_s8 + $0xb60] sm:$0xff] %v1721_v44 }
 0x187   : > { %1724 = vst [vmem:[%s6387_s8 + $0xb68] sm:$0xff] %v1723_v45  ;;  %v1725_v46 = vld [vmem:[%s6382_s7 + $0x2dc0] sm:$0xff] }
 0x188   : > { %v1727_v47 = vld [vmem:[%s6382_s7 + $0x2de0] sm:$0xff]  ;;  %1726 = vst [vmem:[%s6387_s8 + $0xb70] sm:$0xff] %v1725_v46 }
 0x189   : > { %v1729_v48 = vld [vmem:[%s6382_s7 + $0x2e00] sm:$0xff]  ;;  %1728 = vst [vmem:[%s6387_s8 + $0xb78] sm:$0xff] %v1727_v47 }
 0x18a   : > { %1730 = vst [vmem:[%s6387_s8 + $0xb80] sm:$0xff] %v1729_v48  ;;  %v1731_v49 = vld [vmem:[%s6382_s7 + $0x2e20] sm:$0xff] }
 0x18b   : > { %v1733_v50 = vld [vmem:[%s6382_s7 + $0x2e40] sm:$0xff]  ;;  %1732 = vst [vmem:[%s6387_s8 + $0xb88] sm:$0xff] %v1731_v49 }
 0x18c   : > { %v1735_v51 = vld [vmem:[%s6382_s7 + $0x2e60] sm:$0xff]  ;;  %1734 = vst [vmem:[%s6387_s8 + $0xb90] sm:$0xff] %v1733_v50 }
 0x18d   : > { %1736 = vst [vmem:[%s6387_s8 + $0xb98] sm:$0xff] %v1735_v51  ;;  %v1737_v52 = vld [vmem:[%s6382_s7 + $0x2e80] sm:$0xff] }
 0x18e   : > { %v1739_v53 = vld [vmem:[%s6382_s7 + $0x2ea0] sm:$0xff]  ;;  %1738 = vst [vmem:[%s6387_s8 + $0xba0] sm:$0xff] %v1737_v52 }
 0x18f   : > { %v1741_v54 = vld [vmem:[%s6382_s7 + $0x2ec0] sm:$0xff]  ;;  %1740 = vst [vmem:[%s6387_s8 + $0xba8] sm:$0xff] %v1739_v53 }
 0x190   : > { %1742 = vst [vmem:[%s6387_s8 + $0xbb0] sm:$0xff] %v1741_v54  ;;  %v1743_v55 = vld [vmem:[%s6382_s7 + $0x2ee0] sm:$0xff] }
 0x191   : > { %v1745_v56 = vld [vmem:[%s6382_s7 + $0x2f00] sm:$0xff]  ;;  %1744 = vst [vmem:[%s6387_s8 + $0xbb8] sm:$0xff] %v1743_v55 }
 0x192   : > { %v1747_v57 = vld [vmem:[%s6382_s7 + $0x2f20] sm:$0xff]  ;;  %1746 = vst [vmem:[%s6387_s8 + $0xbc0] sm:$0xff] %v1745_v56 }
 0x193   : > { %1748 = vst [vmem:[%s6387_s8 + $0xbc8] sm:$0xff] %v1747_v57  ;;  %v1749_v58 = vld [vmem:[%s6382_s7 + $0x2f40] sm:$0xff] }
 0x194   : > { %v1751_v59 = vld [vmem:[%s6382_s7 + $0x2f60] sm:$0xff]  ;;  %1750 = vst [vmem:[%s6387_s8 + $0xbd0] sm:$0xff] %v1749_v58 }
 0x195   : > { %v1753_v60 = vld [vmem:[%s6382_s7 + $0x2f80] sm:$0xff]  ;;  %1752 = vst [vmem:[%s6387_s8 + $0xbd8] sm:$0xff] %v1751_v59 }
 0x196   : > { %1754 = vst [vmem:[%s6387_s8 + $0xbe0] sm:$0xff] %v1753_v60  ;;  %v1755_v61 = vld [vmem:[%s6382_s7 + $0x2fa0] sm:$0xff] }
 0x197   : > { %v1757_v62 = vld [vmem:[%s6382_s7 + $0x2fc0] sm:$0xff]  ;;  %1756 = vst [vmem:[%s6387_s8 + $0xbe8] sm:$0xff] %v1755_v61 }
 0x198   : > { %v1759_v63 = vld [vmem:[%s6382_s7 + $0x2fe0] sm:$0xff]  ;;  %1758 = vst [vmem:[%s6387_s8 + $0xbf0] sm:$0xff] %v1757_v62 }
 0x199   : > { %1760 = vst [vmem:[%s6387_s8 + $0xbf8] sm:$0xff] %v1759_v63  ;;  %v1761_v0 = vld [vmem:[%s6382_s7 + $0x3000] sm:$0xff] }
 0x19a   : > { %v1763_v1 = vld [vmem:[%s6382_s7 + $0x3020] sm:$0xff]  ;;  %1762 = vst [vmem:[%s6387_s8 + $0xc00] sm:$0xff] %v1761_v0 }
 0x19b   : > { %v1765_v2 = vld [vmem:[%s6382_s7 + $0x3040] sm:$0xff]  ;;  %1764 = vst [vmem:[%s6387_s8 + $0xc08] sm:$0xff] %v1763_v1 }
 0x19c   : > { %1766 = vst [vmem:[%s6387_s8 + $0xc10] sm:$0xff] %v1765_v2  ;;  %v1767_v3 = vld [vmem:[%s6382_s7 + $0x3060] sm:$0xff] }
 0x19d   : > { %v1769_v4 = vld [vmem:[%s6382_s7 + $0x3080] sm:$0xff]  ;;  %1768 = vst [vmem:[%s6387_s8 + $0xc18] sm:$0xff] %v1767_v3 }
 0x19e   : > { %v1771_v5 = vld [vmem:[%s6382_s7 + $0x30a0] sm:$0xff]  ;;  %1770 = vst [vmem:[%s6387_s8 + $0xc20] sm:$0xff] %v1769_v4 }
 0x19f   : > { %1772 = vst [vmem:[%s6387_s8 + $0xc28] sm:$0xff] %v1771_v5  ;;  %v1773_v6 = vld [vmem:[%s6382_s7 + $0x30c0] sm:$0xff] }
 0x1a0   : > { %v1775_v7 = vld [vmem:[%s6382_s7 + $0x30e0] sm:$0xff]  ;;  %1774 = vst [vmem:[%s6387_s8 + $0xc30] sm:$0xff] %v1773_v6 }
 0x1a1   : > { %1776 = vst [vmem:[%s6387_s8 + $0xc38] sm:$0xff] %v1775_v7 }
 0x1a2 PF: > { %p5138_p7 = scmp.ge.s32.totalorder %s6298_s18, 1  ;;  %p1793_p8 = scmp.lt.s32.totalorder %s6298_s18, 13 }
 0x1a4   : > { %p1794_p9 = pnand %p5138_p7, %p1793_p8 }
 0x1a5   : > { %s1800_s9 = sand.u32 (!%p1794_p9), 1, %s6274_s12   ;;  %p1846_p10 = scmp.lt.s32.totalorder (!%p1794_p9), %s6286_s15, 2  ;;  %v2276_v44 = vlaneseq (!%p1794_p9)  ;;  %v6300_v45 = vmov (!%p1794_p9), 1966171168   ;;  %vm4435_vm0 = vcmask (!%p1794_p9), 523264  }
 0x1a6   : > { %1797 = sbr.rel (%p1794_p9) target bundleno = 1048 (0x418), region = 66  ;;  %v2292_v46 = vunpack.c.l.s4 (!%p1794_p9), %v6300_v45  ;;  %s5139_s24 = sshll.u32 (!%p1794_p9), %s6282_s14, 1 }
 0x1a7   : > { %s5591_s10 = smul.u32 (!%p1794_p9), 3136, %s1800_s9  ;;  %v7218_v50 = vshrl.u32 (!%p1794_p9), %v2276_v44, 7  ;;  %p1858_p11 = scmp.lt.s32.totalorder (!%p1794_p9), %s5139_s24, 7 }
 0x1a8   : > { %v2293_v51 = vunpack.c.0.s8 (!%p1794_p9), %v2292_v46 }
 0x1a9   : > { %s7173_s11 = scalar_lea.vmem (!%p1794_p9), [#allocation2], %s5591_s10 }
 0x1aa   : > { %v5651_v8 = vld [vmem:[%s7173_s11 + $0x4] ss:$8 sps:$4 sm:$0xff] (!%p1794_p9)   ;;  %v5655_v10 = vld [vmem:[%s7173_s11] ss:$8 sps:$4 sm:$0xff] (!%p1794_p9)   ;;  %v5657_v12 = vld [vmem:[%s7173_s11 + $0x14] ss:$8 sps:$4 sm:$0xff] (!%p1794_p9)   ;;  %v7227_v57 = vsub.s32 (!%p1794_p9), %v2293_v51, %v7218_v50 }
 0x1ab   : > { %v5653_v9 = vld [vmem:[%s7173_s11 + $0x604] ss:$8 sps:$4 sm:$0xff] (!%p1794_p9)   ;;  %4439 = vmatprep.subr.bf16.mxu1 (!%p1794_p9), %v5651_v8  ;;  %v5656_v11 = vld [vmem:[%s7173_s11 + $0x600] ss:$8 sps:$4 sm:$0xff] (!%p1794_p9)   ;;  %v5659_v13 = vld [vmem:[%s7173_s11 + $0x614] ss:$8 sps:$4 sm:$0xff] (!%p1794_p9)  }
 0x1ac   : > { %4685 = vmatprep.subr.bf16.mxu0 (!%p1794_p9), %v5653_v9  ;;  %4440 = vmatpush1.bf16.msra.mxu1 (!%p1794_p9), %v5655_v10  ;;  %v5661_v14 = vld [vmem:[%s7173_s11 + $0x10] ss:$8 sps:$4 sm:$0xff] (!%p1794_p9)   ;;  %v5663_v16 = vld [vmem:[%s7173_s11 + $0x24] ss:$8 sps:$4 sm:$0xff] (!%p1794_p9)   ;;  %v5667_v18 = vld [vmem:[%s7173_s11 + $0x20] ss:$8 sps:$4 sm:$0xff] (!%p1794_p9)  }
 0x1ad   : > { %4686 = vmatpush1.bf16.msra.mxu0 %v5656_v11  ;;  %4441 = vmatprep.subr.bf16.mxu1 %v5657_v12  ;;  %v5662_v15 = vld [vmem:[%s7173_s11 + $0x610] ss:$8 sps:$4 sm:$0xff]   ;;  %v5665_v17 = vld [vmem:[%s7173_s11 + $0x624] ss:$8 sps:$4 sm:$0xff]   ;;  %v5668_v19 = vld [vmem:[%s7173_s11 + $0x620] ss:$8 sps:$4 sm:$0xff]  }
 0x1ae   : > { %4687 = vmatprep.subr.bf16.mxu0 %v5659_v13  ;;  %v5669_v20 = vld [vmem:[%s7173_s11 + $0x34] ss:$8 sps:$4 sm:$0xff]   ;;  %v5673_v22 = vld [vmem:[%s7173_s11 + $0x30] ss:$8 sps:$4 sm:$0xff]   ;;  %v5675_v24 = vld [vmem:[%s7173_s11 + $0x44] ss:$8 sps:$4 sm:$0xff]  }
 0x1af   : > { %v5671_v21 = vld [vmem:[%s7173_s11 + $0x634] ss:$8 sps:$4 sm:$0xff]   ;;  %v5674_v23 = vld [vmem:[%s7173_s11 + $0x630] ss:$8 sps:$4 sm:$0xff]   ;;  %v5677_v25 = vld [vmem:[%s7173_s11 + $0x644] ss:$8 sps:$4 sm:$0xff]  }
 0x1b0   : > { %4442 = vmatpush1.bf16.msra.mxu1 %v5661_v14  ;;  %v5679_v26 = vld [vmem:[%s7173_s11 + $0x40] ss:$8 sps:$4 sm:$0xff]   ;;  %v5681_v28 = vld [vmem:[%s7173_s11 + $0x54] ss:$8 sps:$4 sm:$0xff]   ;;  %v5685_v30 = vld [vmem:[%s7173_s11 + $0x50] ss:$8 sps:$4 sm:$0xff]  }
 0x1b1   : > { %4688 = vmatpush1.bf16.msra.mxu0 %v5662_v15  ;;  %4443 = vmatprep.subr.bf16.mxu1 %v5663_v16  ;;  %v5680_v27 = vld [vmem:[%s7173_s11 + $0x640] ss:$8 sps:$4 sm:$0xff]   ;;  %v5683_v29 = vld [vmem:[%s7173_s11 + $0x654] ss:$8 sps:$4 sm:$0xff]   ;;  %v5686_v31 = vld [vmem:[%s7173_s11 + $0x650] ss:$8 sps:$4 sm:$0xff]  }
 0x1b2   : > { %4689 = vmatprep.subr.bf16.mxu0 %v5665_v17  ;;  %v5687_v32 = vld [vmem:[%s7173_s11 + $0x64] ss:$8 sps:$4 sm:$0xff]   ;;  %v5691_v34 = vld [vmem:[%s7173_s11 + $0x60] ss:$8 sps:$4 sm:$0xff]   ;;  %v5693_v36 = vld [vmem:[%s7173_s11 + $0x74] ss:$8 sps:$4 sm:$0xff]  }
 0x1b3   : > { %v5689_v33 = vld [vmem:[%s7173_s11 + $0x664] ss:$8 sps:$4 sm:$0xff]   ;;  %v5692_v35 = vld [vmem:[%s7173_s11 + $0x660] ss:$8 sps:$4 sm:$0xff]   ;;  %v5695_v37 = vld [vmem:[%s7173_s11 + $0x674] ss:$8 sps:$4 sm:$0xff]  }
 0x1b4   : > { %4444 = vmatpush1.bf16.msra.mxu1 %v5667_v18  ;;  %v5697_v38 = vld [vmem:[%s7173_s11 + $0x70] ss:$8 sps:$4 sm:$0xff]   ;;  %v5699_v40 = vld [vmem:[%s7173_s11 + $0x84] ss:$8 sps:$4 sm:$0xff]   ;;  %v5703_v42 = vld [vmem:[%s7173_s11 + $0x80] ss:$8 sps:$4 sm:$0xff]  }
 0x1b5   : > { %4690 = vmatpush1.bf16.msra.mxu0 %v5668_v19  ;;  %4445 = vmatprep.subr.bf16.mxu1 %v5669_v20  ;;  %v5698_v39 = vld [vmem:[%s7173_s11 + $0x670] ss:$8 sps:$4 sm:$0xff]   ;;  %v5701_v41 = vld [vmem:[%s7173_s11 + $0x684] ss:$8 sps:$4 sm:$0xff]   ;;  %v5704_v43 = vld [vmem:[%s7173_s11 + $0x680] ss:$8 sps:$4 sm:$0xff]  }
 0x1b6   : > { %4691 = vmatprep.subr.bf16.mxu0 %v5671_v21  ;;  %v5705_v47 = vld [vmem:[%s7173_s11 + $0x94] ss:$8 sps:$4 sm:$0xff]   ;;  %s7734_s15 = smov (!%p1846_p10, %s6286_s15), 2  ;;  %v5709_v49 = vld [vmem:[%s7173_s11 + $0x90] ss:$8 sps:$4 sm:$0xff]   ;;  %s7736_s24 = smov (!%p1858_p11, %s5139_s24), 7 }
 0x1b7   : > { %v5707_v48 = vld [vmem:[%s7173_s11 + $0x694] ss:$8 sps:$4 sm:$0xff]   ;;  %v5710_v52 = vld [vmem:[%s7173_s11 + $0x690] ss:$8 sps:$4 sm:$0xff]   ;;  %v5711_v53 = vld [vmem:[%s7173_s11 + $0xa4] ss:$8 sps:$4 sm:$0xff]  }
 0x1b8   : > { %4446 = vmatpush1.bf16.msra.mxu1 %v5673_v22  ;;  %v5713_v54 = vld [vmem:[%s7173_s11 + $0x6a4] ss:$8 sps:$4 sm:$0xff]   ;;  %s5592_s12 = smul.u32 25, %s7734_s15  ;;  %v5715_v55 = vld [vmem:[%s7173_s11 + $0xa0] ss:$8 sps:$4 sm:$0xff]   ;;  %s5140_s26 = sshll.u32 %s7734_s15, 3 }
 0x1b9   : > { %4692 = vmatpush1.bf16.msra.mxu0 %v5674_v23  ;;  %4447 = vmatprep.subr.bf16.mxu1 %v5675_v24  ;;  %v5716_v56 = vld [vmem:[%s7173_s11 + $0x6a0] ss:$8 sps:$4 sm:$0xff]   ;;  %v5717_v58 = vld [vmem:[%s7173_s11 + $0xb4] ss:$8 sps:$4 sm:$0xff]   ;;  %v5721_v61 = vld [vmem:[%s7173_s11 + $0xb0] ss:$8 sps:$4 sm:$0xff]   ;;  %s1861_s27 = sadd.s32 %s5140_s26, %s7736_s24 }
 0x1ba   : > { %4693 = vmatprep.subr.bf16.mxu0 %v5677_v25  ;;  %v5719_v59 = vld [vmem:[%s7173_s11 + $0x6b4] ss:$8 sps:$4 sm:$0xff]   ;;  %s7234_s23 = scalar_lea.vmem %s7717_s0, %s5592_s12  ;;  %v5722_v63 = vld [vmem:[%s7173_s11 + $0x6b0] ss:$8 sps:$4 sm:$0xff]   ;;  %v5723_v1 = vld [vmem:[%s7173_s11 + $0xc4] ss:$8 sps:$4 sm:$0xff]   ;;  %s1862_s30 = scalar_lea.vmem %s7719_s2, %s1861_s27 }
 0x1bb   : > { %v7237_v60 = vld [vmem:[%s7234_s23] sm:$0xff]  ;;  %v1879_v0 = vld [vmem:[%s7234_s23 + $0x8] sm:$0xff]  ;;  %v5729_v9 = vld [vmem:[%s7173_s11 + $0xd4] ss:$8 sps:$4 sm:$0xff]   ;;  %s1875_s4 = scalar_lea.vmem %s7720_s3, %s1861_s27 }
 0x1bc   : > { %4448 = vmatpush1.bf16.msra.mxu1 %v5679_v26  ;;  %v2297_v62 = vrot.slane %v7237_v60, %v7227_v57  ;;  %v5725_v2 = vld [vmem:[%s7173_s11 + $0x6c4] ss:$8 sps:$4 sm:$0xff]   ;;  %v2339_v4 = vcombine.high %v1879_v0, %v1879_v0  ;;  %v5727_v7 = vld [vmem:[%s7173_s11 + $0xc0] ss:$8 sps:$4 sm:$0xff]   ;;  %v5731_v10 = vld [vmem:[%s7173_s11 + $0x6d4] ss:$8 sps:$4 sm:$0xff]  }
 0x1bd   : > { %4694 = vmatpush1.bf16.msra.mxu0 %v5680_v27  ;;  %4449 = vmatprep.subr.bf16.mxu1 %v5681_v28  ;;  %v5728_v8 = vld [vmem:[%s7173_s11 + $0x6c0] ss:$8 sps:$4 sm:$0xff]   ;;  %v5733_v13 = vld [vmem:[%s7173_s11 + $0xd0] ss:$8 sps:$4 sm:$0xff]   ;;  %v5735_v15 = vld [vmem:[%s7173_s11 + $0xe4] ss:$8 sps:$4 sm:$0xff]  }
 0x1be   : > { %4695 = vmatprep.subr.bf16.mxu0 %v5683_v29  ;;  %v2305_v3 = vcombine.high %v2297_v62, %v2297_v62  ;;  %v2353_v6 = vrot.slane %v2339_v4, %v7227_v57  ;;  %v5734_v14 = vld [vmem:[%s7173_s11 + $0x6d0] ss:$8 sps:$4 sm:$0xff]   ;;  %v5737_v16 = vld [vmem:[%s7173_s11 + $0x6e4] ss:$8 sps:$4 sm:$0xff]   ;;  %v5739_v17 = vld [vmem:[%s7173_s11 + $0xe0] ss:$8 sps:$4 sm:$0xff]   ;;  %v7266_v25 = vrot.slane %v2297_v62, %v7227_v57 }
 0x1bf   : > { %v5740_v18 = vld [vmem:[%s7173_s11 + $0x6e0] ss:$8 sps:$4 sm:$0xff]   ;;  %v5741_v19 = vld [vmem:[%s7173_s11 + $0xf4] ss:$8 sps:$4 sm:$0xff]   ;;  %v5745_v21 = vld [vmem:[%s7173_s11 + $0xf0] ss:$8 sps:$4 sm:$0xff]  }
 0x1c0   : > { %4450 = vmatpush1.bf16.msra.mxu1 %v5685_v30  ;;  %v2327_v5 = vrot.slane %v2305_v3, %v7227_v57  ;;  %v2355_v11 = vcombine.high %v2353_v6, %v2353_v6  ;;  %v5743_v20 = vld [vmem:[%s7173_s11 + $0x6f4] ss:$8 sps:$4 sm:$0xff]   ;;  %v5746_v22 = vld [vmem:[%s7173_s11 + $0x6f0] ss:$8 sps:$4 sm:$0xff]   ;;  %v5750_v23 = vld [vmem:[%s7173_s11 + $0x104] ss:$8 sps:$4 sm:$0xff]   ;;  %v7269_v26 = vrot.slane %v2353_v6, %v7227_v57 }
 0x1c1   : > { %4696 = vmatpush1.bf16.msra.mxu0 %v5686_v31  ;;  %4451 = vmatprep.subr.bf16.mxu1 %v5687_v32  ;;  %v5754_v24 = vld [vmem:[%s7173_s11 + $0x704] ss:$8 sps:$4 sm:$0xff]   ;;  %v5748_v27 = vld [vmem:[%s7173_s11 + $0x100] ss:$8 sps:$4 sm:$0xff]   ;;  %v5757_v29 = vld [vmem:[%s7173_s11 + $0x114] ss:$8 sps:$4 sm:$0xff]  }
 0x1c2   : > { %4697 = vmatprep.subr.bf16.mxu0 %v5689_v33  ;;  %4471 = vmatprep.mubr.bf16.mxu1 %v2327_v5  ;;  %v2383_v12 = vrot.slane %v2355_v11, %v7227_v57  ;;  %v5752_v28 = vld [vmem:[%s7173_s11 + $0x700] ss:$8 sps:$4 sm:$0xff]   ;;  %v5760_v30 = vld [vmem:[%s7173_s11 + $0x714] ss:$8 sps:$4 sm:$0xff]   ;;  %v2337_v31 = vcombine.high %v2327_v5, %v2327_v5  ;;  %v5755_v33 = vld [vmem:[%s7173_s11 + $0x110] ss:$8 sps:$4 sm:$0xff]  }
 0x1c3   : > { %v5778_v44 = vld [vmem:[%s7173_s11 + $0x744] ss:$8 sps:$4 sm:$0xff]   ;;  %v5773_v45 = vld [vmem:[%s7173_s11 + $0x140] ss:$8 sps:$4 sm:$0xff]   ;;  %v5782_v51 = vld [vmem:[%s7173_s11 + $0x750] ss:$8 sps:$4 sm:$0xff]  }
 0x1c4   : > { %4452 = vmatpush1.bf16.msra.mxu1 %v5691_v34  ;;  %4717 = vmatprep.mubr.bf16.mxu0 %v2383_v12  ;;  %v2387_v32 = vcombine.high %v2383_v12, %v2383_v12  ;;  %v5758_v34 = vld [vmem:[%s7173_s11 + $0x710] ss:$8 sps:$4 sm:$0xff]   ;;  %v5776_v46 = vld [vmem:[%s7173_s11 + $0x740] ss:$8 sps:$4 sm:$0xff]   ;;  %v5799_v62 = vld [vmem:[%s7173_s11 + $0x184] ss:$8 sps:$4 sm:$0xff]  }
 0x1c5   : > { %4698 = vmatpush1.bf16.msra.mxu0 %v5692_v35  ;;  %4453 = vmatprep.subr.bf16.mxu1 %v5693_v36  ;;  %v5763_v35 = vld [vmem:[%s7173_s11 + $0x124] ss:$8 sps:$4 sm:$0xff]   ;;  %v5797_v0 = vld [vmem:[%s7173_s11 + $0x180] ss:$8 sps:$4 sm:$0xff]   ;;  %v5808_v3 = vld [vmem:[%s7173_s11 + $0x794] ss:$8 sps:$4 sm:$0xff]  }
 0x1c6   : > { %4699 = vmatprep.subr.bf16.mxu0 %v5695_v37  ;;  %v5766_v36 = vld [vmem:[%s7173_s11 + $0x724] ss:$8 sps:$4 sm:$0xff]   ;;  %v5761_v37 = vld [vmem:[%s7173_s11 + $0x120] ss:$8 sps:$4 sm:$0xff]   ;;  %v5803_v4 = vld [vmem:[%s7173_s11 + $0x190] ss:$8 sps:$4 sm:$0xff]  }
 0x1c7   : > { %v5806_v5 = vld [vmem:[%s7173_s11 + $0x790] ss:$8 sps:$4 sm:$0xff]   ;;  %v5811_v6 = vld [vmem:[%s7173_s11 + $0x1a4] ss:$8 sps:$4 sm:$0xff]   ;;  %v5820_v11 = vld [vmem:[%s7173_s11 + $0x7b4] ss:$8 sps:$4 sm:$0xff]  }
 0x1c8   : > { %4454 = vmatpush1.bf16.msra.mxu1 %v5697_v38  ;;  %v5764_v38 = vld [vmem:[%s7173_s11 + $0x720] ss:$8 sps:$4 sm:$0xff]   ;;  %v5815_v12 = vld [vmem:[%s7173_s11 + $0x1b0] ss:$8 sps:$4 sm:$0xff]  }
 0x1c9   : > { %4700 = vmatpush1.bf16.msra.mxu0 %v5698_v39  ;;  %4455 = vmatprep.subr.bf16.mxu1 %v5699_v40  ;;  %v5769_v39 = vld [vmem:[%s7173_s11 + $0x134] ss:$8 sps:$4 sm:$0xff]  }
 0x1ca   : > { %4701 = vmatprep.subr.bf16.mxu0 %v5701_v41  ;;  %v5772_v40 = vld [vmem:[%s7173_s11 + $0x734] ss:$8 sps:$4 sm:$0xff]   ;;  %v5767_v41 = vld [vmem:[%s7173_s11 + $0x130] ss:$8 sps:$4 sm:$0xff]  }
 0x1cc   : > { %4456 = vmatpush1.bf16.msra.mxu1 %v5703_v42  ;;  %v5770_v42 = vld [vmem:[%s7173_s11 + $0x730] ss:$8 sps:$4 sm:$0xff]  }
 0x1cd   : > { %4702 = vmatpush1.bf16.msra.mxu0 %v5704_v43  ;;  %4457 = vmatprep.subr.bf16.mxu1 %v5705_v47  ;;  %v5775_v43 = vld [vmem:[%s7173_s11 + $0x144] ss:$8 sps:$4 sm:$0xff]   ;;  %v5781_v47 = vld [vmem:[%s7173_s11 + $0x154] ss:$8 sps:$4 sm:$0xff]  }
 0x1ce   : > { %4703 = vmatprep.subr.bf16.mxu0 %v5707_v48  ;;  %v5784_v48 = vld [vmem:[%s7173_s11 + $0x754] ss:$8 sps:$4 sm:$0xff]  }
 0x1d0   : > { %4458 = vmatpush1.bf16.msra.mxu1 %v5709_v49  ;;  %v5779_v49 = vld [vmem:[%s7173_s11 + $0x150] ss:$8 sps:$4 sm:$0xff]  }
 0x1d1   : > { %4704 = vmatpush1.bf16.msra.mxu0 %v5710_v52  ;;  %4459 = vmatprep.subr.bf16.mxu1 %v5711_v53  ;;  %v5787_v52 = vld [vmem:[%s7173_s11 + $0x164] ss:$8 sps:$4 sm:$0xff]  }
 0x1d2   : > { %4705 = vmatprep.subr.bf16.mxu0 %v5713_v54  ;;  %v5790_v53 = vld [vmem:[%s7173_s11 + $0x764] ss:$8 sps:$4 sm:$0xff]   ;;  %v5785_v54 = vld [vmem:[%s7173_s11 + $0x160] ss:$8 sps:$4 sm:$0xff]  }
 0x1d4   : > { %4460 = vmatpush1.bf16.msra.mxu1 %v5715_v55  ;;  %v5788_v55 = vld [vmem:[%s7173_s11 + $0x760] ss:$8 sps:$4 sm:$0xff]  }
 0x1d5   : > { %4706 = vmatpush1.bf16.msra.mxu0 %v5716_v56  ;;  %4461 = vmatprep.subr.bf16.mxu1 %v5717_v58  ;;  %v5793_v56 = vld [vmem:[%s7173_s11 + $0x174] ss:$8 sps:$4 sm:$0xff]  }
 0x1d6   : > { %4707 = vmatprep.subr.bf16.mxu0 %v5719_v59  ;;  %v5796_v58 = vld [vmem:[%s7173_s11 + $0x774] ss:$8 sps:$4 sm:$0xff]   ;;  %v5791_v59 = vld [vmem:[%s7173_s11 + $0x170] ss:$8 sps:$4 sm:$0xff]  }
 0x1d8   : > { %4462 = vmatpush1.bf16.msra.mxu1 %v5721_v61  ;;  %v5794_v61 = vld [vmem:[%s7173_s11 + $0x770] ss:$8 sps:$4 sm:$0xff]  }
 0x1d9   : > { %4708 = vmatpush1.bf16.msra.mxu0 %v5722_v63  ;;  %4463 = vmatprep.subr.bf16.mxu1 %v5723_v1  ;;  %v5802_v63 = vld [vmem:[%s7173_s11 + $0x784] ss:$8 sps:$4 sm:$0xff]   ;;  %v5800_v1 = vld [vmem:[%s7173_s11 + $0x780] ss:$8 sps:$4 sm:$0xff]  }
 0x1da   : > { %4709 = vmatprep.subr.bf16.mxu0 %v5725_v2  ;;  %v5805_v2 = vld [vmem:[%s7173_s11 + $0x194] ss:$8 sps:$4 sm:$0xff]  }
 0x1dc   : > { %4464 = vmatpush1.bf16.msra.mxu1 %v5727_v7  ;;  %v5814_v7 = vld [vmem:[%s7173_s11 + $0x7a4] ss:$8 sps:$4 sm:$0xff]  }
 0x1dd   : > { %4710 = vmatpush1.bf16.msra.mxu0 %v5728_v8  ;;  %4465 = vmatprep.subr.bf16.mxu1 %v5729_v9  ;;  %v5809_v8 = vld [vmem:[%s7173_s11 + $0x1a0] ss:$8 sps:$4 sm:$0xff]  }
 0x1de   : > { %4711 = vmatprep.subr.bf16.mxu0 %v5731_v10  ;;  %v5812_v9 = vld [vmem:[%s7173_s11 + $0x7a0] ss:$8 sps:$4 sm:$0xff]   ;;  %v5817_v10 = vld [vmem:[%s7173_s11 + $0x1b4] ss:$8 sps:$4 sm:$0xff]  }
 0x1e0   : > { %4466 = vmatpush1.bf16.msra.mxu1 %v5733_v13  ;;  %v5818_v13 = vld [vmem:[%s7173_s11 + $0x7b0] ss:$8 sps:$4 sm:$0xff]  }
 0x1e1   : > { %4712 = vmatpush1.bf16.msra.mxu0 %v5734_v14  ;;  %4467 = vmatprep.subr.bf16.mxu1 %v5735_v15  ;;  %v5823_v14 = vld [vmem:[%s7173_s11 + $0x1c4] ss:$8 sps:$4 sm:$0xff]  }
 0x1e2   : > { %4713 = vmatprep.subr.bf16.mxu0 %v5737_v16  ;;  %v5826_v15 = vld [vmem:[%s7173_s11 + $0x7c4] ss:$8 sps:$4 sm:$0xff]   ;;  %v5821_v16 = vld [vmem:[%s7173_s11 + $0x1c0] ss:$8 sps:$4 sm:$0xff]  }
 0x1e4   : > { %4468 = vmatpush1.bf16.msra.mxu1 %v5739_v17  ;;  %v5824_v17 = vld [vmem:[%s7173_s11 + $0x7c0] ss:$8 sps:$4 sm:$0xff]  }
 0x1e5   : > { %4714 = vmatpush1.bf16.msra.mxu0 %v5740_v18  ;;  %4469 = vmatprep.subr.bf16.mxu1 %v5741_v19  ;;  %v5829_v18 = vld [vmem:[%s7173_s11 + $0x1d4] ss:$8 sps:$4 sm:$0xff]  }
 0x1e6   : > { %4715 = vmatprep.subr.bf16.mxu0 %v5743_v20  ;;  %v5832_v19 = vld [vmem:[%s7173_s11 + $0x7d4] ss:$8 sps:$4 sm:$0xff]   ;;  %v5827_v20 = vld [vmem:[%s7173_s11 + $0x1d0] ss:$8 sps:$4 sm:$0xff]  }
 0x1e8   : > { %4470 = vmatpush1.bf16.msra.mxu1 %v5745_v21  ;;  %v5830_v21 = vld [vmem:[%s7173_s11 + $0x7d0] ss:$8 sps:$4 sm:$0xff]  }
 0x1e9   : > { %4716 = vmatpush1.bf16.msra.mxu0 %v5746_v22  ;;  %4480 = vmatprep.subr.bf16.mxu1 %v5750_v23  ;;  %v5835_v22 = vld [vmem:[%s7173_s11 + $0x1e4] ss:$8 sps:$4 sm:$0xff]  }
 0x1ea   : > { %4726 = vmatprep.subr.bf16.mxu0 %v5754_v24  ;;  %v5838_v23 = vld [vmem:[%s7173_s11 + $0x7e4] ss:$8 sps:$4 sm:$0xff]   ;;  %v2290_v24 = vcombine.high %v7237_v60, %v7237_v60  ;;  %v5842_v60 = vld [vmem:[%s7173_s11 + $0x7f0] ss:$8 sps:$4 sm:$0xff]  }
 0x1eb   : > { %4472 = vmatmul.mubr.bf16.vlgmr.msra.gmra.mrb[0].mxu1 %v7266_v25 }
 0x1ec   : > { %4718 = vmatmul.mubr.bf16.vlgmr.msra.gmra.mrb[0].mxu0 %v7269_v26  ;;  %4481 = vmatpush1.bf16.msra.mxu1 %v5748_v27  ;;  %v5833_v27 = vld [vmem:[%s7173_s11 + $0x1e0] ss:$8 sps:$4 sm:$0xff]  }
 0x1ed   : > { %4727 = vmatpush1.bf16.msra.mxu0 %v5752_v28  ;;  %4482 = vmatprep.subr.bf16.mxu1 %v5757_v29  ;;  %v5836_v28 = vld [vmem:[%s7173_s11 + $0x7e0] ss:$8 sps:$4 sm:$0xff]   ;;  %v5841_v29 = vld [vmem:[%s7173_s11 + $0x1f4] ss:$8 sps:$4 sm:$0xff]  }
 0x1ee   : > { %4728 = vmatprep.subr.bf16.mxu0 %v5760_v30  ;;  %4512 = vmatprep.mubr.bf16.mxu1 %v2337_v31  ;;  %v5844_v30 = vld [vmem:[%s7173_s11 + $0x7f4] ss:$8 sps:$4 sm:$0xff]   ;;  %v7336_v31 = vrot.slane %v2290_v24, %v7227_v57  ;;  %v5911_v24 = vld [vmem:[%s7173_s11 + $0x2b0] ss:$8 sps:$4 sm:$0xff]  }
 0x1ef   : > { %4758 = vmatprep.mubr.bf16.mxu0 %v2387_v32  ;;  %v5839_v32 = vld [vmem:[%s7173_s11 + $0x1f0] ss:$8 sps:$4 sm:$0xff]  }
 0x1f0   : > { %4483 = vmatpush1.bf16.msra.mxu1 %v5755_v33  ;;  %v5847_v33 = vld [vmem:[%s7173_s11 + $0x204] ss:$8 sps:$4 sm:$0xff]  }
 0x1f1   : > { %4729 = vmatpush1.bf16.msra.mxu0 %v5758_v34  ;;  %4484 = vmatprep.subr.bf16.mxu1 %v5763_v35  ;;  %v5850_v34 = vld [vmem:[%s7173_s11 + $0x804] ss:$8 sps:$4 sm:$0xff]   ;;  %v2306_v35 = vcombine.high %v7336_v31, %v7336_v31 }
 0x1f2   : > { %4730 = vmatprep.subr.bf16.mxu0 %v5766_v36  ;;  %v2335_v36 = vcombine.high %v7266_v25, %v7266_v25  ;;  %v5851_v25 = vld [vmem:[%s7173_s11 + $0x210] ss:$8 sps:$4 sm:$0xff]  }
 0x1f4   : > { %4485 = vmatpush1.bf16.msra.mxu1 %v5761_v37  ;;  %v2385_v37 = vcombine.high %v7269_v26, %v7269_v26 }
 0x1f5   : > { %4731 = vmatpush1.bf16.msra.mxu0 %v5764_v38  ;;  %4486 = vmatprep.subr.bf16.mxu1 %v5769_v39  ;;  %v5845_v38 = vld [vmem:[%s7173_s11 + $0x200] ss:$8 sps:$4 sm:$0xff]  }
 0x1f6   : > { %4732 = vmatprep.subr.bf16.mxu0 %v5772_v40  ;;  %v5848_v39 = vld [vmem:[%s7173_s11 + $0x800] ss:$8 sps:$4 sm:$0xff]   ;;  %v5853_v40 = vld [vmem:[%s7173_s11 + $0x214] ss:$8 sps:$4 sm:$0xff]  }
 0x1f8   : > { %4487 = vmatpush1.bf16.msra.mxu1 %v5767_v41  ;;  %v5856_v41 = vld [vmem:[%s7173_s11 + $0x814] ss:$8 sps:$4 sm:$0xff]  }
 0x1f9   : > { %4733 = vmatpush1.bf16.msra.mxu0 %v5770_v42  ;;  %4488 = vmatprep.subr.bf16.mxu1 %v5775_v43  ;;  %v7353_v42 = vrot.slane %v2306_v35, %v7227_v57  ;;  %v7356_v43 = vld [vmem:[%s7234_s23 + $0x10] sm:$0xff] }
 0x1fa   : > { %4734 = vmatprep.subr.bf16.mxu0 %v5778_v44  ;;  %v7361_v26 = vrot.slane %v7356_v43, %v7227_v57  ;;  %v5854_v44 = vld [vmem:[%s7173_s11 + $0x810] ss:$8 sps:$4 sm:$0xff]  }
 0x1fb   : > { %v5926_v35 = vld [vmem:[%s7173_s11 + $0x8d0] ss:$8 sps:$4 sm:$0xff]  }
 0x1fc   : > { %4489 = vmatpush1.bf16.msra.mxu1 %v5773_v45  ;;  %v5859_v45 = vld [vmem:[%s7173_s11 + $0x224] ss:$8 sps:$4 sm:$0xff]  }
 0x1fd   : > { %4735 = vmatpush1.bf16.msra.mxu0 %v5776_v46  ;;  %4490 = vmatprep.subr.bf16.mxu1 %v5781_v47  ;;  %v5862_v46 = vld [vmem:[%s7173_s11 + $0x824] ss:$8 sps:$4 sm:$0xff]   ;;  %v2403_v47 = vcombine.high %v7361_v26, %v7361_v26 }
 0x1fe   : > { %4736 = vmatprep.subr.bf16.mxu0 %v5784_v48  ;;  %v5857_v48 = vld [vmem:[%s7173_s11 + $0x220] ss:$8 sps:$4 sm:$0xff]  }
 0x200   : > { %4491 = vmatpush1.bf16.msra.mxu1 %v5779_v49  ;;  %v7371_v49 = vrot.slane %v2403_v47, %v7227_v57  ;;  %v5941_v47 = vld [vmem:[%s7173_s11 + $0x300] ss:$8 sps:$4 sm:$0xff]  }
 0x201   : > { %4737 = vmatpush1.bf16.msra.mxu0 %v5782_v51  ;;  %4492 = vmatprep.subr.bf16.mxu1 %v5787_v52  ;;  %v5860_v51 = vld [vmem:[%s7173_s11 + $0x820] ss:$8 sps:$4 sm:$0xff]   ;;  %v5865_v52 = vld [vmem:[%s7173_s11 + $0x234] ss:$8 sps:$4 sm:$0xff]  }
 0x202   : > { %4738 = vmatprep.subr.bf16.mxu0 %v5790_v53  ;;  %v5868_v53 = vld [vmem:[%s7173_s11 + $0x834] ss:$8 sps:$4 sm:$0xff]  }
 0x204   : > { %4493 = vmatpush1.bf16.msra.mxu1 %v5785_v54  ;;  %v5863_v54 = vld [vmem:[%s7173_s11 + $0x230] ss:$8 sps:$4 sm:$0xff]  }
 0x205   : > { %4739 = vmatpush1.bf16.msra.mxu0 %v5788_v55  ;;  %4494 = vmatprep.subr.bf16.mxu1 %v5793_v56  ;;  %v5866_v55 = vld [vmem:[%s7173_s11 + $0x830] ss:$8 sps:$4 sm:$0xff]   ;;  %v5871_v56 = vld [vmem:[%s7173_s11 + $0x244] ss:$8 sps:$4 sm:$0xff]  }
 0x206   : > { %4740 = vmatprep.subr.bf16.mxu0 %v5796_v58  ;;  %v5874_v58 = vld [vmem:[%s7173_s11 + $0x844] ss:$8 sps:$4 sm:$0xff]  }
 0x208   : > { %4495 = vmatpush1.bf16.msra.mxu1 %v5791_v59  ;;  %v5869_v59 = vld [vmem:[%s7173_s11 + $0x240] ss:$8 sps:$4 sm:$0xff]  }
 0x209   : > { %4741 = vmatpush1.bf16.msra.mxu0 %v5794_v61  ;;  %4496 = vmatprep.subr.bf16.mxu1 %v5799_v62  ;;  %v5872_v61 = vld [vmem:[%s7173_s11 + $0x840] ss:$8 sps:$4 sm:$0xff]   ;;  %v5877_v62 = vld [vmem:[%s7173_s11 + $0x254] ss:$8 sps:$4 sm:$0xff]  }
 0x20a   : > { %4742 = vmatprep.subr.bf16.mxu0 %v5802_v63  ;;  %v5880_v63 = vld [vmem:[%s7173_s11 + $0x854] ss:$8 sps:$4 sm:$0xff]  }
 0x20c   : > { %4497 = vmatpush1.bf16.msra.mxu1 %v5797_v0  ;;  %v5875_v0 = vld [vmem:[%s7173_s11 + $0x250] ss:$8 sps:$4 sm:$0xff]  }
 0x20d   : > { %4743 = vmatpush1.bf16.msra.mxu0 %v5800_v1  ;;  %4498 = vmatprep.subr.bf16.mxu1 %v5805_v2  ;;  %v5878_v1 = vld [vmem:[%s7173_s11 + $0x850] ss:$8 sps:$4 sm:$0xff]   ;;  %v5883_v2 = vld [vmem:[%s7173_s11 + $0x264] ss:$8 sps:$4 sm:$0xff]  }
 0x20e   : > { %4744 = vmatprep.subr.bf16.mxu0 %v5808_v3  ;;  %v5886_v3 = vld [vmem:[%s7173_s11 + $0x864] ss:$8 sps:$4 sm:$0xff]  }
 0x210   : > { %4499 = vmatpush1.bf16.msra.mxu1 %v5803_v4  ;;  %v5881_v4 = vld [vmem:[%s7173_s11 + $0x260] ss:$8 sps:$4 sm:$0xff]  }
 0x211   : > { %4745 = vmatpush1.bf16.msra.mxu0 %v5806_v5  ;;  %4500 = vmatprep.subr.bf16.mxu1 %v5811_v6  ;;  %v5884_v5 = vld [vmem:[%s7173_s11 + $0x860] ss:$8 sps:$4 sm:$0xff]   ;;  %v5889_v6 = vld [vmem:[%s7173_s11 + $0x274] ss:$8 sps:$4 sm:$0xff]  }
 0x212   : > { %4746 = vmatprep.subr.bf16.mxu0 %v5814_v7  ;;  %v5892_v7 = vld [vmem:[%s7173_s11 + $0x874] ss:$8 sps:$4 sm:$0xff]  }
 0x214   : > { %4501 = vmatpush1.bf16.msra.mxu1 %v5809_v8  ;;  %v5887_v8 = vld [vmem:[%s7173_s11 + $0x270] ss:$8 sps:$4 sm:$0xff]  }
 0x215   : > { %4747 = vmatpush1.bf16.msra.mxu0 %v5812_v9  ;;  %4502 = vmatprep.subr.bf16.mxu1 %v5817_v10  ;;  %v5890_v9 = vld [vmem:[%s7173_s11 + $0x870] ss:$8 sps:$4 sm:$0xff]   ;;  %v5895_v10 = vld [vmem:[%s7173_s11 + $0x284] ss:$8 sps:$4 sm:$0xff]  }
 0x216   : > { %4748 = vmatprep.subr.bf16.mxu0 %v5820_v11  ;;  %v5898_v11 = vld [vmem:[%s7173_s11 + $0x884] ss:$8 sps:$4 sm:$0xff]  }
 0x218   : > { %4503 = vmatpush1.bf16.msra.mxu1 %v5815_v12  ;;  %v5893_v12 = vld [vmem:[%s7173_s11 + $0x280] ss:$8 sps:$4 sm:$0xff]  }
 0x219   : > { %4749 = vmatpush1.bf16.msra.mxu0 %v5818_v13  ;;  %4504 = vmatprep.subr.bf16.mxu1 %v5823_v14  ;;  %v5896_v13 = vld [vmem:[%s7173_s11 + $0x880] ss:$8 sps:$4 sm:$0xff]   ;;  %v5901_v14 = vld [vmem:[%s7173_s11 + $0x294] ss:$8 sps:$4 sm:$0xff]  }
 0x21a   : > { %4750 = vmatprep.subr.bf16.mxu0 %v5826_v15  ;;  %v5904_v15 = vld [vmem:[%s7173_s11 + $0x894] ss:$8 sps:$4 sm:$0xff]  }
 0x21c   : > { %4505 = vmatpush1.bf16.msra.mxu1 %v5821_v16  ;;  %v5899_v16 = vld [vmem:[%s7173_s11 + $0x290] ss:$8 sps:$4 sm:$0xff]  }
 0x21d   : > { %4751 = vmatpush1.bf16.msra.mxu0 %v5824_v17  ;;  %4506 = vmatprep.subr.bf16.mxu1 %v5829_v18  ;;  %v5902_v17 = vld [vmem:[%s7173_s11 + $0x890] ss:$8 sps:$4 sm:$0xff]   ;;  %v5907_v18 = vld [vmem:[%s7173_s11 + $0x2a4] ss:$8 sps:$4 sm:$0xff]  }
 0x21e   : > { %4752 = vmatprep.subr.bf16.mxu0 %v5832_v19  ;;  %v5910_v19 = vld [vmem:[%s7173_s11 + $0x8a4] ss:$8 sps:$4 sm:$0xff]  }
 0x220   : > { %4507 = vmatpush1.bf16.msra.mxu1 %v5827_v20  ;;  %v5905_v20 = vld [vmem:[%s7173_s11 + $0x2a0] ss:$8 sps:$4 sm:$0xff]  }
 0x221   : > { %4753 = vmatpush1.bf16.msra.mxu0 %v5830_v21  ;;  %4508 = vmatprep.subr.bf16.mxu1 %v5835_v22  ;;  %v5908_v21 = vld [vmem:[%s7173_s11 + $0x8a0] ss:$8 sps:$4 sm:$0xff]   ;;  %v5913_v22 = vld [vmem:[%s7173_s11 + $0x2b4] ss:$8 sps:$4 sm:$0xff]  }
 0x222   : > { %4754 = vmatprep.subr.bf16.mxu0 %v5838_v23  ;;  %v5916_v23 = vld [vmem:[%s7173_s11 + $0x8b4] ss:$8 sps:$4 sm:$0xff]  }
 0x224   : > { %4509 = vmatpush1.bf16.msra.mxu1 %v5833_v27  ;;  %v5914_v27 = vld [vmem:[%s7173_s11 + $0x8b0] ss:$8 sps:$4 sm:$0xff]  }
 0x225   : > { %4755 = vmatpush1.bf16.msra.mxu0 %v5836_v28  ;;  %4510 = vmatprep.subr.bf16.mxu1 %v5841_v29  ;;  %v5919_v28 = vld [vmem:[%s7173_s11 + $0x2c4] ss:$8 sps:$4 sm:$0xff]  }
 0x226   : > { %4756 = vmatprep.subr.bf16.mxu0 %v5844_v30  ;;  %v5922_v29 = vld [vmem:[%s7173_s11 + $0x8c4] ss:$8 sps:$4 sm:$0xff]   ;;  %v5917_v30 = vld [vmem:[%s7173_s11 + $0x2c0] ss:$8 sps:$4 sm:$0xff]  }
 0x228   : > { %4511 = vmatpush1.bf16.msra.mxu1 %v5839_v32  ;;  %v5920_v32 = vld [vmem:[%s7173_s11 + $0x8c0] ss:$8 sps:$4 sm:$0xff]  }
 0x229   : > { %4757 = vmatpush1.bf16.msra.mxu0 %v5842_v60  ;;  %4521 = vmatprep.subr.bf16.mxu1 %v5847_v33  ;;  %v5925_v60 = vld [vmem:[%s7173_s11 + $0x2d4] ss:$8 sps:$4 sm:$0xff]  }
 0x22a   : > { %4767 = vmatprep.subr.bf16.mxu0 %v5850_v34  ;;  %v5928_v33 = vld [vmem:[%s7173_s11 + $0x8d4] ss:$8 sps:$4 sm:$0xff]   ;;  %v5923_v34 = vld [vmem:[%s7173_s11 + $0x2d0] ss:$8 sps:$4 sm:$0xff]  }
 0x22b   : > { %4513 = vmatmul.mubr.bf16.vlgmr.msra.gmra.mrb[0].mxu1 %v2335_v36  ;;  %v5931_v36 = vld [vmem:[%s7173_s11 + $0x2e4] ss:$8 sps:$4 sm:$0xff]  }
 0x22c   : > { %4759 = vmatmul.mubr.bf16.vlgmr.msra.gmra.mrb[0].mxu0 %v2385_v37  ;;  %4522 = vmatpush1.bf16.msra.mxu1 %v5845_v38  ;;  %v5934_v37 = vld [vmem:[%s7173_s11 + $0x8e4] ss:$8 sps:$4 sm:$0xff]   ;;  %v5929_v38 = vld [vmem:[%s7173_s11 + $0x2e0] ss:$8 sps:$4 sm:$0xff]  }
 0x22d   : > { %4768 = vmatpush1.bf16.msra.mxu0 %v5848_v39  ;;  %4523 = vmatprep.subr.bf16.mxu1 %v5853_v40  ;;  %v5932_v39 = vld [vmem:[%s7173_s11 + $0x8e0] ss:$8 sps:$4 sm:$0xff]   ;;  %v5937_v40 = vld [vmem:[%s7173_s11 + $0x2f4] ss:$8 sps:$4 sm:$0xff]  }
 0x22e   : > { %4769 = vmatprep.subr.bf16.mxu0 %v5856_v41  ;;  %4553 = vmatprep.mubr.bf16.mxu1 %v7353_v42  ;;  %v5940_v41 = vld [vmem:[%s7173_s11 + $0x8f4] ss:$8 sps:$4 sm:$0xff]  }
 0x22f   : > { %4799 = vmatprep.mubr.bf16.mxu0 %v7371_v49 }
 0x230   : > { %4524 = vmatpush1.bf16.msra.mxu1 %v5851_v25  ;;  %v5935_v25 = vld [vmem:[%s7173_s11 + $0x2f0] ss:$8 sps:$4 sm:$0xff]  }
 0x231   : > { %4770 = vmatpush1.bf16.msra.mxu0 %v5854_v44  ;;  %4525 = vmatprep.subr.bf16.mxu1 %v5859_v45  ;;  %v5938_v44 = vld [vmem:[%s7173_s11 + $0x8f0] ss:$8 sps:$4 sm:$0xff]   ;;  %v5943_v45 = vld [vmem:[%s7173_s11 + $0x304] ss:$8 sps:$4 sm:$0xff]  }
 0x232   : > { %4771 = vmatprep.subr.bf16.mxu0 %v5862_v46  ;;  %v5946_v46 = vld [vmem:[%s7173_s11 + $0x904] ss:$8 sps:$4 sm:$0xff]  }
 0x234   : > { %4526 = vmatpush1.bf16.msra.mxu1 %v5857_v48  ;;  %v7432_v48 = vrot.slane %v7336_v31, %v7227_v57  ;;  %v2435_v31 = vcombine.high %v7371_v49, %v7371_v49  ;;  %v5953_v49 = vld [vmem:[%s7173_s11 + $0x320] ss:$8 sps:$4 sm:$0xff]  }
 0x235   : > { %4772 = vmatpush1.bf16.msra.mxu0 %v5860_v51  ;;  %4527 = vmatprep.subr.bf16.mxu1 %v5865_v52  ;;  %v7436_v51 = vrot.slane %v7361_v26, %v7227_v57  ;;  %v5944_v52 = vld [vmem:[%s7173_s11 + $0x900] ss:$8 sps:$4 sm:$0xff]   ;;  %v5947_v26 = vld [vmem:[%s7173_s11 + $0x310] ss:$8 sps:$4 sm:$0xff]  }
 0x236   : > { %4773 = vmatprep.subr.bf16.mxu0 %v5868_v53  ;;  %v5949_v53 = vld [vmem:[%s7173_s11 + $0x314] ss:$8 sps:$4 sm:$0xff]  }
 0x238   : > { %4528 = vmatpush1.bf16.msra.mxu1 %v5863_v54  ;;  %v5952_v54 = vld [vmem:[%s7173_s11 + $0x914] ss:$8 sps:$4 sm:$0xff]  }
 0x239   : > { %4774 = vmatpush1.bf16.msra.mxu0 %v5866_v55  ;;  %4529 = vmatprep.subr.bf16.mxu1 %v5871_v56  ;;  %v2338_v55 = vcombine.high %v7353_v42, %v7353_v42  ;;  %v5950_v56 = vld [vmem:[%s7173_s11 + $0x910] ss:$8 sps:$4 sm:$0xff]   ;;  %v5958_v42 = vld [vmem:[%s7173_s11 + $0x924] ss:$8 sps:$4 sm:$0xff]  }
 0x23a   : > { %4775 = vmatprep.subr.bf16.mxu0 %v5874_v58  ;;  %v5955_v58 = vld [vmem:[%s7173_s11 + $0x324] ss:$8 sps:$4 sm:$0xff]  }
 0x23c   : > { %4530 = vmatpush1.bf16.msra.mxu1 %v5869_v59  ;;  %v5956_v59 = vld [vmem:[%s7173_s11 + $0x920] ss:$8 sps:$4 sm:$0xff]  }
 0x23d   : > { %4776 = vmatpush1.bf16.msra.mxu0 %v5872_v61  ;;  %4531 = vmatprep.subr.bf16.mxu1 %v5877_v62  ;;  %v5961_v61 = vld [vmem:[%s7173_s11 + $0x334] ss:$8 sps:$4 sm:$0xff]  }
 0x23e   : > { %4777 = vmatprep.subr.bf16.mxu0 %v5880_v63  ;;  %v5964_v62 = vld [vmem:[%s7173_s11 + $0x934] ss:$8 sps:$4 sm:$0xff]   ;;  %v5959_v63 = vld [vmem:[%s7173_s11 + $0x330] ss:$8 sps:$4 sm:$0xff]  }
 0x240   : > { %4532 = vmatpush1.bf16.msra.mxu1 %v5875_v0  ;;  %v5962_v0 = vld [vmem:[%s7173_s11 + $0x930] ss:$8 sps:$4 sm:$0xff]  }
 0x241   : > { %4778 = vmatpush1.bf16.msra.mxu0 %v5878_v1  ;;  %4533 = vmatprep.subr.bf16.mxu1 %v5883_v2  ;;  %v5967_v1 = vld [vmem:[%s7173_s11 + $0x344] ss:$8 sps:$4 sm:$0xff]  }
 0x242   : > { %4779 = vmatprep.subr.bf16.mxu0 %v5886_v3  ;;  %v5970_v2 = vld [vmem:[%s7173_s11 + $0x944] ss:$8 sps:$4 sm:$0xff]   ;;  %v5965_v3 = vld [vmem:[%s7173_s11 + $0x340] ss:$8 sps:$4 sm:$0xff]  }
 0x244   : > { %4534 = vmatpush1.bf16.msra.mxu1 %v5881_v4  ;;  %v5968_v4 = vld [vmem:[%s7173_s11 + $0x940] ss:$8 sps:$4 sm:$0xff]  }
 0x245   : > { %4780 = vmatpush1.bf16.msra.mxu0 %v5884_v5  ;;  %4535 = vmatprep.subr.bf16.mxu1 %v5889_v6  ;;  %v5973_v5 = vld [vmem:[%s7173_s11 + $0x354] ss:$8 sps:$4 sm:$0xff]  }
 0x246   : > { %4781 = vmatprep.subr.bf16.mxu0 %v5892_v7  ;;  %v5976_v6 = vld [vmem:[%s7173_s11 + $0x954] ss:$8 sps:$4 sm:$0xff]   ;;  %v5971_v7 = vld [vmem:[%s7173_s11 + $0x350] ss:$8 sps:$4 sm:$0xff]  }
 0x248   : > { %4536 = vmatpush1.bf16.msra.mxu1 %v5887_v8  ;;  %v5974_v8 = vld [vmem:[%s7173_s11 + $0x950] ss:$8 sps:$4 sm:$0xff]  }
 0x249   : > { %4782 = vmatpush1.bf16.msra.mxu0 %v5890_v9  ;;  %4537 = vmatprep.subr.bf16.mxu1 %v5895_v10  ;;  %v5979_v9 = vld [vmem:[%s7173_s11 + $0x364] ss:$8 sps:$4 sm:$0xff]  }
 0x24a   : > { %4783 = vmatprep.subr.bf16.mxu0 %v5898_v11  ;;  %v5982_v10 = vld [vmem:[%s7173_s11 + $0x964] ss:$8 sps:$4 sm:$0xff]   ;;  %v5977_v11 = vld [vmem:[%s7173_s11 + $0x360] ss:$8 sps:$4 sm:$0xff]  }
 0x24c   : > { %4538 = vmatpush1.bf16.msra.mxu1 %v5893_v12  ;;  %v5980_v12 = vld [vmem:[%s7173_s11 + $0x960] ss:$8 sps:$4 sm:$0xff]  }
 0x24d   : > { %4784 = vmatpush1.bf16.msra.mxu0 %v5896_v13  ;;  %4539 = vmatprep.subr.bf16.mxu1 %v5901_v14  ;;  %v5985_v13 = vld [vmem:[%s7173_s11 + $0x374] ss:$8 sps:$4 sm:$0xff]  }
 0x24e   : > { %4785 = vmatprep.subr.bf16.mxu0 %v5904_v15  ;;  %v5988_v14 = vld [vmem:[%s7173_s11 + $0x974] ss:$8 sps:$4 sm:$0xff]   ;;  %v5983_v15 = vld [vmem:[%s7173_s11 + $0x370] ss:$8 sps:$4 sm:$0xff]  }
 0x250   : > { %4540 = vmatpush1.bf16.msra.mxu1 %v5899_v16  ;;  %v5986_v16 = vld [vmem:[%s7173_s11 + $0x970] ss:$8 sps:$4 sm:$0xff]  }
 0x251   : > { %4786 = vmatpush1.bf16.msra.mxu0 %v5902_v17  ;;  %4541 = vmatprep.subr.bf16.mxu1 %v5907_v18  ;;  %v5991_v17 = vld [vmem:[%s7173_s11 + $0x384] ss:$8 sps:$4 sm:$0xff]  }
 0x252   : > { %4787 = vmatprep.subr.bf16.mxu0 %v5910_v19  ;;  %v5994_v18 = vld [vmem:[%s7173_s11 + $0x984] ss:$8 sps:$4 sm:$0xff]   ;;  %v5989_v19 = vld [vmem:[%s7173_s11 + $0x380] ss:$8 sps:$4 sm:$0xff]  }
 0x254   : > { %4542 = vmatpush1.bf16.msra.mxu1 %v5905_v20  ;;  %v5992_v20 = vld [vmem:[%s7173_s11 + $0x980] ss:$8 sps:$4 sm:$0xff]  }
 0x255   : > { %4788 = vmatpush1.bf16.msra.mxu0 %v5908_v21  ;;  %4543 = vmatprep.subr.bf16.mxu1 %v5913_v22  ;;  %v5997_v21 = vld [vmem:[%s7173_s11 + $0x394] ss:$8 sps:$4 sm:$0xff]  }
 0x256   : > { %4789 = vmatprep.subr.bf16.mxu0 %v5916_v23  ;;  %v6000_v22 = vld [vmem:[%s7173_s11 + $0x994] ss:$8 sps:$4 sm:$0xff]   ;;  %v5995_v23 = vld [vmem:[%s7173_s11 + $0x390] ss:$8 sps:$4 sm:$0xff]  }
 0x258   : > { %4544 = vmatpush1.bf16.msra.mxu1 %v5911_v24  ;;  %v5998_v24 = vld [vmem:[%s7173_s11 + $0x990] ss:$8 sps:$4 sm:$0xff]  }
 0x259   : > { %4790 = vmatpush1.bf16.msra.mxu0 %v5914_v27  ;;  %4545 = vmatprep.subr.bf16.mxu1 %v5919_v28  ;;  %v6003_v27 = vld [vmem:[%s7173_s11 + $0x3a4] ss:$8 sps:$4 sm:$0xff]  }
 0x25a   : > { %4791 = vmatprep.subr.bf16.mxu0 %v5922_v29  ;;  %v6006_v28 = vld [vmem:[%s7173_s11 + $0x9a4] ss:$8 sps:$4 sm:$0xff]   ;;  %v6001_v29 = vld [vmem:[%s7173_s11 + $0x3a0] ss:$8 sps:$4 sm:$0xff]  }
 0x25c   : > { %4546 = vmatpush1.bf16.msra.mxu1 %v5917_v30  ;;  %v6004_v30 = vld [vmem:[%s7173_s11 + $0x9a0] ss:$8 sps:$4 sm:$0xff]  }
 0x25d   : > { %4792 = vmatpush1.bf16.msra.mxu0 %v5920_v32  ;;  %4547 = vmatprep.subr.bf16.mxu1 %v5925_v60  ;;  %v6009_v32 = vld [vmem:[%s7173_s11 + $0x3b4] ss:$8 sps:$4 sm:$0xff]  }
 0x25e   : > { %4793 = vmatprep.subr.bf16.mxu0 %v5928_v33  ;;  %v6012_v60 = vld [vmem:[%s7173_s11 + $0x9b4] ss:$8 sps:$4 sm:$0xff]   ;;  %v6007_v33 = vld [vmem:[%s7173_s11 + $0x3b0] ss:$8 sps:$4 sm:$0xff]  }
 0x260   : > { %4548 = vmatpush1.bf16.msra.mxu1 %v5923_v34  ;;  %v6010_v34 = vld [vmem:[%s7173_s11 + $0x9b0] ss:$8 sps:$4 sm:$0xff]  }
 0x261   : > { %4794 = vmatpush1.bf16.msra.mxu0 %v5926_v35  ;;  %4549 = vmatprep.subr.bf16.mxu1 %v5931_v36  ;;  %v6015_v35 = vld [vmem:[%s7173_s11 + $0x3c4] ss:$8 sps:$4 sm:$0xff]  }
 0x262   : > { %4795 = vmatprep.subr.bf16.mxu0 %v5934_v37  ;;  %v6018_v36 = vld [vmem:[%s7173_s11 + $0x9c4] ss:$8 sps:$4 sm:$0xff]   ;;  %v6013_v37 = vld [vmem:[%s7173_s11 + $0x3c0] ss:$8 sps:$4 sm:$0xff]  }
 0x264   : > { %4550 = vmatpush1.bf16.msra.mxu1 %v5929_v38  ;;  %v6016_v38 = vld [vmem:[%s7173_s11 + $0x9c0] ss:$8 sps:$4 sm:$0xff]  }
 0x265   : > { %4796 = vmatpush1.bf16.msra.mxu0 %v5932_v39  ;;  %4551 = vmatprep.subr.bf16.mxu1 %v5937_v40  ;;  %v6021_v39 = vld [vmem:[%s7173_s11 + $0x3d4] ss:$8 sps:$4 sm:$0xff]  }
 0x266   : > { %4797 = vmatprep.subr.bf16.mxu0 %v5940_v41  ;;  %v6024_v40 = vld [vmem:[%s7173_s11 + $0x9d4] ss:$8 sps:$4 sm:$0xff]   ;;  %v6019_v41 = vld [vmem:[%s7173_s11 + $0x3d0] ss:$8 sps:$4 sm:$0xff]  }
 0x268   : > { %4552 = vmatpush1.bf16.msra.mxu1 %v5935_v25  ;;  %v6022_v25 = vld [vmem:[%s7173_s11 + $0x9d0] ss:$8 sps:$4 sm:$0xff]  }
 0x269   : > { %4798 = vmatpush1.bf16.msra.mxu0 %v5938_v44  ;;  %4562 = vmatprep.subr.bf16.mxu1 %v5943_v45  ;;  %v6027_v44 = vld [vmem:[%s7173_s11 + $0x3e4] ss:$8 sps:$4 sm:$0xff]  }
 0x26a   : > { %4808 = vmatprep.subr.bf16.mxu0 %v5946_v46  ;;  %v6030_v45 = vld [vmem:[%s7173_s11 + $0x9e4] ss:$8 sps:$4 sm:$0xff]   ;;  %v2388_v46 = vcombine.high %v7356_v43, %v7356_v43  ;;  %v6034_v43 = vld [vmem:[%s7173_s11 + $0x9f0] ss:$8 sps:$4 sm:$0xff]  }
 0x26b   : > { %4554 = vmatmul.mubr.bf16.vlgmr.msra.gmra.mrb[0].mxu1 %v7432_v48 }
 0x26c   : > { %4800 = vmatmul.mubr.bf16.vlgmr.msra.gmra.mrb[0].mxu0 %v7436_v51  ;;  %4563 = vmatpush1.bf16.msra.mxu1 %v5941_v47  ;;  %v6025_v47 = vld [vmem:[%s7173_s11 + $0x3e0] ss:$8 sps:$4 sm:$0xff]  }
 0x26d   : > { %4809 = vmatpush1.bf16.msra.mxu0 %v5944_v52  ;;  %4564 = vmatprep.subr.bf16.mxu1 %v5949_v53  ;;  %v6028_v52 = vld [vmem:[%s7173_s11 + $0x9e0] ss:$8 sps:$4 sm:$0xff]   ;;  %v6033_v53 = vld [vmem:[%s7173_s11 + $0x3f4] ss:$8 sps:$4 sm:$0xff]  }
 0x26e   : > { %4810 = vmatprep.subr.bf16.mxu0 %v5952_v54  ;;  %4594 = vmatprep.mubr.bf16.mxu1 %v2338_v55  ;;  %v6036_v54 = vld [vmem:[%s7173_s11 + $0x9f4] ss:$8 sps:$4 sm:$0xff]   ;;  %v7506_v55 = vld.sshfl [vmem:[%s7234_s23 + $0x8] sm:$0xff pattern:$0x75316420] }
 0x26f   : > { %4840 = vmatprep.mubr.bf16.mxu0 %v2435_v31  ;;  %v7509_v31 = vrot.slane %v2388_v46, %v7227_v57  ;;  %v6106_v46 = vld [vmem:[%s7173_s11 + $0xab0] ss:$8 sps:$4 sm:$0xff]  }
 0x270   : > { %4565 = vmatpush1.bf16.msra.mxu1 %v5947_v26  ;;  %v6031_v26 = vld [vmem:[%s7173_s11 + $0x3f0] ss:$8 sps:$4 sm:$0xff]  }
 0x271   : > { %4811 = vmatpush1.bf16.msra.mxu0 %v5950_v56  ;;  %4566 = vmatprep.subr.bf16.mxu1 %v5955_v58  ;;  %v6039_v56 = vld [vmem:[%s7173_s11 + $0x404] ss:$8 sps:$4 sm:$0xff]  }
 0x272   : > { %4812 = vmatprep.subr.bf16.mxu0 %v5958_v42  ;;  %v6042_v58 = vld [vmem:[%s7173_s11 + $0xa04] ss:$8 sps:$4 sm:$0xff]   ;;  %v2354_v42 = vcombine.high %v7506_v55, %v7506_v55 }
 0x274   : > { %4567 = vmatpush1.bf16.msra.mxu1 %v5953_v49  ;;  %v2404_v49 = vcombine.high %v7509_v31, %v7509_v31 }
 0x275   : > { %4813 = vmatpush1.bf16.msra.mxu0 %v5956_v59  ;;  %4568 = vmatprep.subr.bf16.mxu1 %v5961_v61  ;;  %v6037_v59 = vld [vmem:[%s7173_s11 + $0x400] ss:$8 sps:$4 sm:$0xff]   ;;  %v2336_v61 = vcombine.high %v7432_v48, %v7432_v48  ;;  %v6043_v48 = vld [vmem:[%s7173_s11 + $0x410] ss:$8 sps:$4 sm:$0xff]  }
 0x276   : > { %4814 = vmatprep.subr.bf16.mxu0 %v5964_v62  ;;  %v2433_v62 = vcombine.high %v7436_v51, %v7436_v51  ;;  %v6046_v51 = vld [vmem:[%s7173_s11 + $0xa10] ss:$8 sps:$4 sm:$0xff]  }
 0x278   : > { %4569 = vmatpush1.bf16.msra.mxu1 %v5959_v63  ;;  %v6040_v63 = vld [vmem:[%s7173_s11 + $0xa00] ss:$8 sps:$4 sm:$0xff]  }
 0x279   : > { %4815 = vmatpush1.bf16.msra.mxu0 %v5962_v0  ;;  %4570 = vmatprep.subr.bf16.mxu1 %v5967_v1  ;;  %v6045_v0 = vld [vmem:[%s7173_s11 + $0x414] ss:$8 sps:$4 sm:$0xff]  }
 0x27a   : > { %4816 = vmatprep.subr.bf16.mxu0 %v5970_v2  ;;  %v6048_v1 = vld [vmem:[%s7173_s11 + $0xa14] ss:$8 sps:$4 sm:$0xff]   ;;  %v7528_v2 = vrot.slane %v2354_v42, %v7227_v57  ;;  %v6123_v42 = vld [vmem:[%s7173_s11 + $0x4e4] ss:$8 sps:$4 sm:$0xff]  }
 0x27c   : > { %4571 = vmatpush1.bf16.msra.mxu1 %v5965_v3  ;;  %v7531_v3 = vrot.slane %v2404_v49, %v7227_v57  ;;  %v6126_v49 = vld [vmem:[%s7173_s11 + $0xae4] ss:$8 sps:$4 sm:$0xff]  }
 0x27d   : > { %4817 = vmatpush1.bf16.msra.mxu0 %v5968_v4  ;;  %4572 = vmatprep.subr.bf16.mxu1 %v5973_v5  ;;  %v6051_v4 = vld [vmem:[%s7173_s11 + $0x424] ss:$8 sps:$4 sm:$0xff]  }
 0x27e   : > { %4818 = vmatprep.subr.bf16.mxu0 %v5976_v6  ;;  %v6054_v5 = vld [vmem:[%s7173_s11 + $0xa24] ss:$8 sps:$4 sm:$0xff]   ;;  %v6049_v6 = vld [vmem:[%s7173_s11 + $0x420] ss:$8 sps:$4 sm:$0xff]  }
 0x280   : > { %4573 = vmatpush1.bf16.msra.mxu1 %v5971_v7  ;;  %v6052_v7 = vld [vmem:[%s7173_s11 + $0xa20] ss:$8 sps:$4 sm:$0xff]  }
 0x281   : > { %4819 = vmatpush1.bf16.msra.mxu0 %v5974_v8  ;;  %4574 = vmatprep.subr.bf16.mxu1 %v5979_v9  ;;  %v6057_v8 = vld [vmem:[%s7173_s11 + $0x434] ss:$8 sps:$4 sm:$0xff]  }
 0x282   : > { %4820 = vmatprep.subr.bf16.mxu0 %v5982_v10  ;;  %v6060_v9 = vld [vmem:[%s7173_s11 + $0xa34] ss:$8 sps:$4 sm:$0xff]   ;;  %v6055_v10 = vld [vmem:[%s7173_s11 + $0x430] ss:$8 sps:$4 sm:$0xff]  }
 0x284   : > { %4575 = vmatpush1.bf16.msra.mxu1 %v5977_v11  ;;  %v6058_v11 = vld [vmem:[%s7173_s11 + $0xa30] ss:$8 sps:$4 sm:$0xff]  }
 0x285   : > { %4821 = vmatpush1.bf16.msra.mxu0 %v5980_v12  ;;  %4576 = vmatprep.subr.bf16.mxu1 %v5985_v13  ;;  %v6063_v12 = vld [vmem:[%s7173_s11 + $0x444] ss:$8 sps:$4 sm:$0xff]  }
 0x286   : > { %4822 = vmatprep.subr.bf16.mxu0 %v5988_v14  ;;  %v6066_v13 = vld [vmem:[%s7173_s11 + $0xa44] ss:$8 sps:$4 sm:$0xff]   ;;  %v6061_v14 = vld [vmem:[%s7173_s11 + $0x440] ss:$8 sps:$4 sm:$0xff]  }
 0x288   : > { %4577 = vmatpush1.bf16.msra.mxu1 %v5983_v15  ;;  %v6064_v15 = vld [vmem:[%s7173_s11 + $0xa40] ss:$8 sps:$4 sm:$0xff]  }
 0x289   : > { %4823 = vmatpush1.bf16.msra.mxu0 %v5986_v16  ;;  %4578 = vmatprep.subr.bf16.mxu1 %v5991_v17  ;;  %v6069_v16 = vld [vmem:[%s7173_s11 + $0x454] ss:$8 sps:$4 sm:$0xff]  }
 0x28a   : > { %4824 = vmatprep.subr.bf16.mxu0 %v5994_v18  ;;  %v6072_v17 = vld [vmem:[%s7173_s11 + $0xa54] ss:$8 sps:$4 sm:$0xff]   ;;  %v6067_v18 = vld [vmem:[%s7173_s11 + $0x450] ss:$8 sps:$4 sm:$0xff]  }
 0x28c   : > { %4579 = vmatpush1.bf16.msra.mxu1 %v5989_v19  ;;  %v6070_v19 = vld [vmem:[%s7173_s11 + $0xa50] ss:$8 sps:$4 sm:$0xff]  }
 0x28d   : > { %4825 = vmatpush1.bf16.msra.mxu0 %v5992_v20  ;;  %4580 = vmatprep.subr.bf16.mxu1 %v5997_v21  ;;  %v6075_v20 = vld [vmem:[%s7173_s11 + $0x464] ss:$8 sps:$4 sm:$0xff]  }
 0x28e   : > { %4826 = vmatprep.subr.bf16.mxu0 %v6000_v22  ;;  %v6078_v21 = vld [vmem:[%s7173_s11 + $0xa64] ss:$8 sps:$4 sm:$0xff]   ;;  %v6073_v22 = vld [vmem:[%s7173_s11 + $0x460] ss:$8 sps:$4 sm:$0xff]  }
 0x290   : > { %4581 = vmatpush1.bf16.msra.mxu1 %v5995_v23  ;;  %v6076_v23 = vld [vmem:[%s7173_s11 + $0xa60] ss:$8 sps:$4 sm:$0xff]  }
 0x291   : > { %4827 = vmatpush1.bf16.msra.mxu0 %v5998_v24  ;;  %4582 = vmatprep.subr.bf16.mxu1 %v6003_v27  ;;  %v6081_v24 = vld [vmem:[%s7173_s11 + $0x474] ss:$8 sps:$4 sm:$0xff]  }
 0x292   : > { %4828 = vmatprep.subr.bf16.mxu0 %v6006_v28  ;;  %v6084_v27 = vld [vmem:[%s7173_s11 + $0xa74] ss:$8 sps:$4 sm:$0xff]   ;;  %v6079_v28 = vld [vmem:[%s7173_s11 + $0x470] ss:$8 sps:$4 sm:$0xff]  }
 0x294   : > { %4583 = vmatpush1.bf16.msra.mxu1 %v6001_v29  ;;  %v6082_v29 = vld [vmem:[%s7173_s11 + $0xa70] ss:$8 sps:$4 sm:$0xff]  }
 0x295   : > { %4829 = vmatpush1.bf16.msra.mxu0 %v6004_v30  ;;  %4584 = vmatprep.subr.bf16.mxu1 %v6009_v32  ;;  %v6087_v30 = vld [vmem:[%s7173_s11 + $0x484] ss:$8 sps:$4 sm:$0xff]  }
 0x296   : > { %4830 = vmatprep.subr.bf16.mxu0 %v6012_v60  ;;  %v6090_v32 = vld [vmem:[%s7173_s11 + $0xa84] ss:$8 sps:$4 sm:$0xff]   ;;  %v6085_v60 = vld [vmem:[%s7173_s11 + $0x480] ss:$8 sps:$4 sm:$0xff]  }
 0x298   : > { %4585 = vmatpush1.bf16.msra.mxu1 %v6007_v33  ;;  %v6088_v33 = vld [vmem:[%s7173_s11 + $0xa80] ss:$8 sps:$4 sm:$0xff]  }
 0x299   : > { %4831 = vmatpush1.bf16.msra.mxu0 %v6010_v34  ;;  %4586 = vmatprep.subr.bf16.mxu1 %v6015_v35  ;;  %v6093_v34 = vld [vmem:[%s7173_s11 + $0x494] ss:$8 sps:$4 sm:$0xff]  }
 0x29a   : > { %4832 = vmatprep.subr.bf16.mxu0 %v6018_v36  ;;  %v6096_v35 = vld [vmem:[%s7173_s11 + $0xa94] ss:$8 sps:$4 sm:$0xff]   ;;  %v6091_v36 = vld [vmem:[%s7173_s11 + $0x490] ss:$8 sps:$4 sm:$0xff]  }
 0x29c   : > { %4587 = vmatpush1.bf16.msra.mxu1 %v6013_v37  ;;  %v6094_v37 = vld [vmem:[%s7173_s11 + $0xa90] ss:$8 sps:$4 sm:$0xff]  }
 0x29d   : > { %4833 = vmatpush1.bf16.msra.mxu0 %v6016_v38  ;;  %4588 = vmatprep.subr.bf16.mxu1 %v6021_v39  ;;  %v6099_v38 = vld [vmem:[%s7173_s11 + $0x4a4] ss:$8 sps:$4 sm:$0xff]  }
 0x29e   : > { %4834 = vmatprep.subr.bf16.mxu0 %v6024_v40  ;;  %v6102_v39 = vld [vmem:[%s7173_s11 + $0xaa4] ss:$8 sps:$4 sm:$0xff]   ;;  %v6097_v40 = vld [vmem:[%s7173_s11 + $0x4a0] ss:$8 sps:$4 sm:$0xff]  }
 0x2a0   : > { %4589 = vmatpush1.bf16.msra.mxu1 %v6019_v41  ;;  %v6100_v41 = vld [vmem:[%s7173_s11 + $0xaa0] ss:$8 sps:$4 sm:$0xff]  }
 0x2a1   : > { %4835 = vmatpush1.bf16.msra.mxu0 %v6022_v25  ;;  %4590 = vmatprep.subr.bf16.mxu1 %v6027_v44  ;;  %v6105_v25 = vld [vmem:[%s7173_s11 + $0x4b4] ss:$8 sps:$4 sm:$0xff]  }
 0x2a2   : > { %4836 = vmatprep.subr.bf16.mxu0 %v6030_v45  ;;  %v6108_v44 = vld [vmem:[%s7173_s11 + $0xab4] ss:$8 sps:$4 sm:$0xff]   ;;  %v6103_v45 = vld [vmem:[%s7173_s11 + $0x4b0] ss:$8 sps:$4 sm:$0xff]  }
 0x2a4   : > { %4591 = vmatpush1.bf16.msra.mxu1 %v6025_v47  ;;  %v6111_v47 = vld [vmem:[%s7173_s11 + $0x4c4] ss:$8 sps:$4 sm:$0xff]  }
 0x2a5   : > { %4837 = vmatpush1.bf16.msra.mxu0 %v6028_v52  ;;  %4592 = vmatprep.subr.bf16.mxu1 %v6033_v53  ;;  %v6114_v52 = vld [vmem:[%s7173_s11 + $0xac4] ss:$8 sps:$4 sm:$0xff]   ;;  %v6109_v53 = vld [vmem:[%s7173_s11 + $0x4c0] ss:$8 sps:$4 sm:$0xff]  }
 0x2a6   : > { %4838 = vmatprep.subr.bf16.mxu0 %v6036_v54  ;;  %v6112_v54 = vld [vmem:[%s7173_s11 + $0xac0] ss:$8 sps:$4 sm:$0xff]  }
 0x2a8   : > { %4593 = vmatpush1.bf16.msra.mxu1 %v6031_v26  ;;  %v6117_v26 = vld [vmem:[%s7173_s11 + $0x4d4] ss:$8 sps:$4 sm:$0xff]  }
 0x2a9   : > { %4839 = vmatpush1.bf16.msra.mxu0 %v6034_v43  ;;  %4603 = vmatprep.subr.bf16.mxu1 %v6039_v56  ;;  %v6120_v43 = vld [vmem:[%s7173_s11 + $0xad4] ss:$8 sps:$4 sm:$0xff]   ;;  %v6115_v56 = vld [vmem:[%s7173_s11 + $0x4d0] ss:$8 sps:$4 sm:$0xff]  }
 0x2aa   : > { %4849 = vmatprep.subr.bf16.mxu0 %v6042_v58  ;;  %v6118_v58 = vld [vmem:[%s7173_s11 + $0xad0] ss:$8 sps:$4 sm:$0xff]  }
 0x2ab   : > { %4595 = vmatmul.mubr.bf16.vlgmr.msra.gmra.mrb[0].mxu1 %v2336_v61  ;;  %v6124_v61 = vld [vmem:[%s7173_s11 + $0xae0] ss:$8 sps:$4 sm:$0xff]  }
 0x2ac   : > { %4841 = vmatmul.mubr.bf16.vlgmr.msra.gmra.mrb[0].mxu0 %v2433_v62  ;;  %4604 = vmatpush1.bf16.msra.mxu1 %v6037_v59  ;;  %v6121_v59 = vld [vmem:[%s7173_s11 + $0x4e0] ss:$8 sps:$4 sm:$0xff]   ;;  %v6129_v62 = vld [vmem:[%s7173_s11 + $0x4f4] ss:$8 sps:$4 sm:$0xff]  }
 0x2ad   : > { %4850 = vmatpush1.bf16.msra.mxu0 %v6040_v63  ;;  %4605 = vmatprep.subr.bf16.mxu1 %v6045_v0  ;;  %v6132_v63 = vld [vmem:[%s7173_s11 + $0xaf4] ss:$8 sps:$4 sm:$0xff]   ;;  %v6127_v0 = vld [vmem:[%s7173_s11 + $0x4f0] ss:$8 sps:$4 sm:$0xff]  }
 0x2ae   : > { %4851 = vmatprep.subr.bf16.mxu0 %v6048_v1  ;;  %4635 = vmatprep.mubr.bf16.mxu1 %v7528_v2  ;;  %v6130_v1 = vld [vmem:[%s7173_s11 + $0xaf0] ss:$8 sps:$4 sm:$0xff]  }
 0x2af   : > { %4881 = vmatprep.mubr.bf16.mxu0 %v7531_v3 }
 0x2b0   : > { %4606 = vmatpush1.bf16.msra.mxu1 %v6043_v48  ;;  %v6135_v48 = vld [vmem:[%s7173_s11 + $0x504] ss:$8 sps:$4 sm:$0xff]  }
 0x2b1   : > { %4852 = vmatpush1.bf16.msra.mxu0 %v6046_v51  ;;  %4607 = vmatprep.subr.bf16.mxu1 %v6051_v4  ;;  %v6139_v51 = vld [vmem:[%s7173_s11 + $0xb04] ss:$8 sps:$4 sm:$0xff]   ;;  %v7597_v4 = vrot.slane %v7506_v55, %v7227_v57  ;;  %v2386_v55 = vcombine.high %v7528_v2, %v7528_v2 }
 0x2b2   : > { %4853 = vmatprep.subr.bf16.mxu0 %v6054_v5  ;;  %v7601_v5 = vrot.slane %v7509_v31, %v7227_v57  ;;  %v6140_v31 = vld [vmem:[%s7173_s11 + $0x510] ss:$8 sps:$4 sm:$0xff]   ;;  %v6148_v2 = vld [vmem:[%s7173_s11 + $0x524] ss:$8 sps:$4 sm:$0xff]  }
 0x2b4   : > { %4608 = vmatpush1.bf16.msra.mxu1 %v6049_v6  ;;  %v6133_v6 = vld [vmem:[%s7173_s11 + $0x500] ss:$8 sps:$4 sm:$0xff]  }
 0x2b5   : > { %4854 = vmatpush1.bf16.msra.mxu0 %v6052_v7  ;;  %4609 = vmatprep.subr.bf16.mxu1 %v6057_v8  ;;  %v6137_v7 = vld [vmem:[%s7173_s11 + $0xb00] ss:$8 sps:$4 sm:$0xff]   ;;  %v6142_v8 = vld [vmem:[%s7173_s11 + $0x514] ss:$8 sps:$4 sm:$0xff]  }
 0x2b6   : > { %4855 = vmatprep.subr.bf16.mxu0 %v6060_v9  ;;  %v6145_v9 = vld [vmem:[%s7173_s11 + $0xb14] ss:$8 sps:$4 sm:$0xff]  }
 0x2b8   : > { %4610 = vmatpush1.bf16.msra.mxu1 %v6055_v10  ;;  %v2436_v10 = vcombine.high %v7531_v3, %v7531_v3  ;;  %v6146_v3 = vld [vmem:[%s7173_s11 + $0x520] ss:$8 sps:$4 sm:$0xff]  }
 0x2b9   : > { %4856 = vmatpush1.bf16.msra.mxu0 %v6058_v11  ;;  %4611 = vmatprep.subr.bf16.mxu1 %v6063_v12  ;;  %v6143_v11 = vld [vmem:[%s7173_s11 + $0xb10] ss:$8 sps:$4 sm:$0xff]   ;;  %v6151_v12 = vld [vmem:[%s7173_s11 + $0xb24] ss:$8 sps:$4 sm:$0xff]  }
 0x2ba   : > { %4857 = vmatprep.subr.bf16.mxu0 %v6066_v13  ;;  %v6149_v13 = vld [vmem:[%s7173_s11 + $0xb20] ss:$8 sps:$4 sm:$0xff]  }
 0x2bc   : > { %4612 = vmatpush1.bf16.msra.mxu1 %v6061_v14  ;;  %v6154_v14 = vld [vmem:[%s7173_s11 + $0x534] ss:$8 sps:$4 sm:$0xff]  }
 0x2bd   : > { %4858 = vmatpush1.bf16.msra.mxu0 %v6064_v15  ;;  %4613 = vmatprep.subr.bf16.mxu1 %v6069_v16  ;;  %v6157_v15 = vld [vmem:[%s7173_s11 + $0xb34] ss:$8 sps:$4 sm:$0xff]   ;;  %v6152_v16 = vld [vmem:[%s7173_s11 + $0x530] ss:$8 sps:$4 sm:$0xff]  }
 0x2be   : > { %4859 = vmatprep.subr.bf16.mxu0 %v6072_v17  ;;  %v6155_v17 = vld [vmem:[%s7173_s11 + $0xb30] ss:$8 sps:$4 sm:$0xff]  }
 0x2c0   : > { %4614 = vmatpush1.bf16.msra.mxu1 %v6067_v18  ;;  %v6160_v18 = vld [vmem:[%s7173_s11 + $0x544] ss:$8 sps:$4 sm:$0xff]  }
 0x2c1   : > { %4860 = vmatpush1.bf16.msra.mxu0 %v6070_v19  ;;  %4615 = vmatprep.subr.bf16.mxu1 %v6075_v20  ;;  %v6163_v19 = vld [vmem:[%s7173_s11 + $0xb44] ss:$8 sps:$4 sm:$0xff]   ;;  %v6158_v20 = vld [vmem:[%s7173_s11 + $0x540] ss:$8 sps:$4 sm:$0xff]  }
 0x2c2   : > { %4861 = vmatprep.subr.bf16.mxu0 %v6078_v21  ;;  %v6161_v21 = vld [vmem:[%s7173_s11 + $0xb40] ss:$8 sps:$4 sm:$0xff]  }
 0x2c4   : > { %4616 = vmatpush1.bf16.msra.mxu1 %v6073_v22  ;;  %v6166_v22 = vld [vmem:[%s7173_s11 + $0x554] ss:$8 sps:$4 sm:$0xff]  }
 0x2c5   : > { %4862 = vmatpush1.bf16.msra.mxu0 %v6076_v23  ;;  %4617 = vmatprep.subr.bf16.mxu1 %v6081_v24  ;;  %v6169_v23 = vld [vmem:[%s7173_s11 + $0xb54] ss:$8 sps:$4 sm:$0xff]   ;;  %v6164_v24 = vld [vmem:[%s7173_s11 + $0x550] ss:$8 sps:$4 sm:$0xff]  }
 0x2c6   : > { %4863 = vmatprep.subr.bf16.mxu0 %v6084_v27  ;;  %v6167_v27 = vld [vmem:[%s7173_s11 + $0xb50] ss:$8 sps:$4 sm:$0xff]  }
 0x2c8   : > { %4618 = vmatpush1.bf16.msra.mxu1 %v6079_v28  ;;  %v6172_v28 = vld [vmem:[%s7173_s11 + $0x564] ss:$8 sps:$4 sm:$0xff]  }
 0x2c9   : > { %4864 = vmatpush1.bf16.msra.mxu0 %v6082_v29  ;;  %4619 = vmatprep.subr.bf16.mxu1 %v6087_v30  ;;  %v6175_v29 = vld [vmem:[%s7173_s11 + $0xb64] ss:$8 sps:$4 sm:$0xff]   ;;  %v6170_v30 = vld [vmem:[%s7173_s11 + $0x560] ss:$8 sps:$4 sm:$0xff]  }
 0x2ca   : > { %4865 = vmatprep.subr.bf16.mxu0 %v6090_v32  ;;  %v6173_v32 = vld [vmem:[%s7173_s11 + $0xb60] ss:$8 sps:$4 sm:$0xff]  }
 0x2cc   : > { %4620 = vmatpush1.bf16.msra.mxu1 %v6085_v60  ;;  %v6178_v60 = vld [vmem:[%s7173_s11 + $0x574] ss:$8 sps:$4 sm:$0xff]  }
 0x2cd   : > { %4866 = vmatpush1.bf16.msra.mxu0 %v6088_v33  ;;  %4621 = vmatprep.subr.bf16.mxu1 %v6093_v34  ;;  %v6181_v33 = vld [vmem:[%s7173_s11 + $0xb74] ss:$8 sps:$4 sm:$0xff]   ;;  %v6176_v34 = vld [vmem:[%s7173_s11 + $0x570] ss:$8 sps:$4 sm:$0xff]  }
 0x2ce   : > { %4867 = vmatprep.subr.bf16.mxu0 %v6096_v35  ;;  %v6179_v35 = vld [vmem:[%s7173_s11 + $0xb70] ss:$8 sps:$4 sm:$0xff]  }
 0x2d0   : > { %4622 = vmatpush1.bf16.msra.mxu1 %v6091_v36  ;;  %v6184_v36 = vld [vmem:[%s7173_s11 + $0x584] ss:$8 sps:$4 sm:$0xff]  }
 0x2d1   : > { %4868 = vmatpush1.bf16.msra.mxu0 %v6094_v37  ;;  %4623 = vmatprep.subr.bf16.mxu1 %v6099_v38  ;;  %v6187_v37 = vld [vmem:[%s7173_s11 + $0xb84] ss:$8 sps:$4 sm:$0xff]   ;;  %v6182_v38 = vld [vmem:[%s7173_s11 + $0x580] ss:$8 sps:$4 sm:$0xff]  }
 0x2d2   : > { %4869 = vmatprep.subr.bf16.mxu0 %v6102_v39  ;;  %v6185_v39 = vld [vmem:[%s7173_s11 + $0xb80] ss:$8 sps:$4 sm:$0xff]  }
 0x2d4   : > { %4624 = vmatpush1.bf16.msra.mxu1 %v6097_v40  ;;  %v6190_v40 = vld [vmem:[%s7173_s11 + $0x594] ss:$8 sps:$4 sm:$0xff]  }
 0x2d5   : > { %4870 = vmatpush1.bf16.msra.mxu0 %v6100_v41  ;;  %4625 = vmatprep.subr.bf16.mxu1 %v6105_v25  ;;  %v6193_v41 = vld [vmem:[%s7173_s11 + $0xb94] ss:$8 sps:$4 sm:$0xff]   ;;  %v6188_v25 = vld [vmem:[%s7173_s11 + $0x590] ss:$8 sps:$4 sm:$0xff]  }
 0x2d6   : > { %4871 = vmatprep.subr.bf16.mxu0 %v6108_v44  ;;  %v6191_v44 = vld [vmem:[%s7173_s11 + $0xb90] ss:$8 sps:$4 sm:$0xff]  }
 0x2d8   : > { %4626 = vmatpush1.bf16.msra.mxu1 %v6103_v45  ;;  %v6196_v45 = vld [vmem:[%s7173_s11 + $0x5a4] ss:$8 sps:$4 sm:$0xff]  }
 0x2d9   : > { %4872 = vmatpush1.bf16.msra.mxu0 %v6106_v46  ;;  %4627 = vmatprep.subr.bf16.mxu1 %v6111_v47  ;;  %v6199_v46 = vld [vmem:[%s7173_s11 + $0xba4] ss:$8 sps:$4 sm:$0xff]   ;;  %v6194_v47 = vld [vmem:[%s7173_s11 + $0x5a0] ss:$8 sps:$4 sm:$0xff]  }
 0x2da   : > { %4873 = vmatprep.subr.bf16.mxu0 %v6114_v52  ;;  %v6197_v52 = vld [vmem:[%s7173_s11 + $0xba0] ss:$8 sps:$4 sm:$0xff]  }
 0x2dc   : > { %4628 = vmatpush1.bf16.msra.mxu1 %v6109_v53  ;;  %v6202_v53 = vld [vmem:[%s7173_s11 + $0x5b4] ss:$8 sps:$4 sm:$0xff]  }
 0x2dd   : > { %4874 = vmatpush1.bf16.msra.mxu0 %v6112_v54  ;;  %4629 = vmatprep.subr.bf16.mxu1 %v6117_v26  ;;  %v6205_v54 = vld [vmem:[%s7173_s11 + $0xbb4] ss:$8 sps:$4 sm:$0xff]   ;;  %v6200_v26 = vld [vmem:[%s7173_s11 + $0x5b0] ss:$8 sps:$4 sm:$0xff]  }
 0x2de   : > { %4875 = vmatprep.subr.bf16.mxu0 %v6120_v43  ;;  %v6203_v43 = vld [vmem:[%s7173_s11 + $0xbb0] ss:$8 sps:$4 sm:$0xff]  }
 0x2e0   : > { %4630 = vmatpush1.bf16.msra.mxu1 %v6115_v56  ;;  %v6208_v56 = vld [vmem:[%s7173_s11 + $0x5c4] ss:$8 sps:$4 sm:$0xff]  }
 0x2e1   : > { %4876 = vmatpush1.bf16.msra.mxu0 %v6118_v58  ;;  %4631 = vmatprep.subr.bf16.mxu1 %v6123_v42  ;;  %v6211_v58 = vld [vmem:[%s7173_s11 + $0xbc4] ss:$8 sps:$4 sm:$0xff]   ;;  %v6206_v42 = vld [vmem:[%s7173_s11 + $0x5c0] ss:$8 sps:$4 sm:$0xff]  }
 0x2e2   : > { %4877 = vmatprep.subr.bf16.mxu0 %v6126_v49  ;;  %v6209_v49 = vld [vmem:[%s7173_s11 + $0xbc0] ss:$8 sps:$4 sm:$0xff]  }
 0x2e4   : > { %4632 = vmatpush1.bf16.msra.mxu1 %v6121_v59  ;;  %v6214_v59 = vld [vmem:[%s7173_s11 + $0x5d4] ss:$8 sps:$4 sm:$0xff]  }
 0x2e5   : > { %4878 = vmatpush1.bf16.msra.mxu0 %v6124_v61  ;;  %4633 = vmatprep.subr.bf16.mxu1 %v6129_v62  ;;  %v6217_v61 = vld [vmem:[%s7173_s11 + $0xbd4] ss:$8 sps:$4 sm:$0xff]   ;;  %v6212_v62 = vld [vmem:[%s7173_s11 + $0x5d0] ss:$8 sps:$4 sm:$0xff]  }
 0x2e6   : > { %4879 = vmatprep.subr.bf16.mxu0 %v6132_v63  ;;  %v6215_v63 = vld [vmem:[%s7173_s11 + $0xbd0] ss:$8 sps:$4 sm:$0xff]  }
 0x2e8   : > { %4634 = vmatpush1.bf16.msra.mxu1 %v6127_v0  ;;  %v6220_v0 = vld [vmem:[%s7173_s11 + $0x5e4] ss:$8 sps:$4 sm:$0xff]  }
 0x2e9   : > { %4880 = vmatpush1.bf16.msra.mxu0 %v6130_v1  ;;  %4644 = vmatprep.subr.bf16.mxu1 %v6135_v48  ;;  %v6223_v1 = vld [vmem:[%s7173_s11 + $0xbe4] ss:$8 sps:$4 sm:$0xff]   ;;  %v6218_v48 = vld [vmem:[%s7173_s11 + $0x5e0] ss:$8 sps:$4 sm:$0xff]  }
 0x2ea   : > { %4890 = vmatprep.subr.bf16.mxu0 %v6139_v51  ;;  %v6221_v51 = vld [vmem:[%s7173_s11 + $0xbe0] ss:$8 sps:$4 sm:$0xff]  }
 0x2eb   : > { %4636 = vmatmul.mubr.bf16.vlgmr.msra.gmra.mrb[0].mxu1 %v7597_v4 }
 0x2ec   : > { %4882 = vmatmul.mubr.bf16.vlgmr.msra.gmra.mrb[0].mxu0 %v7601_v5  ;;  %4645 = vmatpush1.bf16.msra.mxu1 %v6133_v6  ;;  %v6226_v6 = vld [vmem:[%s7173_s11 + $0x5f4] ss:$8 sps:$4 sm:$0xff]  }
 0x2ed   : > { %4891 = vmatpush1.bf16.msra.mxu0 %v6137_v7  ;;  %4646 = vmatprep.subr.bf16.mxu1 %v6142_v8  ;;  %v6229_v7 = vld [vmem:[%s7173_s11 + $0xbf4] ss:$8 sps:$4 sm:$0xff]   ;;  %v6224_v8 = vld [vmem:[%s7173_s11 + $0x5f0] ss:$8 sps:$4 sm:$0xff]  }
 0x2ee   : > { %4892 = vmatprep.subr.bf16.mxu0 %v6145_v9  ;;  %4676 = vmatprep.mubr.bf16.mxu1 %v2386_v55  ;;  %v6227_v9 = vld [vmem:[%s7173_s11 + $0xbf0] ss:$8 sps:$4 sm:$0xff]   ;;  %v6232_v55 = vld [vmem:[%s7173_s11 + $0xc04] ss:$8 sps:$4 sm:$0xff]  }
 0x2ef   : > { %4922 = vmatprep.mubr.bf16.mxu0 %v2436_v10  ;;  %v2384_v10 = vcombine.high %v7597_v4, %v7597_v4  ;;  %v6238_v4 = vld [vmem:[%s7173_s11 + $0xc24] ss:$8 sps:$4 sm:$0xff]  }
 0x2f0   : > { %4647 = vmatpush1.bf16.msra.mxu1 %v6140_v31  ;;  %v2434_v31 = vcombine.high %v7601_v5, %v7601_v5  ;;  %v6236_v5 = vld [vmem:[%s7173_s11 + $0xc20] ss:$8 sps:$4 sm:$0xff]  }
 0x2f1   : > { %4893 = vmatpush1.bf16.msra.mxu0 %v6143_v11  ;;  %4648 = vmatprep.subr.bf16.mxu1 %v6148_v2  ;;  %v6230_v11 = vld [vmem:[%s7173_s11 + $0xc00] ss:$8 sps:$4 sm:$0xff]   ;;  %v6235_v2 = vld [vmem:[%s7173_s11 + $0xc14] ss:$8 sps:$4 sm:$0xff]  }
 0x2f2   : > { %4894 = vmatprep.subr.bf16.mxu0 %v6151_v12  ;;  %v6233_v12 = vld [vmem:[%s7173_s11 + $0xc10] ss:$8 sps:$4 sm:$0xff]  }
 0x2f4   : > { %4649 = vmatpush1.bf16.msra.mxu1 %v6146_v3  ;;  %v6301_v3 = vmov 0  }
 0x2f5   : > { %4895 = vmatpush1.bf16.msra.mxu0 %v6149_v13  ;;  %4650 = vmatprep.subr.bf16.mxu1 %v6154_v14  ;;  %v6241_v13 = vld [vmem:[%s7173_s11 + $0xc34] ss:$8 sps:$4 sm:$0xff]   ;;  %v6239_v14 = vld [vmem:[%s7173_s11 + $0xc30] ss:$8 sps:$4 sm:$0xff]  }
 0x2f6   : > { %4896 = vmatprep.subr.bf16.mxu0 %v6157_v15  ;;  %v5143_v15 = vld.sshfl [vmem:[%s7234_s23 + $0x18] sm:$0x1 pattern:$0x75316420] }
 0x2f8   : > { %4651 = vmatpush1.bf16.msra.mxu1 %v6152_v16  ;;  %v2450_v16 = vrot.slane %v5143_v15, %v7227_v57 }
 0x2f9   : > { %4897 = vmatpush1.bf16.msra.mxu0 %v6155_v17  ;;  %4652 = vmatprep.subr.bf16.mxu1 %v6160_v18 }
 0x2fa   : > { %4898 = vmatprep.subr.bf16.mxu0 %v6163_v19 }
 0x2fc   : > { %4653 = vmatpush1.bf16.msra.mxu1 %v6158_v20 }
 0x2fd   : > { %4899 = vmatpush1.bf16.msra.mxu0 %v6161_v21  ;;  %4654 = vmatprep.subr.bf16.mxu1 %v6166_v22  ;;  %v2278_v21 = vsub.s32 0, %v7218_v50  ;;  %v2274_v22 = vld [vmem:[%s1862_s30] sm:$0x3] }
 0x2fe   : > { %4900 = vmatprep.subr.bf16.mxu0 %v6169_v23  ;;  %v2282_v23 = vsub.s32 1, %v7218_v50 }
 0x300   : > { %4655 = vmatpush1.bf16.msra.mxu1 %v6164_v24  ;;  %v2279_v24 = vrot.slane %v2274_v22, %v2278_v21 }
 0x301   : > { %4901 = vmatpush1.bf16.msra.mxu0 %v6167_v27  ;;  %4656 = vmatprep.subr.bf16.mxu1 %v6172_v28  ;;  %v2283_v27 = vrot.slane %v2274_v22, %v2282_v23 }
 0x302   : > { %4902 = vmatprep.subr.bf16.mxu0 %v6175_v29 }
 0x304   : > { %4657 = vmatpush1.bf16.msra.mxu1 %v6170_v30 }
 0x305   : > { %4903 = vmatpush1.bf16.msra.mxu0 %v6173_v32  ;;  %4658 = vmatprep.subr.bf16.mxu1 %v6178_v60 }
 0x306   : > { %4904 = vmatprep.subr.bf16.mxu0 %v6181_v33 }
 0x308   : > { %4659 = vmatpush1.bf16.msra.mxu1 %v6176_v34 }
 0x309   : > { %4905 = vmatpush1.bf16.msra.mxu0 %v6179_v35  ;;  %4660 = vmatprep.subr.bf16.mxu1 %v6184_v36 }
 0x30a   : > { %4906 = vmatprep.subr.bf16.mxu0 %v6187_v37 }
 0x30c   : > { %4661 = vmatpush1.bf16.msra.mxu1 %v6182_v38 }
 0x30d   : > { %4907 = vmatpush1.bf16.msra.mxu0 %v6185_v39  ;;  %4662 = vmatprep.subr.bf16.mxu1 %v6190_v40 }
 0x30e   : > { %4908 = vmatprep.subr.bf16.mxu0 %v6193_v41 }
 0x310   : > { %4663 = vmatpush1.bf16.msra.mxu1 %v6188_v25 }
 0x311   : > { %4909 = vmatpush1.bf16.msra.mxu0 %v6191_v44  ;;  %4664 = vmatprep.subr.bf16.mxu1 %v6196_v45 }
 0x312   : > { %4910 = vmatprep.subr.bf16.mxu0 %v6199_v46 }
 0x314   : > { %4665 = vmatpush1.bf16.msra.mxu1 %v6194_v47 }
 0x315   : > { %4911 = vmatpush1.bf16.msra.mxu0 %v6197_v52  ;;  %4666 = vmatprep.subr.bf16.mxu1 %v6202_v53 }
 0x316   : > { %4912 = vmatprep.subr.bf16.mxu0 %v6205_v54 }
 0x318   : > { %4667 = vmatpush1.bf16.msra.mxu1 %v6200_v26 }
 0x319   : > { %4913 = vmatpush1.bf16.msra.mxu0 %v6203_v43  ;;  %4668 = vmatprep.subr.bf16.mxu1 %v6208_v56 }
 0x31a   : > { %4914 = vmatprep.subr.bf16.mxu0 %v6211_v58 }
 0x31c   : > { %4669 = vmatpush1.bf16.msra.mxu1 %v6206_v42 }
 0x31d   : > { %4915 = vmatpush1.bf16.msra.mxu0 %v6209_v49  ;;  %4670 = vmatprep.subr.bf16.mxu1 %v6214_v59 }
 0x31e   : > { %4916 = vmatprep.subr.bf16.mxu0 %v6217_v61 }
 0x320   : > { %4671 = vmatpush1.bf16.msra.mxu1 %v6212_v62 }
 0x321   : > { %4917 = vmatpush1.bf16.msra.mxu0 %v6215_v63  ;;  %4672 = vmatprep.subr.bf16.mxu1 %v6220_v0 }
 0x322   : > { %4918 = vmatprep.subr.bf16.mxu0 %v6223_v1 }
 0x324   : > { %4673 = vmatpush1.bf16.msra.mxu1 %v6218_v48 }
 0x325   : > { %4919 = vmatpush1.bf16.msra.mxu0 %v6221_v51  ;;  %4674 = vmatprep.subr.bf16.mxu1 %v6226_v6 }
 0x326   : > { %4920 = vmatprep.subr.bf16.mxu0 %v6229_v7 }
 0x328   : > { %4675 = vmatpush1.bf16.msra.mxu1 %v6224_v8 }
 0x329   : > { %4921 = vmatpush1.bf16.msra.mxu0 %v6227_v9 }
 0x32a   : > { %4931 = vmatprep.subr.bf16.mxu0 %v6232_v55 }
 0x32b   : > { %4677 = vmatmul.mubr.bf16.vlgmr.msra.gmra.mrb[0].mxu1 %v2384_v10 }
 0x32c   : > { %4923 = vmatmul.mubr.bf16.vlgmr.msra.gmra.mrb[0].mxu0 %v2434_v31 }
 0x32d   : > { %4932 = vmatpush1.bf16.msra.mxu0 %v6230_v11  ;;  %4963 = vmatprep.mubr.bf16.mxu0 %v6301_v3 }
 0x32e   : > { %4933 = vmatprep.subr.bf16.mxu0 %v6235_v2 }
 0x331   : > { %4934 = vmatpush1.bf16.msra.mxu0 %v6233_v12 }
 0x332   : > { %4935 = vmatprep.subr.bf16.mxu0 %v6238_v4 }
 0x335   : > { %4936 = vmatpush1.bf16.msra.mxu0 %v6236_v5 }
 0x336   : > { %4937 = vmatprep.subr.bf16.mxu0 %v6241_v13 }
 0x339   : > { %4938 = vmatpush1.bf16.msra.mxu0 %v6239_v14 }
 0x33c   : > { %5536 = vmatmul.mubr.msk.bf16.vlgmr.msra.gmra.mrb[0].mxu0 %vm4435_vm0, %v2450_v16 }
 0x3fe   : > { %v4678_v17 = vpop.f32.mrb[0].mxu1 }
 0x3ff   : > { %v4680_v18 = vpop.f32.mrb[1].mxu1  ;;  %v5541_v28 = vadd.f32 %v4678_v17, %v2279_v24 }
 0x400   : > { %v4682_v19 = vpop.f32.mrb[2].mxu1  ;;  %v5543_v29 = vadd.f32 %v4680_v18, %v2283_v27 }
 0x401   : > { %v4683_v20 = vpop.f32.mrb[3].mxu1 }
 0x40f   : > { %v4965_v30 = vpop.f32.mrb[0].mxu0 }
 0x410   : > { %v5542_v32 = vadd.f32 %v5541_v28, %v4965_v30  ;;  %v4967_v60 = vpop.f32.mrb[1].mxu0 }
 0x411   : > { %v5544_v33 = vadd.f32 %v5543_v29, %v4967_v60  ;;  %v4969_v34 = vpop.f32.mrb[2].mxu0 }
 0x412   : > { %v4970_v35 = vpop.f32.mrb[3].mxu0 }
 0x413   : > { %v5537_v36 = vpack.c.bf16 %v5544_v33, %v5542_v32 }
 0x415   : > { %v4983_v37 = vrot.slane %v5537_v36, %v7227_v57 }
 0x417   : > { %5538 = vst.sshfl [vmem:[%s1875_s4] sm:$0x5 pattern:$0x73625140] %v4983_v37 }
 0x418 PF: > { %s13_s18 = sadd.s32 1, %s6298_s18   ;;  %s7721_s12 = smov %s6278_s13 }
 0x419   : > { %p10_p12 = scmp.ge.s32.totalorder %s13_s18, 14   ;;  %s7722_s13 = smov %s6373_s25 }
 0x41a   : > { %s7723_s14 = smov %s6290_s16  ;;  %s7724_s15 = smov %s6294_s17 }
 0x41b   : > { %s7725_s16 = smov %s7728_s19  ;;  %s7726_s17 = smov %s7732_s20 }
 0x41c   :  { %12 = sbr.rel (!%p10_p12) target bundleno = 4 (0x4), region = 111 }

// kernel: triplenet_forward.11
= control target key start
LH: loop header
LB: loop body
LE: loop exit
PB: predicated region body
PF: predicated region fallthrough
CT: control target
= control target key end

     0   :  { %8 = vsyncpa [#allocation3], 0  ;;  %s1321_s12 = smov 0   ;;  %s1462_s0 = inlined_call_operand.vmem [shape: bf16[3,2,1024], index: 0, kind: input, shape index: {}]   ;;  %s1463_s1 = inlined_call_operand.vmem [shape: bf16[3,1024,10], index: 1, kind: input, shape index: {}]   ;;  %s1464_s2 = inlined_call_operand.vmem [shape: f32[3,1,10], index: 2, kind: input, shape index: {}]   ;;  %s1465_s3 = inlined_call_operand.hbm [shape: f32[2,10], index: 3, kind: output, shape index: {}]  }
   0x1 LB: > { %s1327_s13 = sadd.s32 4294967295, %s1296_s12   ;;  %p1014_p0 = scmp.ge.s32.totalorder %s1296_s12, 1  ;;  %s1296_s12 = sphi %s1321_s12, %s14_s12  }
   0x2   : > { %p150_p1 = scmp.lt.s32.totalorder %s1296_s12, 4 }
   0x4   : > { %p151_p2 = pnand %p1014_p0, %p150_p1 }
   0x5   : > { %p176_p3 = scmp.lt.s32.totalorder (!%p151_p2), %s1327_s13, 2  ;;  %p1018_p4 = scmp.ne.s32.totalorder (!%p151_p2), %s1327_s13, 0 }
   0x6   : > { %154 = sbr.rel (%p151_p2) target bundleno = 344 (0x158), region = 32 }
   0xd   : > { %s1333_s14 = scalar_select %p176_p3, %s1327_s13, 2 }
   0xe   : > { %192 = sbr.rel (%p1018_p4) target bundleno = 21 (0x15), region = 36  ;;  %vm193_vm0 = vcmask (!%p1018_p4), 74752   ;;  %v1298_v0 = vmov (!%p1018_p4), 0.0  }
   0xf   : > { %s1015_s15 = sshll.u32 %s1333_s14, 3  ;;  %s1089_s16 = sshll.u32 %s1333_s14, 9  ;;  %194 = vst.msk [vmem:[#allocation2] sm:$0x3] (!%p1018_p4), %vm193_vm0, %v1298_v0 }
  0x10   : > { %s1340_s19 = scalar_lea.vmem %s1462_s0, %s1015_s15  ;;  %s1345_s22 = scalar_lea.vmem %s1463_s1, %s1089_s16 }
  0x11   : > { %s187_s25 = scalar_lea.vmem %s1464_s2, %s1333_s14 }
  0x15 PF: > { %v1195_v1 = vld [vmem:[%s1345_s22 + $0x40] sm:$0xff]   ;;  %v1199_v5 = vld [vmem:[%s1345_s22 + $0x48] sm:$0xff]   ;;  %v1203_v9 = vld [vmem:[%s1345_s22 + $0x50] sm:$0xff]   ;;  %v336_v29 = vlaneseq  ;;  %v1299_v37 = vmov 1966171168   ;;  %vm935_vm1 = vcmask 74752  }
  0x16   : > { %v1196_v2 = vld [vmem:[%s1345_s22 + $0xc0] sm:$0xff]   ;;  %1090 = vmatprep.subr.bf16.mxu0 %v1195_v1  ;;  %v1200_v6 = vld [vmem:[%s1345_s22 + $0xc8] sm:$0xff]   ;;  %v1204_v10 = vld [vmem:[%s1345_s22 + $0xd0] sm:$0xff]   ;;  %v334_v38 = vunpack.c.l.s4 %v1299_v37  ;;  %p1084_p5 = scmp.ne.s32.totalorder %s1327_s13, 2 }
  0x17   : > { %v1197_v3 = vld [vmem:[%s1345_s22] sm:$0xff]   ;;  %1112 = vmatprep.subr.bf16.mxu1 %v1196_v2  ;;  %v1201_v7 = vld [vmem:[%s1345_s22 + $0x8] sm:$0xff]   ;;  %v1205_v11 = vld [vmem:[%s1345_s22 + $0x10] sm:$0xff]   ;;  %v337_v34 = vshrl.u32 %v336_v29, 7 }
  0x18   : > { %v1198_v4 = vld [vmem:[%s1345_s22 + $0x80] sm:$0xff]   ;;  %1091 = vmatpush3.bf16.msra.mxu0 %v1197_v3  ;;  %v1202_v8 = vld [vmem:[%s1345_s22 + $0x88] sm:$0xff]   ;;  %v1206_v12 = vld [vmem:[%s1345_s22 + $0x90] sm:$0xff]   ;;  %v335_v41 = vunpack.c.0.s8 %v334_v38 }
  0x19   : > { %1113 = vmatpush3.bf16.msra.mxu1 %v1198_v4  ;;  %1092 = vmatprep.subr.bf16.mxu0 %v1199_v5  ;;  %v1207_v13 = vld [vmem:[%s1345_s22 + $0x58] sm:$0xff]   ;;  %v1211_v17 = vld [vmem:[%s1345_s22 + $0x60] sm:$0xff]   ;;  %v1215_v21 = vld [vmem:[%s1345_s22 + $0x68] sm:$0xff]  }
  0x1a   : > { %1114 = vmatprep.subr.bf16.mxu1 %v1200_v6  ;;  %v1208_v14 = vld [vmem:[%s1345_s22 + $0xd8] sm:$0xff]   ;;  %v1212_v18 = vld [vmem:[%s1345_s22 + $0xe0] sm:$0xff]   ;;  %v1216_v22 = vld [vmem:[%s1345_s22 + $0xe8] sm:$0xff]   ;;  %v1387_v42 = vsub.s32 %v335_v41, %v337_v34 }
  0x1b   : > { %v1209_v15 = vld [vmem:[%s1345_s22 + $0x18] sm:$0xff]   ;;  %v1213_v19 = vld [vmem:[%s1345_s22 + $0x20] sm:$0xff]   ;;  %v1217_v23 = vld [vmem:[%s1345_s22 + $0x28] sm:$0xff]  }
  0x1c   : > { %1093 = vmatpush3.bf16.msra.mxu0 %v1201_v7  ;;  %v1210_v16 = vld [vmem:[%s1345_s22 + $0x98] sm:$0xff]   ;;  %v1214_v20 = vld [vmem:[%s1345_s22 + $0xa0] sm:$0xff]   ;;  %v1218_v24 = vld [vmem:[%s1345_s22 + $0xa8] sm:$0xff]  }
  0x1d   : > { %1115 = vmatpush3.bf16.msra.mxu1 %v1202_v8  ;;  %1094 = vmatprep.subr.bf16.mxu0 %v1203_v9  ;;  %v1219_v25 = vld [vmem:[%s1345_s22 + $0x70] sm:$0xff]   ;;  %v1223_v30 = vld [vmem:[%s1345_s22 + $0x78] sm:$0xff]   ;;  %v195_v35 = vld [vmem:[%s1340_s19] sm:$0xff] }
  0x1e   : > { %1116 = vmatprep.subr.bf16.mxu1 %v1204_v10  ;;  %v1220_v26 = vld [vmem:[%s1345_s22 + $0xf0] sm:$0xff]   ;;  %v1224_v31 = vld [vmem:[%s1345_s22 + $0xf8] sm:$0xff]   ;;  %v1228_v36 = vld [vmem:[%s1345_s22 + $0x140] sm:$0xff]   ;;  %v332_v40 = vcombine.high %v195_v35, %v195_v35  ;;  %v339_v43 = vrot.slane %v195_v35, %v1387_v42 }
  0x1f   : > { %v1221_v27 = vld [vmem:[%s1345_s22 + $0x30] sm:$0xff]   ;;  %v1225_v32 = vld [vmem:[%s1345_s22 + $0x38] sm:$0xff]   ;;  %v1229_v39 = vld [vmem:[%s1345_s22 + $0x1c0] sm:$0xff]  }
  0x20   : > { %1095 = vmatpush3.bf16.msra.mxu0 %v1205_v11  ;;  %v1222_v28 = vld [vmem:[%s1345_s22 + $0xb0] sm:$0xff]   ;;  %v1226_v33 = vld [vmem:[%s1345_s22 + $0xb8] sm:$0xff]   ;;  %v1391_v44 = vrot.slane %v332_v40, %v1387_v42  ;;  %v347_v45 = vcombine.high %v339_v43, %v339_v43  ;;  %v355_v46 = vrot.slane %v339_v43, %v1387_v42  ;;  %v1230_v49 = vld [vmem:[%s1345_s22 + $0x100] sm:$0xff]  }
  0x21   : > { %1117 = vmatpush3.bf16.msra.mxu1 %v1206_v12  ;;  %1096 = vmatprep.subr.bf16.mxu0 %v1207_v13  ;;  %v1232_v52 = vld [vmem:[%s1345_s22 + $0x148] sm:$0xff]   ;;  %v1231_v54 = vld [vmem:[%s1345_s22 + $0x180] sm:$0xff]   ;;  %v1236_v58 = vld [vmem:[%s1345_s22 + $0x150] sm:$0xff]  }
  0x22   : > { %1118 = vmatprep.subr.bf16.mxu1 %v1208_v14  ;;  %v348_v47 = vcombine.high %v1391_v44, %v1391_v44  ;;  %v369_v48 = vrot.slane %v347_v45, %v1387_v42  ;;  %v377_v51 = vcombine.high %v355_v46, %v355_v46  ;;  %v1233_v55 = vld [vmem:[%s1345_s22 + $0x1c8] sm:$0xff]   ;;  %v1237_v60 = vld [vmem:[%s1345_s22 + $0x1d0] sm:$0xff]   ;;  %v1240_v62 = vld [vmem:[%s1345_s22 + $0x158] sm:$0xff]  }
  0x23   : > { %v1234_v57 = vld [vmem:[%s1345_s22 + $0x108] sm:$0xff]   ;;  %v1238_v61 = vld [vmem:[%s1345_s22 + $0x110] sm:$0xff]   ;;  %v1241_v0 = vld [vmem:[%s1345_s22 + $0x1d8] sm:$0xff]  }
  0x24   : > { %1097 = vmatpush3.bf16.msra.mxu0 %v1209_v15  ;;  %v376_v50 = vrot.slane %v348_v47, %v1387_v42  ;;  %805 = vmatprep.mubr.bf16.mxu0 %v369_v48  ;;  %v379_v53 = vcombine.high %v369_v48, %v369_v48  ;;  %v1235_v59 = vld [vmem:[%s1345_s22 + $0x188] sm:$0xff]   ;;  %v1239_v63 = vld [vmem:[%s1345_s22 + $0x190] sm:$0xff]   ;;  %v1242_v1 = vld [vmem:[%s1345_s22 + $0x118] sm:$0xff]  }
  0x25   : > { %1119 = vmatpush3.bf16.msra.mxu1 %v1210_v16  ;;  %1098 = vmatprep.subr.bf16.mxu0 %v1211_v17  ;;  %v1244_v2 = vld [vmem:[%s1345_s22 + $0x160] sm:$0xff]   ;;  %v1243_v3 = vld [vmem:[%s1345_s22 + $0x198] sm:$0xff]   ;;  %v1248_v6 = vld [vmem:[%s1345_s22 + $0x168] sm:$0xff]  }
  0x26   : > { %1120 = vmatprep.subr.bf16.mxu1 %v1212_v18  ;;  %v380_v56 = vcombine.high %v376_v50, %v376_v50  ;;  %845 = vmatprep.mubr.bf16.mxu1 %v379_v53  ;;  %v1245_v4 = vld [vmem:[%s1345_s22 + $0x1e0] sm:$0xff]   ;;  %v1249_v8 = vld [vmem:[%s1345_s22 + $0x1e8] sm:$0xff]   ;;  %v1252_v10 = vld [vmem:[%s1345_s22 + $0x170] sm:$0xff]   ;;  %v362_v18 = vrot.slane %v1391_v44, %v1387_v42 }
  0x27   : > { %v1246_v5 = vld [vmem:[%s1345_s22 + $0x120] sm:$0xff]   ;;  %v1250_v9 = vld [vmem:[%s1345_s22 + $0x128] sm:$0xff]   ;;  %v1253_v12 = vld [vmem:[%s1345_s22 + $0x1f0] sm:$0xff]  }
  0x28   : > { %1099 = vmatpush3.bf16.msra.mxu0 %v1213_v19  ;;  %v1247_v7 = vld [vmem:[%s1345_s22 + $0x1a0] sm:$0xff]   ;;  %v1251_v11 = vld [vmem:[%s1345_s22 + $0x1a8] sm:$0xff]   ;;  %v1254_v13 = vld [vmem:[%s1345_s22 + $0x130] sm:$0xff]  }
  0x29   : > { %1121 = vmatpush3.bf16.msra.mxu1 %v1214_v20  ;;  %1100 = vmatprep.subr.bf16.mxu0 %v1215_v21  ;;  %v1256_v14 = vld [vmem:[%s1345_s22 + $0x178] sm:$0xff]   ;;  %v1255_v15 = vld [vmem:[%s1345_s22 + $0x1b0] sm:$0xff]   ;;  %v378_v20 = vcombine.high %v362_v18, %v362_v18  ;;  %v933_v44 = vld [vmem:[#allocation2] sm:$0x3] }
  0x2a   : > { %1122 = vmatprep.subr.bf16.mxu1 %v1216_v22  ;;  %v1257_v16 = vld [vmem:[%s1345_s22 + $0x1f8] sm:$0xff]   ;;  %v1019_v22 = vld [vmem:[%s187_s25] ss:$0 sm:$0xff] }
  0x2b   : > { %v1258_v17 = vld [vmem:[%s1345_s22 + $0x138] sm:$0xff]  }
  0x2c   : > { %1101 = vmatpush3.bf16.msra.mxu0 %v1217_v23  ;;  %v1259_v19 = vld [vmem:[%s1345_s22 + $0x1b8] sm:$0xff]  }
  0x2d   : > { %1123 = vmatpush3.bf16.msra.mxu1 %v1218_v24  ;;  %1102 = vmatprep.subr.bf16.mxu0 %v1219_v25 }
  0x2e   : > { %1124 = vmatprep.subr.bf16.mxu1 %v1220_v26 }
  0x30   : > { %1103 = vmatpush3.bf16.msra.mxu0 %v1221_v27 }
  0x31   : > { %1125 = vmatpush3.bf16.msra.mxu1 %v1222_v28  ;;  %1104 = vmatprep.subr.bf16.mxu0 %v1223_v30 }
  0x32   : > { %1126 = vmatprep.subr.bf16.mxu1 %v1224_v31 }
  0x34   : > { %1105 = vmatpush3.bf16.msra.mxu0 %v1225_v32 }
  0x35   : > { %1127 = vmatpush3.bf16.msra.mxu1 %v1226_v33  ;;  %1134 = vmatprep.subr.bf16.mxu0 %v1228_v36 }
  0x36   : > { %1156 = vmatprep.subr.bf16.mxu1 %v1229_v39 }
  0x37   : > { %806 = vmatmul.mubr.bf16.vlgmr.msra.gmra.mrb[0].mxu0 %v355_v46 }
  0x38   : > { %1135 = vmatpush3.bf16.msra.mxu0 %v1230_v49  ;;  %846 = vmatmul.mubr.bf16.vlgmr.msra.gmra.mrb[0].mxu1 %v377_v51 }
  0x39   : > { %1136 = vmatprep.subr.bf16.mxu0 %v1232_v52  ;;  %1157 = vmatpush3.bf16.msra.mxu1 %v1231_v54 }
  0x3a   : > { %885 = vmatprep.mubr.bf16.mxu0 %v376_v50  ;;  %1158 = vmatprep.subr.bf16.mxu1 %v1233_v55 }
  0x3b   : > { %925 = vmatprep.mubr.bf16.mxu1 %v380_v56 }
  0x3c   : > { %1137 = vmatpush3.bf16.msra.mxu0 %v1234_v57 }
  0x3d   : > { %1138 = vmatprep.subr.bf16.mxu0 %v1236_v58  ;;  %1159 = vmatpush3.bf16.msra.mxu1 %v1235_v59 }
  0x3e   : > { %1160 = vmatprep.subr.bf16.mxu1 %v1237_v60 }
  0x40   : > { %1139 = vmatpush3.bf16.msra.mxu0 %v1238_v61 }
  0x41   : > { %1140 = vmatprep.subr.bf16.mxu0 %v1240_v62  ;;  %1161 = vmatpush3.bf16.msra.mxu1 %v1239_v63 }
  0x42   : > { %1162 = vmatprep.subr.bf16.mxu1 %v1241_v0 }
  0x44   : > { %1141 = vmatpush3.bf16.msra.mxu0 %v1242_v1 }
  0x45   : > { %1142 = vmatprep.subr.bf16.mxu0 %v1244_v2  ;;  %1163 = vmatpush3.bf16.msra.mxu1 %v1243_v3 }
  0x46   : > { %1164 = vmatprep.subr.bf16.mxu1 %v1245_v4 }
  0x48   : > { %1143 = vmatpush3.bf16.msra.mxu0 %v1246_v5 }
  0x49   : > { %1144 = vmatprep.subr.bf16.mxu0 %v1248_v6  ;;  %1165 = vmatpush3.bf16.msra.mxu1 %v1247_v7 }
  0x4a   : > { %1166 = vmatprep.subr.bf16.mxu1 %v1249_v8 }
  0x4c   : > { %1145 = vmatpush3.bf16.msra.mxu0 %v1250_v9 }
  0x4d   : > { %1146 = vmatprep.subr.bf16.mxu0 %v1252_v10  ;;  %1167 = vmatpush3.bf16.msra.mxu1 %v1251_v11 }
  0x4e   : > { %1168 = vmatprep.subr.bf16.mxu1 %v1253_v12 }
  0x50   : > { %1147 = vmatpush3.bf16.msra.mxu0 %v1254_v13 }
  0x51   : > { %1148 = vmatprep.subr.bf16.mxu0 %v1256_v14  ;;  %1169 = vmatpush3.bf16.msra.mxu1 %v1255_v15 }
  0x52   : > { %1170 = vmatprep.subr.bf16.mxu1 %v1257_v16 }
  0x54   : > { %1149 = vmatpush3.bf16.msra.mxu0 %v1258_v17 }
  0x55   : > { %1171 = vmatpush3.bf16.msra.mxu1 %v1259_v19 }
  0x57   : > { %886 = vmatmul.mubr.bf16.vlgmr.msra.gmra.mrb[4].mxu0 %v362_v18 }
  0x58   : > { %926 = vmatmul.mubr.bf16.vlgmr.msra.gmra.mrb[4].mxu1 %v378_v20 }
 0x10a   : > { %v1106_v21 = vpop.f32.mrb[0].mxu0 }
 0x10b   : > { %v1107_v23 = vpop.f32.mrb[1].mxu0  ;;  %v1128_v24 = vpop.f32.mrb[0].mxu1 }
 0x10c   : > { %v1108_v25 = vadd.f32 %v1107_v23, %v1106_v21  ;;  %v1109_v26 = vpop.f32.mrb[2].mxu0  ;;  %v1129_v27 = vpop.f32.mrb[1].mxu1 }
 0x10d   : > { %v1110_v28 = vpop.f32.mrb[3].mxu0  ;;  %v1130_v30 = vadd.f32 %v1129_v27, %v1128_v24  ;;  %v1131_v31 = vpop.f32.mrb[2].mxu1 }
 0x10e   : > { %v808_v29 = vadd.f32 %v1108_v25, %v1019_v22  ;;  %v1132_v32 = vpop.f32.mrb[3].mxu1 }
 0x110   : > { %v848_v33 = vadd.f32 %v1130_v30, %v808_v29 }
 0x12a   : > { %v1150_v34 = vpop.f32.mrb[4].mxu0 }
 0x12b   : > { %v1151_v35 = vpop.f32.mrb[5].mxu0  ;;  %v1172_v36 = vpop.f32.mrb[4].mxu1 }
 0x12c   : > { %v1152_v37 = vadd.f32 %v1151_v35, %v1150_v34  ;;  %v1153_v38 = vpop.f32.mrb[6].mxu0  ;;  %v1173_v39 = vpop.f32.mrb[5].mxu1 }
 0x12d   : > { %v1154_v40 = vpop.f32.mrb[7].mxu0  ;;  %v1174_v42 = vadd.f32 %v1173_v39, %v1172_v36  ;;  %v1175_v43 = vpop.f32.mrb[6].mxu1 }
 0x12e   : > { %v888_v41 = vadd.f32 %v1152_v37, %v848_v33  ;;  %v1176_v45 = vpop.f32.mrb[7].mxu1  ;;  %940 = sbr.rel (%p1084_p5) target bundleno = 319 (0x13f), region = 40 }
 0x130   : > { %v928_v46 = vadd.f32 %v1174_v42, %v888_v41 }
 0x132   : > { %v934_v47 = vadd.f32 %v933_v44, %v928_v46 }
 0x134   : > { %936 = vst.msk [vmem:[#allocation2] sm:$0x3] %vm935_vm1, %v934_v47 }
 0x13b   : > { %v941_v48 = vld [vmem:[#allocation2] sm:$0x3] }
 0x13c   : > { %v942_v49 = vmul.f32 0.33333334, %v941_v48 }
 0x13e   : > { %943 = vst.msk [vmem:[#allocation2] sm:$0x3] %vm935_vm1, %v942_v49 }
 0x13f PF: > { %p1182_p6 = scmp.eq.s32.totalorder %s1327_s13, 2  ;;  %s1300_s28 = smov [#allocation2]  }
 0x140   : > { %s951_s29 = sshll.u32 %s1300_s28, 4  ;;  %s952_s29 = int_to_ptr.vmem [resolvable:$true] %s951_s29 }
 0x141   : > { %s1260_s30 = scalar_lea.vmem %s952_s29, 32  ;;  %p1267_p10 = scmp.lt.s32.totalorder %s952_s29, %s952_s29 }
 0x142   : > { %p1261_p7 = scmp.ne.s32.totalorder %s952_s29, %s1260_s30  ;;  %p1268_p11 = scmp.lt.s32.totalorder %s1260_s30, %s1260_s30 }
 0x144   : > { %p1262_p8 = pnand %p1261_p7, %p1182_p6  ;;  %p1269_p12 = por %p1268_p11, %p1267_p10 }
 0x146   : > { %p1263_p9 = pneg %p1262_p8 }
 0x148   : > { %p1270_p13 = pnand %p1269_p12, %p1263_p9 }
 0x14a   : > { %1273 = shalt.err (!%p1270_p13)
}
 0x14b   : > { %s1274_s6 = scalar_lea.hbm %s1465_s3, 32 }
 0x14c   : > { %p1275_p0 = scmp.ne.s32.totalorder %s1465_s3, %s1274_s6  ;;  %p1280_p3 = scmp.lt.u32.totalorder %s1274_s6, %s1465_s3 }
 0x14e   : > { %p1276_p1 = pnand %p1275_p0, %p1182_p6 }
 0x150   : > { %p1277_p2 = pneg %p1276_p1 }
 0x152   : > { %p1282_p4 = pnand %p1280_p3, %p1277_p2 }
 0x154   : > { %1285 = shalt.err (!%p1282_p4)
}
 0x155   : > { %1179 = dma.vmem_to_hbm [thread:$0]  (%p1182_p6), %s952_s29, 32, %s1465_s3, [#allocation3]  }
 0x156   : > { %1291 = dma.done.wait (%p1182_p6), [#allocation3], 32  }
 0x157   : > { %1293 = vsyncadd (%p1182_p6), [#allocation3], 4294967264 }
 0x158 PF: > { %s14_s12 = sadd.s32 1, %s1296_s12  }
 0x159   : > { %p11_p5 = scmp.ge.s32.totalorder %s14_s12, 5  }
 0x15b   :  { %13 = sbr.rel (!%p11_p5) target bundleno = 1 (0x1), region = 73 }
 0x162   :  { %964 = vsyncpa [#allocation3], 1 }
 0x163   :  { %966 = vsyncpa [#allocation3 + $0x1], 1 }

</bundles_post_ra>
